<compile_context>
chip_gen: v6e
topology: v6e:2x2x1
jax: 0.10.0
libtpu: 0.0.40
codegen_flags: <defaults>
</compile_context>

<pallas_src>
import functools
import math

import jax
import jax.numpy as jnp
from jax.experimental import pallas as pl
from jax.experimental.pallas import tpu as pltpu


def round_up(x, m):
    return (x + m - 1) // m * m


def cdiv(a, b):
    return -(-a // b)


# ------------------------------------------------------------------
# Pallas kernels
# ------------------------------------------------------------------

def mm_bias_kernel(x_ref, w_ref, b_ref, o_ref, *, relu):
    acc = jnp.dot(x_ref[...], w_ref[...], preferred_element_type=jnp.float32)
    acc = acc + b_ref[...]
    if relu:
        acc = jnp.maximum(acc, 0.0)
    o_ref[...] = acc.astype(o_ref.dtype)


def pool_lrn_kernel(t0_ref, t1_ref, t2_ref, band_ref, o_ref, *, alpha, beta, k, size):
    # t*_ref: (1, Wo, C) -- the three H-direction window taps (selected via BlockSpec).
    m = jnp.maximum(jnp.maximum(t0_ref[0], t1_ref[0]), t2_ref[0])       # (Wo, C) pooled
    mf = m.astype(jnp.float32)
    # CrossMapLRN2d: out = x * (k + alpha/size * sum_{|dc|<=2} x^2)^(-beta)
    # channel-window sum as a banded matmul (band is 0/1 -> exact in bf16).
    sq = (mf * mf).astype(jnp.bfloat16)
    s = jnp.dot(sq, band_ref[...], preferred_element_type=jnp.float32)   # (Wo, C)
    denom = k + (alpha / size) * s
    out = mf * jnp.exp(-beta * jnp.log(denom))
    o_ref[...] = out.astype(o_ref.dtype)[None, None]


def conv34_kernel(p_ref, w3_ref, b3_ref, w4_ref, b4_ref, o_ref):
    # conv3 (3x3, via im2col patches) fused with the 1x1 conv4; ReLU after each.
    h = jnp.dot(p_ref[...], w3_ref[...], preferred_element_type=jnp.float32) + b3_ref[...]
    h = jnp.maximum(h, 0.0)
    y = jnp.dot(h.astype(jnp.bfloat16), w4_ref[...],
                preferred_element_type=jnp.float32) + b4_ref[...]
    o_ref[...] = jnp.maximum(y, 0.0).astype(o_ref.dtype)


def fc_tail_kernel(x_ref, w1_ref, b1_ref, w2_ref, b2_ref, w3_ref, b3_ref, o_ref):
    # Linear(1280,128) -> ReLU -> Linear(128,64) -> Dropout -> ReLU -> Linear(64,2)
    # TODO(synk): Dropout(0.5) is identity here (inference); add PRNG masking for training.
    h = jnp.dot(x_ref[...], w1_ref[...], preferred_element_type=jnp.float32) + b1_ref[...]
    h = jnp.maximum(h, 0.0)
    h = jnp.dot(h.astype(jnp.bfloat16), w2_ref[...],
                preferred_element_type=jnp.float32) + b2_ref[...]
    h = jnp.maximum(h, 0.0)
    o_ref[...] = jnp.dot(h.astype(jnp.bfloat16), w3_ref[...],
                         preferred_element_type=jnp.float32) + b3_ref[...]


# ------------------------------------------------------------------
# Wrappers / host glue (weights arrive prepacked: transposed, padded, bf16)
# ------------------------------------------------------------------

def pallas_matmul_bias(x, w, b, *, relu, out_dtype, m_split=512, min_m_blocks=2):
    """(relu)(x @ w + b).  x: (M,K) bf16; w: (Kp,Np) prepacked bf16; b: (1,Np) f32."""
    M, K = x.shape
    Kp, Np = w.shape
    nm = max(min_m_blocks, cdiv(M, m_split))        # >=2 M blocks (v7x second TC)
    tm = round_up(cdiv(M, nm), 8)
    nm = cdiv(M, tm)
    Mp = tm * nm
    tn = min(Np, 512)
    assert Np % tn == 0
    xp = jnp.pad(x.astype(jnp.bfloat16), ((0, Mp - M), (0, Kp - K)))
    out = pl.pallas_call(
        functools.partial(mm_bias_kernel, relu=relu),
        out_shape=jax.ShapeDtypeStruct((Mp, Np), out_dtype),
        grid=(nm, Np // tn),
        in_specs=[
            pl.BlockSpec((tm, Kp), lambda i, j: (i, 0)),
            pl.BlockSpec((Kp, tn), lambda i, j: (0, j)),
            pl.BlockSpec((1, tn), lambda i, j: (0, j)),
        ],
        out_specs=pl.BlockSpec((tm, tn), lambda i, j: (i, j)),
        compiler_params=pltpu.CompilerParams(
            dimension_semantics=("parallel", "parallel")),
    )(xp, w, b)
    return out


def im2col_nhwc(x, kh, kw, stride, pad):
    """NHWC -> (N*Ho*Wo, C*kh*kw); K ordered (C, kh, kw) to match torch weight layout."""
    if pad:
        x = jnp.pad(x, ((0, 0), (pad, pad), (pad, pad), (0, 0)))
    N, H, W, C = x.shape
    Ho = (H - kh) // stride + 1
    Wo = (W - kw) // stride + 1
    cols = []
    for i in range(kh):
        for j in range(kw):
            cols.append(x[:, i:i + stride * (Ho - 1) + 1:stride,
                           j:j + stride * (Wo - 1) + 1:stride, :])
    p = jnp.stack(cols, axis=-1)                     # (N, Ho, Wo, C, kh*kw)
    return p.reshape(N * Ho * Wo, C * kh * kw), Ho, Wo


def _tap_spec(dh, H, Wo, C):
    # stride-2 H-window tap: block index on dim0 is an element row (block size 1).
    return pl.BlockSpec((1, Wo, C), lambda n, ho: (n * H + 2 * ho + dh, 0, 0))


def maxpool_lrn(y, band, *, size=5, alpha=1e-4, beta=0.75, k=1.0):
    """Fused MaxPool2d(3, stride=2) + CrossMapLRN2d(5, 1e-4, 0.75, 1.0).

    y: (N, H, W, C) bf16 (C may carry zero-padded channels - harmless to max / LRN).
    W-direction 3-tap max is one fused XLA maximum of strided slices; the H-direction
    3-tap max + LRN run inside the kernel, with the stride-2 row addressing done by the
    three tap BlockSpecs (no (3,M,C) host stack).
    """
    N, H, W, C = y.shape
    Ho = (H - 3) // 2 + 1
    Wo = (W - 3) // 2 + 1
    xw = jnp.maximum(jnp.maximum(y[:, :, 0:2 * Wo - 1:2, :],
                                 y[:, :, 1:2 * Wo:2, :]),
                     y[:, :, 2:2 * Wo + 1:2, :])              # (N, H, Wo, C)
    xw = xw.reshape(N * H, Wo, C)
    out = pl.pallas_call(
        functools.partial(pool_lrn_kernel, alpha=alpha, beta=beta, k=k, size=size),
        out_shape=jax.ShapeDtypeStruct((N, Ho, Wo, C), jnp.bfloat16),
        grid=(N, Ho),
        in_specs=[_tap_spec(0, H, Wo, C),
                  _tap_spec(1, H, Wo, C),
                  _tap_spec(2, H, Wo, C),
                  pl.BlockSpec((C, C), lambda n, ho: (0, 0))],
        out_specs=pl.BlockSpec((1, 1, Wo, C), lambda n, ho: (n, ho, 0, 0)),
        compiler_params=pltpu.CompilerParams(
            dimension_semantics=("parallel", "parallel")),
    )(xw, xw, xw, band)
    return out


def conv3_conv4(p, dp, m_split=256):
    """conv3 (3x3, pad 1) + ReLU + conv4 (1x1) + ReLU fused; p: (M, 2304) bf16 patches."""
    M, K = p.shape
    nm = max(1, cdiv(M, m_split))
    tm = round_up(cdiv(M, nm), 8)
    nm = cdiv(M, tm)
    Mp = tm * nm
    pp = jnp.pad(p.astype(jnp.bfloat16), ((0, Mp - M), (0, 0)))
    out = pl.pallas_call(
        conv34_kernel,
        out_shape=jax.ShapeDtypeStruct((Mp, 128), jnp.bfloat16),
        grid=(nm,),
        in_specs=[pl.BlockSpec((tm, K), lambda i: (i, 0)),
                  pl.BlockSpec((K, 384), lambda i: (0, 0)),
                  pl.BlockSpec((1, 384), lambda i: (0, 0)),
                  pl.BlockSpec((384, 128), lambda i: (0, 0)),
                  pl.BlockSpec((1, 128), lambda i: (0, 0))],
        out_specs=pl.BlockSpec((tm, 128), lambda i: (i, 0)),
        compiler_params=pltpu.CompilerParams(dimension_semantics=("parallel",)),
    )(pp, dp['conv3_w'], dp['conv3_b'], dp['conv4_w'], dp['conv4_b'])
    return out


def eye_patch_fc(x, dp):
    """eyePatchFc: three Linears (+ReLU; Dropout=identity at inference) in one kernel."""
    M, K = x.shape                    # K = 2*10*128 = 2560 (padded-channel NHWC flatten)
    Mp = round_up(M, 8)
    xp = jnp.pad(x.astype(jnp.bfloat16), ((0, Mp - M), (0, 0)))
    out = pl.pallas_call(
        fc_tail_kernel,
        out_shape=jax.ShapeDtypeStruct((Mp, 128), jnp.float32),
    )(xp, dp['fc1_w'], dp['fc1_b'], dp['fc2_w'], dp['fc2_b'], dp['fc3_w'], dp['fc3_b'])
    return out[:M, :2]


# ------------------------------------------------------------------
# One-time weight prepacking (OUTSIDE the jitted forward)
# ------------------------------------------------------------------

def prepack_params(P):
    def pad2(a, r, c):
        return jnp.pad(a, ((0, r - a.shape[0]), (0, c - a.shape[1])))

    dp = {}
    # conv1: (96, 6, 11, 11) -> (726, 96) -> pad (768, 128) bf16
    w, b = P['conv1']
    dp['conv1_w'] = pad2(w.reshape(96, -1).T, round_up(726, 128), 128).astype(jnp.bfloat16)
    dp['conv1_b'] = jnp.pad(b.astype(jnp.float32), (0, 32)).reshape(1, 128)

    # conv2 (groups=2): block-diagonal (2400, 256) -> pad (2432, 256) bf16
    w, b = P['conv2']                                   # (256, 48, 5, 5)
    kg = 48 * 25
    w0 = w[:128].reshape(128, kg).T                     # (1200, 128) group 0
    w1 = w[128:].reshape(128, kg).T                     # (1200, 128) group 1
    z = jnp.zeros((kg, 128), w.dtype)
    wbd = jnp.concatenate([jnp.concatenate([w0, z], axis=1),
                           jnp.concatenate([z, w1], axis=1)], axis=0)       # (2400, 256)
    dp['conv2_w'] = pad2(wbd, round_up(2 * kg, 128), 256).astype(jnp.bfloat16)
    dp['conv2_b'] = b.astype(jnp.float32).reshape(1, 256)

    # conv3: (384, 256, 3, 3) -> (2304, 384) bf16 (already 128-aligned)
    w3, b3 = P['conv3']
    dp['conv3_w'] = w3.reshape(384, -1).T.astype(jnp.bfloat16)
    dp['conv3_b'] = b3.astype(jnp.float32).reshape(1, 384)
    # conv4: (64, 384, 1, 1) -> (384, 64) -> pad (384, 128) bf16
    w4, b4 = P['conv4']
    dp['conv4_w'] = pad2(w4.reshape(64, 384).T, 384, 128).astype(jnp.bfloat16)
    dp['conv4_b'] = jnp.pad(b4.astype(jnp.float32), (0, 64)).reshape(1, 128)

    # fc1: fold torch's NCHW flatten into the weight so the activation is consumed in its
    # padded NHWC layout (index h*1280 + w*128 + c_pad), no transpose / channel slice.
    w1_, b1_ = P['fc1']                                 # (128, 1280) over (c, h, w)
    w1r = w1_.reshape(128, 64, 2, 10).transpose(0, 2, 3, 1)     # (128, 2, 10, 64)
    w1r = jnp.pad(w1r, ((0, 0), (0, 0), (0, 0), (0, 64)))       # (128, 2, 10, 128)
    dp['fc1_w'] = w1r.reshape(128, 2560).T.astype(jnp.bfloat16)  # (2560, 128)
    dp['fc1_b'] = b1_.astype(jnp.float32).reshape(1, 128)
    w2_, b2_ = P['fc2']                                 # (64, 128)
    dp['fc2_w'] = pad2(w2_.T, 128, 128).astype(jnp.bfloat16)
    dp['fc2_b'] = jnp.pad(b2_.astype(jnp.float32), (0, 64)).reshape(1, 128)
    w3_, b3_ = P['fc3']                                 # (2, 64)
    dp['fc3_w'] = pad2(w3_.T, 128, 128).astype(jnp.bfloat16)
    dp['fc3_b'] = jnp.pad(b3_.astype(jnp.float32), (0, 126)).reshape(1, 128)

    # CrossMapLRN band matrices (width-5 0/1 band; exact in bf16).
    def band(C):
        i = jnp.arange(C)
        return (jnp.abs(i[:, None] - i[None, :]) <= 2).astype(jnp.bfloat16)
    dp['band128'] = band(128)
    dp['band256'] = band(256)
    return dp


# ------------------------------------------------------------------
# Model
# ------------------------------------------------------------------

def init_params(key):
    ks = jax.random.split(key, 16)
    it = iter(ks)

    def conv(cout, cin, kh, kw):
        fan = cin * kh * kw
        w = jax.random.normal(next(it), (cout, cin, kh, kw), jnp.float32) / math.sqrt(fan)
        b = 0.01 * jax.random.normal(next(it), (cout,), jnp.float32)
        return w, b

    def lin(cout, cin):
        w = jax.random.normal(next(it), (cout, cin), jnp.float32) / math.sqrt(cin)
        b = 0.01 * jax.random.normal(next(it), (cout,), jnp.float32)
        return w, b

    return {
        'conv1': conv(96, 6, 11, 11),
        'conv2': conv(256, 48, 5, 5),      # groups=2
        'conv3': conv(384, 256, 3, 3),
        'conv4': conv(64, 384, 1, 1),
        'fc1': lin(128, 10 * 2 * 64),
        'fc2': lin(64, 128),
        'fc3': lin(2, 64),
    }


def eye_patch_model_forward(dp, faces, eyes_left, eyes_right):
    # EyePatchModel.forward only consumes `faces` (6-channel); eyesLeft / eyesRight are
    # arguments of the reference forward but never used by it.
    del eyes_left, eyes_right
    N = faces.shape[0]
    x = jnp.transpose(faces, (0, 2, 3, 1)).astype(jnp.bfloat16)       # NCHW -> NHWC bf16

    # conv1 (11x11, stride 4) + ReLU; output kept in its lane-dense 128-padded channels.
    p, Ho, Wo = im2col_nhwc(x, 11, 11, 4, 0)                          # (N*13*43, 726)
    y = pallas_matmul_bias(p, dp['conv1_w'], dp['conv1_b'], relu=True,
                           out_dtype=jnp.bfloat16)
    y = y[:N * Ho * Wo].reshape(N, Ho, Wo, 128)

    # maxpool(3,2) + LRN(5)
    y = maxpool_lrn(y, dp['band128'])                                 # (N, 6, 21, 128)

    # conv2 (5x5, pad 2, groups=2) + ReLU via the block-diagonal weight (one launch).
    p, Ho, Wo = im2col_nhwc(y[..., :96], 5, 5, 1, 2)                  # (N*6*21, 2400)
    y = pallas_matmul_bias(p, dp['conv2_w'], dp['conv2_b'], relu=True,
                           out_dtype=jnp.bfloat16)
    y = y[:N * Ho * Wo].reshape(N, Ho, Wo, 256)

    # maxpool(3,2) + LRN(5)
    y = maxpool_lrn(y, dp['band256'])                                 # (N, 2, 10, 256)

    # conv3 (3x3, pad 1) + ReLU + conv4 (1x1) + ReLU fused.
    p, Ho, Wo = im2col_nhwc(y, 3, 3, 1, 1)                            # (N*2*10, 2304)
    y = conv3_conv4(p, dp)                                            # (Mp, 128) bf16
    feat = y[:N * Ho * Wo].reshape(N, Ho * Wo * 128)                  # padded NHWC flatten

    # eyePatchFc tail (flatten permutation folded into fc1 weight).
    return eye_patch_fc(feat, dp)                                     # (N, 2) f32


if __name__ == "__main__":
    key = jax.random.PRNGKey(0)
    kp, kf, kl, kr = jax.random.split(key, 4)
    P = init_params(kp)
    dp = prepack_params(P)       # one-time prepack, outside the jitted forward

    B = 2
    # Spatial size 60x180 is what the hard-coded Linear(10*2*64, ...) implies
    # (conv/pool chain: 60x180 -> 13x43 -> 6x21 -> 6x21 -> 2x10 -> 2x10 -> 2x10).
    faces = jax.random.normal(kf, (B, 6, 60, 180), jnp.float32)
    eyes_left = jax.random.normal(kl, (B, 3, 60, 36), jnp.float32)    # unused by forward
    eyes_right = jax.random.normal(kr, (B, 3, 60, 36), jnp.float32)   # unused by forward

    fwd = jax.jit(eye_patch_model_forward)
    out = jax.block_until_ready(fwd(dp, faces, eyes_left, eyes_right))
    assert out.shape == (B, 2) and out.dtype == jnp.float32
    assert bool(jnp.all(jnp.isfinite(out)))
    print("KERNEL_OK")
</pallas_src>

<mosaic_0001>
module attributes {stable_mosaic.version = 11 : i64} {
  func.func @mm_bias_kernel(%arg0: i32, %arg1: i32, %arg2: memref<376x768xbf16, #tpu.memory_space<vmem>>, %arg3: memref<768x128xbf16, #tpu.memory_space<vmem>>, %arg4: memref<1x128xf32, #tpu.memory_space<vmem>>, %arg5: memref<376x128xbf16, #tpu.memory_space<vmem>>) attributes {dimension_semantics = [#tpu.dimension_semantics<parallel>, #tpu.dimension_semantics<parallel>], iteration_bounds = array<i64: 3, 1>, scalar_prefetch = 0 : i64, scratch_operands = 0 : i64, tpu.core_type = #tpu.core_type<tc>, window_params = [{transform_indices = @transform_0, window_bounds = array<i64: 376, 768>}, {transform_indices = @transform_1, window_bounds = array<i64: 768, 128>}, {transform_indices = @transform_2, window_bounds = array<i64: 1, 128>}, {transform_indices = @transform_3, window_bounds = array<i64: 376, 128>}]} {
    %c0 = arith.constant 0 : index
    %c0_0 = arith.constant 0 : index
    %0 = vector.load %arg2[%c0, %c0_0] : memref<376x768xbf16, #tpu.memory_space<vmem>>, vector<376x768xbf16>
    %c0_1 = arith.constant 0 : index
    %c0_2 = arith.constant 0 : index
    %1 = vector.load %arg3[%c0_1, %c0_2] : memref<768x128xbf16, #tpu.memory_space<vmem>>, vector<768x128xbf16>
    %cst = arith.constant dense<0.000000e+00> : vector<376x128xf32>
    %2 = tpu.matmul %0, %1, %cst {dimension_numbers = #tpu.dot_dimension_numbers<[1], [0], [0], [1], [0, 0, 1, 1], [], []>} : vector<376x768xbf16>, vector<768x128xbf16>, vector<376x128xf32> -> vector<376x128xf32>
    %c0_3 = arith.constant 0 : index
    %c0_4 = arith.constant 0 : index
    %3 = vector.load %arg4[%c0_3, %c0_4] : memref<1x128xf32, #tpu.memory_space<vmem>>, vector<1x128xf32>
    %4 = vector.broadcast %3 : vector<1x128xf32> to vector<376x128xf32>
    %5 = arith.addf %2, %4 : vector<376x128xf32>
    %cst_5 = arith.constant 0.000000e+00 : f32
    %6 = vector.broadcast %cst_5 : f32 to vector<376x128xf32>
    %7 = arith.maximumf %5, %6 : vector<376x128xf32>
    %8 = arith.truncf %7 : vector<376x128xf32> to vector<376x128xbf16>
    %c0_6 = arith.constant 0 : index
    %c0_7 = arith.constant 0 : index
    %9 = vector.load %arg5[%c0_6, %c0_7] : memref<376x128xbf16, #tpu.memory_space<vmem>>, vector<376x128xbf16>
    tpu.vector_store %arg5[%c0_6, %c0_7], %8 {strides = array<i32>} : memref<376x128xbf16, #tpu.memory_space<vmem>>, vector<376x128xbf16>,
    return
  }
  func.func @transform_0(%arg0: i32, %arg1: i32) -> (i32, i32) {
    %c0_i32 = arith.constant 0 : i32
    %c0_i32_0 = arith.constant 0 : i32
    return %arg0, %c0_i32 : i32, i32
  }
  func.func @transform_1(%arg0: i32, %arg1: i32) -> (i32, i32) {
    %c0_i32 = arith.constant 0 : i32
    %c0_i32_0 = arith.constant 0 : i32
    return %c0_i32, %arg1 : i32, i32
  }
  func.func @transform_2(%arg0: i32, %arg1: i32) -> (i32, i32) {
    %c0_i32 = arith.constant 0 : i32
    %c0_i32_0 = arith.constant 0 : i32
    return %c0_i32, %arg1 : i32, i32
  }
  func.func @transform_3(%arg0: i32, %arg1: i32) -> (i32, i32) {
    %c0_i32 = arith.constant 0 : i32
    return %arg0, %arg1 : i32, i32
  }
}

module attributes {stable_mosaic.version = 11 : i64} {
  func.func @pool_lrn_kernel(%arg0: i32, %arg1: i32, %arg2: memref<1x21x128xbf16, #tpu.memory_space<vmem>>, %arg3: memref<1x21x128xbf16, #tpu.memory_space<vmem>>, %arg4: memref<1x21x128xbf16, #tpu.memory_space<vmem>>, %arg5: memref<128x128xbf16, #tpu.memory_space<vmem>>, %arg6: memref<1x1x21x128xbf16, #tpu.memory_space<vmem>>) attributes {dimension_semantics = [#tpu.dimension_semantics<parallel>, #tpu.dimension_semantics<parallel>], iteration_bounds = array<i64: 2, 6>, scalar_prefetch = 0 : i64, scratch_operands = 0 : i64, tpu.core_type = #tpu.core_type<tc>, window_params = [{transform_indices = @transform_0, window_bounds = array<i64: 1, 21, 128>}, {transform_indices = @transform_1, window_bounds = array<i64: 1, 21, 128>}, {transform_indices = @transform_2, window_bounds = array<i64: 1, 21, 128>}, {pipeline_mode = #tpu.pipeline_mode<synchronous>, transform_indices = @transform_3, window_bounds = array<i64: 128, 128>}, {transform_indices = @transform_4, window_bounds = array<i64: 1, 1, 21, 128>}]} {
    %c0 = arith.constant 0 : index
    %c0_0 = arith.constant 0 : index
    %c0_1 = arith.constant 0 : index
    %0 = vector.load %arg2[%c0, %c0_0, %c0_1] : memref<1x21x128xbf16, #tpu.memory_space<vmem>>, vector<1x21x128xbf16>
    %1 = vector.shape_cast %0 : vector<1x21x128xbf16> to vector<21x128xbf16>
    %c0_2 = arith.constant 0 : index
    %c0_3 = arith.constant 0 : index
    %c0_4 = arith.constant 0 : index
    %2 = vector.load %arg3[%c0_2, %c0_3, %c0_4] : memref<1x21x128xbf16, #tpu.memory_space<vmem>>, vector<1x21x128xbf16>
    %3 = vector.shape_cast %2 : vector<1x21x128xbf16> to vector<21x128xbf16>
    %4 = arith.maximumf %1, %3 : vector<21x128xbf16>
    %c0_5 = arith.constant 0 : index
    %c0_6 = arith.constant 0 : index
    %c0_7 = arith.constant 0 : index
    %5 = vector.load %arg4[%c0_5, %c0_6, %c0_7] : memref<1x21x128xbf16, #tpu.memory_space<vmem>>, vector<1x21x128xbf16>
    %6 = vector.shape_cast %5 : vector<1x21x128xbf16> to vector<21x128xbf16>
    %7 = arith.maximumf %4, %6 : vector<21x128xbf16>
    %8 = arith.extf %7 : vector<21x128xbf16> to vector<21x128xf32>
    %9 = arith.mulf %8, %8 : vector<21x128xf32>
    %10 = arith.truncf %9 : vector<21x128xf32> to vector<21x128xbf16>
    %c0_8 = arith.constant 0 : index
    %c0_9 = arith.constant 0 : index
    %11 = vector.load %arg5[%c0_8, %c0_9] : memref<128x128xbf16, #tpu.memory_space<vmem>>, vector<128x128xbf16>
    %cst = arith.constant dense<0.000000e+00> : vector<21x128xf32>
    %12 = tpu.matmul %10, %11, %cst {dimension_numbers = #tpu.dot_dimension_numbers<[1], [0], [0], [1], [0, 0, 1, 1], [], []>} : vector<21x128xbf16>, vector<128x128xbf16>, vector<21x128xf32> -> vector<21x128xf32>
    %cst_10 = arith.constant 2.000000e-05 : f32
    %13 = vector.broadcast %cst_10 : f32 to vector<21x128xf32>
    %14 = arith.mulf %13, %12 : vector<21x128xf32>
    %cst_11 = arith.constant 1.000000e+00 : f32
    %15 = vector.broadcast %cst_11 : f32 to vector<21x128xf32>
    %16 = arith.addf %15, %14 : vector<21x128xf32>
    %17 = math.log %16 : vector<21x128xf32>
    %cst_12 = arith.constant -7.500000e-01 : f32
    %18 = vector.broadcast %cst_12 : f32 to vector<21x128xf32>
    %19 = arith.mulf %18, %17 : vector<21x128xf32>
    %20 = math.exp %19 : vector<21x128xf32>
    %21 = arith.mulf %8, %20 : vector<21x128xf32>
    %22 = arith.truncf %21 : vector<21x128xf32> to vector<21x128xbf16>
    %23 = vector.shape_cast %22 : vector<21x128xbf16> to vector<1x1x21x128xbf16>
    %c0_13 = arith.constant 0 : index
    %c0_14 = arith.constant 0 : index
    %c0_15 = arith.constant 0 : index
    %c0_16 = arith.constant 0 : index
    %24 = vector.load %arg6[%c0_13, %c0_14, %c0_15, %c0_16] : memref<1x1x21x128xbf16, #tpu.memory_space<vmem>>, vector<1x1x21x128xbf16>
    tpu.vector_store %arg6[%c0_13, %c0_14, %c0_15, %c0_16], %23 {strides = array<i32>} : memref<1x1x21x128xbf16, #tpu.memory_space<vmem>>, vector<1x1x21x128xbf16>,
    return
  }
  func.func @transform_0(%arg0: i32, %arg1: i32) -> (i32, i32, i32) {
    %c13_i32 = arith.constant 13 : i32
    %0 = arith.muli %arg0, %c13_i32 : i32
    %c2_i32 = arith.constant 2 : i32
    %1 = arith.muli %c2_i32, %arg1 : i32
    %2 = arith.addi %0, %1 : i32
    %c0_i32 = arith.constant 0 : i32
    %3 = arith.addi %2, %c0_i32 : i32
    %c0_i32_0 = arith.constant 0 : i32
    %c0_i32_1 = arith.constant 0 : i32
    %c0_i32_2 = arith.constant 0 : i32
    return %3, %c0_i32_0, %c0_i32_1 : i32, i32, i32
  }
  func.func @transform_1(%arg0: i32, %arg1: i32) -> (i32, i32, i32) {
    %c13_i32 = arith.constant 13 : i32
    %0 = arith.muli %arg0, %c13_i32 : i32
    %c2_i32 = arith.constant 2 : i32
    %1 = arith.muli %c2_i32, %arg1 : i32
    %2 = arith.addi %0, %1 : i32
    %c1_i32 = arith.constant 1 : i32
    %3 = arith.addi %2, %c1_i32 : i32
    %c0_i32 = arith.constant 0 : i32
    %c0_i32_0 = arith.constant 0 : i32
    %c0_i32_1 = arith.constant 0 : i32
    return %3, %c0_i32, %c0_i32_0 : i32, i32, i32
  }
  func.func @transform_2(%arg0: i32, %arg1: i32) -> (i32, i32, i32) {
    %c13_i32 = arith.constant 13 : i32
    %0 = arith.muli %arg0, %c13_i32 : i32
    %c2_i32 = arith.constant 2 : i32
    %1 = arith.muli %c2_i32, %arg1 : i32
    %2 = arith.addi %0, %1 : i32
    %c2_i32_0 = arith.constant 2 : i32
    %3 = arith.addi %2, %c2_i32_0 : i32
    %c0_i32 = arith.constant 0 : i32
    %c0_i32_1 = arith.constant 0 : i32
    %c0_i32_2 = arith.constant 0 : i32
    return %3, %c0_i32, %c0_i32_1 : i32, i32, i32
  }
  func.func @transform_3(%arg0: i32, %arg1: i32) -> (i32, i32) {
    %c0_i32 = arith.constant 0 : i32
    %c0_i32_0 = arith.constant 0 : i32
    %c0_i32_1 = arith.constant 0 : i32
    return %c0_i32, %c0_i32_0 : i32, i32
  }
  func.func @transform_4(%arg0: i32, %arg1: i32) -> (i32, i32, i32, i32) {
    %c0_i32 = arith.constant 0 : i32
    %c0_i32_0 = arith.constant 0 : i32
    %c0_i32_1 = arith.constant 0 : i32
    return %arg0, %arg1, %c0_i32, %c0_i32_0 : i32, i32, i32, i32
  }
}

module attributes {stable_mosaic.version = 11 : i64} {
  func.func @mm_bias_kernel(%arg0: i32, %arg1: i32, %arg2: memref<128x2432xbf16, #tpu.memory_space<vmem>>, %arg3: memref<2432x256xbf16, #tpu.memory_space<vmem>>, %arg4: memref<1x256xf32, #tpu.memory_space<vmem>>, %arg5: memref<128x256xbf16, #tpu.memory_space<vmem>>) attributes {dimension_semantics = [#tpu.dimension_semantics<parallel>, #tpu.dimension_semantics<parallel>], iteration_bounds = array<i64: 2, 1>, scalar_prefetch = 0 : i64, scratch_operands = 0 : i64, tpu.core_type = #tpu.core_type<tc>, window_params = [{transform_indices = @transform_0, window_bounds = array<i64: 128, 2432>}, {transform_indices = @transform_1, window_bounds = array<i64: 2432, 256>}, {transform_indices = @transform_2, window_bounds = array<i64: 1, 256>}, {transform_indices = @transform_3, window_bounds = array<i64: 128, 256>}]} {
    %c0 = arith.constant 0 : index
    %c0_0 = arith.constant 0 : index
    %0 = vector.load %arg2[%c0, %c0_0] : memref<128x2432xbf16, #tpu.memory_space<vmem>>, vector<128x2432xbf16>
    %c0_1 = arith.constant 0 : index
    %c0_2 = arith.constant 0 : index
    %1 = vector.load %arg3[%c0_1, %c0_2] : memref<2432x256xbf16, #tpu.memory_space<vmem>>, vector<2432x256xbf16>
    %cst = arith.constant dense<0.000000e+00> : vector<128x256xf32>
    %2 = tpu.matmul %0, %1, %cst {dimension_numbers = #tpu.dot_dimension_numbers<[1], [0], [0], [1], [0, 0, 1, 1], [], []>} : vector<128x2432xbf16>, vector<2432x256xbf16>, vector<128x256xf32> -> vector<128x256xf32>
    %c0_3 = arith.constant 0 : index
    %c0_4 = arith.constant 0 : index
    %3 = vector.load %arg4[%c0_3, %c0_4] : memref<1x256xf32, #tpu.memory_space<vmem>>, vector<1x256xf32>
    %4 = vector.broadcast %3 : vector<1x256xf32> to vector<128x256xf32>
    %5 = arith.addf %2, %4 : vector<128x256xf32>
    %cst_5 = arith.constant 0.000000e+00 : f32
    %6 = vector.broadcast %cst_5 : f32 to vector<128x256xf32>
    %7 = arith.maximumf %5, %6 : vector<128x256xf32>
    %8 = arith.truncf %7 : vector<128x256xf32> to vector<128x256xbf16>
    %c0_6 = arith.constant 0 : index
    %c0_7 = arith.constant 0 : index
    %9 = vector.load %arg5[%c0_6, %c0_7] : memref<128x256xbf16, #tpu.memory_space<vmem>>, vector<128x256xbf16>
    tpu.vector_store %arg5[%c0_6, %c0_7], %8 {strides = array<i32>} : memref<128x256xbf16, #tpu.memory_space<vmem>>, vector<128x256xbf16>,
    return
  }
  func.func @transform_0(%arg0: i32, %arg1: i32) -> (i32, i32) {
    %c0_i32 = arith.constant 0 : i32
    %c0_i32_0 = arith.constant 0 : i32
    return %arg0, %c0_i32 : i32, i32
  }
  func.func @transform_1(%arg0: i32, %arg1: i32) -> (i32, i32) {
    %c0_i32 = arith.constant 0 : i32
    %c0_i32_0 = arith.constant 0 : i32
    return %c0_i32, %arg1 : i32, i32
  }
  func.func @transform_2(%arg0: i32, %arg1: i32) -> (i32, i32) {
    %c0_i32 = arith.constant 0 : i32
    %c0_i32_0 = arith.constant 0 : i32
    return %c0_i32, %arg1 : i32, i32
  }
  func.func @transform_3(%arg0: i32, %arg1: i32) -> (i32, i32) {
    %c0_i32 = arith.constant 0 : i32
    return %arg0, %arg1 : i32, i32
  }
}

module attributes {stable_mosaic.version = 11 : i64} {
  func.func @pool_lrn_kernel(%arg0: i32, %arg1: i32, %arg2: memref<1x10x256xbf16, #tpu.memory_space<vmem>>, %arg3: memref<1x10x256xbf16, #tpu.memory_space<vmem>>, %arg4: memref<1x10x256xbf16, #tpu.memory_space<vmem>>, %arg5: memref<256x256xbf16, #tpu.memory_space<vmem>>, %arg6: memref<1x1x10x256xbf16, #tpu.memory_space<vmem>>) attributes {dimension_semantics = [#tpu.dimension_semantics<parallel>, #tpu.dimension_semantics<parallel>], iteration_bounds = array<i64: 2, 2>, scalar_prefetch = 0 : i64, scratch_operands = 0 : i64, tpu.core_type = #tpu.core_type<tc>, window_params = [{transform_indices = @transform_0, window_bounds = array<i64: 1, 10, 256>}, {transform_indices = @transform_1, window_bounds = array<i64: 1, 10, 256>}, {transform_indices = @transform_2, window_bounds = array<i64: 1, 10, 256>}, {pipeline_mode = #tpu.pipeline_mode<synchronous>, transform_indices = @transform_3, window_bounds = array<i64: 256, 256>}, {transform_indices = @transform_4, window_bounds = array<i64: 1, 1, 10, 256>}]} {
    %c0 = arith.constant 0 : index
    %c0_0 = arith.constant 0 : index
    %c0_1 = arith.constant 0 : index
    %0 = vector.load %arg2[%c0, %c0_0, %c0_1] : memref<1x10x256xbf16, #tpu.memory_space<vmem>>, vector<1x10x256xbf16>
    %1 = vector.shape_cast %0 : vector<1x10x256xbf16> to vector<10x256xbf16>
    %c0_2 = arith.constant 0 : index
    %c0_3 = arith.constant 0 : index
    %c0_4 = arith.constant 0 : index
    %2 = vector.load %arg3[%c0_2, %c0_3, %c0_4] : memref<1x10x256xbf16, #tpu.memory_space<vmem>>, vector<1x10x256xbf16>
    %3 = vector.shape_cast %2 : vector<1x10x256xbf16> to vector<10x256xbf16>
    %4 = arith.maximumf %1, %3 : vector<10x256xbf16>
    %c0_5 = arith.constant 0 : index
    %c0_6 = arith.constant 0 : index
    %c0_7 = arith.constant 0 : index
    %5 = vector.load %arg4[%c0_5, %c0_6, %c0_7] : memref<1x10x256xbf16, #tpu.memory_space<vmem>>, vector<1x10x256xbf16>
    %6 = vector.shape_cast %5 : vector<1x10x256xbf16> to vector<10x256xbf16>
    %7 = arith.maximumf %4, %6 : vector<10x256xbf16>
    %8 = arith.extf %7 : vector<10x256xbf16> to vector<10x256xf32>
    %9 = arith.mulf %8, %8 : vector<10x256xf32>
    %10 = arith.truncf %9 : vector<10x256xf32> to vector<10x256xbf16>
    %c0_8 = arith.constant 0 : index
    %c0_9 = arith.constant 0 : index
    %11 = vector.load %arg5[%c0_8, %c0_9] : memref<256x256xbf16, #tpu.memory_space<vmem>>, vector<256x256xbf16>
    %cst = arith.constant dense<0.000000e+00> : vector<10x256xf32>
    %12 = tpu.matmul %10, %11, %cst {dimension_numbers = #tpu.dot_dimension_numbers<[1], [0], [0], [1], [0, 0, 1, 1], [], []>} : vector<10x256xbf16>, vector<256x256xbf16>, vector<10x256xf32> -> vector<10x256xf32>
    %cst_10 = arith.constant 2.000000e-05 : f32
    %13 = vector.broadcast %cst_10 : f32 to vector<10x256xf32>
    %14 = arith.mulf %13, %12 : vector<10x256xf32>
    %cst_11 = arith.constant 1.000000e+00 : f32
    %15 = vector.broadcast %cst_11 : f32 to vector<10x256xf32>
    %16 = arith.addf %15, %14 : vector<10x256xf32>
    %17 = math.log %16 : vector<10x256xf32>
    %cst_12 = arith.constant -7.500000e-01 : f32
    %18 = vector.broadcast %cst_12 : f32 to vector<10x256xf32>
    %19 = arith.mulf %18, %17 : vector<10x256xf32>
    %20 = math.exp %19 : vector<10x256xf32>
    %21 = arith.mulf %8, %20 : vector<10x256xf32>
    %22 = arith.truncf %21 : vector<10x256xf32> to vector<10x256xbf16>
    %23 = vector.shape_cast %22 : vector<10x256xbf16> to vector<1x1x10x256xbf16>
    %c0_13 = arith.constant 0 : index
    %c0_14 = arith.constant 0 : index
    %c0_15 = arith.constant 0 : index
    %c0_16 = arith.constant 0 : index
    %24 = vector.load %arg6[%c0_13, %c0_14, %c0_15, %c0_16] : memref<1x1x10x256xbf16, #tpu.memory_space<vmem>>, vector<1x1x10x256xbf16>
    tpu.vector_store %arg6[%c0_13, %c0_14, %c0_15, %c0_16], %23 {strides = array<i32>} : memref<1x1x10x256xbf16, #tpu.memory_space<vmem>>, vector<1x1x10x256xbf16>,
    return
  }
  func.func @transform_0(%arg0: i32, %arg1: i32) -> (i32, i32, i32) {
    %c6_i32 = arith.constant 6 : i32
    %0 = arith.muli %arg0, %c6_i32 : i32
    %c2_i32 = arith.constant 2 : i32
    %1 = arith.muli %c2_i32, %arg1 : i32
    %2 = arith.addi %0, %1 : i32
    %c0_i32 = arith.constant 0 : i32
    %3 = arith.addi %2, %c0_i32 : i32
    %c0_i32_0 = arith.constant 0 : i32
    %c0_i32_1 = arith.constant 0 : i32
    %c0_i32_2 = arith.constant 0 : i32
    return %3, %c0_i32_0, %c0_i32_1 : i32, i32, i32
  }
  func.func @transform_1(%arg0: i32, %arg1: i32) -> (i32, i32, i32) {
    %c6_i32 = arith.constant 6 : i32
    %0 = arith.muli %arg0, %c6_i32 : i32
    %c2_i32 = arith.constant 2 : i32
    %1 = arith.muli %c2_i32, %arg1 : i32
    %2 = arith.addi %0, %1 : i32
    %c1_i32 = arith.constant 1 : i32
    %3 = arith.addi %2, %c1_i32 : i32
    %c0_i32 = arith.constant 0 : i32
    %c0_i32_0 = arith.constant 0 : i32
    %c0_i32_1 = arith.constant 0 : i32
    return %3, %c0_i32, %c0_i32_0 : i32, i32, i32
  }
  func.func @transform_2(%arg0: i32, %arg1: i32) -> (i32, i32, i32) {
    %c6_i32 = arith.constant 6 : i32
    %0 = arith.muli %arg0, %c6_i32 : i32
    %c2_i32 = arith.constant 2 : i32
    %1 = arith.muli %c2_i32, %arg1 : i32
    %2 = arith.addi %0, %1 : i32
    %c2_i32_0 = arith.constant 2 : i32
    %3 = arith.addi %2, %c2_i32_0 : i32
    %c0_i32 = arith.constant 0 : i32
    %c0_i32_1 = arith.constant 0 : i32
    %c0_i32_2 = arith.constant 0 : i32
    return %3, %c0_i32, %c0_i32_1 : i32, i32, i32
  }
  func.func @transform_3(%arg0: i32, %arg1: i32) -> (i32, i32) {
    %c0_i32 = arith.constant 0 : i32
    %c0_i32_0 = arith.constant 0 : i32
    %c0_i32_1 = arith.constant 0 : i32
    return %c0_i32, %c0_i32_0 : i32, i32
  }
  func.func @transform_4(%arg0: i32, %arg1: i32) -> (i32, i32, i32, i32) {
    %c0_i32 = arith.constant 0 : i32
    %c0_i32_0 = arith.constant 0 : i32
    %c0_i32_1 = arith.constant 0 : i32
    return %arg0, %arg1, %c0_i32, %c0_i32_0 : i32, i32, i32, i32
  }
}

module attributes {stable_mosaic.version = 11 : i64} {
  func.func @conv34_kernel(%arg0: i32, %arg1: memref<40x2304xbf16, #tpu.memory_space<vmem>>, %arg2: memref<2304x384xbf16, #tpu.memory_space<vmem>>, %arg3: memref<1x384xf32, #tpu.memory_space<vmem>>, %arg4: memref<384x128xbf16, #tpu.memory_space<vmem>>, %arg5: memref<1x128xf32, #tpu.memory_space<vmem>>, %arg6: memref<40x128xbf16, #tpu.memory_space<vmem>>) attributes {dimension_semantics = [#tpu.dimension_semantics<parallel>], iteration_bounds = array<i64: 1>, scalar_prefetch = 0 : i64, scratch_operands = 0 : i64, tpu.core_type = #tpu.core_type<tc>, window_params = [{transform_indices = @transform_0, window_bounds = array<i64: 40, 2304>}, {pipeline_mode = #tpu.pipeline_mode<synchronous>, transform_indices = @transform_1, window_bounds = array<i64: 2304, 384>}, {pipeline_mode = #tpu.pipeline_mode<synchronous>, transform_indices = @transform_2, window_bounds = array<i64: 1, 384>}, {pipeline_mode = #tpu.pipeline_mode<synchronous>, transform_indices = @transform_3, window_bounds = array<i64: 384, 128>}, {pipeline_mode = #tpu.pipeline_mode<synchronous>, transform_indices = @transform_4, window_bounds = array<i64: 1, 128>}, {transform_indices = @transform_5, window_bounds = array<i64: 40, 128>}]} {
    %c0 = arith.constant 0 : index
    %c0_0 = arith.constant 0 : index
    %0 = vector.load %arg1[%c0, %c0_0] : memref<40x2304xbf16, #tpu.memory_space<vmem>>, vector<40x2304xbf16>
    %c0_1 = arith.constant 0 : index
    %c0_2 = arith.constant 0 : index
    %1 = vector.load %arg2[%c0_1, %c0_2] : memref<2304x384xbf16, #tpu.memory_space<vmem>>, vector<2304x384xbf16>
    %cst = arith.constant dense<0.000000e+00> : vector<40x384xf32>
    %2 = tpu.matmul %0, %1, %cst {dimension_numbers = #tpu.dot_dimension_numbers<[1], [0], [0], [1], [0, 0, 1, 1], [], []>} : vector<40x2304xbf16>, vector<2304x384xbf16>, vector<40x384xf32> -> vector<40x384xf32>
    %c0_3 = arith.constant 0 : index
    %c0_4 = arith.constant 0 : index
    %3 = vector.load %arg3[%c0_3, %c0_4] : memref<1x384xf32, #tpu.memory_space<vmem>>, vector<1x384xf32>
    %4 = vector.broadcast %3 : vector<1x384xf32> to vector<40x384xf32>
    %5 = arith.addf %2, %4 : vector<40x384xf32>
    %cst_5 = arith.constant 0.000000e+00 : f32
    %6 = vector.broadcast %cst_5 : f32 to vector<40x384xf32>
    %7 = arith.maximumf %5, %6 : vector<40x384xf32>
    %8 = arith.truncf %7 : vector<40x384xf32> to vector<40x384xbf16>
    %c0_6 = arith.constant 0 : index
    %c0_7 = arith.constant 0 : index
    %9 = vector.load %arg4[%c0_6, %c0_7] : memref<384x128xbf16, #tpu.memory_space<vmem>>, vector<384x128xbf16>
    %cst_8 = arith.constant dense<0.000000e+00> : vector<40x128xf32>
    %10 = tpu.matmul %8, %9, %cst_8 {dimension_numbers = #tpu.dot_dimension_numbers<[1], [0], [0], [1], [0, 0, 1, 1], [], []>} : vector<40x384xbf16>, vector<384x128xbf16>, vector<40x128xf32> -> vector<40x128xf32>
    %c0_9 = arith.constant 0 : index
    %c0_10 = arith.constant 0 : index
    %11 = vector.load %arg5[%c0_9, %c0_10] : memref<1x128xf32, #tpu.memory_space<vmem>>, vector<1x128xf32>
    %12 = vector.broadcast %11 : vector<1x128xf32> to vector<40x128xf32>
    %13 = arith.addf %10, %12 : vector<40x128xf32>
    %cst_11 = arith.constant 0.000000e+00 : f32
    %14 = vector.broadcast %cst_11 : f32 to vector<40x128xf32>
    %15 = arith.maximumf %13, %14 : vector<40x128xf32>
    %16 = arith.truncf %15 : vector<40x128xf32> to vector<40x128xbf16>
    %c0_12 = arith.constant 0 : index
    %c0_13 = arith.constant 0 : index
    %17 = vector.load %arg6[%c0_12, %c0_13] : memref<40x128xbf16, #tpu.memory_space<vmem>>, vector<40x128xbf16>
    tpu.vector_store %arg6[%c0_12, %c0_13], %16 {strides = array<i32>} : memref<40x128xbf16, #tpu.memory_space<vmem>>, vector<40x128xbf16>,
    return
  }
  func.func @transform_0(%arg0: i32) -> (i32, i32) {
    %c0_i32 = arith.constant 0 : i32
    %c0_i32_0 = arith.constant 0 : i32
    return %arg0, %c0_i32 : i32, i32
  }
  func.func @transform_1(%arg0: i32) -> (i32, i32) {
    %c0_i32 = arith.constant 0 : i32
    %c0_i32_0 = arith.constant 0 : i32
    %c0_i32_1 = arith.constant 0 : i32
    return %c0_i32, %c0_i32_0 : i32, i32
  }
  func.func @transform_2(%arg0: i32) -> (i32, i32) {
    %c0_i32 = arith.constant 0 : i32
    %c0_i32_0 = arith.constant 0 : i32
    %c0_i32_1 = arith.constant 0 : i32
    return %c0_i32, %c0_i32_0 : i32, i32
  }
  func.func @transform_3(%arg0: i32) -> (i32, i32) {
    %c0_i32 = arith.constant 0 : i32
    %c0_i32_0 = arith.constant 0 : i32
    %c0_i32_1 = arith.constant 0 : i32
    return %c0_i32, %c0_i32_0 : i32, i32
  }
  func.func @transform_4(%arg0: i32) -> (i32, i32) {
    %c0_i32 = arith.constant 0 : i32
    %c0_i32_0 = arith.constant 0 : i32
    %c0_i32_1 = arith.constant 0 : i32
    return %c0_i32, %c0_i32_0 : i32, i32
  }
  func.func @transform_5(%arg0: i32) -> (i32, i32) {
    %c0_i32 = arith.constant 0 : i32
    %c0_i32_0 = arith.constant 0 : i32
    return %arg0, %c0_i32 : i32, i32
  }
}

module attributes {stable_mosaic.version = 11 : i64} {
  func.func @fc_tail_kernel(%arg0: memref<8x2560xbf16, #tpu.memory_space<vmem>>, %arg1: memref<2560x128xbf16, #tpu.memory_space<vmem>>, %arg2: memref<1x128xf32, #tpu.memory_space<vmem>>, %arg3: memref<128x128xbf16, #tpu.memory_space<vmem>>, %arg4: memref<1x128xf32, #tpu.memory_space<vmem>>, %arg5: memref<128x128xbf16, #tpu.memory_space<vmem>>, %arg6: memref<1x128xf32, #tpu.memory_space<vmem>>, %arg7: memref<8x128xf32, #tpu.memory_space<vmem>>) attributes {dimension_semantics = [], scalar_prefetch = 0 : i64, scratch_operands = 0 : i64, tpu.core_type = #tpu.core_type<tc>} {
    %c0 = arith.constant 0 : index
    %c0_0 = arith.constant 0 : index
    %0 = vector.load %arg0[%c0, %c0_0] : memref<8x2560xbf16, #tpu.memory_space<vmem>>, vector<8x2560xbf16>
    %c0_1 = arith.constant 0 : index
    %c0_2 = arith.constant 0 : index
    %1 = vector.load %arg1[%c0_1, %c0_2] : memref<2560x128xbf16, #tpu.memory_space<vmem>>, vector<2560x128xbf16>
    %cst = arith.constant dense<0.000000e+00> : vector<8x128xf32>
    %2 = tpu.matmul %0, %1, %cst {dimension_numbers = #tpu.dot_dimension_numbers<[1], [0], [0], [1], [0, 0, 1, 1], [], []>} : vector<8x2560xbf16>, vector<2560x128xbf16>, vector<8x128xf32> -> vector<8x128xf32>
    %c0_3 = arith.constant 0 : index
    %c0_4 = arith.constant 0 : index
    %3 = vector.load %arg2[%c0_3, %c0_4] : memref<1x128xf32, #tpu.memory_space<vmem>>, vector<1x128xf32>
    %4 = vector.broadcast %3 : vector<1x128xf32> to vector<8x128xf32>
    %5 = arith.addf %2, %4 : vector<8x128xf32>
    %cst_5 = arith.constant 0.000000e+00 : f32
    %6 = vector.broadcast %cst_5 : f32 to vector<8x128xf32>
    %7 = arith.maximumf %5, %6 : vector<8x128xf32>
    %8 = arith.truncf %7 : vector<8x128xf32> to vector<8x128xbf16>
    %c0_6 = arith.constant 0 : index
    %c0_7 = arith.constant 0 : index
    %9 = vector.load %arg3[%c0_6, %c0_7] : memref<128x128xbf16, #tpu.memory_space<vmem>>, vector<128x128xbf16>
    %cst_8 = arith.constant dense<0.000000e+00> : vector<8x128xf32>
    %10 = tpu.matmul %8, %9, %cst_8 {dimension_numbers = #tpu.dot_dimension_numbers<[1], [0], [0], [1], [0, 0, 1, 1], [], []>} : vector<8x128xbf16>, vector<128x128xbf16>, vector<8x128xf32> -> vector<8x128xf32>
    %c0_9 = arith.constant 0 : index
    %c0_10 = arith.constant 0 : index
    %11 = vector.load %arg4[%c0_9, %c0_10] : memref<1x128xf32, #tpu.memory_space<vmem>>, vector<1x128xf32>
    %12 = vector.broadcast %11 : vector<1x128xf32> to vector<8x128xf32>
    %13 = arith.addf %10, %12 : vector<8x128xf32>
    %cst_11 = arith.constant 0.000000e+00 : f32
    %14 = vector.broadcast %cst_11 : f32 to vector<8x128xf32>
    %15 = arith.maximumf %13, %14 : vector<8x128xf32>
    %16 = arith.truncf %15 : vector<8x128xf32> to vector<8x128xbf16>
    %c0_12 = arith.constant 0 : index
    %c0_13 = arith.constant 0 : index
    %17 = vector.load %arg5[%c0_12, %c0_13] : memref<128x128xbf16, #tpu.memory_space<vmem>>, vector<128x128xbf16>
    %cst_14 = arith.constant dense<0.000000e+00> : vector<8x128xf32>
    %18 = tpu.matmul %16, %17, %cst_14 {dimension_numbers = #tpu.dot_dimension_numbers<[1], [0], [0], [1], [0, 0, 1, 1], [], []>} : vector<8x128xbf16>, vector<128x128xbf16>, vector<8x128xf32> -> vector<8x128xf32>
    %c0_15 = arith.constant 0 : index
    %c0_16 = arith.constant 0 : index
    %19 = vector.load %arg6[%c0_15, %c0_16] : memref<1x128xf32, #tpu.memory_space<vmem>>, vector<1x128xf32>
    %20 = vector.broadcast %19 : vector<1x128xf32> to vector<8x128xf32>
    %21 = arith.addf %18, %20 : vector<8x128xf32>
    %c0_17 = arith.constant 0 : index
    %c0_18 = arith.constant 0 : index
    %22 = vector.load %arg7[%c0_17, %c0_18] : memref<8x128xf32, #tpu.memory_space<vmem>>, vector<8x128xf32>
    tpu.vector_store %arg7[%c0_17, %c0_18], %21 {strides = array<i32>} : memref<8x128xf32, #tpu.memory_space<vmem>>, vector<8x128xf32>,
    return
  }
}

</mosaic_0001>

<bundles_post_ra>
// kernel: eye_patch_model_forward.6
= control target key start
LH: loop header
LB: loop body
LE: loop exit
PB: predicated region body
PF: predicated region fallthrough
CT: control target
= control target key end

     0   :  { %s3328_s12 = smov 0   ;;  %s3330_s13 = smov 0   ;;  %s3935_s0 = inlined_call_operand.vmem [shape: bf16[1128,768], index: 0, kind: input, shape index: {}]   ;;  %s3936_s1 = inlined_call_operand.vmem [shape: bf16[768,128], index: 1, kind: input, shape index: {}]   ;;  %s3937_s2 = inlined_call_operand.vmem [shape: f32[1,128], index: 2, kind: input, shape index: {}]   ;;  %s3938_s3 = inlined_call_operand.vmem [shape: bf16[1128,128], index: 3, kind: output, shape index: {}]  }
   0x1   :  { %s3332_s14 = smov 0  }
   0x2 LB: > { %s25_s15 = sadd.s32 1, %s3301_s13  ;;  %p2535_p0 = scmp.ge.s32.totalorder %s3305_s14, 1  ;;  %s3305_s14 = sphi %s3332_s14, %s13_s14   ;;  %s3301_s13 = sphi %s3330_s13, %s3942_s13   ;;  %s3297_s12 = sphi %s3328_s12, %s3941_s12  }
   0x3   : > { %p27_p1 = scmp.ge.s32.totalorder %s25_s15, 3  ;;  %p170_p2 = scmp.lt.s32.totalorder %s3305_s14, 4 }
   0x5   : > { %s3944_s15 = smov (%p27_p1, %s25_s15), 0  ;;  %p171_p3 = pnand %p2535_p0, %p170_p2 }
   0x7   : > { %174 = sbr.rel (%p171_p3) target bundleno = 559 (0x22f), region = 32 }
   0xc   : > { %v3022_v0 = vld [vmem:[%s3936_s1 + $0x38] sm:$0xff]   ;;  %v3307_v1 = vmov 0   ;;  %s205_s18 = smul.u32 47, %s3297_s12  ;;  %v3023_v2 = vld [vmem:[%s3936_s1 + $0x30] sm:$0xff]   ;;  %v3024_v3 = vld [vmem:[%s3936_s1 + $0x28] sm:$0xff]  }
   0xd   : > { %1472 = vmatprep.subr.bf16.mxu0 %v3307_v1  ;;  %2964 = vmatprep.subr.bf16.mxu1 %v3307_v1  ;;  %v3025_v4 = vld [vmem:[%s3936_s1 + $0x20] sm:$0xff]   ;;  %v3026_v5 = vld [vmem:[%s3936_s1 + $0x18] sm:$0xff]   ;;  %v3027_v7 = vld [vmem:[%s3936_s1 + $0x10] sm:$0xff]  }
   0xe   : > { %1473 = vmatpush1.bf16.msra.mxu0 %v3022_v0  ;;  %2980 = vmatpush1.bf16.msra.mxu1 %v3022_v0  ;;  %p206_p4 = scmp.lt.s32.totalorder %s205_s18, 140  ;;  %v3028_v9 = vld [vmem:[%s3936_s1 + $0x8] sm:$0xff]   ;;  %v3029_v10 = vld [vmem:[%s3936_s1] sm:$0xff]   ;;  %v3030_v11 = vld [vmem:[%s3936_s1 + $0x78] sm:$0xff]  }
   0xf   : > { %1474 = vmatprep.subr.bf16.mxu0 %v3307_v1  ;;  %2965 = vmatprep.subr.bf16.mxu1 %v3307_v1  ;;  %v3031_v12 = vld [vmem:[%s3936_s1 + $0x70] sm:$0xff]   ;;  %v3032_v13 = vld [vmem:[%s3936_s1 + $0x68] sm:$0xff]   ;;  %v3033_v14 = vld [vmem:[%s3936_s1 + $0x60] sm:$0xff]  }
  0x10   : > { %s3946_s18 = smov (!%p206_p4, %s205_s18), 140  ;;  %v3034_v15 = vld [vmem:[%s3936_s1 + $0x58] sm:$0xff]   ;;  %v3035_v16 = vld [vmem:[%s3936_s1 + $0x50] sm:$0xff]   ;;  %v3036_v17 = vld [vmem:[%s3936_s1 + $0x48] sm:$0xff]  }
  0x11   : > { %s2996_s25 = smul.u32 24, %s3946_s18  ;;  %v3037_v18 = vld [vmem:[%s3936_s1 + $0x40] sm:$0xff]   ;;  %v3044_v21 = vld [vmem:[%s3936_s1 + $0xb8] sm:$0xff]   ;;  %v3050_v25 = vld [vmem:[%s3936_s1 + $0xb0] sm:$0xff]   ;;  %s2537_s29 = sshll.u32 %s3946_s18, 2 }
  0x12   : > { %1475 = vmatpush1.bf16.msra.mxu0 %v3023_v2  ;;  %2981 = vmatpush1.bf16.msra.mxu1 %v3023_v2  ;;  %v3045_v22 = vld [vmem:[%s3936_s1 + $0x138] sm:$0xff]   ;;  %v3053_v26 = vld [vmem:[%s3936_s1 + $0x130] sm:$0xff]   ;;  %v3054_v29 = vld [vmem:[%s3936_s1 + $0xa8] sm:$0xff]   ;;  %s3812_s6 = scalar_lea.vmem %s3938_s3, %s2537_s29 }
  0x13   : > { %1476 = vmatprep.subr.bf16.mxu0 %v3307_v1  ;;  %2966 = vmatprep.subr.bf16.mxu1 %v3307_v1  ;;  %s3375_s30 = scalar_lea.vmem %s3935_s0, %s2996_s25  ;;  %v3059_v32 = vld [vmem:[%s3936_s1 + $0x128] sm:$0xff]   ;;  %v3062_v33 = vld [vmem:[%s3936_s1 + $0xa0] sm:$0xff]   ;;  %v3070_v39 = vld [vmem:[%s3936_s1 + $0x98] sm:$0xff]  }
  0x14   : > { %v3040_v6 = vld [vmem:[%s3375_s30 + $0x4] ss:$24 sps:$4 sm:$0xff]   ;;  %v3038_v19 = vld [vmem:[%s3375_s30] ss:$24 sps:$4 sm:$0xff]   ;;  %v3046_v23 = vld [vmem:[%s3375_s30 + $0x34] ss:$24 sps:$4 sm:$0xff]  }
  0x15   : > { %v3043_v8 = vld [vmem:[%s3375_s30 + $0x244] ss:$24 sps:$4 sm:$0xff]   ;;  %1504 = vmatprep.mubr.bf16.mxu0 %v3040_v6  ;;  %v3041_v20 = vld [vmem:[%s3375_s30 + $0x240] ss:$24 sps:$4 sm:$0xff]   ;;  %v3048_v24 = vld [vmem:[%s3375_s30 + $0x274] ss:$24 sps:$4 sm:$0xff]  }
  0x16   : > { %1477 = vmatpush1.bf16.msra.mxu0 %v3024_v3  ;;  %2982 = vmatpush1.bf16.msra.mxu1 %v3024_v3  ;;  %v3051_v27 = vld [vmem:[%s3375_s30 + $0x30] ss:$24 sps:$4 sm:$0xff]   ;;  %v3055_v30 = vld [vmem:[%s3375_s30 + $0x64] ss:$24 sps:$4 sm:$0xff]   ;;  %v3060_v34 = vld [vmem:[%s3375_s30 + $0x60] ss:$24 sps:$4 sm:$0xff]  }
  0x17   : > { %1478 = vmatprep.subr.bf16.mxu0 %v3307_v1  ;;  %2967 = vmatprep.subr.bf16.mxu1 %v3307_v1  ;;  %v3052_v28 = vld [vmem:[%s3375_s30 + $0x270] ss:$24 sps:$4 sm:$0xff]   ;;  %v3057_v31 = vld [vmem:[%s3375_s30 + $0x2a4] ss:$24 sps:$4 sm:$0xff]   ;;  %v3061_v36 = vld [vmem:[%s3375_s30 + $0x2a0] ss:$24 sps:$4 sm:$0xff]  }
  0x18   : > { %1600 = vmatprep.mubr.bf16.mxu1 %v3043_v8  ;;  %v3063_v35 = vld [vmem:[%s3936_s1 + $0x120] sm:$0xff]   ;;  %v3064_v37 = vld [vmem:[%s3375_s30 + $0x94] ss:$24 sps:$4 sm:$0xff]   ;;  %v3071_v40 = vld [vmem:[%s3936_s1 + $0x118] sm:$0xff]  }
  0x19   : > { %v3066_v38 = vld [vmem:[%s3375_s30 + $0x2d4] ss:$24 sps:$4 sm:$0xff]   ;;  %v3068_v43 = vld [vmem:[%s3375_s30 + $0x90] ss:$24 sps:$4 sm:$0xff]   ;;  %v3072_v45 = vld [vmem:[%s3375_s30 + $0xc4] ss:$24 sps:$4 sm:$0xff]  }
  0x1a   : > { %1479 = vmatpush1.bf16.msra.mxu0 %v3025_v4  ;;  %2983 = vmatpush1.bf16.msra.mxu1 %v3025_v4  ;;  %v3076_v41 = vld [vmem:[%s3936_s1 + $0x90] sm:$0xff]   ;;  %v3074_v46 = vld [vmem:[%s3375_s30 + $0x304] ss:$24 sps:$4 sm:$0xff]   ;;  %v3080_v47 = vld [vmem:[%s3936_s1 + $0x88] sm:$0xff]  }
  0x1b   : > { %1480 = vmatprep.subr.bf16.mxu0 %v3307_v1  ;;  %2968 = vmatprep.subr.bf16.mxu1 %v3307_v1  ;;  %v3079_v42 = vld [vmem:[%s3936_s1 + $0x110] sm:$0xff]   ;;  %v3085_v48 = vld [vmem:[%s3936_s1 + $0x108] sm:$0xff]   ;;  %v3088_v49 = vld [vmem:[%s3936_s1 + $0x80] sm:$0xff]  }
  0x1c   : > { %v3069_v44 = vld [vmem:[%s3375_s30 + $0x2d0] ss:$24 sps:$4 sm:$0xff]   ;;  %v3089_v50 = vld [vmem:[%s3936_s1 + $0x100] sm:$0xff]   ;;  %v3081_v53 = vld [vmem:[%s3375_s30 + $0xf4] ss:$24 sps:$4 sm:$0xff]  }
  0x1d   : > { %v3077_v51 = vld [vmem:[%s3375_s30 + $0xc0] ss:$24 sps:$4 sm:$0xff]   ;;  %v3083_v54 = vld [vmem:[%s3375_s30 + $0x334] ss:$24 sps:$4 sm:$0xff]   ;;  %v3086_v59 = vld [vmem:[%s3375_s30 + $0xf0] ss:$24 sps:$4 sm:$0xff]  }
  0x1e   : > { %1481 = vmatpush1.bf16.msra.mxu0 %v3026_v5  ;;  %2984 = vmatpush1.bf16.msra.mxu1 %v3026_v5  ;;  %v3078_v52 = vld [vmem:[%s3375_s30 + $0x300] ss:$24 sps:$4 sm:$0xff]   ;;  %v3102_v57 = vld [vmem:[%s3936_s1 + $0xf0] sm:$0xff]   ;;  %v3090_v61 = vld [vmem:[%s3375_s30 + $0x124] ss:$24 sps:$4 sm:$0xff]  }
  0x1f   : > { %1482 = vmatprep.subr.bf16.mxu0 %v3307_v1  ;;  %2969 = vmatprep.subr.bf16.mxu1 %v3307_v1  ;;  %v3096_v55 = vld [vmem:[%s3936_s1 + $0xf8] sm:$0xff]   ;;  %v3105_v58 = vld [vmem:[%s3936_s1 + $0x170] sm:$0xff]   ;;  %v3106_v63 = vld [vmem:[%s3936_s1 + $0xe8] sm:$0xff]  }
  0x20   : > { %v3097_v56 = vld [vmem:[%s3936_s1 + $0x178] sm:$0xff]   ;;  %v3087_v60 = vld [vmem:[%s3375_s30 + $0x330] ss:$24 sps:$4 sm:$0xff]   ;;  %v3114_v4 = vld [vmem:[%s3936_s1 + $0xe0] sm:$0xff]  }
  0x21   : > { %v3092_v62 = vld [vmem:[%s3375_s30 + $0x364] ss:$24 sps:$4 sm:$0xff]   ;;  %v3111_v0 = vld [vmem:[%s3936_s1 + $0x168] sm:$0xff]   ;;  %v3094_v2 = vld [vmem:[%s3375_s30 + $0x120] ss:$24 sps:$4 sm:$0xff]  }
  0x22   : > { %1483 = vmatpush1.bf16.msra.mxu0 %v3027_v7  ;;  %2985 = vmatpush1.bf16.msra.mxu1 %v3027_v7  ;;  %v3095_v3 = vld [vmem:[%s3375_s30 + $0x360] ss:$24 sps:$4 sm:$0xff]   ;;  %v3098_v6 = vld [vmem:[%s3375_s30 + $0x154] ss:$24 sps:$4 sm:$0xff]  }
  0x23   : > { %1484 = vmatprep.subr.bf16.mxu0 %v3307_v1  ;;  %2970 = vmatprep.subr.bf16.mxu1 %v3307_v1  ;;  %v3115_v5 = vld [vmem:[%s3936_s1 + $0x160] sm:$0xff]   ;;  %v3100_v7 = vld [vmem:[%s3375_s30 + $0x394] ss:$24 sps:$4 sm:$0xff]   ;;  %v3122_v8 = vld [vmem:[%s3936_s1 + $0xd8] sm:$0xff]  }
  0x26   : > { %1485 = vmatpush1.bf16.msra.mxu0 %v3028_v9  ;;  %2986 = vmatpush1.bf16.msra.mxu1 %v3028_v9  ;;  %v3123_v9 = vld [vmem:[%s3936_s1 + $0x158] sm:$0xff]  }
  0x27   : > { %1486 = vmatprep.subr.bf16.mxu0 %v3307_v1  ;;  %2971 = vmatprep.subr.bf16.mxu1 %v3307_v1 }
  0x2a   : > { %1487 = vmatpush1.bf16.msra.mxu0 %v3029_v10  ;;  %2987 = vmatpush1.bf16.msra.mxu1 %v3029_v10  ;;  %v3128_v10 = vld [vmem:[%s3936_s1 + $0xd0] sm:$0xff]  }
  0x2b   : > { %1488 = vmatprep.subr.bf16.mxu0 %v3307_v1  ;;  %2972 = vmatprep.subr.bf16.mxu1 %v3307_v1 }
  0x2e   : > { %1489 = vmatpush2.bf16.msra.mxu0 %v3030_v11  ;;  %2988 = vmatpush2.bf16.msra.mxu1 %v3030_v11  ;;  %v3131_v11 = vld [vmem:[%s3936_s1 + $0x150] sm:$0xff]  }
  0x2f   : > { %1490 = vmatprep.subr.bf16.mxu0 %v3307_v1  ;;  %2973 = vmatprep.subr.bf16.mxu1 %v3307_v1 }
  0x32   : > { %1491 = vmatpush2.bf16.msra.mxu0 %v3031_v12  ;;  %2989 = vmatpush2.bf16.msra.mxu1 %v3031_v12  ;;  %v3103_v12 = vld [vmem:[%s3375_s30 + $0x150] ss:$24 sps:$4 sm:$0xff]  }
  0x33   : > { %1492 = vmatprep.subr.bf16.mxu0 %v3307_v1  ;;  %2974 = vmatprep.subr.bf16.mxu1 %v3307_v1 }
  0x36   : > { %1493 = vmatpush2.bf16.msra.mxu0 %v3032_v13  ;;  %2990 = vmatpush2.bf16.msra.mxu1 %v3032_v13  ;;  %v3104_v13 = vld [vmem:[%s3375_s30 + $0x390] ss:$24 sps:$4 sm:$0xff]  }
  0x37   : > { %1494 = vmatprep.subr.bf16.mxu0 %v3307_v1  ;;  %2975 = vmatprep.subr.bf16.mxu1 %v3307_v1 }
  0x3a   : > { %1495 = vmatpush2.bf16.msra.mxu0 %v3033_v14  ;;  %2991 = vmatpush2.bf16.msra.mxu1 %v3033_v14  ;;  %v3107_v14 = vld [vmem:[%s3375_s30 + $0x184] ss:$24 sps:$4 sm:$0xff]  }
  0x3b   : > { %1496 = vmatprep.subr.bf16.mxu0 %v3307_v1  ;;  %2976 = vmatprep.subr.bf16.mxu1 %v3307_v1 }
  0x3e   : > { %1497 = vmatpush2.bf16.msra.mxu0 %v3034_v15  ;;  %2992 = vmatpush2.bf16.msra.mxu1 %v3034_v15  ;;  %v3109_v15 = vld [vmem:[%s3375_s30 + $0x3c4] ss:$24 sps:$4 sm:$0xff]  }
  0x3f   : > { %1498 = vmatprep.subr.bf16.mxu0 %v3307_v1  ;;  %2977 = vmatprep.subr.bf16.mxu1 %v3307_v1 }
  0x42   : > { %1499 = vmatpush2.bf16.msra.mxu0 %v3035_v16  ;;  %2993 = vmatpush2.bf16.msra.mxu1 %v3035_v16  ;;  %v3132_v16 = vld [vmem:[%s3936_s1 + $0xc8] sm:$0xff]  }
  0x43   : > { %1500 = vmatprep.subr.bf16.mxu0 %v3307_v1  ;;  %2978 = vmatprep.subr.bf16.mxu1 %v3307_v1 }
  0x46   : > { %1501 = vmatpush2.bf16.msra.mxu0 %v3036_v17  ;;  %2994 = vmatpush2.bf16.msra.mxu1 %v3036_v17  ;;  %v3136_v17 = vld [vmem:[%s3936_s1 + $0x148] sm:$0xff]  }
  0x47   : > { %1502 = vmatprep.subr.bf16.mxu0 %v3307_v1  ;;  %2979 = vmatprep.subr.bf16.mxu1 %v3307_v1 }
  0x4a   : > { %1503 = vmatpush2.bf16.msra.mxu0 %v3037_v18  ;;  %2995 = vmatpush2.bf16.msra.mxu1 %v3037_v18  ;;  %v3139_v18 = vld [vmem:[%s3936_s1 + $0xc0] sm:$0xff]  }
  0x4b   : > { %1696 = vmatprep.subr.bf16.mxu1 %v3307_v1  ;;  %1920 = vmatprep.subr.bf16.mxu0 %v3307_v1 }
  0x4d   : > { %1505 = vmatmul.mubr.bf16.vlgmr.msra.gmra.mxu0 %v3038_v19  ;;  %1601 = vmatmul.mubr.bf16.vlgmr.msra.gmra.mxu1 %v3041_v20  ;;  %v3140_v19 = vld [vmem:[%s3936_s1 + $0x140] sm:$0xff]  }
  0x4e   : > { %1697 = vmatpush1.bf16.msra.mxu1 %v3044_v21  ;;  %1921 = vmatpush1.bf16.msra.mxu0 %v3045_v22  ;;  %v3112_v20 = vld [vmem:[%s3375_s30 + $0x180] ss:$24 sps:$4 sm:$0xff]   ;;  %v3116_v22 = vld [vmem:[%s3375_s30 + $0x1b4] ss:$24 sps:$4 sm:$0xff]  }
  0x4f   : > { %1698 = vmatprep.subr.bf16.mxu1 %v3307_v1  ;;  %1512 = vmatprep.mubr.bf16.mxu0 %v3046_v23  ;;  %v3113_v21 = vld [vmem:[%s3375_s30 + $0x3c0] ss:$24 sps:$4 sm:$0xff]   ;;  %v3118_v23 = vld [vmem:[%s3375_s30 + $0x3f4] ss:$24 sps:$4 sm:$0xff]  }
  0x50   : > { %1608 = vmatprep.mubr.bf16.mxu1 %v3048_v24  ;;  %1922 = vmatprep.subr.bf16.mxu0 %v3307_v1  ;;  %v3120_v24 = vld [vmem:[%s3375_s30 + $0x1b0] ss:$24 sps:$4 sm:$0xff]  }
  0x52   : > { %1699 = vmatpush1.bf16.msra.mxu1 %v3050_v25  ;;  %1923 = vmatpush1.bf16.msra.mxu0 %v3053_v26  ;;  %v3121_v25 = vld [vmem:[%s3375_s30 + $0x3f0] ss:$24 sps:$4 sm:$0xff]   ;;  %v3124_v26 = vld [vmem:[%s3375_s30 + $0x1e4] ss:$24 sps:$4 sm:$0xff]  }
  0x53   : > { %1700 = vmatprep.subr.bf16.mxu1 %v3307_v1  ;;  %1924 = vmatprep.subr.bf16.mxu0 %v3307_v1 }
  0x55   : > { %1513 = vmatmul.mubr.bf16.gmra.mxu0 %v3051_v27  ;;  %1609 = vmatmul.mubr.bf16.gmra.mxu1 %v3052_v28  ;;  %v3126_v27 = vld [vmem:[%s3375_s30 + $0x424] ss:$24 sps:$4 sm:$0xff]   ;;  %v3129_v28 = vld [vmem:[%s3375_s30 + $0x1e0] ss:$24 sps:$4 sm:$0xff]  }
  0x56   : > { %1701 = vmatpush1.bf16.msra.mxu1 %v3054_v29  ;;  %1520 = vmatprep.mubr.bf16.mxu0 %v3055_v30  ;;  %v3130_v29 = vld [vmem:[%s3375_s30 + $0x420] ss:$24 sps:$4 sm:$0xff]   ;;  %v3133_v30 = vld [vmem:[%s3375_s30 + $0x214] ss:$24 sps:$4 sm:$0xff]  }
  0x57   : > { %1616 = vmatprep.mubr.bf16.mxu1 %v3057_v31  ;;  %1925 = vmatpush1.bf16.msra.mxu0 %v3059_v32  ;;  %v3137_v32 = vld [vmem:[%s3375_s30 + $0x210] ss:$24 sps:$4 sm:$0xff]  }
  0x58   : > { %1702 = vmatprep.subr.bf16.mxu1 %v3307_v1  ;;  %1926 = vmatprep.subr.bf16.mxu0 %v3307_v1 }
  0x5a   : > { %1703 = vmatpush1.bf16.msra.mxu1 %v3062_v33 }
  0x5b   : > { %1927 = vmatpush1.bf16.msra.mxu0 %v3063_v35  ;;  %1704 = vmatprep.subr.bf16.mxu1 %v3307_v1  ;;  %v3146_v35 = vld [vmem:[%s3375_s30 + $0x14] ss:$24 sps:$4 sm:$0xff]  }
  0x5c   : > { %1928 = vmatprep.subr.bf16.mxu0 %v3307_v1 }
  0x5d   : > { %1521 = vmatmul.mubr.bf16.gmra.mxu0 %v3060_v34  ;;  %1617 = vmatmul.mubr.bf16.gmra.mxu1 %v3061_v36  ;;  %v3143_v34 = vld [vmem:[%s3375_s30 + $0xc] ss:$24 sps:$4 sm:$0xff]   ;;  %v3141_v36 = vld [vmem:[%s3375_s30 + $0x8] ss:$24 sps:$4 sm:$0xff]  }
  0x5e   : > { %1528 = vmatprep.mubr.bf16.mxu0 %v3064_v37  ;;  %1624 = vmatprep.mubr.bf16.mxu1 %v3066_v38  ;;  %v3144_v37 = vld [vmem:[%s3375_s30 + $0x10] ss:$24 sps:$4 sm:$0xff]   ;;  %v3147_v38 = vld [vmem:[%s3375_s30 + $0x3c] ss:$24 sps:$4 sm:$0xff]  }
  0x5f   : > { %1705 = vmatpush1.bf16.msra.mxu1 %v3070_v39  ;;  %1929 = vmatpush1.bf16.msra.mxu0 %v3071_v40  ;;  %v3149_v39 = vld [vmem:[%s3375_s30 + $0x44] ss:$24 sps:$4 sm:$0xff]   ;;  %v3151_v40 = vld [vmem:[%s3375_s30 + $0x38] ss:$24 sps:$4 sm:$0xff]  }
  0x60   : > { %1706 = vmatprep.subr.bf16.mxu1 %v3307_v1  ;;  %1930 = vmatprep.subr.bf16.mxu0 %v3307_v1 }
  0x63   : > { %1707 = vmatpush1.bf16.msra.mxu1 %v3076_v41  ;;  %1931 = vmatpush1.bf16.msra.mxu0 %v3079_v42  ;;  %v3152_v41 = vld [vmem:[%s3375_s30 + $0x40] ss:$24 sps:$4 sm:$0xff]   ;;  %v3153_v42 = vld [vmem:[%s3375_s30 + $0x6c] ss:$24 sps:$4 sm:$0xff]  }
  0x64   : > { %1708 = vmatprep.subr.bf16.mxu1 %v3307_v1  ;;  %1932 = vmatprep.subr.bf16.mxu0 %v3307_v1 }
  0x65   : > { %1529 = vmatmul.mubr.bf16.gmra.mxu0 %v3068_v43  ;;  %1625 = vmatmul.mubr.bf16.gmra.mxu1 %v3069_v44  ;;  %v3155_v43 = vld [vmem:[%s3375_s30 + $0x74] ss:$24 sps:$4 sm:$0xff]   ;;  %v3157_v44 = vld [vmem:[%s3375_s30 + $0x68] ss:$24 sps:$4 sm:$0xff]  }
  0x66   : > { %1536 = vmatprep.mubr.bf16.mxu0 %v3072_v45  ;;  %1632 = vmatprep.mubr.bf16.mxu1 %v3074_v46  ;;  %v3158_v45 = vld [vmem:[%s3375_s30 + $0x70] ss:$24 sps:$4 sm:$0xff]   ;;  %v3159_v46 = vld [vmem:[%s3375_s30 + $0x9c] ss:$24 sps:$4 sm:$0xff]  }
  0x67   : > { %1709 = vmatpush1.bf16.msra.mxu1 %v3080_v47  ;;  %1933 = vmatpush1.bf16.msra.mxu0 %v3085_v48  ;;  %v3161_v47 = vld [vmem:[%s3375_s30 + $0xa4] ss:$24 sps:$4 sm:$0xff]   ;;  %v3163_v48 = vld [vmem:[%s3375_s30 + $0x98] ss:$24 sps:$4 sm:$0xff]  }
  0x68   : > { %1710 = vmatprep.subr.bf16.mxu1 %v3307_v1  ;;  %1934 = vmatprep.subr.bf16.mxu0 %v3307_v1 }
  0x6b   : > { %1711 = vmatpush1.bf16.msra.mxu1 %v3088_v49  ;;  %1935 = vmatpush1.bf16.msra.mxu0 %v3089_v50  ;;  %v3164_v49 = vld [vmem:[%s3375_s30 + $0xa0] ss:$24 sps:$4 sm:$0xff]   ;;  %v3165_v50 = vld [vmem:[%s3375_s30 + $0xcc] ss:$24 sps:$4 sm:$0xff]  }
  0x6c   : > { %1712 = vmatprep.subr.bf16.mxu1 %v3307_v1  ;;  %1936 = vmatprep.subr.bf16.mxu0 %v3307_v1 }
  0x6d   : > { %1537 = vmatmul.mubr.bf16.gmra.mxu0 %v3077_v51  ;;  %1633 = vmatmul.mubr.bf16.gmra.mxu1 %v3078_v52  ;;  %v3167_v51 = vld [vmem:[%s3375_s30 + $0xd4] ss:$24 sps:$4 sm:$0xff]   ;;  %v3169_v52 = vld [vmem:[%s3375_s30 + $0xc8] ss:$24 sps:$4 sm:$0xff]  }
  0x6e   : > { %1544 = vmatprep.mubr.bf16.mxu0 %v3081_v53  ;;  %1640 = vmatprep.mubr.bf16.mxu1 %v3083_v54  ;;  %v3170_v53 = vld [vmem:[%s3375_s30 + $0xd0] ss:$24 sps:$4 sm:$0xff]   ;;  %v3171_v54 = vld [vmem:[%s3375_s30 + $0xfc] ss:$24 sps:$4 sm:$0xff]  }
  0x6f   : > { %1713 = vmatpush2.bf16.msra.mxu1 %v3096_v55  ;;  %1937 = vmatpush2.bf16.msra.mxu0 %v3097_v56  ;;  %v3173_v55 = vld [vmem:[%s3375_s30 + $0x104] ss:$24 sps:$4 sm:$0xff]   ;;  %v3175_v56 = vld [vmem:[%s3375_s30 + $0xf8] ss:$24 sps:$4 sm:$0xff]  }
  0x70   : > { %1714 = vmatprep.subr.bf16.mxu1 %v3307_v1  ;;  %1938 = vmatprep.subr.bf16.mxu0 %v3307_v1 }
  0x73   : > { %1715 = vmatpush2.bf16.msra.mxu1 %v3102_v57  ;;  %1939 = vmatpush2.bf16.msra.mxu0 %v3105_v58  ;;  %v3176_v57 = vld [vmem:[%s3375_s30 + $0x100] ss:$24 sps:$4 sm:$0xff]   ;;  %v3177_v58 = vld [vmem:[%s3375_s30 + $0x12c] ss:$24 sps:$4 sm:$0xff]  }
  0x74   : > { %1716 = vmatprep.subr.bf16.mxu1 %v3307_v1  ;;  %1940 = vmatprep.subr.bf16.mxu0 %v3307_v1 }
  0x75   : > { %1545 = vmatmul.mubr.bf16.gmra.mxu0 %v3086_v59  ;;  %1641 = vmatmul.mubr.bf16.gmra.mxu1 %v3087_v60  ;;  %v3179_v59 = vld [vmem:[%s3375_s30 + $0x134] ss:$24 sps:$4 sm:$0xff]   ;;  %v3181_v60 = vld [vmem:[%s3375_s30 + $0x128] ss:$24 sps:$4 sm:$0xff]  }
  0x76   : > { %1552 = vmatprep.mubr.bf16.mxu0 %v3090_v61  ;;  %1648 = vmatprep.mubr.bf16.mxu1 %v3092_v62  ;;  %v3182_v61 = vld [vmem:[%s3375_s30 + $0x130] ss:$24 sps:$4 sm:$0xff]   ;;  %v3183_v62 = vld [vmem:[%s3375_s30 + $0x15c] ss:$24 sps:$4 sm:$0xff]  }
  0x77   : > { %1717 = vmatpush2.bf16.msra.mxu1 %v3106_v63  ;;  %1941 = vmatpush2.bf16.msra.mxu0 %v3111_v0  ;;  %v3185_v63 = vld [vmem:[%s3375_s30 + $0x164] ss:$24 sps:$4 sm:$0xff]   ;;  %v3187_v0 = vld [vmem:[%s3375_s30 + $0x158] ss:$24 sps:$4 sm:$0xff]  }
  0x78   : > { %1718 = vmatprep.subr.bf16.mxu1 %v3307_v1  ;;  %1942 = vmatprep.subr.bf16.mxu0 %v3307_v1 }
  0x7b   : > { %1719 = vmatpush2.bf16.msra.mxu1 %v3114_v4  ;;  %1943 = vmatpush2.bf16.msra.mxu0 %v3115_v5  ;;  %v3191_v4 = vld [vmem:[%s3375_s30 + $0x194] ss:$24 sps:$4 sm:$0xff]   ;;  %v3193_v5 = vld [vmem:[%s3375_s30 + $0x188] ss:$24 sps:$4 sm:$0xff]  }
  0x7c   : > { %1720 = vmatprep.subr.bf16.mxu1 %v3307_v1  ;;  %1944 = vmatprep.subr.bf16.mxu0 %v3307_v1 }
  0x7d   : > { %1553 = vmatmul.mubr.bf16.gmra.mxu0 %v3094_v2  ;;  %1649 = vmatmul.mubr.bf16.gmra.mxu1 %v3095_v3  ;;  %v3188_v2 = vld [vmem:[%s3375_s30 + $0x160] ss:$24 sps:$4 sm:$0xff]   ;;  %v3189_v3 = vld [vmem:[%s3375_s30 + $0x18c] ss:$24 sps:$4 sm:$0xff]  }
  0x7e   : > { %1560 = vmatprep.mubr.bf16.mxu0 %v3098_v6  ;;  %1656 = vmatprep.mubr.bf16.mxu1 %v3100_v7  ;;  %v3194_v6 = vld [vmem:[%s3375_s30 + $0x190] ss:$24 sps:$4 sm:$0xff]   ;;  %v3195_v7 = vld [vmem:[%s3375_s30 + $0x1bc] ss:$24 sps:$4 sm:$0xff]  }
  0x7f   : > { %1721 = vmatpush2.bf16.msra.mxu1 %v3122_v8  ;;  %1945 = vmatpush2.bf16.msra.mxu0 %v3123_v9  ;;  %v3197_v8 = vld [vmem:[%s3375_s30 + $0x1c4] ss:$24 sps:$4 sm:$0xff]   ;;  %v3199_v9 = vld [vmem:[%s3375_s30 + $0x1b8] ss:$24 sps:$4 sm:$0xff]  }
  0x80   : > { %1722 = vmatprep.subr.bf16.mxu1 %v3307_v1  ;;  %1946 = vmatprep.subr.bf16.mxu0 %v3307_v1 }
  0x83   : > { %1723 = vmatpush2.bf16.msra.mxu1 %v3128_v10  ;;  %1947 = vmatpush2.bf16.msra.mxu0 %v3131_v11  ;;  %v3200_v10 = vld [vmem:[%s3375_s30 + $0x1c0] ss:$24 sps:$4 sm:$0xff]   ;;  %v3201_v11 = vld [vmem:[%s3375_s30 + $0x1ec] ss:$24 sps:$4 sm:$0xff]  }
  0x84   : > { %1724 = vmatprep.subr.bf16.mxu1 %v3307_v1  ;;  %1948 = vmatprep.subr.bf16.mxu0 %v3307_v1 }
  0x85   : > { %1561 = vmatmul.mubr.bf16.gmra.mxu0 %v3103_v12  ;;  %1657 = vmatmul.mubr.bf16.gmra.mxu1 %v3104_v13  ;;  %v3203_v12 = vld [vmem:[%s3375_s30 + $0x1f4] ss:$24 sps:$4 sm:$0xff]   ;;  %v3205_v13 = vld [vmem:[%s3375_s30 + $0x1e8] ss:$24 sps:$4 sm:$0xff]  }
  0x86   : > { %1568 = vmatprep.mubr.bf16.mxu0 %v3107_v14  ;;  %1664 = vmatprep.mubr.bf16.mxu1 %v3109_v15  ;;  %v3206_v14 = vld [vmem:[%s3375_s30 + $0x1f0] ss:$24 sps:$4 sm:$0xff]   ;;  %v3207_v15 = vld [vmem:[%s3375_s30 + $0x21c] ss:$24 sps:$4 sm:$0xff]  }
  0x87   : > { %1725 = vmatpush2.bf16.msra.mxu1 %v3132_v16  ;;  %1949 = vmatpush2.bf16.msra.mxu0 %v3136_v17  ;;  %v3209_v16 = vld [vmem:[%s3375_s30 + $0x224] ss:$24 sps:$4 sm:$0xff]   ;;  %v3211_v17 = vld [vmem:[%s3375_s30 + $0x218] ss:$24 sps:$4 sm:$0xff]  }
  0x88   : > { %1726 = vmatprep.subr.bf16.mxu1 %v3307_v1  ;;  %1950 = vmatprep.subr.bf16.mxu0 %v3307_v1  ;;  %v367_v1 = vld [vmem:[%s3375_s30 + $0x450] sm:$0xff] }
  0x89   : > { %v2678_v31 = vcombine.high %v367_v1, %v367_v1  ;;  %v2677_v33 = vcombine.low %v367_v1, %v367_v1 }
  0x8b   : > { %1727 = vmatpush2.bf16.msra.mxu1 %v3139_v18  ;;  %1951 = vmatpush2.bf16.msra.mxu0 %v3140_v19  ;;  %v3212_v18 = vld [vmem:[%s3375_s30 + $0x220] ss:$24 sps:$4 sm:$0xff]   ;;  %v3213_v19 = vld [vmem:[%s3375_s30 + $0x24c] ss:$24 sps:$4 sm:$0xff]  }
  0x8d   : > { %1569 = vmatmul.mubr.bf16.gmra.mxu0 %v3112_v20  ;;  %1665 = vmatmul.mubr.bf16.gmra.mxu1 %v3113_v21  ;;  %v3215_v20 = vld [vmem:[%s3375_s30 + $0x254] ss:$24 sps:$4 sm:$0xff]   ;;  %v3217_v21 = vld [vmem:[%s3375_s30 + $0x248] ss:$24 sps:$4 sm:$0xff]  }
  0x8e   : > { %1576 = vmatprep.mubr.bf16.mxu0 %v3116_v22  ;;  %1672 = vmatprep.mubr.bf16.mxu1 %v3118_v23  ;;  %v3218_v22 = vld [vmem:[%s3375_s30 + $0x250] ss:$24 sps:$4 sm:$0xff]   ;;  %v3219_v23 = vld [vmem:[%s3375_s30 + $0x27c] ss:$24 sps:$4 sm:$0xff]  }
  0x95   : > { %1577 = vmatmul.mubr.bf16.gmra.mxu0 %v3120_v24  ;;  %1673 = vmatmul.mubr.bf16.gmra.mxu1 %v3121_v25  ;;  %v3221_v24 = vld [vmem:[%s3375_s30 + $0x284] ss:$24 sps:$4 sm:$0xff]  }
  0x96   : > { %1584 = vmatprep.mubr.bf16.mxu0 %v3124_v26  ;;  %1680 = vmatprep.mubr.bf16.mxu1 %v3126_v27 }
  0x9d   : > { %1585 = vmatmul.mubr.bf16.gmra.mxu0 %v3129_v28  ;;  %1681 = vmatmul.mubr.bf16.gmra.mxu1 %v3130_v29 }
  0x9e   : > { %1592 = vmatprep.mubr.bf16.mxu0 %v3133_v30  ;;  %1688 = vmatprep.mubr.bf16.mxu1 %v2678_v31  ;;  %v3223_v30 = vld [vmem:[%s3375_s30 + $0x278] ss:$24 sps:$4 sm:$0xff]  }
  0x9f   : > { %v3224_v31 = vld [vmem:[%s3375_s30 + $0x280] ss:$24 sps:$4 sm:$0xff]  }
  0xa5   : > { %1593 = vmatmul.mubr.bf16.gmra.mxu0 %v3137_v32  ;;  %1689 = vmatmul.mubr.bf16.gmra.mxu1 %v2677_v33  ;;  %v3225_v32 = vld [vmem:[%s3375_s30 + $0x2ac] ss:$24 sps:$4 sm:$0xff]  }
  0xa6   : > { %1728 = vmatprep.mubr.bf16.mxu1 %v3143_v34  ;;  %1952 = vmatprep.mubr.bf16.mxu0 %v3146_v35  ;;  %v3227_v33 = vld [vmem:[%s3375_s30 + $0x2b4] ss:$24 sps:$4 sm:$0xff]  }
  0xad   : > { %1729 = vmatmul.mubr.bf16.vlgmr.msra.gmra.mxu1 %v3141_v36  ;;  %1953 = vmatmul.mubr.bf16.vlgmr.msra.gmra.mxu0 %v3144_v37 }
  0xae   : > { %1736 = vmatprep.mubr.bf16.mxu1 %v3147_v38  ;;  %1960 = vmatprep.mubr.bf16.mxu0 %v3149_v39 }
  0xb5   : > { %1737 = vmatmul.mubr.bf16.gmra.mxu1 %v3151_v40  ;;  %1961 = vmatmul.mubr.bf16.gmra.mxu0 %v3152_v41 }
  0xb6   : > { %1744 = vmatprep.mubr.bf16.mxu1 %v3153_v42  ;;  %1968 = vmatprep.mubr.bf16.mxu0 %v3155_v43  ;;  %v3229_v42 = vld [vmem:[%s3375_s30 + $0x2a8] ss:$24 sps:$4 sm:$0xff]  }
  0xb7   : > { %v3230_v43 = vld [vmem:[%s3375_s30 + $0x2b0] ss:$24 sps:$4 sm:$0xff]  }
  0xbd   : > { %1745 = vmatmul.mubr.bf16.gmra.mxu1 %v3157_v44  ;;  %1969 = vmatmul.mubr.bf16.gmra.mxu0 %v3158_v45  ;;  %v3231_v44 = vld [vmem:[%s3375_s30 + $0x2dc] ss:$24 sps:$4 sm:$0xff]  }
  0xbe   : > { %1752 = vmatprep.mubr.bf16.mxu1 %v3159_v46  ;;  %1976 = vmatprep.mubr.bf16.mxu0 %v3161_v47  ;;  %v3233_v45 = vld [vmem:[%s3375_s30 + $0x2e4] ss:$24 sps:$4 sm:$0xff]  }
  0xc5   : > { %1753 = vmatmul.mubr.bf16.gmra.mxu1 %v3163_v48  ;;  %1977 = vmatmul.mubr.bf16.gmra.mxu0 %v3164_v49 }
  0xc6   : > { %1760 = vmatprep.mubr.bf16.mxu1 %v3165_v50  ;;  %1984 = vmatprep.mubr.bf16.mxu0 %v3167_v51 }
  0xcd   : > { %1761 = vmatmul.mubr.bf16.gmra.mxu1 %v3169_v52  ;;  %1985 = vmatmul.mubr.bf16.gmra.mxu0 %v3170_v53 }
  0xce   : > { %1768 = vmatprep.mubr.bf16.mxu1 %v3171_v54  ;;  %1992 = vmatprep.mubr.bf16.mxu0 %v3173_v55  ;;  %v3235_v54 = vld [vmem:[%s3375_s30 + $0x2d8] ss:$24 sps:$4 sm:$0xff]  }
  0xcf   : > { %v3236_v55 = vld [vmem:[%s3375_s30 + $0x2e0] ss:$24 sps:$4 sm:$0xff]  }
  0xd5   : > { %1769 = vmatmul.mubr.bf16.gmra.mxu1 %v3175_v56  ;;  %1993 = vmatmul.mubr.bf16.gmra.mxu0 %v3176_v57  ;;  %v3239_v56 = vld [vmem:[%s3375_s30 + $0x30c] ss:$24 sps:$4 sm:$0xff]  }
  0xd6   : > { %1776 = vmatprep.mubr.bf16.mxu1 %v3177_v58  ;;  %2000 = vmatprep.mubr.bf16.mxu0 %v3179_v59  ;;  %v3242_v57 = vld [vmem:[%s3375_s30 + $0x314] ss:$24 sps:$4 sm:$0xff]  }
  0xdd   : > { %1777 = vmatmul.mubr.bf16.gmra.mxu1 %v3181_v60  ;;  %2001 = vmatmul.mubr.bf16.gmra.mxu0 %v3182_v61 }
  0xde   : > { %1784 = vmatprep.mubr.bf16.mxu1 %v3183_v62  ;;  %2008 = vmatprep.mubr.bf16.mxu0 %v3185_v63 }
  0xe5   : > { %1785 = vmatmul.mubr.bf16.gmra.mxu1 %v3187_v0  ;;  %2009 = vmatmul.mubr.bf16.gmra.mxu0 %v3188_v2 }
  0xe6   : > { %1792 = vmatprep.mubr.bf16.mxu1 %v3189_v3  ;;  %2016 = vmatprep.mubr.bf16.mxu0 %v3191_v4  ;;  %v3237_v3 = vld [vmem:[%s3375_s30 + $0x308] ss:$24 sps:$4 sm:$0xff]  }
  0xe7   : > { %v3240_v4 = vld [vmem:[%s3375_s30 + $0x310] ss:$24 sps:$4 sm:$0xff]  }
  0xed   : > { %1793 = vmatmul.mubr.bf16.gmra.mxu1 %v3193_v5  ;;  %2017 = vmatmul.mubr.bf16.gmra.mxu0 %v3194_v6  ;;  %v3245_v5 = vld [vmem:[%s3375_s30 + $0x33c] ss:$24 sps:$4 sm:$0xff]  }
  0xee   : > { %1800 = vmatprep.mubr.bf16.mxu1 %v3195_v7  ;;  %2024 = vmatprep.mubr.bf16.mxu0 %v3197_v8  ;;  %v3248_v6 = vld [vmem:[%s3375_s30 + $0x344] ss:$24 sps:$4 sm:$0xff]  }
  0xf5   : > { %1801 = vmatmul.mubr.bf16.gmra.mxu1 %v3199_v9  ;;  %2025 = vmatmul.mubr.bf16.gmra.mxu0 %v3200_v10 }
  0xf6   : > { %1808 = vmatprep.mubr.bf16.mxu1 %v3201_v11  ;;  %2032 = vmatprep.mubr.bf16.mxu0 %v3203_v12 }
  0xfd   : > { %1809 = vmatmul.mubr.bf16.gmra.mxu1 %v3205_v13  ;;  %2033 = vmatmul.mubr.bf16.gmra.mxu0 %v3206_v14 }
  0xfe   : > { %1816 = vmatprep.mubr.bf16.mxu1 %v3207_v15  ;;  %2040 = vmatprep.mubr.bf16.mxu0 %v3209_v16  ;;  %v3243_v15 = vld [vmem:[%s3375_s30 + $0x338] ss:$24 sps:$4 sm:$0xff]  }
  0xff   : > { %v3246_v16 = vld [vmem:[%s3375_s30 + $0x340] ss:$24 sps:$4 sm:$0xff]  }
 0x105   : > { %1817 = vmatmul.mubr.bf16.gmra.mxu1 %v3211_v17  ;;  %2041 = vmatmul.mubr.bf16.gmra.mxu0 %v3212_v18  ;;  %v3251_v17 = vld [vmem:[%s3375_s30 + $0x36c] ss:$24 sps:$4 sm:$0xff]  }
 0x106   : > { %1824 = vmatprep.mubr.bf16.mxu1 %v3213_v19  ;;  %2048 = vmatprep.mubr.bf16.mxu0 %v3215_v20  ;;  %v3254_v18 = vld [vmem:[%s3375_s30 + $0x374] ss:$24 sps:$4 sm:$0xff]  }
 0x10d   : > { %v3663_v25 = vpop.f32.mrf.mxu0  ;;  %v3665_v26 = vpop.f32.mrf.mxu1  ;;  %1825 = vmatmul.mubr.bf16.gmra.mxu1 %v3217_v21  ;;  %2049 = vmatmul.mubr.bf16.gmra.mxu0 %v3218_v22 }
 0x10e   : > { %1832 = vmatprep.mubr.bf16.mxu1 %v3219_v23  ;;  %2056 = vmatprep.mubr.bf16.mxu0 %v3221_v24 }
 0x10f   : > { %v1508_v27 = vpop.f32.mrf.mxu0  ;;  %v1604_v1 = vpop.f32.mrf.mxu1 }
 0x111   : > { %v3667_v28 = vpop.f32.mrf.mxu0  ;;  %v3669_v29 = vpop.f32.mrf.mxu1 }
 0x113   : > { %v1511_v34 = vpop.f32.mrf.mxu0  ;;  %v1607_v35 = vpop.f32.mrf.mxu1 }
 0x115   : > { %v3675_v36 = vpop.f32.mrf.mxu0  ;;  %v3677_v37 = vpop.f32.mrf.mxu1  ;;  %1833 = vmatmul.mubr.bf16.gmra.mxu1 %v3223_v30  ;;  %2057 = vmatmul.mubr.bf16.gmra.mxu0 %v3224_v31  ;;  %v3249_v30 = vld [vmem:[%s3375_s30 + $0x368] ss:$24 sps:$4 sm:$0xff]  }
 0x116   : > { %1840 = vmatprep.mubr.bf16.mxu1 %v3225_v32  ;;  %2064 = vmatprep.mubr.bf16.mxu0 %v3227_v33  ;;  %v3252_v31 = vld [vmem:[%s3375_s30 + $0x370] ss:$24 sps:$4 sm:$0xff]   ;;  %v3257_v32 = vld [vmem:[%s3375_s30 + $0x39c] ss:$24 sps:$4 sm:$0xff]  }
 0x117   : > { %v1516_v38 = vpop.f32.mrf.mxu0  ;;  %v1612_v39 = vpop.f32.mrf.mxu1  ;;  %v3260_v33 = vld [vmem:[%s3375_s30 + $0x3a4] ss:$24 sps:$4 sm:$0xff]  }
 0x119   : > { %v3679_v40 = vpop.f32.mrf.mxu0  ;;  %v3681_v41 = vpop.f32.mrf.mxu1 }
 0x11b   : > { %v1519_v46 = vpop.f32.mrf.mxu0  ;;  %v1615_v47 = vpop.f32.mrf.mxu1 }
 0x11c   : > { %v3255_v46 = vld [vmem:[%s3375_s30 + $0x398] ss:$24 sps:$4 sm:$0xff]  }
 0x11d   : > { %v3687_v48 = vpop.f32.mrf.mxu0  ;;  %v3689_v49 = vpop.f32.mrf.mxu1  ;;  %1841 = vmatmul.mubr.bf16.gmra.mxu1 %v3229_v42  ;;  %2065 = vmatmul.mubr.bf16.gmra.mxu0 %v3230_v43  ;;  %v3258_v47 = vld [vmem:[%s3375_s30 + $0x3a0] ss:$24 sps:$4 sm:$0xff]  }
 0x11e   : > { %1848 = vmatprep.mubr.bf16.mxu1 %v3231_v44  ;;  %2072 = vmatprep.mubr.bf16.mxu0 %v3233_v45 }
 0x11f   : > { %v1524_v50 = vpop.f32.mrf.mxu0  ;;  %v1620_v51 = vpop.f32.mrf.mxu1 }
 0x120   : > { %v3263_v50 = vld [vmem:[%s3375_s30 + $0x3cc] ss:$24 sps:$4 sm:$0xff]  }
 0x121   : > { %v3691_v52 = vpop.f32.mrf.mxu0  ;;  %v3693_v53 = vpop.f32.mrf.mxu1  ;;  %v3266_v51 = vld [vmem:[%s3375_s30 + $0x3d4] ss:$24 sps:$4 sm:$0xff]  }
 0x123   : > { %v1527_v58 = vpop.f32.mrf.mxu0  ;;  %v1623_v59 = vpop.f32.mrf.mxu1 }
 0x125   : > { %v3699_v60 = vpop.f32.mrf.mxu0  ;;  %v3701_v61 = vpop.f32.mrf.mxu1  ;;  %1849 = vmatmul.mubr.bf16.gmra.mxu1 %v3235_v54  ;;  %2073 = vmatmul.mubr.bf16.gmra.mxu0 %v3236_v55 }
 0x126   : > { %1856 = vmatprep.mubr.bf16.mxu1 %v3239_v56  ;;  %2080 = vmatprep.mubr.bf16.mxu0 %v3242_v57 }
 0x127   : > { %v1532_v62 = vpop.f32.mrf.mxu0  ;;  %v1628_v63 = vpop.f32.mrf.mxu1 }
 0x129   : > { %v3703_v0 = vpop.f32.mrf.mxu0  ;;  %v3705_v2 = vpop.f32.mrf.mxu1 }
 0x12b   : > { %v1535_v7 = vpop.f32.mrf.mxu0  ;;  %v1631_v8 = vpop.f32.mrf.mxu1 }
 0x12d   : > { %v3711_v9 = vpop.f32.mrf.mxu0  ;;  %v3713_v10 = vpop.f32.mrf.mxu1  ;;  %1857 = vmatmul.mubr.bf16.gmra.mxu1 %v3237_v3  ;;  %2081 = vmatmul.mubr.bf16.gmra.mxu0 %v3240_v4  ;;  %v3261_v3 = vld [vmem:[%s3375_s30 + $0x3c8] ss:$24 sps:$4 sm:$0xff]  }
 0x12e   : > { %1864 = vmatprep.mubr.bf16.mxu1 %v3245_v5  ;;  %2088 = vmatprep.mubr.bf16.mxu0 %v3248_v6  ;;  %v3264_v4 = vld [vmem:[%s3375_s30 + $0x3d0] ss:$24 sps:$4 sm:$0xff]   ;;  %v3269_v5 = vld [vmem:[%s3375_s30 + $0x3fc] ss:$24 sps:$4 sm:$0xff]  }
 0x12f   : > { %v1540_v11 = vpop.f32.mrf.mxu0  ;;  %v1636_v12 = vpop.f32.mrf.mxu1  ;;  %v3272_v6 = vld [vmem:[%s3375_s30 + $0x404] ss:$24 sps:$4 sm:$0xff]  }
 0x131   : > { %v3715_v13 = vpop.f32.mrf.mxu0  ;;  %v3717_v14 = vpop.f32.mrf.mxu1 }
 0x133   : > { %v1543_v19 = vpop.f32.mrf.mxu0  ;;  %v1639_v20 = vpop.f32.mrf.mxu1 }
 0x134   : > { %v3267_v19 = vld [vmem:[%s3375_s30 + $0x3f8] ss:$24 sps:$4 sm:$0xff]  }
 0x135   : > { %v3723_v21 = vpop.f32.mrf.mxu0  ;;  %v3725_v22 = vpop.f32.mrf.mxu1  ;;  %1865 = vmatmul.mubr.bf16.gmra.mxu1 %v3243_v15  ;;  %2089 = vmatmul.mubr.bf16.gmra.mxu0 %v3246_v16  ;;  %v3270_v20 = vld [vmem:[%s3375_s30 + $0x400] ss:$24 sps:$4 sm:$0xff]  }
 0x136   : > { %1872 = vmatprep.mubr.bf16.mxu1 %v3251_v17  ;;  %2096 = vmatprep.mubr.bf16.mxu0 %v3254_v18 }
 0x137   : > { %v1548_v23 = vpop.f32.mrf.mxu0  ;;  %v1644_v24 = vpop.f32.mrf.mxu1 }
 0x138   : > { %v3275_v23 = vld [vmem:[%s3375_s30 + $0x42c] ss:$24 sps:$4 sm:$0xff]  }
 0x139   : > { %v3727_v27 = vpop.f32.mrf.mxu0  ;;  %v3729_v1 = vpop.f32.mrf.mxu1  ;;  %v3278_v24 = vld [vmem:[%s3375_s30 + $0x434] ss:$24 sps:$4 sm:$0xff]  }
 0x13b   : > { %v1551_v34 = vpop.f32.mrf.mxu0  ;;  %v1647_v35 = vpop.f32.mrf.mxu1 }
 0x13d   : > { %v3735_v38 = vpop.f32.mrf.mxu0  ;;  %v3737_v39 = vpop.f32.mrf.mxu1  ;;  %1873 = vmatmul.mubr.bf16.gmra.mxu1 %v3249_v30  ;;  %2097 = vmatmul.mubr.bf16.gmra.mxu0 %v3252_v31 }
 0x13e   : > { %1880 = vmatprep.mubr.bf16.mxu1 %v3257_v32  ;;  %2104 = vmatprep.mubr.bf16.mxu0 %v3260_v33 }
 0x13f   : > { %v1556_v42 = vpop.f32.mrf.mxu0  ;;  %v1652_v43 = vpop.f32.mrf.mxu1 }
 0x140   : > { %v368_v42 = vld [vmem:[%s3375_s30 + $0x458] sm:$0xff]  ;;  %v369_v43 = vld [vmem:[%s3375_s30 + $0x460] sm:$0xff] }
 0x141   : > { %v3739_v44 = vpop.f32.mrf.mxu0  ;;  %v3741_v45 = vpop.f32.mrf.mxu1 }
 0x143   : > { %v1559_v54 = vpop.f32.mrf.mxu0  ;;  %v1655_v55 = vpop.f32.mrf.mxu1 }
 0x144   : > { %v2680_v54 = vcombine.high %v368_v42, %v368_v42  ;;  %v2682_v55 = vcombine.high %v369_v43, %v369_v43 }
 0x145   : > { %v3747_v56 = vpop.f32.mrf.mxu0  ;;  %v3749_v57 = vpop.f32.mrf.mxu1  ;;  %1881 = vmatmul.mubr.bf16.gmra.mxu1 %v3255_v46  ;;  %2105 = vmatmul.mubr.bf16.gmra.mxu0 %v3258_v47 }
 0x146   : > { %1888 = vmatprep.mubr.bf16.mxu1 %v3263_v50  ;;  %2112 = vmatprep.mubr.bf16.mxu0 %v3266_v51  ;;  %v3273_v50 = vld [vmem:[%s3375_s30 + $0x428] ss:$24 sps:$4 sm:$0xff]  }
 0x147   : > { %v1564_v58 = vpop.f32.mrf.mxu0  ;;  %v1660_v59 = vpop.f32.mrf.mxu1  ;;  %v3276_v51 = vld [vmem:[%s3375_s30 + $0x430] ss:$24 sps:$4 sm:$0xff]  }
 0x149   : > { %v3751_v62 = vpop.f32.mrf.mxu0  ;;  %v3753_v63 = vpop.f32.mrf.mxu1 }
 0x14b   : > { %v1567_v7 = vpop.f32.mrf.mxu0  ;;  %v1663_v8 = vpop.f32.mrf.mxu1 }
 0x14d   : > { %v3759_v11 = vpop.f32.mrf.mxu0  ;;  %v3761_v12 = vpop.f32.mrf.mxu1  ;;  %1889 = vmatmul.mubr.bf16.gmra.mxu1 %v3261_v3  ;;  %2113 = vmatmul.mubr.bf16.gmra.mxu0 %v3264_v4 }
 0x14e   : > { %1896 = vmatprep.mubr.bf16.mxu1 %v3269_v5  ;;  %2120 = vmatprep.mubr.bf16.mxu0 %v3272_v6 }
 0x14f   : > { %v1572_v15 = vpop.f32.mrf.mxu0  ;;  %v1668_v16 = vpop.f32.mrf.mxu1 }
 0x150   : > { %v2679_v15 = vcombine.low %v368_v42, %v368_v42  ;;  %v2681_v16 = vcombine.low %v369_v43, %v369_v43 }
 0x151   : > { %v3763_v17 = vpop.f32.mrf.mxu0  ;;  %v3765_v18 = vpop.f32.mrf.mxu1 }
 0x153   : > { %v1575_v30 = vpop.f32.mrf.mxu0  ;;  %v1671_v31 = vpop.f32.mrf.mxu1 }
 0x155   : > { %v3771_v32 = vpop.f32.mrf.mxu0  ;;  %v3773_v33 = vpop.f32.mrf.mxu1  ;;  %1897 = vmatmul.mubr.bf16.gmra.mxu1 %v3267_v19  ;;  %2121 = vmatmul.mubr.bf16.gmra.mxu0 %v3270_v20 }
 0x156   : > { %1904 = vmatprep.mubr.bf16.mxu1 %v3275_v23  ;;  %2128 = vmatprep.mubr.bf16.mxu0 %v3278_v24 }
 0x157   : > { %v1580_v34 = vpop.f32.mrf.mxu0  ;;  %v1676_v35 = vpop.f32.mrf.mxu1 }
 0x159   : > { %v3777_v46 = vpop.f32.mrf.mxu0  ;;  %v3779_v47 = vpop.f32.mrf.mxu1 }
 0x15b   : > { %v1583_v58 = vpop.f32.mrf.mxu0  ;;  %v1679_v59 = vpop.f32.mrf.mxu1 }
 0x15d   : > { %v3783_v3 = vpop.f32.mrf.mxu0  ;;  %v3785_v4 = vpop.f32.mrf.mxu1  ;;  %1905 = vmatmul.mubr.bf16.gmra.mxu1 %v3273_v50  ;;  %2129 = vmatmul.mubr.bf16.gmra.mxu0 %v3276_v51  ;;  %v3800_v50 = vld [vmem:[%s3937_s2] ss:$0 sm:$0xff] }
 0x15e   : > { %1912 = vmatprep.mubr.bf16.mxu1 %v2680_v54  ;;  %2136 = vmatprep.mubr.bf16.mxu0 %v2682_v55  ;;  %v1507_v51 = vadd.f32 %v3800_v50, %v3663_v25 }
 0x15f   : > { %v1588_v5 = vpop.f32.mrf.mxu0  ;;  %v1684_v6 = vpop.f32.mrf.mxu1 }
 0x160   : > { %v1510_v6 = vadd.f32 %v3800_v50, %v3667_v28 }
 0x161   : > { %v3787_v7 = vpop.f32.mrf.mxu0  ;;  %v3789_v8 = vpop.f32.mrf.mxu1 }
 0x163   : > { %v1591_v19 = vpop.f32.mrf.mxu0  ;;  %v1687_v20 = vpop.f32.mrf.mxu1 }
 0x165   : > { %v3791_v23 = vpop.f32.mrf.mxu0  ;;  %v3793_v24 = vpop.f32.mrf.mxu1  ;;  %1913 = vmatmul.mubr.bf16.gmra.mxu1 %v2679_v15  ;;  %2137 = vmatmul.mubr.bf16.gmra.mxu0 %v2681_v16 }
 0x166   : > { %3939 = vst [vmem:[#allocation2_spill] sm:$0xff] %v3793_v24 }
 0x167   : > { %v1596_v30 = vpop.f32.mrf.mxu0  ;;  %v1692_v31 = vpop.f32.mrf.mxu1 }
 0x169   : > { %v3795_v34 = vpop.f32.mrf.mxu0  ;;  %v1693_v35 = vpop.f32.mrf.mxu1 }
 0x16a   : > { %v1515_v35 = vadd.f32 %v3800_v50, %v3675_v36 }
 0x16b   : > { %v1599_v42 = vpop.f32.mrf.mxu0  ;;  %v1694_v43 = vpop.f32.mrf.mxu1 }
 0x16d   : > { %v1730_v54 = vpop.f32.mrf.mxu1  ;;  %v1954_v55 = vpop.f32.mrf.mxu0 }
 0x16e   : > { %v1731_v58 = vadd.f32 %v1730_v54, %v1507_v51 }
 0x16f   : > { %v1732_v59 = vpop.f32.mrf.mxu1  ;;  %v1956_v5 = vpop.f32.mrf.mxu0 }
 0x170   : > { %v1955_v19 = vadd.f32 %v1954_v55, %v1731_v58  ;;  %v1518_v58 = vadd.f32 %v3800_v50, %v3679_v40 }
 0x171   : > { %v1733_v15 = vpop.f32.mrf.mxu1  ;;  %v1957_v16 = vpop.f32.mrf.mxu0 }
 0x172   : > { %v1734_v20 = vadd.f32 %v1733_v15, %v1510_v6  ;;  %v2144_v24 = vmax.f32 %v1955_v19, 0.0 }
 0x173   : > { %v1735_v30 = vpop.f32.mrf.mxu1  ;;  %v1959_v31 = vpop.f32.mrf.mxu0 }
 0x174   : > { %v1958_v42 = vadd.f32 %v1957_v16, %v1734_v20  ;;  %v1523_v20 = vadd.f32 %v3800_v50, %v3687_v48 }
 0x175   : > { %v1738_v25 = vpop.f32.mrf.mxu1  ;;  %v1962_v43 = vpop.f32.mrf.mxu0 }
 0x176   : > { %v2145_v51 = vmax.f32 %v1958_v42, 0.0  ;;  %v1739_v54 = vadd.f32 %v1738_v25, %v1515_v35 }
 0x177   : > { %v1740_v28 = vpop.f32.mrf.mxu1  ;;  %v1964_v55 = vpop.f32.mrf.mxu0 }
 0x178   : > { %v2830_v59 = vpack.c.bf16 %v2145_v51, %v2144_v24  ;;  %v1963_v6 = vadd.f32 %v1962_v43, %v1739_v54  ;;  %v1526_v24 = vadd.f32 %v3800_v50, %v3691_v52 }
 0x179   : > { %v1741_v36 = vpop.f32.mrf.mxu1  ;;  %v1965_v5 = vpop.f32.mrf.mxu0 }
 0x17a   : > { %2831 = vst [vmem:[%s3812_s6] sm:$0xff] %v2830_v59   ;;  %v1742_v15 = vadd.f32 %v1741_v36, %v1518_v58  ;;  %v2146_v42 = vmax.f32 %v1963_v6, 0.0 }
 0x17b   : > { %v1743_v16 = vpop.f32.mrf.mxu1  ;;  %v1967_v19 = vpop.f32.mrf.mxu0 }
 0x17c   : > { %v1966_v30 = vadd.f32 %v1965_v5, %v1742_v15  ;;  %v1531_v5 = vadd.f32 %v3800_v50, %v3699_v60 }
 0x17d   : > { %v1746_v31 = vpop.f32.mrf.mxu1  ;;  %v1970_v35 = vpop.f32.mrf.mxu0 }
 0x17e   : > { %v2147_v25 = vmax.f32 %v1966_v30, 0.0  ;;  %v1747_v28 = vadd.f32 %v1746_v31, %v1523_v20 }
 0x17f   : > { %v1748_v55 = vpop.f32.mrf.mxu1  ;;  %v1972_v40 = vpop.f32.mrf.mxu0 }
 0x180   : > { %v2835_v51 = vpack.c.bf16 %v2147_v25, %v2146_v42  ;;  %v1971_v58 = vadd.f32 %v1970_v35, %v1747_v28  ;;  %v1534_v42 = vadd.f32 %v3800_v50, %v3703_v0 }
 0x181   : > { %v1749_v43 = vpop.f32.mrf.mxu1  ;;  %v1973_v54 = vpop.f32.mrf.mxu0 }
 0x182   : > { %2942 = vst [vmem:[%s3812_s6 + $0x8] sm:$0xff] %v2835_v51   ;;  %v1750_v59 = vadd.f32 %v1749_v43, %v1526_v24  ;;  %v2148_v19 = vmax.f32 %v1971_v58, 0.0  ;;  %v1539_v51 = vadd.f32 %v3800_v50, %v3711_v9 }
 0x183   : > { %v1751_v36 = vpop.f32.mrf.mxu1  ;;  %v1975_v48 = vpop.f32.mrf.mxu0 }
 0x184   : > { %v1974_v6 = vadd.f32 %v1973_v54, %v1750_v59 }
 0x185   : > { %v1754_v15 = vpop.f32.mrf.mxu1  ;;  %v1978_v16 = vpop.f32.mrf.mxu0 }
 0x186   : > { %v2149_v20 = vmax.f32 %v1974_v6, 0.0  ;;  %v1755_v30 = vadd.f32 %v1754_v15, %v1531_v5  ;;  %v1542_v6 = vadd.f32 %v3800_v50, %v3715_v13 }
 0x187   : > { %v1756_v31 = vpop.f32.mrf.mxu1  ;;  %v1980_v52 = vpop.f32.mrf.mxu0 }
 0x188   : > { %v2840_v25 = vpack.c.bf16 %v2149_v20, %v2148_v19  ;;  %v1979_v55 = vadd.f32 %v1978_v16, %v1755_v30  ;;  %v1547_v52 = vadd.f32 %v3800_v50, %v3723_v21 }
 0x189   : > { %v1757_v35 = vpop.f32.mrf.mxu1  ;;  %v1981_v28 = vpop.f32.mrf.mxu0 }
 0x18a   : > { %2943 = vst [vmem:[%s3812_s6 + $0x10] sm:$0xff] %v2840_v25   ;;  %v1758_v40 = vadd.f32 %v1757_v35, %v1534_v42  ;;  %v2150_v59 = vmax.f32 %v1979_v55, 0.0 }
 0x18b   : > { %v1759_v24 = vpop.f32.mrf.mxu1  ;;  %v1983_v60 = vpop.f32.mrf.mxu0 }
 0x18c   : > { %v1982_v43 = vadd.f32 %v1981_v28, %v1758_v40  ;;  %v1550_v60 = vadd.f32 %v3800_v50, %v3727_v27 }
 0x18d   : > { %v1762_v54 = vpop.f32.mrf.mxu1  ;;  %v1986_v58 = vpop.f32.mrf.mxu0 }
 0x18e   : > { %v2151_v36 = vmax.f32 %v1982_v43, 0.0  ;;  %v1763_v48 = vadd.f32 %v1762_v54, %v1539_v51 }
 0x18f   : > { %v1764_v5 = vpop.f32.mrf.mxu1  ;;  %v1988_v0 = vpop.f32.mrf.mxu0 }
 0x190   : > { %v2845_v15 = vpack.c.bf16 %v2151_v36, %v2150_v59  ;;  %v1987_v20 = vadd.f32 %v1986_v58, %v1763_v48  ;;  %v1555_v48 = vadd.f32 %v3800_v50, %v3735_v38 }
 0x191   : > { %v1765_v16 = vpop.f32.mrf.mxu1  ;;  %v1989_v19 = vpop.f32.mrf.mxu0 }
 0x192   : > { %2944 = vst [vmem:[%s3812_s6 + $0x18] sm:$0xff] %v2845_v15   ;;  %v1766_v30 = vadd.f32 %v1765_v16, %v1542_v6  ;;  %v2152_v28 = vmax.f32 %v1987_v20, 0.0 }
 0x193   : > { %v1767_v31 = vpop.f32.mrf.mxu1  ;;  %v1991_v9 = vpop.f32.mrf.mxu0 }
 0x194   : > { %v1990_v42 = vadd.f32 %v1989_v19, %v1766_v30  ;;  %v1558_v30 = vadd.f32 %v3800_v50, %v3739_v44 }
 0x195   : > { %v1770_v25 = vpop.f32.mrf.mxu1  ;;  %v1994_v35 = vpop.f32.mrf.mxu0 }
 0x196   : > { %v2153_v55 = vmax.f32 %v1990_v42, 0.0  ;;  %v1771_v40 = vadd.f32 %v1770_v25, %v1547_v52 }
 0x197   : > { %v1772_v24 = vpop.f32.mrf.mxu1  ;;  %v1996_v13 = vpop.f32.mrf.mxu0 }
 0x198   : > { %v2850_v51 = vpack.c.bf16 %v2153_v55, %v2152_v28  ;;  %v1995_v58 = vadd.f32 %v1994_v35, %v1771_v40  ;;  %v1563_v28 = vadd.f32 %v3800_v50, %v3747_v56 }
 0x199   : > { %v1773_v43 = vpop.f32.mrf.mxu1  ;;  %v1997_v54 = vpop.f32.mrf.mxu0 }
 0x19a   : > { %2945 = vst [vmem:[%s3812_s6 + $0x20] sm:$0xff] %v2850_v51   ;;  %v1774_v59 = vadd.f32 %v1773_v43, %v1550_v60  ;;  %v2154_v15 = vmax.f32 %v1995_v58, 0.0 }
 0x19b   : > { %v1775_v36 = vpop.f32.mrf.mxu1  ;;  %v1999_v21 = vpop.f32.mrf.mxu0 }
 0x19c   : > { %v1998_v5 = vadd.f32 %v1997_v54, %v1774_v59  ;;  %v1566_v54 = vadd.f32 %v3800_v50, %v3751_v62 }
 0x19d   : > { %v1778_v0 = vpop.f32.mrf.mxu1  ;;  %v2002_v6 = vpop.f32.mrf.mxu0 }
 0x19e   : > { %v2155_v16 = vmax.f32 %v1998_v5, 0.0  ;;  %v1779_v19 = vadd.f32 %v1778_v0, %v1555_v48  ;;  %v1571_v0 = vadd.f32 %v3800_v50, %v3759_v11 }
 0x19f   : > { %v1780_v20 = vpop.f32.mrf.mxu1  ;;  %v2004_v27 = vpop.f32.mrf.mxu0 }
 0x1a0   : > { %v2855_v31 = vpack.c.bf16 %v2155_v16, %v2154_v15  ;;  %v2003_v42 = vadd.f32 %v2002_v6, %v1779_v19 }
 0x1a1   : > { %v1781_v9 = vpop.f32.mrf.mxu1  ;;  %v2005_v52 = vpop.f32.mrf.mxu0 }
 0x1a2   : > { %2946 = vst [vmem:[%s3812_s6 + $0x28] sm:$0xff] %v2855_v31   ;;  %v1782_v25 = vadd.f32 %v1781_v9, %v1558_v30  ;;  %v2156_v13 = vmax.f32 %v2003_v42, 0.0  ;;  %v1574_v31 = vadd.f32 %v3800_v50, %v3763_v17 }
 0x1a3   : > { %v1783_v35 = vpop.f32.mrf.mxu1  ;;  %v2007_v38 = vpop.f32.mrf.mxu0 }
 0x1a4   : > { %v2006_v55 = vadd.f32 %v2005_v52, %v1782_v25 }
 0x1a5   : > { %v1786_v40 = vpop.f32.mrf.mxu1  ;;  %v2010_v24 = vpop.f32.mrf.mxu0 }
 0x1a6   : > { %v2157_v60 = vmax.f32 %v2006_v55, 0.0  ;;  %v1787_v51 = vadd.f32 %v1786_v40, %v1563_v28  ;;  %v1579_v28 = vadd.f32 %v3800_v50, %v3771_v32 }
 0x1a7   : > { %v1788_v43 = vpop.f32.mrf.mxu1  ;;  %v2012_v44 = vpop.f32.mrf.mxu0 }
 0x1a8   : > { %v2860_v58 = vpack.c.bf16 %v2157_v60, %v2156_v13  ;;  %v2011_v21 = vadd.f32 %v2010_v24, %v1787_v51  ;;  %v1582_v44 = vadd.f32 %v3800_v50, %v3777_v46 }
 0x1a9   : > { %v1789_v59 = vpop.f32.mrf.mxu1  ;;  %v2013_v36 = vpop.f32.mrf.mxu0 }
 0x1aa   : > { %2947 = vst [vmem:[%s3812_s6 + $0x30] sm:$0xff] %v2860_v58   ;;  %v1790_v48 = vadd.f32 %v1789_v59, %v1566_v54  ;;  %v2158_v19 = vmax.f32 %v2011_v21, 0.0 }
 0x1ab   : > { %v1791_v5 = vpop.f32.mrf.mxu1  ;;  %v2015_v56 = vpop.f32.mrf.mxu0 }
 0x1ac   : > { %v2014_v6 = vadd.f32 %v2013_v36, %v1790_v48  ;;  %v1587_v5 = vadd.f32 %v3800_v50, %v3783_v3 }
 0x1ad   : > { %v1794_v15 = vpop.f32.mrf.mxu1  ;;  %v2018_v16 = vpop.f32.mrf.mxu0 }
 0x1ae   : > { %v2159_v20 = vmax.f32 %v2014_v6, 0.0  ;;  %v1795_v27 = vadd.f32 %v1794_v15, %v1571_v0 }
 0x1af   : > { %v1796_v30 = vpop.f32.mrf.mxu1  ;;  %v2020_v62 = vpop.f32.mrf.mxu0 }
 0x1b0   : > { %v2865_v9 = vpack.c.bf16 %v2159_v20, %v2158_v19  ;;  %v2019_v25 = vadd.f32 %v2018_v16, %v1795_v27  ;;  %v1590_v27 = vadd.f32 %v3800_v50, %v3787_v7 }
 0x1b1   : > { %v1797_v52 = vpop.f32.mrf.mxu1  ;;  %v2021_v42 = vpop.f32.mrf.mxu0 }
 0x1b2   : > { %2948 = vst [vmem:[%s3812_s6 + $0x38] sm:$0xff] %v2865_v9   ;;  %v1798_v35 = vadd.f32 %v1797_v52, %v1574_v31  ;;  %v2160_v13 = vmax.f32 %v2019_v25, 0.0  ;;  %v1595_v25 = vadd.f32 %v3800_v50, %v3791_v23 }
 0x1b3   : > { %v1799_v38 = vpop.f32.mrf.mxu1  ;;  %v2023_v11 = vpop.f32.mrf.mxu0 }
 0x1b4   : > { %v2022_v55 = vadd.f32 %v2021_v42, %v1798_v35 }
 0x1b5   : > { %v1802_v40 = vpop.f32.mrf.mxu1  ;;  %v2026_v24 = vpop.f32.mrf.mxu0 }
 0x1b6   : > { %v2161_v60 = vmax.f32 %v2022_v55, 0.0  ;;  %v1803_v51 = vadd.f32 %v1802_v40, %v1579_v28 }
 0x1b7   : > { %v1804_v43 = vpop.f32.mrf.mxu1  ;;  %v2028_v17 = vpop.f32.mrf.mxu0 }
 0x1b8   : > { %v2870_v54 = vpack.c.bf16 %v2161_v60, %v2160_v13  ;;  %v2027_v36 = vadd.f32 %v2026_v24, %v1803_v51  ;;  %v1598_v13 = vadd.f32 %v3800_v50, %v3795_v34 }
 0x1b9   : > { %v1805_v58 = vpop.f32.mrf.mxu1  ;;  %v2029_v59 = vpop.f32.mrf.mxu0 }
 0x1ba   : > { %2949 = vst [vmem:[%s3812_s6 + $0x40] sm:$0xff] %v2870_v54   ;;  %v1806_v21 = vadd.f32 %v1805_v58, %v1582_v44  ;;  %v2162_v15 = vmax.f32 %v2027_v36, 0.0  ;;  %v1603_v58 = vadd.f32 %v3800_v50, %v3665_v26 }
 0x1bb   : > { %v1807_v48 = vpop.f32.mrf.mxu1  ;;  %v2031_v32 = vpop.f32.mrf.mxu0 }
 0x1bc   : > { %v2030_v56 = vadd.f32 %v2029_v59, %v1806_v21 }
 0x1bd   : > { %v1810_v0 = vpop.f32.mrf.mxu1  ;;  %v2034_v6 = vpop.f32.mrf.mxu0 }
 0x1be   : > { %v2163_v16 = vmax.f32 %v2030_v56, 0.0  ;;  %v1811_v19 = vadd.f32 %v1810_v0, %v1587_v5  ;;  %v1606_v0 = vadd.f32 %v3800_v50, %v3669_v29 }
 0x1bf   : > { %v1812_v20 = vpop.f32.mrf.mxu1  ;;  %v2036_v46 = vpop.f32.mrf.mxu0 }
 0x1c0   : > { %v2875_v30 = vpack.c.bf16 %v2163_v16, %v2162_v15  ;;  %v2035_v9 = vadd.f32 %v2034_v6, %v1811_v19 }
 0x1c1   : > { %v1813_v62 = vpop.f32.mrf.mxu1  ;;  %v2037_v31 = vpop.f32.mrf.mxu0 }
 0x1c2   : > { %2950 = vst [vmem:[%s3812_s6 + $0x48] sm:$0xff] %v2875_v30   ;;  %v1814_v52 = vadd.f32 %v1813_v62, %v1590_v27  ;;  %v2164_v28 = vmax.f32 %v2035_v9, 0.0  ;;  %v1611_v27 = vadd.f32 %v3800_v50, %v3677_v37 }
 0x1c3   : > { %v1815_v42 = vpop.f32.mrf.mxu1  ;;  %v2039_v3 = vpop.f32.mrf.mxu0 }
 0x1c4   : > { %v2038_v35 = vadd.f32 %v2037_v31, %v1814_v52 }
 0x1c5   : > { %v1818_v38 = vpop.f32.mrf.mxu1  ;;  %v2042_v11 = vpop.f32.mrf.mxu0 }
 0x1c6   : > { %v2165_v55 = vmax.f32 %v2038_v35, 0.0  ;;  %v1819_v40 = vadd.f32 %v1818_v38, %v1595_v25  ;;  %v1614_v25 = vadd.f32 %v3800_v50, %v3681_v41 }
 0x1c7   : > { %v1820_v24 = vpop.f32.mrf.mxu1  ;;  %v2044_v7 = vpop.f32.mrf.mxu0 }
 0x1c8   : > { %v2880_v60 = vpack.c.bf16 %v2165_v55, %v2164_v28  ;;  %v2043_v17 = vadd.f32 %v2042_v11, %v1819_v40  ;;  %v1619_v24 = vadd.f32 %v3800_v50, %v3689_v49 }
 0x1c9   : > { %v1821_v51 = vpop.f32.mrf.mxu1  ;;  %v2045_v43 = vpop.f32.mrf.mxu0 }
 0x1ca   : > { %2951 = vst [vmem:[%s3812_s6 + $0x50] sm:$0xff] %v2880_v60   ;;  %v1822_v44 = vadd.f32 %v1821_v51, %v1598_v13  ;;  %v2166_v48 = vmax.f32 %v2043_v17, 0.0 }
 0x1cb   : > { %v1823_v54 = vpop.f32.mrf.mxu1  ;;  %v2047_v23 = vpop.f32.mrf.mxu0 }
 0x1cc   : > { %v2046_v59 = vadd.f32 %v2045_v43, %v1822_v44  ;;  %v1622_v54 = vadd.f32 %v3800_v50, %v3693_v53 }
 0x1cd   : > { %v1826_v36 = vpop.f32.mrf.mxu1  ;;  %v2050_v21 = vpop.f32.mrf.mxu0 }
 0x1ce   : > { %v2167_v32 = vmax.f32 %v2046_v59, 0.0  ;;  %v1827_v5 = vadd.f32 %v1826_v36, %v1603_v58 }
 0x1cf   : > { %v1828_v56 = vpop.f32.mrf.mxu1  ;;  %v2052_v34 = vpop.f32.mrf.mxu0 }
 0x1d0   : > { %v2885_v6 = vpack.c.bf16 %v2167_v32, %v2166_v48  ;;  %v2051_v19 = vadd.f32 %v2050_v21, %v1827_v5  ;;  %v1627_v32 = vadd.f32 %v3800_v50, %v3701_v61 }
 0x1d1   : > { %v1829_v15 = vpop.f32.mrf.mxu1  ;;  %v2053_v16 = vpop.f32.mrf.mxu0 }
 0x1d2   : > { %2952 = vst [vmem:[%s3812_s6 + $0x58] sm:$0xff] %v2885_v6   ;;  %v1830_v20 = vadd.f32 %v1829_v15, %v1606_v0  ;;  %v2168_v9 = vmax.f32 %v2051_v19, 0.0  ;;  %v1630_v19 = vadd.f32 %v3800_v50, %v3705_v2 }
 0x1d3   : > { %v1831_v46 = vpop.f32.mrf.mxu1  ;;  %v2055_v26 = vpop.f32.mrf.mxu0 }
 0x1d4   : > { %v2054_v30 = vadd.f32 %v2053_v16, %v1830_v20 }
 0x1d5   : > { %v1834_v62 = vpop.f32.mrf.mxu1  ;;  %v2058_v31 = vpop.f32.mrf.mxu0 }
 0x1d6   : > { %v2169_v52 = vmax.f32 %v2054_v30, 0.0  ;;  %v1835_v42 = vadd.f32 %v1834_v62, %v1611_v27 }
 0x1d7   : > { %v1836_v3 = vpop.f32.mrf.mxu1  ;;  %v2060_v29 = vpop.f32.mrf.mxu0 }
 0x1d8   : > { %v2890_v35 = vpack.c.bf16 %v2169_v52, %v2168_v9  ;;  %v2059_v28 = vadd.f32 %v2058_v31, %v1835_v42  ;;  %v1635_v31 = vadd.f32 %v3800_v50, %v3713_v10 }
 0x1d9   : > { %v1837_v38 = vpop.f32.mrf.mxu1  ;;  %v2061_v11 = vpop.f32.mrf.mxu0 }
 0x1da   : > { %2953 = vst [vmem:[%s3812_s6 + $0x60] sm:$0xff] %v2890_v35   ;;  %v1838_v55 = vadd.f32 %v1837_v38, %v1614_v25  ;;  %v2170_v51 = vmax.f32 %v2059_v28, 0.0  ;;  %v1638_v38 = vadd.f32 %v3800_v50, %v3717_v14 }
 0x1db   : > { %v1839_v40 = vpop.f32.mrf.mxu1  ;;  %v2063_v37 = vpop.f32.mrf.mxu0 }
 0x1dc   : > { %v2062_v7 = vadd.f32 %v2061_v11, %v1838_v55 }
 0x1dd   : > { %v1842_v13 = vpop.f32.mrf.mxu1  ;;  %v2066_v60 = vpop.f32.mrf.mxu0 }
 0x1de   : > { %v2171_v43 = vmax.f32 %v2062_v7, 0.0  ;;  %v1843_v17 = vadd.f32 %v1842_v13, %v1619_v24  ;;  %v1643_v7 = vadd.f32 %v3800_v50, %v3725_v22 }
 0x1df   : > { %v1844_v44 = vpop.f32.mrf.mxu1  ;;  %v2068_v41 = vpop.f32.mrf.mxu0 }
 0x1e0   : > { %v2895_v23 = vpack.c.bf16 %v2171_v43, %v2170_v51  ;;  %v2067_v36 = vadd.f32 %v2066_v60, %v1843_v17 }
 0x1e1   : > { %v1845_v58 = vpop.f32.mrf.mxu1  ;;  %v2069_v59 = vpop.f32.mrf.mxu0 }
 0x1e2   : > { %2954 = vst [vmem:[%s3812_s6 + $0x68] sm:$0xff] %v2895_v23   ;;  %v1846_v21 = vadd.f32 %v1845_v58, %v1622_v54  ;;  %v2172_v0 = vmax.f32 %v2067_v36, 0.0  ;;  %v1646_v54 = vadd.f32 %v3800_v50, %v3729_v1 }
 0x1e3   : > { %v1847_v48 = vpop.f32.mrf.mxu1  ;;  %v2071_v49 = vpop.f32.mrf.mxu0 }
 0x1e4   : > { %v2070_v5 = vadd.f32 %v2069_v59, %v1846_v21  ;;  %v1651_v49 = vadd.f32 %v3800_v50, %v3737_v39 }
 0x1e5   : > { %v1850_v56 = vpop.f32.mrf.mxu1  ;;  %v2074_v34 = vpop.f32.mrf.mxu0 }
 0x1e6   : > { %v2173_v6 = vmax.f32 %v2070_v5, 0.0  ;;  %v1851_v15 = vadd.f32 %v1850_v56, %v1627_v32 }
 0x1e7   : > { %v1852_v16 = vpop.f32.mrf.mxu1  ;;  %v2076_v53 = vpop.f32.mrf.mxu0 }
 0x1e8   : > { %v2900_v20 = vpack.c.bf16 %v2173_v6, %v2172_v0  ;;  %v2075_v27 = vadd.f32 %v2074_v34, %v1851_v15  ;;  %v1654_v16 = vadd.f32 %v3800_v50, %v3741_v45 }
 0x1e9   : > { %v1853_v46 = vpop.f32.mrf.mxu1  ;;  %v2077_v26 = vpop.f32.mrf.mxu0 }
 0x1ea   : > { %2955 = vst [vmem:[%s3812_s6 + $0x70] sm:$0xff] %v2900_v20   ;;  %v1854_v30 = vadd.f32 %v1853_v46, %v1630_v19  ;;  %v2174_v3 = vmax.f32 %v2075_v27, 0.0 }
 0x1eb   : > { %v1855_v62 = vpop.f32.mrf.mxu1  ;;  %v2079_v61 = vpop.f32.mrf.mxu0 }
 0x1ec   : > { %v2078_v9 = vadd.f32 %v2077_v26, %v1854_v30  ;;  %v1659_v30 = vadd.f32 %v3800_v50, %v3749_v57 }
 0x1ed   : > { %v1858_v52 = vpop.f32.mrf.mxu1  ;;  %v2082_v42 = vpop.f32.mrf.mxu0 }
 0x1ee   : > { %v2175_v29 = vmax.f32 %v2078_v9, 0.0  ;;  %v1859_v25 = vadd.f32 %v1858_v52, %v1635_v31 }
 0x1ef   : > { %v1860_v35 = vpop.f32.mrf.mxu1  ;;  %v2084_v2 = vpop.f32.mrf.mxu0 }
 0x1f0   : > { %v2905_v11 = vpack.c.bf16 %v2175_v29, %v2174_v3  ;;  %v2083_v40 = vadd.f32 %v2082_v42, %v1859_v25  ;;  %v1662_v29 = vadd.f32 %v3800_v50, %v3753_v63 }
 0x1f1   : > { %v1861_v28 = vpop.f32.mrf.mxu1  ;;  %v2085_v55 = vpop.f32.mrf.mxu0 }
 0x1f2   : > { %2956 = vst [vmem:[%s3812_s6 + $0x78] sm:$0xff] %v2905_v11   ;;  %v1862_v37 = vadd.f32 %v1861_v28, %v1638_v38  ;;  %v2176_v43 = vmax.f32 %v2083_v40, 0.0 }
 0x1f3   : > { %v1863_v24 = vpop.f32.mrf.mxu1  ;;  %v2087_v10 = vpop.f32.mrf.mxu0 }
 0x1f4   : > { %v2086_v13 = vadd.f32 %v2085_v55, %v1862_v37  ;;  %v1667_v55 = vadd.f32 %v3800_v50, %v3761_v12 }
 0x1f5   : > { %v1866_v60 = vpop.f32.mrf.mxu1  ;;  %v2090_v51 = vpop.f32.mrf.mxu0 }
 0x1f6   : > { %v2177_v17 = vmax.f32 %v2086_v13, 0.0  ;;  %v1867_v44 = vadd.f32 %v1866_v60, %v1643_v7 }
 0x1f7   : > { %v1868_v41 = vpop.f32.mrf.mxu1  ;;  %v2092_v14 = vpop.f32.mrf.mxu0 }
 0x1f8   : > { %v2910_v23 = vpack.c.bf16 %v2177_v17, %v2176_v43  ;;  %v2091_v36 = vadd.f32 %v2090_v51, %v1867_v44  ;;  %v1670_v51 = vadd.f32 %v3800_v50, %v3765_v18 }
 0x1f9   : > { %v1869_v58 = vpop.f32.mrf.mxu1  ;;  %v2093_v59 = vpop.f32.mrf.mxu0 }
 0x1fa   : > { %2957 = vst [vmem:[%s3812_s6 + $0x80] sm:$0xff] %v2910_v23   ;;  %v1870_v21 = vadd.f32 %v1869_v58, %v1646_v54  ;;  %v2178_v34 = vmax.f32 %v2091_v36, 0.0  ;;  %v1675_v23 = vadd.f32 %v3800_v50, %v3773_v33 }
 0x1fb   : > { %v1871_v48 = vpop.f32.mrf.mxu1  ;;  %v2095_v22 = vpop.f32.mrf.mxu0 }
 0x1fc   : > { %v2094_v32 = vadd.f32 %v2093_v59, %v1870_v21 }
 0x1fd   : > { %v1874_v5 = vpop.f32.mrf.mxu1  ;;  %v2098_v56 = vpop.f32.mrf.mxu0 }
 0x1fe   : > { %v2179_v0 = vmax.f32 %v2094_v32, 0.0  ;;  %v1875_v6 = vadd.f32 %v1874_v5, %v1651_v49  ;;  %v1678_v32 = vadd.f32 %v3800_v50, %v3779_v47 }
 0x1ff   : > { %v1876_v15 = vpop.f32.mrf.mxu1  ;;  %v2100_v1 = vpop.f32.mrf.mxu0 }
 0x200   : > { %v2915_v53 = vpack.c.bf16 %v2179_v0, %v2178_v34  ;;  %v2099_v46 = vadd.f32 %v2098_v56, %v1875_v6  ;;  %v1683_v1 = vadd.f32 %v3800_v50, %v3785_v4 }
 0x201   : > { %v1877_v19 = vpop.f32.mrf.mxu1  ;;  %v2101_v20 = vpop.f32.mrf.mxu0 }
 0x202   : > { %2958 = vst [vmem:[%s3812_s6 + $0x88] sm:$0xff] %v2915_v53   ;;  %v1878_v26 = vadd.f32 %v1877_v19, %v1654_v16  ;;  %v2180_v9 = vmax.f32 %v2099_v46, 0.0 }
 0x203   : > { %v1879_v27 = vpop.f32.mrf.mxu1  ;;  %v2103_v39 = vpop.f32.mrf.mxu0 }
 0x204   : > { %v2102_v62 = vadd.f32 %v2101_v20, %v1878_v26  ;;  %v1686_v39 = vadd.f32 %v3800_v50, %v3789_v8 }
 0x205   : > { %v1882_v61 = vpop.f32.mrf.mxu1  ;;  %v2106_v31 = vpop.f32.mrf.mxu0 }
 0x206   : > { %v2181_v52 = vmax.f32 %v2102_v62, 0.0  ;;  %v1883_v42 = vadd.f32 %v1882_v61, %v1659_v30 }
 0x207   : > { %v1884_v3 = vpop.f32.mrf.mxu1  ;;  %v2108_v45 = vpop.f32.mrf.mxu0 }
 0x208   : > { %v2920_v25 = vpack.c.bf16 %v2181_v52, %v2180_v9  ;;  %v2107_v38 = vadd.f32 %v2106_v31, %v1883_v42  ;;  %v3940_v42 = vld [vmem:[#allocation2_spill] sm:$0xff] }
 0x209   : > { %v1885_v35 = vpop.f32.mrf.mxu1  ;;  %v2109_v2 = vpop.f32.mrf.mxu0  ;;  %v1691_v3 = vadd.f32 %v3800_v50, %v3940_v42 }
 0x20a   : > { %2959 = vst [vmem:[%s3812_s6 + $0x90] sm:$0xff] %v2920_v25   ;;  %v1886_v11 = vadd.f32 %v1885_v35, %v1662_v29  ;;  %v2182_v10 = vmax.f32 %v2107_v38, 0.0 }
 0x20b   : > { %v1887_v28 = vpop.f32.mrf.mxu1  ;;  %v2111_v57 = vpop.f32.mrf.mxu0 }
 0x20c   : > { %v2110_v40 = vadd.f32 %v2109_v2, %v1886_v11 }
 0x20d   : > { %v1890_v37 = vpop.f32.mrf.mxu1  ;;  %v2114_v24 = vpop.f32.mrf.mxu0 }
 0x20e   : > { %v2183_v7 = vmax.f32 %v2110_v40, 0.0  ;;  %v1891_v13 = vadd.f32 %v1890_v37, %v1667_v55 }
 0x20f   : > { %v1892_v60 = vpop.f32.mrf.mxu1  ;;  %v2116_v63 = vpop.f32.mrf.mxu0 }
 0x210   : > { %v2925_v43 = vpack.c.bf16 %v2183_v7, %v2182_v10  ;;  %v2115_v41 = vadd.f32 %v2114_v24, %v1891_v13 }
 0x211   : > { %v1893_v17 = vpop.f32.mrf.mxu1  ;;  %v2117_v44 = vpop.f32.mrf.mxu0 }
 0x212   : > { %2960 = vst [vmem:[%s3812_s6 + $0x98] sm:$0xff] %v2925_v43   ;;  %v1894_v14 = vadd.f32 %v1893_v17, %v1670_v51  ;;  %v2184_v21 = vmax.f32 %v2115_v41, 0.0 }
 0x213   : > { %v1895_v54 = vpop.f32.mrf.mxu1  ;;  %v2119_v12 = vpop.f32.mrf.mxu0 }
 0x214   : > { %v2118_v58 = vadd.f32 %v2117_v44, %v1894_v14 }
 0x215   : > { %v1898_v59 = vpop.f32.mrf.mxu1  ;;  %v2122_v36 = vpop.f32.mrf.mxu0 }
 0x216   : > { %v2185_v48 = vmax.f32 %v2118_v58, 0.0  ;;  %v1899_v22 = vadd.f32 %v1898_v59, %v1675_v23 }
 0x217   : > { %v1900_v49 = vpop.f32.mrf.mxu1  ;;  %v2124_v18 = vpop.f32.mrf.mxu0 }
 0x218   : > { %v2930_v5 = vpack.c.bf16 %v2185_v48, %v2184_v21  ;;  %v2123_v0 = vadd.f32 %v2122_v36, %v1899_v22 }
 0x219   : > { %v1901_v56 = vpop.f32.mrf.mxu1  ;;  %v2125_v34 = vpop.f32.mrf.mxu0 }
 0x21a   : > { %2961 = vst [vmem:[%s3812_s6 + $0xa0] sm:$0xff] %v2930_v5   ;;  %v1902_v6 = vadd.f32 %v1901_v56, %v1678_v32  ;;  %v2186_v20 = vmax.f32 %v2123_v0, 0.0 }
 0x21b   : > { %v1903_v15 = vpop.f32.mrf.mxu1  ;;  %v2127_v33 = vpop.f32.mrf.mxu0 }
 0x21c   : > { %v2126_v16 = vadd.f32 %v2125_v34, %v1902_v6 }
 0x21d   : > { %v1906_v53 = vpop.f32.mrf.mxu1  ;;  %v2130_v19 = vpop.f32.mrf.mxu0 }
 0x21e   : > { %v2187_v46 = vmax.f32 %v2126_v16, 0.0  ;;  %v1907_v26 = vadd.f32 %v1906_v53, %v1683_v1 }
 0x21f   : > { %v1908_v27 = vpop.f32.mrf.mxu1  ;;  %v2132_v47 = vpop.f32.mrf.mxu0 }
 0x220   : > { %v2935_v30 = vpack.c.bf16 %v2187_v46, %v2186_v20  ;;  %v2131_v31 = vadd.f32 %v2130_v19, %v1907_v26 }
 0x221   : > { %v1909_v62 = vpop.f32.mrf.mxu1  ;;  %v2133_v61 = vpop.f32.mrf.mxu0 }
 0x222   : > { %2962 = vst [vmem:[%s3812_s6 + $0xa8] sm:$0xff] %v2935_v30   ;;  %v1910_v9 = vadd.f32 %v1909_v62, %v1686_v39  ;;  %v2188_v35 = vmax.f32 %v2131_v31, 0.0 }
 0x223   : > { %v1911_v52 = vpop.f32.mrf.mxu1  ;;  %v2135_v4 = vpop.f32.mrf.mxu0 }
 0x224   : > { %v2134_v45 = vadd.f32 %v2133_v61, %v1910_v9 }
 0x225   : > { %v1914_v29 = vpop.f32.mrf.mxu1  ;;  %v2138_v25 = vpop.f32.mrf.mxu0 }
 0x226   : > { %v2189_v2 = vmax.f32 %v2134_v45, 0.0  ;;  %v1915_v38 = vadd.f32 %v1914_v29, %v1691_v3 }
 0x227   : > { %v1916_v8 = vpop.f32.mrf.mxu1  ;;  %v2140_v11 = vpop.f32.mrf.mxu0 }
 0x228   : > { %v2940_v28 = vpack.c.bf16 %v2189_v2, %v2188_v35  ;;  %v2139_v57 = vadd.f32 %v2138_v25, %v1915_v38 }
 0x229   : > { %v1917_v55 = vpop.f32.mrf.mxu1  ;;  %v2141_v40 = vpop.f32.mrf.mxu0 }
 0x22a   : > { %2963 = vst [vmem:[%s3812_s6 + $0xb0] sm:$0xff] %v2940_v28   ;;  %v2190_v37 = vmax.f32 %v2139_v57, 0.0 }
 0x22b   : > { %v1918_v24 = vpop.f32.mrf.mxu1  ;;  %v2142_v10 = vpop.f32.mrf.mxu0 }
 0x22c   : > { %v2826_v7 = vpack.c.bf16 %v2190_v37, %v2190_v37 }
 0x22e   : > { %2426 = vst [vmem:[%s3812_s6 + $0xb8] sm:$0xf] %v2826_v7 }
 0x22f PF: > { %s13_s14 = sadd.s32 1, %s3305_s14   ;;  %s3941_s12 = smov %s3301_s13 }
 0x230   : > { %p10_p5 = scmp.ge.s32.totalorder %s13_s14, 5   ;;  %s3942_s13 = smov %s3944_s15 }
 0x232   :  { %12 = sbr.rel (!%p10_p5) target bundleno = 2 (0x2), region = 68 }

// kernel: eye_patch_model_forward.7
= control target key start
LH: loop header
LB: loop body
LE: loop exit
PB: predicated region body
PF: predicated region fallthrough
CT: control target
= control target key end

     0   :  { %s827_s15 = smov 0   ;;  %s829_s16 = smov 0   ;;  %s928_s0 = inlined_call_operand.vmem [shape: bf16[26,21,128], index: 0, kind: input, shape index: {}, may-alias: {0,1,2}]   ;;  %s929_s1 = inlined_call_operand.vmem [shape: bf16[26,21,128], index: 1, kind: input, shape index: {}, may-alias: {0,1,2}]   ;;  %s930_s2 = inlined_call_operand.vmem [shape: bf16[26,21,128], index: 2, kind: input, shape index: {}, may-alias: {0,1,2}]   ;;  %s931_s3 = inlined_call_operand.vmem [shape: bf16[128,128], index: 3, kind: input, shape index: {}]   ;;  %s932_s4 = inlined_call_operand.vmem [shape: bf16[2,6,21,128], index: 4, kind: output, shape index: {}]  }
   0x1   :  { %s831_s17 = smov 0   ;;  %s833_s18 = smov 0  }
   0x2   :  { %s835_s19 = smov 0  }
   0x3 LB: > { %s23_s20 = sadd.s32 1, %s792_s17  ;;  %s26_s21 = sadd.s32 1, %s796_s18  ;;  %s800_s19 = sphi %s835_s19, %s14_s19   ;;  %s796_s18 = sphi %s833_s18, %s936_s18   ;;  %s792_s17 = sphi %s831_s17, %s935_s17   ;;  %s788_s16 = sphi %s829_s16, %s934_s16   ;;  %s784_s15 = sphi %s827_s15, %s933_s15  }
   0x4   : > { %p24_p0 = scmp.ge.s32.totalorder %s23_s20, 6  ;;  %p638_p1 = scmp.ge.s32.totalorder %s800_s19, 1 }
   0x5   : > { %p240_p2 = scmp.lt.s32.totalorder %s800_s19, 13 }
   0x6   : > { %s938_s20 = smov (%p24_p0, %s23_s20), 0  ;;  %s940_s21 = smov (!%p24_p0, %s26_s21), %s796_s18 }
   0x7   : > { %p241_p3 = pnand %p638_p1, %p240_p2  ;;  %p28_p4 = scmp.ge.s32.totalorder %s940_s21, 2 }
   0x8   : > { %s291_s24 = smul.u32 (!%p241_p3), 13, %s788_s16  ;;  %s639_s27 = sshll.u32 (!%p241_p3), %s784_s15, 1 }
   0x9   : > { %s942_s21 = smov (%p28_p4, %s940_s21), 0  ;;  %244 = sbr.rel (%p241_p3) target bundleno = 289 (0x121), region = 36 }
   0xa   : > { %s293_s28 = sadd.s32 (!%p241_p3), %s639_s27, %s291_s24  ;;  %p330_p8 = scmp.lt.s32.totalorder (!%p241_p3), %s784_s15, 5 }
   0xb   : > { %p294_p5 = scmp.lt.s32.totalorder (!%p241_p3), %s293_s28, 25  ;;  %s305_s5 = sadd.s32 (!%p241_p3), 1, %s293_s28 }
   0xc   : > { %p306_p6 = scmp.lt.s32.totalorder (!%p241_p3), %s305_s5, 25  ;;  %s318_s13 = sadd.s32 (!%p241_p3), 2, %s293_s28 }
   0xd   : > { %p319_p7 = scmp.lt.s32.totalorder (!%p241_p3), %s318_s13, 25  ;;  %p328_p9 = scmp.lt.s32.totalorder (!%p241_p3), %s788_s16, 1 }
   0xe   : > { %v742_v0 = vld [vmem:[%s931_s3 + $0x38] sm:$0xff]   ;;  %v743_v1 = vld [vmem:[%s931_s3 + $0x30] sm:$0xff]   ;;  %v744_v2 = vld [vmem:[%s931_s3 + $0x28] sm:$0xff]   ;;  %s295_s6 = scalar_select %p294_p5, %s293_s28, 25  ;;  %vm512_vm0 = vcmask 1042432  }
   0xf   : > { %677 = vmatprep.subr.bf16.mxu0 %v742_v0  ;;  %v745_v3 = vld [vmem:[%s931_s3 + $0x20] sm:$0xff]   ;;  %s944_s5 = smov (!%p306_p6, %s305_s5), 25  ;;  %v746_v4 = vld [vmem:[%s931_s3 + $0x18] sm:$0xff]   ;;  %s946_s13 = smov (!%p319_p7, %s318_s13), 25  ;;  %v747_v14 = vld [vmem:[%s931_s3 + $0x10] sm:$0xff]  }
  0x10   : > { %678 = vmatpush3.bf16.msra.mxu0 %v742_v0  ;;  %s697_s7 = smul.u32 12, %s295_s6  ;;  %v748_v21 = vld [vmem:[%s931_s3 + $0x8] sm:$0xff]   ;;  %v749_v27 = vld [vmem:[%s931_s3] sm:$0xff]   ;;  %s948_s15 = smov (!%p330_p8, %s784_s15), 5  ;;  %vm513_vm1 = vsmask.f32 2304 }
  0x11   : > { %679 = vmatprep.subr.bf16.mxu0 %v743_v1  ;;  %s698_s14 = smul.u32 12, %s944_s5  ;;  %s950_s16 = smov (!%p328_p9, %s788_s16), 1  ;;  %vm514_vm2 = vmand %vm512_vm0, %vm513_vm1 }
  0x12   : > { %s298_s12 = scalar_lea.vmem %s928_s0, %s697_s7  ;;  %s699_s27 = smul.u32 12, %s946_s13 }
  0x13   : > { %s310_s26 = scalar_lea.vmem %s929_s1, %s698_s14  ;;  %v338_v5 = vld [vmem:[%s298_s12] sm:$0xf]  ;;  %v339_v6 = vld [vmem:[%s298_s12 + $0x4] sm:$0xf]  ;;  %v340_v7 = vld [vmem:[%s298_s12 + $0x8] sm:$0x7] }
  0x14   : > { %680 = vmatpush3.bf16.msra.mxu0 %v743_v1  ;;  %v341_v8 = vld [vmem:[%s310_s26] sm:$0xf]  ;;  %v342_v9 = vld [vmem:[%s310_s26 + $0x4] sm:$0xf]  ;;  %v343_v10 = vld [vmem:[%s310_s26 + $0x8] sm:$0x7]  ;;  %s323_s6 = scalar_lea.vmem %s930_s2, %s699_s27 }
  0x15   : > { %681 = vmatprep.subr.bf16.mxu0 %v744_v2  ;;  %v344_v11 = vmax.bf16 %v341_v8, %v338_v5  ;;  %v345_v12 = vmax.bf16 %v342_v9, %v339_v6  ;;  %v346_v13 = vmax.bf16 %v343_v10, %v340_v7  ;;  %v347_v15 = vld [vmem:[%s323_s6] sm:$0xf]  ;;  %v348_v16 = vld [vmem:[%s323_s6 + $0x4] sm:$0xf]  ;;  %v349_v17 = vld [vmem:[%s323_s6 + $0x8] sm:$0x7] }
  0x16   : > { %s700_s11 = smul.u32 3, %s948_s15 }
  0x17   : > { %v350_v18 = vmax.bf16 %v347_v15, %v344_v11  ;;  %v351_v19 = vmax.bf16 %v348_v16, %v345_v12  ;;  %v352_v20 = vmax.bf16 %v349_v17, %v346_v13  ;;  %s701_s12 = smul.u32 18, %s950_s16 }
  0x18   : > { %682 = vmatpush3.bf16.msra.mxu0 %v744_v2 }
  0x19   : > { %683 = vmatprep.subr.bf16.mxu0 %v745_v3  ;;  %v893_v22 = vunpack.c.l.bf16 %v350_v18  ;;  %v895_v23 = vunpack.c.l.bf16 %v351_v19  ;;  %v355_v24 = vunpack.c.l.bf16 %v352_v20  ;;  %s334_s13 = sadd.s32 %s701_s12, %s700_s11 }
  0x1a   : > { %s645_s14 = sshll.u32 %s334_s13, 2 }
  0x1b   : > { %v356_v25 = vmul.f32 %v893_v22, %v893_v22  ;;  %v357_v26 = vmul.f32 %v895_v23, %v895_v23  ;;  %v358_v29 = vmul.f32 %v355_v24, %v355_v24  ;;  %s336_s24 = scalar_lea.vmem %s932_s4, %s645_s14 }
  0x1c   : > { %684 = vmatpush3.bf16.msra.mxu0 %v745_v3  ;;  %v515_v55 = vld [vmem:[%s336_s24 + $0x8] sm:$0x7] }
  0x1d   : > { %685 = vmatprep.subr.bf16.mxu0 %v746_v4  ;;  %v359_v28 = vpack.c.bf16 %v357_v26, %v356_v25  ;;  %v360_v30 = vpack.c.bf16 %v358_v29, %v358_v29 }
  0x1f   : > { %693 = vmatprep.mubr.bf16.mxu0 %v359_v28 }
  0x20   : > { %686 = vmatpush3.bf16.msra.mxu0 %v746_v4 }
  0x21   : > { %687 = vmatprep.subr.bf16.mxu0 %v747_v14 }
  0x24   : > { %688 = vmatpush3.bf16.msra.mxu0 %v747_v14 }
  0x25   : > { %689 = vmatprep.subr.bf16.mxu0 %v748_v21 }
  0x28   : > { %690 = vmatpush3.bf16.msra.mxu0 %v748_v21 }
  0x29   : > { %691 = vmatprep.subr.bf16.mxu0 %v749_v27 }
  0x2c   : > { %692 = vmatpush3.bf16.msra.mxu0 %v749_v27 }
  0x2f   : > { %694 = vmatmul.mubr.bf16.vlgmr.msra.gmra.mxu0 %v360_v30 }
  0xef   : > { %v695_v31 = vpop.f32.mrf.mxu0 }
  0xf0   : > { %v475_v32 = vmul.f32 2e-05, %v695_v31 }
  0xf1   : > { %v459_v33 = vpop.f32.mrf.mxu0 }
  0xf2   : > { %v478_v34 = vadd.f32 1.0, %v475_v32  ;;  %v473_v35 = vmul.f32 2e-05, %v459_v33 }
  0xf3   : > { %v696_v36 = vpop.f32.mrf.mxu0 }
  0xf4   : > { %750 = vlog2.f32 %v478_v34  ;;  %v476_v37 = vadd.f32 1.0, %v473_v35 }
  0xf5   : > { %v462_v38 = vpop.f32.mrf.mxu0 }
  0xf6   : > { %752 = vlog2.f32 %v476_v37  ;;  %v474_v39 = vmul.f32 2e-05, %v462_v38 }
  0xf8   : > { %v477_v40 = vadd.f32 1.0, %v474_v39 }
  0xfa   : > { %754 = vlog2.f32 %v477_v40 }
 0x101   : > { %v751_v41 = vpop.eup %750 }
 0x102   : > { %v484_v42 = vmul.f32 0.6931472, %v751_v41 }
 0x103   : > { %v753_v43 = vpop.eup %752 }
 0x104   : > { %v487_v44 = vmul.f32 -0.75, %v484_v42  ;;  %v480_v45 = vmul.f32 0.6931472, %v753_v43 }
 0x106   : > { %v492_v46 = vmul.f32 1.442695, %v487_v44  ;;  %v485_v47 = vmul.f32 -0.75, %v480_v45 }
 0x107   : > { %v755_v48 = vpop.eup %754 }
 0x108   : > { %756 = vpow2.f32 %v492_v46  ;;  %v488_v49 = vmul.f32 1.442695, %v485_v47  ;;  %v482_v50 = vmul.f32 0.6931472, %v755_v48 }
 0x10a   : > { %v486_v51 = vmul.f32 -0.75, %v482_v50  ;;  %758 = vpow2.f32 %v488_v49 }
 0x10c   : > { %v490_v52 = vmul.f32 1.442695, %v486_v51 }
 0x10e   : > { %760 = vpow2.f32 %v490_v52 }
 0x115   : > { %v757_v53 = vpop.eup %756 }
 0x116   : > { %v496_v54 = vmul.f32 %v757_v53, %v355_v24 }
 0x117   : > { %v759_v57 = vpop.eup %758 }
 0x118   : > { %v661_v56 = vpack.c.bf16 %v496_v54, %v496_v54  ;;  %v494_v60 = vmul.f32 %v759_v57, %v893_v22 }
 0x11a   : > { %v516_v58 = vsel %vm514_vm2, %v661_v56, %v515_v55 }
 0x11b   : > { %v761_v59 = vpop.eup %760  ;;  %517 = vst [vmem:[%s336_s24 + $0x8] sm:$0x7] %v516_v58 }
 0x11c   : > { %v495_v61 = vmul.f32 %v761_v59, %v895_v23 }
 0x11e   : > { %v665_v62 = vpack.c.bf16 %v495_v61, %v494_v60 }
 0x120   : > { %666 = vst [vmem:[%s336_s24] sm:$0xff] %v665_v62  }
 0x121 PF: > { %s14_s19 = sadd.s32 1, %s800_s19   ;;  %s933_s15 = smov %s792_s17 }
 0x122   : > { %p11_p10 = scmp.ge.s32.totalorder %s14_s19, 14   ;;  %s934_s16 = smov %s796_s18 }
 0x123   : > { %s935_s17 = smov %s938_s20  ;;  %s936_s18 = smov %s942_s21 }
 0x124   :  { %13 = sbr.rel (!%p11_p10) target bundleno = 3 (0x3), region = 72 }

// kernel: eye_patch_model_forward.9
= control target key start
LH: loop header
LB: loop body
LE: loop exit
PB: predicated region body
PF: predicated region fallthrough
CT: control target
= control target key end

     0   :  { %s981_s15 = smov 0   ;;  %s983_s16 = smov 0   ;;  %s1159_s0 = inlined_call_operand.vmem [shape: bf16[12,10,256], index: 0, kind: input, shape index: {}, may-alias: {0,1,2}]   ;;  %s1160_s1 = inlined_call_operand.vmem [shape: bf16[12,10,256], index: 1, kind: input, shape index: {}, may-alias: {0,1,2}]   ;;  %s1161_s2 = inlined_call_operand.vmem [shape: bf16[12,10,256], index: 2, kind: input, shape index: {}, may-alias: {0,1,2}]   ;;  %s1162_s3 = inlined_call_operand.vmem [shape: bf16[256,256], index: 3, kind: input, shape index: {}]   ;;  %s1163_s4 = inlined_call_operand.vmem [shape: bf16[2,2,10,256], index: 4, kind: output, shape index: {}]  }
   0x1   :  { %s985_s17 = smov 0   ;;  %s987_s18 = smov 0  }
   0x2   :  { %s989_s19 = smov 0  }
   0x3 LB: > { %s23_s20 = sadd.s32 1, %s946_s17  ;;  %s26_s21 = sadd.s32 1, %s950_s18  ;;  %s954_s19 = sphi %s989_s19, %s14_s19   ;;  %s950_s18 = sphi %s987_s18, %s1167_s18   ;;  %s946_s17 = sphi %s985_s17, %s1166_s17   ;;  %s942_s16 = sphi %s983_s16, %s1165_s16   ;;  %s938_s15 = sphi %s981_s15, %s1164_s15  }
   0x4   : > { %p24_p0 = scmp.ge.s32.totalorder %s23_s20, 2  ;;  %p758_p1 = scmp.ge.s32.totalorder %s954_s19, 1 }
   0x5   : > { %p240_p2 = scmp.lt.s32.totalorder %s954_s19, 5 }
   0x6   : > { %s1169_s20 = smov (%p24_p0, %s23_s20), 0  ;;  %s1171_s21 = smov (!%p24_p0, %s26_s21), %s950_s18 }
   0x7   : > { %p241_p3 = pnand %p758_p1, %p240_p2  ;;  %p28_p4 = scmp.ge.s32.totalorder %s1171_s21, 2 }
   0x8   : > { %s291_s24 = smul.u32 (!%p241_p3), 6, %s942_s16  ;;  %s759_s25 = sshll.u32 (!%p241_p3), %s938_s15, 1 }
   0x9   : > { %s1173_s21 = smov (%p28_p4, %s1171_s21), 0  ;;  %244 = sbr.rel (%p241_p3) target bundleno = 321 (0x141), region = 36 }
   0xa   : > { %s293_s30 = sadd.s32 (!%p241_p3), %s759_s25, %s291_s24  ;;  %p328_p8 = scmp.lt.s32.totalorder (!%p241_p3), %s942_s16, 1 }
   0xb   : > { %s305_s9 = sadd.s32 (!%p241_p3), 1, %s293_s30  ;;  %s318_s10 = sadd.s32 (!%p241_p3), 2, %s293_s30 }
   0xc   : > { %p294_p5 = scmp.lt.s32.totalorder (!%p241_p3), %s293_s30, 11  ;;  %p306_p6 = scmp.lt.s32.totalorder (!%p241_p3), %s305_s9, 11 }
   0xd   : > { %p319_p7 = scmp.lt.s32.totalorder (!%p241_p3), %s318_s10, 11  ;;  %p330_p9 = scmp.lt.s32.totalorder (!%p241_p3), %s938_s15, 1 }
   0xe   : > { %v852_v0 = vld [vmem:[%s1162_s3 + $0x74] ss:$8 sps:$4 sm:$0xff]   ;;  %v854_v1 = vld [vmem:[%s1162_s3 + $0x70] ss:$8 sps:$4 sm:$0xff]   ;;  %v855_v2 = vld [vmem:[%s1162_s3 + $0x64] ss:$8 sps:$4 sm:$0xff]  }
   0xf   : > { %549 = vmatprep.subr.bf16.mxu0 %v852_v0  ;;  %v857_v3 = vld [vmem:[%s1162_s3 + $0x60] ss:$8 sps:$4 sm:$0xff]   ;;  %v858_v4 = vld [vmem:[%s1162_s3 + $0x54] ss:$8 sps:$4 sm:$0xff]   ;;  %v860_v5 = vld [vmem:[%s1162_s3 + $0x50] ss:$8 sps:$4 sm:$0xff]  }
  0x10   : > { %550 = vmatpush1.bf16.msra.mxu0 %v854_v1  ;;  %v861_v6 = vld [vmem:[%s1162_s3 + $0x44] ss:$8 sps:$4 sm:$0xff]   ;;  %s1175_s30 = smov (!%p294_p5, %s293_s30), 11  ;;  %v863_v7 = vld [vmem:[%s1162_s3 + $0x40] ss:$8 sps:$4 sm:$0xff]   ;;  %s1177_s9 = smov (!%p306_p6, %s305_s9), 11 }
  0x11   : > { %551 = vmatprep.subr.bf16.mxu0 %v855_v2  ;;  %v864_v8 = vld [vmem:[%s1162_s3 + $0x34] ss:$8 sps:$4 sm:$0xff]   ;;  %s1179_s10 = smov (!%p319_p7, %s318_s10), 11  ;;  %v866_v9 = vld [vmem:[%s1162_s3 + $0x30] ss:$8 sps:$4 sm:$0xff]   ;;  %s807_s28 = sshll.u32 %s1175_s30, 4 }
  0x12   : > { %v867_v10 = vld [vmem:[%s1162_s3 + $0x24] ss:$8 sps:$4 sm:$0xff]   ;;  %s808_s6 = sshll.u32 %s1177_s9, 4  ;;  %s809_s7 = sshll.u32 %s1179_s10, 4  ;;  %v869_v11 = vld [vmem:[%s1162_s3 + $0x20] ss:$8 sps:$4 sm:$0xff]  }
  0x13   : > { %s298_s12 = scalar_lea.vmem %s1159_s0, %s807_s28  ;;  %s310_s30 = scalar_lea.vmem %s1160_s1, %s808_s6  ;;  %v870_v12 = vld [vmem:[%s1162_s3 + $0x14] ss:$8 sps:$4 sm:$0xff]   ;;  %v872_v18 = vld [vmem:[%s1162_s3 + $0x10] ss:$8 sps:$4 sm:$0xff]   ;;  %v873_v22 = vld [vmem:[%s1162_s3 + $0x4] ss:$8 sps:$4 sm:$0xff]  }
  0x14   : > { %552 = vmatpush1.bf16.msra.mxu0 %v857_v3  ;;  %s323_s26 = scalar_lea.vmem %s1161_s2, %s809_s7  ;;  %v337_v13 = vld [vmem:[%s298_s12] sm:$0xff]  ;;  %v338_v14 = vld [vmem:[%s298_s12 + $0x8] sm:$0x11]  ;;  %v876_v28 = vld [vmem:[%s1162_s3 + $0xf4] ss:$8 sps:$4 sm:$0xff]   ;;  %s1181_s16 = smov (!%p328_p8, %s942_s16), 1 }
  0x15   : > { %553 = vmatprep.subr.bf16.mxu0 %v858_v4  ;;  %v339_v15 = vld [vmem:[%s310_s30] sm:$0xff]  ;;  %v340_v16 = vld [vmem:[%s310_s30 + $0x8] sm:$0x11]  ;;  %v878_v31 = vld [vmem:[%s1162_s3 + $0xf0] ss:$8 sps:$4 sm:$0xff]   ;;  %s1183_s15 = smov (!%p330_p9, %s938_s15), 1 }
  0x16   : > { %v343_v17 = vld [vmem:[%s323_s26] sm:$0xff]  ;;  %v341_v19 = vmax.bf16 %v339_v15, %v337_v13  ;;  %v342_v20 = vmax.bf16 %v340_v16, %v338_v14  ;;  %v344_v21 = vld [vmem:[%s323_s26 + $0x8] sm:$0x11]  ;;  %v882_v35 = vld [vmem:[%s1162_s3 + $0xd4] ss:$8 sps:$4 sm:$0xff]   ;;  %s768_s27 = sshll.u32 %s1183_s15, 2 }
  0x17   : > { %v875_v25 = vld [vmem:[%s1162_s3] ss:$8 sps:$4 sm:$0xff]   ;;  %v879_v33 = vld [vmem:[%s1162_s3 + $0xe4] ss:$8 sps:$4 sm:$0xff]   ;;  %v884_v36 = vld [vmem:[%s1162_s3 + $0xd0] ss:$8 sps:$4 sm:$0xff]  }
  0x18   : > { %554 = vmatpush1.bf16.msra.mxu0 %v860_v5  ;;  %v345_v23 = vmax.bf16 %v343_v17, %v341_v19  ;;  %v346_v24 = vmax.bf16 %v344_v21, %v342_v20  ;;  %v881_v34 = vld [vmem:[%s1162_s3 + $0xe0] ss:$8 sps:$4 sm:$0xff]   ;;  %v885_v37 = vld [vmem:[%s1162_s3 + $0xc4] ss:$8 sps:$4 sm:$0xff]   ;;  %v888_v39 = vld [vmem:[%s1162_s3 + $0xb4] ss:$8 sps:$4 sm:$0xff]  }
  0x19   : > { %555 = vmatprep.subr.bf16.mxu0 %v861_v6  ;;  %v887_v38 = vld [vmem:[%s1162_s3 + $0xc0] ss:$8 sps:$4 sm:$0xff]   ;;  %v890_v40 = vld [vmem:[%s1162_s3 + $0xb0] ss:$8 sps:$4 sm:$0xff]   ;;  %v891_v41 = vld [vmem:[%s1162_s3 + $0xa4] ss:$8 sps:$4 sm:$0xff]  }
  0x1a   : > { %v1074_v26 = vunpack.c.h.bf16 %v345_v23  ;;  %v1076_v27 = vunpack.c.h.bf16 %v346_v24  ;;  %v893_v42 = vld [vmem:[%s1162_s3 + $0xa0] ss:$8 sps:$4 sm:$0xff]   ;;  %v894_v43 = vld [vmem:[%s1162_s3 + $0x94] ss:$8 sps:$4 sm:$0xff]   ;;  %v347_v44 = vunpack.c.l.bf16 %v345_v23  ;;  %v1121_v45 = vunpack.c.l.bf16 %v346_v24  ;;  %v896_v46 = vld [vmem:[%s1162_s3 + $0x90] ss:$8 sps:$4 sm:$0xff]  }
  0x1b   : > { %v897_v47 = vld [vmem:[%s1162_s3 + $0x84] ss:$8 sps:$4 sm:$0xff]   ;;  %v899_v50 = vld [vmem:[%s1162_s3 + $0x80] ss:$8 sps:$4 sm:$0xff]   ;;  %s769_s28 = sshll.u32 %s1181_s16, 3 }
  0x1c   : > { %556 = vmatpush1.bf16.msra.mxu0 %v863_v7  ;;  %v352_v29 = vmul.f32 %v1074_v26, %v1074_v26  ;;  %v354_v30 = vmul.f32 %v1076_v27, %v1076_v27  ;;  %v351_v48 = vmul.f32 %v347_v44, %v347_v44  ;;  %v353_v49 = vmul.f32 %v1121_v45, %v1121_v45  ;;  %s334_s29 = sadd.s32 %s769_s28, %s768_s27 }
  0x1d   : > { %557 = vmatprep.subr.bf16.mxu0 %v864_v8  ;;  %s770_s5 = sshll.u32 %s334_s29, 2 }
  0x1e   : > { %v356_v32 = vpack.c.bf16 %v354_v30, %v352_v29  ;;  %v355_v51 = vpack.c.bf16 %v353_v49, %v351_v48  ;;  %s336_s8 = scalar_lea.vmem %s1163_s4, %s770_s5 }
  0x20   : > { %558 = vmatpush1.bf16.msra.mxu0 %v866_v9  ;;  %581 = vmatprep.mubr.bf16.mxu0 %v356_v32 }
  0x21   : > { %559 = vmatprep.subr.bf16.mxu0 %v867_v10 }
  0x24   : > { %560 = vmatpush1.bf16.msra.mxu0 %v869_v11 }
  0x25   : > { %561 = vmatprep.subr.bf16.mxu0 %v870_v12 }
  0x28   : > { %562 = vmatpush1.bf16.msra.mxu0 %v872_v18 }
  0x29   : > { %563 = vmatprep.subr.bf16.mxu0 %v873_v22 }
  0x2c   : > { %564 = vmatpush1.bf16.msra.mxu0 %v875_v25 }
  0x2d   : > { %565 = vmatprep.subr.bf16.mxu0 %v876_v28 }
  0x30   : > { %566 = vmatpush2.bf16.msra.mxu0 %v878_v31 }
  0x31   : > { %567 = vmatprep.subr.bf16.mxu0 %v879_v33 }
  0x34   : > { %568 = vmatpush2.bf16.msra.mxu0 %v881_v34 }
  0x35   : > { %569 = vmatprep.subr.bf16.mxu0 %v882_v35 }
  0x38   : > { %570 = vmatpush2.bf16.msra.mxu0 %v884_v36 }
  0x39   : > { %571 = vmatprep.subr.bf16.mxu0 %v885_v37 }
  0x3c   : > { %572 = vmatpush2.bf16.msra.mxu0 %v887_v38 }
  0x3d   : > { %573 = vmatprep.subr.bf16.mxu0 %v888_v39 }
  0x40   : > { %574 = vmatpush2.bf16.msra.mxu0 %v890_v40 }
  0x41   : > { %575 = vmatprep.subr.bf16.mxu0 %v891_v41 }
  0x44   : > { %576 = vmatpush2.bf16.msra.mxu0 %v893_v42 }
  0x45   : > { %577 = vmatprep.subr.bf16.mxu0 %v894_v43 }
  0x48   : > { %578 = vmatpush2.bf16.msra.mxu0 %v896_v46 }
  0x49   : > { %579 = vmatprep.subr.bf16.mxu0 %v897_v47 }
  0x4c   : > { %580 = vmatpush2.bf16.msra.mxu0 %v899_v50 }
  0x4f   : > { %582 = vmatmul.mubr.bf16.vlgmr.msra.gmra.mxu0 %v355_v51 }
 0x10f   : > { %v583_v52 = vpop.f32.mrf.mxu0 }
 0x110   : > { %v592_v53 = vmul.f32 2e-05, %v583_v52 }
 0x111   : > { %v585_v54 = vpop.f32.mrf.mxu0 }
 0x112   : > { %v596_v55 = vadd.f32 1.0, %v592_v53  ;;  %v593_v56 = vmul.f32 2e-05, %v585_v54 }
 0x113   : > { %v587_v57 = vpop.f32.mrf.mxu0 }
 0x114   : > { %900 = vlog2.f32 %v596_v55  ;;  %v597_v58 = vadd.f32 1.0, %v593_v56  ;;  %v594_v59 = vmul.f32 2e-05, %v587_v57 }
 0x115   : > { %v589_v60 = vpop.f32.mrf.mxu0 }
 0x116   : > { %902 = vlog2.f32 %v597_v58  ;;  %v598_v61 = vadd.f32 1.0, %v594_v59  ;;  %v595_v62 = vmul.f32 2e-05, %v589_v60 }
 0x118   : > { %904 = vlog2.f32 %v598_v61  ;;  %v599_v63 = vadd.f32 1.0, %v595_v62 }
 0x11a   : > { %906 = vlog2.f32 %v599_v63 }
 0x121   : > { %v901_v0 = vpop.eup %900 }
 0x122   : > { %v601_v1 = vmul.f32 0.6931472, %v901_v0 }
 0x123   : > { %v903_v2 = vpop.eup %902 }
 0x124   : > { %v608_v3 = vmul.f32 -0.75, %v601_v1  ;;  %v603_v4 = vmul.f32 0.6931472, %v903_v2 }
 0x125   : > { %v905_v5 = vpop.eup %904 }
 0x126   : > { %v612_v6 = vmul.f32 1.442695, %v608_v3  ;;  %v609_v7 = vmul.f32 -0.75, %v603_v4  ;;  %v605_v8 = vmul.f32 0.6931472, %v905_v5 }
 0x127   : > { %v907_v9 = vpop.eup %906 }
 0x128   : > { %908 = vpow2.f32 %v612_v6  ;;  %v614_v10 = vmul.f32 1.442695, %v609_v7  ;;  %v610_v11 = vmul.f32 -0.75, %v605_v8  ;;  %v607_v12 = vmul.f32 0.6931472, %v907_v9 }
 0x12a   : > { %910 = vpow2.f32 %v614_v10  ;;  %v616_v13 = vmul.f32 1.442695, %v610_v11  ;;  %v611_v14 = vmul.f32 -0.75, %v607_v12 }
 0x12c   : > { %912 = vpow2.f32 %v616_v13  ;;  %v618_v15 = vmul.f32 1.442695, %v611_v14 }
 0x12e   : > { %914 = vpow2.f32 %v618_v15 }
 0x135   : > { %v909_v16 = vpop.eup %908 }
 0x136   : > { %v620_v18 = vmul.f32 %v909_v16, %v347_v44 }
 0x137   : > { %v911_v17 = vpop.eup %910 }
 0x138   : > { %v621_v19 = vmul.f32 %v911_v17, %v1074_v26 }
 0x139   : > { %v913_v20 = vpop.eup %912 }
 0x13a   : > { %v810_v21 = vpack.c.bf16 %v621_v19, %v620_v18  ;;  %v622_v23 = vmul.f32 %v913_v20, %v1121_v45 }
 0x13b   : > { %v915_v22 = vpop.eup %914 }
 0x13c   : > { %636 = vst [vmem:[%s336_s8] sm:$0xff] %v810_v21  ;;  %v623_v24 = vmul.f32 %v915_v22, %v1076_v27 }
 0x13e   : > { %v811_v25 = vpack.c.bf16 %v623_v24, %v622_v23 }
 0x140   : > { %637 = vst [vmem:[%s336_s8 + $0x8] sm:$0x11] %v811_v25 }
 0x141 PF: > { %s14_s19 = sadd.s32 1, %s954_s19   ;;  %s1164_s15 = smov %s946_s17 }
 0x142   : > { %p11_p10 = scmp.ge.s32.totalorder %s14_s19, 6   ;;  %s1165_s16 = smov %s950_s18 }
 0x143   : > { %s1166_s17 = smov %s1169_s20  ;;  %s1167_s18 = smov %s1173_s21 }
 0x144   :  { %13 = sbr.rel (!%p11_p10) target bundleno = 3 (0x3), region = 72 }

// kernel: eye_patch_model_forward.8
= control target key start
LH: loop header
LB: loop body
LE: loop exit
PB: predicated region body
PF: predicated region fallthrough
CT: control target
= control target key end

     0   :  { %s5647_s12 = smov 0   ;;  %s5649_s13 = smov 0   ;;  %s7292_s0 = inlined_call_operand.vmem [shape: bf16[256,2432], index: 0, kind: input, shape index: {}]   ;;  %s7293_s1 = inlined_call_operand.vmem [shape: bf16[2432,256], index: 1, kind: input, shape index: {}]   ;;  %s7294_s2 = inlined_call_operand.vmem [shape: f32[1,256], index: 2, kind: input, shape index: {}]   ;;  %s7295_s3 = inlined_call_operand.vmem [shape: bf16[256,256], index: 3, kind: output, shape index: {}]  }
   0x1   :  { %s5651_s14 = smov 0  }
   0x2 LB: > { %s25_s15 = sadd.s32 1, %s5620_s13  ;;  %p4399_p0 = scmp.ge.s32.totalorder %s5624_s14, 1  ;;  %s5624_s14 = sphi %s5651_s14, %s13_s14   ;;  %s5620_s13 = sphi %s5649_s13, %s7381_s13   ;;  %s5616_s12 = sphi %s5647_s12, %s7380_s12  }
   0x3   : > { %p27_p1 = scmp.ge.s32.totalorder %s25_s15, 2  ;;  %p174_p2 = scmp.lt.s32.totalorder %s5624_s14, 3 }
   0x5   : > { %s7383_s15 = smov (%p27_p1, %s25_s15), 0  ;;  %p175_p3 = pnand %p4399_p0, %p174_p2 }
   0x7   : > { %178 = sbr.rel (%p175_p3) target bundleno = 597 (0x255), region = 32 }
   0xc   : > { %v4922_v0 = vld [vmem:[%s7293_s1 + $0x74] ss:$8 sps:$4 sm:$0xff]   ;;  %v4926_v2 = vld [vmem:[%s7293_s1 + $0x70] ss:$8 sps:$4 sm:$0xff]   ;;  %v4928_v4 = vld [vmem:[%s7293_s1 + $0x64] ss:$8 sps:$4 sm:$0xff]  }
   0xd   : > { %v4924_v1 = vld [vmem:[%s7293_s1 + $0x174] ss:$8 sps:$4 sm:$0xff]   ;;  %3008 = vmatprep.subr.bf16.mxu0 %v4922_v0  ;;  %v4927_v3 = vld [vmem:[%s7293_s1 + $0x170] ss:$8 sps:$4 sm:$0xff]   ;;  %v4930_v5 = vld [vmem:[%s7293_s1 + $0x164] ss:$8 sps:$4 sm:$0xff]  }
   0xe   : > { %3121 = vmatprep.subr.bf16.mxu1 %v4924_v1  ;;  %3009 = vmatpush1.bf16.msra.mxu0 %v4926_v2  ;;  %v4932_v6 = vld [vmem:[%s7293_s1 + $0x60] ss:$8 sps:$4 sm:$0xff]   ;;  %v4934_v8 = vld [vmem:[%s7293_s1 + $0x54] ss:$8 sps:$4 sm:$0xff]   ;;  %v4938_v10 = vld [vmem:[%s7293_s1 + $0x50] ss:$8 sps:$4 sm:$0xff]  }
   0xf   : > { %3122 = vmatpush1.bf16.msra.mxu1 %v4927_v3  ;;  %3010 = vmatprep.subr.bf16.mxu0 %v4928_v4  ;;  %v4933_v7 = vld [vmem:[%s7293_s1 + $0x160] ss:$8 sps:$4 sm:$0xff]   ;;  %v4936_v9 = vld [vmem:[%s7293_s1 + $0x154] ss:$8 sps:$4 sm:$0xff]   ;;  %v4939_v11 = vld [vmem:[%s7293_s1 + $0x150] ss:$8 sps:$4 sm:$0xff]  }
  0x10   : > { %3123 = vmatprep.subr.bf16.mxu1 %v4930_v5  ;;  %v4940_v12 = vld [vmem:[%s7293_s1 + $0x44] ss:$8 sps:$4 sm:$0xff]   ;;  %v4944_v14 = vld [vmem:[%s7293_s1 + $0x40] ss:$8 sps:$4 sm:$0xff]   ;;  %v4946_v16 = vld [vmem:[%s7293_s1 + $0x34] ss:$8 sps:$4 sm:$0xff]  }
  0x11   : > { %v4942_v13 = vld [vmem:[%s7293_s1 + $0x144] ss:$8 sps:$4 sm:$0xff]   ;;  %v4945_v15 = vld [vmem:[%s7293_s1 + $0x140] ss:$8 sps:$4 sm:$0xff]   ;;  %v4948_v17 = vld [vmem:[%s7293_s1 + $0x134] ss:$8 sps:$4 sm:$0xff]  }
  0x12   : > { %3011 = vmatpush1.bf16.msra.mxu0 %v4932_v6  ;;  %v4950_v18 = vld [vmem:[%s7293_s1 + $0x30] ss:$8 sps:$4 sm:$0xff]   ;;  %v4952_v20 = vld [vmem:[%s7293_s1 + $0x24] ss:$8 sps:$4 sm:$0xff]   ;;  %v4956_v22 = vld [vmem:[%s7293_s1 + $0x20] ss:$8 sps:$4 sm:$0xff]  }
  0x13   : > { %3124 = vmatpush1.bf16.msra.mxu1 %v4933_v7  ;;  %3012 = vmatprep.subr.bf16.mxu0 %v4934_v8  ;;  %v4951_v19 = vld [vmem:[%s7293_s1 + $0x130] ss:$8 sps:$4 sm:$0xff]   ;;  %v4954_v21 = vld [vmem:[%s7293_s1 + $0x124] ss:$8 sps:$4 sm:$0xff]   ;;  %v4957_v23 = vld [vmem:[%s7293_s1 + $0x120] ss:$8 sps:$4 sm:$0xff]  }
  0x14   : > { %3125 = vmatprep.subr.bf16.mxu1 %v4936_v9  ;;  %v4958_v24 = vld [vmem:[%s7293_s1 + $0x14] ss:$8 sps:$4 sm:$0xff]   ;;  %v4962_v26 = vld [vmem:[%s7293_s1 + $0x10] ss:$8 sps:$4 sm:$0xff]   ;;  %v4964_v28 = vld [vmem:[%s7293_s1 + $0x4] ss:$8 sps:$4 sm:$0xff]  }
  0x15   : > { %v4960_v25 = vld [vmem:[%s7293_s1 + $0x114] ss:$8 sps:$4 sm:$0xff]   ;;  %v4963_v27 = vld [vmem:[%s7293_s1 + $0x110] ss:$8 sps:$4 sm:$0xff]   ;;  %v4966_v29 = vld [vmem:[%s7293_s1 + $0x104] ss:$8 sps:$4 sm:$0xff]  }
  0x16   : > { %3013 = vmatpush1.bf16.msra.mxu0 %v4938_v10  ;;  %s4400_s30 = sshll.u32 %s5616_s12, 4  ;;  %v4968_v30 = vld [vmem:[%s7293_s1] ss:$8 sps:$4 sm:$0xff]   ;;  %v4970_v32 = vld [vmem:[%s7293_s1 + $0xf4] ss:$8 sps:$4 sm:$0xff]  }
  0x17   : > { %3126 = vmatpush1.bf16.msra.mxu1 %v4939_v11  ;;  %3014 = vmatprep.subr.bf16.mxu0 %v4940_v12  ;;  %v4969_v31 = vld [vmem:[%s7293_s1 + $0x100] ss:$8 sps:$4 sm:$0xff]   ;;  %p214_p4 = scmp.lt.s32.totalorder %s4400_s30, 31  ;;  %v4972_v33 = vld [vmem:[%s7293_s1 + $0x1f4] ss:$8 sps:$4 sm:$0xff]  }
  0x18   : > { %3127 = vmatprep.subr.bf16.mxu1 %v4942_v13  ;;  %v4974_v34 = vld [vmem:[%s7293_s1 + $0xf0] ss:$8 sps:$4 sm:$0xff]   ;;  %v4976_v36 = vld [vmem:[%s7293_s1 + $0xe4] ss:$8 sps:$4 sm:$0xff]   ;;  %v4980_v38 = vld [vmem:[%s7293_s1 + $0xe0] ss:$8 sps:$4 sm:$0xff]  }
  0x19   : > { %v4975_v35 = vld [vmem:[%s7293_s1 + $0x1f0] ss:$8 sps:$4 sm:$0xff]   ;;  %s7385_s30 = smov (!%p214_p4, %s4400_s30), 31  ;;  %v4978_v37 = vld [vmem:[%s7293_s1 + $0x1e4] ss:$8 sps:$4 sm:$0xff]  }
  0x1a   : > { %3015 = vmatpush1.bf16.msra.mxu0 %v4944_v14  ;;  %v4981_v39 = vld [vmem:[%s7293_s1 + $0x1e0] ss:$8 sps:$4 sm:$0xff]   ;;  %v4982_v40 = vld [vmem:[%s7293_s1 + $0xd4] ss:$8 sps:$4 sm:$0xff]   ;;  %s4896_s29 = smul.u32 76, %s7385_s30 }
  0x1b   : > { %3128 = vmatpush1.bf16.msra.mxu1 %v4945_v15  ;;  %3016 = vmatprep.subr.bf16.mxu0 %v4946_v16  ;;  %v4984_v41 = vld [vmem:[%s7293_s1 + $0x1d4] ss:$8 sps:$4 sm:$0xff]   ;;  %v4986_v42 = vld [vmem:[%s7293_s1 + $0xd0] ss:$8 sps:$4 sm:$0xff]   ;;  %v4988_v44 = vld [vmem:[%s7293_s1 + $0xc4] ss:$8 sps:$4 sm:$0xff]  }
  0x1c   : > { %3129 = vmatprep.subr.bf16.mxu1 %v4948_v17  ;;  %v4987_v43 = vld [vmem:[%s7293_s1 + $0x1d0] ss:$8 sps:$4 sm:$0xff]   ;;  %s5809_s17 = scalar_lea.vmem %s7292_s0, %s4896_s29  ;;  %v4990_v45 = vld [vmem:[%s7293_s1 + $0x1c4] ss:$8 sps:$4 sm:$0xff]   ;;  %v4992_v46 = vld [vmem:[%s7293_s1 + $0xc0] ss:$8 sps:$4 sm:$0xff]  }
  0x1d   : > { %v4993_v47 = vld [vmem:[%s7293_s1 + $0x1c0] ss:$8 sps:$4 sm:$0xff]   ;;  %v4994_v48 = vld [vmem:[%s7293_s1 + $0xb4] ss:$8 sps:$4 sm:$0xff]   ;;  %v5020_v49 = vld [vmem:[%s5809_s17 + $0x4] ss:$76 sps:$4 sm:$0xff]  }
  0x1e   : > { %3017 = vmatpush1.bf16.msra.mxu0 %v4950_v18  ;;  %v4996_v50 = vld [vmem:[%s7293_s1 + $0x1b4] ss:$8 sps:$4 sm:$0xff]   ;;  %v5023_v51 = vld [vmem:[%s5809_s17 + $0xc] ss:$76 sps:$4 sm:$0xff]   ;;  %3040 = vmatprep.mubr.bf16.mxu0 %v5020_v49  ;;  %v5004_v56 = vld [vmem:[%s7293_s1 + $0xa0] ss:$8 sps:$4 sm:$0xff]  }
  0x1f   : > { %3130 = vmatpush1.bf16.msra.mxu1 %v4951_v19  ;;  %3018 = vmatprep.subr.bf16.mxu0 %v4952_v20  ;;  %v4998_v52 = vld [vmem:[%s7293_s1 + $0xb0] ss:$8 sps:$4 sm:$0xff]   ;;  %v5000_v54 = vld [vmem:[%s7293_s1 + $0xa4] ss:$8 sps:$4 sm:$0xff]   ;;  %v5005_v57 = vld [vmem:[%s7293_s1 + $0x1a0] ss:$8 sps:$4 sm:$0xff]  }
  0x20   : > { %3131 = vmatprep.subr.bf16.mxu1 %v4954_v21  ;;  %v4999_v53 = vld [vmem:[%s7293_s1 + $0x1b0] ss:$8 sps:$4 sm:$0xff]   ;;  %3153 = vmatprep.mubr.bf16.mxu1 %v5023_v51  ;;  %v5002_v55 = vld [vmem:[%s7293_s1 + $0x1a4] ss:$8 sps:$4 sm:$0xff]   ;;  %v5006_v58 = vld [vmem:[%s7293_s1 + $0x94] ss:$8 sps:$4 sm:$0xff]  }
  0x21   : > { %v5008_v59 = vld [vmem:[%s7293_s1 + $0x194] ss:$8 sps:$4 sm:$0xff]   ;;  %v5010_v60 = vld [vmem:[%s7293_s1 + $0x90] ss:$8 sps:$4 sm:$0xff]   ;;  %v5012_v62 = vld [vmem:[%s7293_s1 + $0x84] ss:$8 sps:$4 sm:$0xff]  }
  0x22   : > { %3019 = vmatpush1.bf16.msra.mxu0 %v4956_v22  ;;  %v5011_v61 = vld [vmem:[%s7293_s1 + $0x190] ss:$8 sps:$4 sm:$0xff]   ;;  %v5014_v63 = vld [vmem:[%s7293_s1 + $0x184] ss:$8 sps:$4 sm:$0xff]   ;;  %v5016_v0 = vld [vmem:[%s7293_s1 + $0x80] ss:$8 sps:$4 sm:$0xff]  }
  0x23   : > { %3132 = vmatpush1.bf16.msra.mxu1 %v4957_v23  ;;  %3020 = vmatprep.subr.bf16.mxu0 %v4958_v24  ;;  %v5017_v1 = vld [vmem:[%s7293_s1 + $0x180] ss:$8 sps:$4 sm:$0xff]   ;;  %v5026_v2 = vld [vmem:[%s7293_s1 + $0x274] ss:$8 sps:$4 sm:$0xff]   ;;  %v5024_v6 = vld [vmem:[%s7293_s1 + $0x270] ss:$8 sps:$4 sm:$0xff]  }
  0x24   : > { %3133 = vmatprep.subr.bf16.mxu1 %v4960_v25  ;;  %v5029_v3 = vld [vmem:[%s7293_s1 + $0x374] ss:$8 sps:$4 sm:$0xff]   ;;  %v5018_v4 = vld [vmem:[%s5809_s17] ss:$76 sps:$4 sm:$0xff]   ;;  %v5027_v7 = vld [vmem:[%s7293_s1 + $0x370] ss:$8 sps:$4 sm:$0xff]  }
  0x25   : > { %v5021_v5 = vld [vmem:[%s5809_s17 + $0x8] ss:$76 sps:$4 sm:$0xff]   ;;  %v5032_v8 = vld [vmem:[%s7293_s1 + $0x264] ss:$8 sps:$4 sm:$0xff]   ;;  %v5042_v18 = vld [vmem:[%s7293_s1 + $0x250] ss:$8 sps:$4 sm:$0xff]  }
  0x26   : > { %3021 = vmatpush1.bf16.msra.mxu0 %v4962_v26  ;;  %v5035_v9 = vld [vmem:[%s7293_s1 + $0x364] ss:$8 sps:$4 sm:$0xff]   ;;  %v5036_v10 = vld [vmem:[%s5809_s17 + $0x9c] ss:$76 sps:$4 sm:$0xff]   ;;  %v5045_v19 = vld [vmem:[%s7293_s1 + $0x350] ss:$8 sps:$4 sm:$0xff]  }
  0x27   : > { %3134 = vmatpush1.bf16.msra.mxu1 %v4963_v27  ;;  %3022 = vmatprep.subr.bf16.mxu0 %v4964_v28  ;;  %v5038_v11 = vld [vmem:[%s5809_s17 + $0xa4] ss:$76 sps:$4 sm:$0xff]   ;;  %v5030_v12 = vld [vmem:[%s7293_s1 + $0x260] ss:$8 sps:$4 sm:$0xff]   ;;  %v5044_v14 = vld [vmem:[%s7293_s1 + $0x254] ss:$8 sps:$4 sm:$0xff]  }
  0x28   : > { %3135 = vmatprep.subr.bf16.mxu1 %v4966_v29  ;;  %v5033_v13 = vld [vmem:[%s7293_s1 + $0x360] ss:$8 sps:$4 sm:$0xff]   ;;  %v5047_v15 = vld [vmem:[%s7293_s1 + $0x354] ss:$8 sps:$4 sm:$0xff]   ;;  %v5040_v16 = vld [vmem:[%s5809_s17 + $0x98] ss:$76 sps:$4 sm:$0xff]  }
  0x29   : > { %v5041_v17 = vld [vmem:[%s5809_s17 + $0xa0] ss:$76 sps:$4 sm:$0xff]   ;;  %v5056_v23 = vld [vmem:[%s5809_s17 + $0x13c] ss:$76 sps:$4 sm:$0xff]   ;;  %v5059_v29 = vld [vmem:[%s5809_s17 + $0x138] ss:$76 sps:$4 sm:$0xff]  }
  0x2a   : > { %3023 = vmatpush1.bf16.msra.mxu0 %v4968_v30  ;;  %v5050_v20 = vld [vmem:[%s7293_s1 + $0x244] ss:$8 sps:$4 sm:$0xff]   ;;  %v5054_v22 = vld [vmem:[%s5809_s17 + $0x134] ss:$76 sps:$4 sm:$0xff]   ;;  %v5058_v28 = vld [vmem:[%s5809_s17 + $0x130] ss:$76 sps:$4 sm:$0xff]  }
  0x2b   : > { %3136 = vmatpush1.bf16.msra.mxu1 %v4969_v31  ;;  %3024 = vmatprep.subr.bf16.mxu0 %v4970_v32  ;;  %v5053_v21 = vld [vmem:[%s7293_s1 + $0x344] ss:$8 sps:$4 sm:$0xff]   ;;  %v5048_v24 = vld [vmem:[%s7293_s1 + $0x240] ss:$8 sps:$4 sm:$0xff]   ;;  %v5062_v26 = vld [vmem:[%s7293_s1 + $0x234] ss:$8 sps:$4 sm:$0xff]  }
  0x2c   : > { %3137 = vmatprep.subr.bf16.mxu1 %v4972_v33  ;;  %v5051_v25 = vld [vmem:[%s7293_s1 + $0x340] ss:$8 sps:$4 sm:$0xff]   ;;  %v5065_v27 = vld [vmem:[%s7293_s1 + $0x334] ss:$8 sps:$4 sm:$0xff]   ;;  %v5060_v30 = vld [vmem:[%s7293_s1 + $0x230] ss:$8 sps:$4 sm:$0xff]  }
  0x2d   : > { %v5063_v31 = vld [vmem:[%s7293_s1 + $0x330] ss:$8 sps:$4 sm:$0xff]   ;;  %v5068_v32 = vld [vmem:[%s7293_s1 + $0x224] ss:$8 sps:$4 sm:$0xff]   ;;  %v5087_v49 = vld [vmem:[%s7293_s1 + $0x300] ss:$8 sps:$4 sm:$0xff]  }
  0x2e   : > { %3025 = vmatpush2.bf16.msra.mxu0 %v4974_v34  ;;  %v5071_v33 = vld [vmem:[%s7293_s1 + $0x324] ss:$8 sps:$4 sm:$0xff]   ;;  %v5101_v51 = vld [vmem:[%s7293_s1 + $0x3f4] ss:$8 sps:$4 sm:$0xff]  }
  0x2f   : > { %3138 = vmatpush2.bf16.msra.mxu1 %v4975_v35  ;;  %3026 = vmatprep.subr.bf16.mxu0 %v4976_v36  ;;  %v5072_v34 = vld [vmem:[%s5809_s17 + $0x1cc] ss:$76 sps:$4 sm:$0xff]   ;;  %v5074_v35 = vld [vmem:[%s5809_s17 + $0x1d4] ss:$76 sps:$4 sm:$0xff]  }
  0x30   : > { %3139 = vmatprep.subr.bf16.mxu1 %v4978_v37  ;;  %v5066_v36 = vld [vmem:[%s7293_s1 + $0x220] ss:$8 sps:$4 sm:$0xff]  }
  0x31   : > { %v5069_v37 = vld [vmem:[%s7293_s1 + $0x320] ss:$8 sps:$4 sm:$0xff]  }
  0x32   : > { %3027 = vmatpush2.bf16.msra.mxu0 %v4980_v38  ;;  %v5080_v38 = vld [vmem:[%s7293_s1 + $0x214] ss:$8 sps:$4 sm:$0xff]  }
  0x33   : > { %3140 = vmatpush2.bf16.msra.mxu1 %v4981_v39  ;;  %3028 = vmatprep.subr.bf16.mxu0 %v4982_v40  ;;  %v5083_v39 = vld [vmem:[%s7293_s1 + $0x314] ss:$8 sps:$4 sm:$0xff]  }
  0x34   : > { %3141 = vmatprep.subr.bf16.mxu1 %v4984_v41  ;;  %v5076_v40 = vld [vmem:[%s5809_s17 + $0x1c8] ss:$76 sps:$4 sm:$0xff]   ;;  %v5077_v41 = vld [vmem:[%s5809_s17 + $0x1d0] ss:$76 sps:$4 sm:$0xff]  }
  0x36   : > { %3029 = vmatpush2.bf16.msra.mxu0 %v4986_v42  ;;  %v5078_v42 = vld [vmem:[%s7293_s1 + $0x210] ss:$8 sps:$4 sm:$0xff]  }
  0x37   : > { %3142 = vmatpush2.bf16.msra.mxu1 %v4987_v43  ;;  %3030 = vmatprep.subr.bf16.mxu0 %v4988_v44  ;;  %v5081_v43 = vld [vmem:[%s7293_s1 + $0x310] ss:$8 sps:$4 sm:$0xff]   ;;  %v5086_v44 = vld [vmem:[%s7293_s1 + $0x204] ss:$8 sps:$4 sm:$0xff]  }
  0x38   : > { %3143 = vmatprep.subr.bf16.mxu1 %v4990_v45  ;;  %v5089_v45 = vld [vmem:[%s7293_s1 + $0x304] ss:$8 sps:$4 sm:$0xff]  }
  0x3a   : > { %3031 = vmatpush2.bf16.msra.mxu0 %v4992_v46  ;;  %v5090_v46 = vld [vmem:[%s5809_s17 + $0x264] ss:$76 sps:$4 sm:$0xff]  }
  0x3b   : > { %3144 = vmatpush2.bf16.msra.mxu1 %v4993_v47  ;;  %3032 = vmatprep.subr.bf16.mxu0 %v4994_v48  ;;  %v5092_v47 = vld [vmem:[%s5809_s17 + $0x26c] ss:$76 sps:$4 sm:$0xff]   ;;  %v5084_v48 = vld [vmem:[%s7293_s1 + $0x200] ss:$8 sps:$4 sm:$0xff]  }
  0x3c   : > { %3145 = vmatprep.subr.bf16.mxu1 %v4996_v50  ;;  %v5098_v50 = vld [vmem:[%s7293_s1 + $0x2f4] ss:$8 sps:$4 sm:$0xff]  }
  0x3e   : > { %3033 = vmatpush2.bf16.msra.mxu0 %v4998_v52  ;;  %v5094_v52 = vld [vmem:[%s5809_s17 + $0x260] ss:$76 sps:$4 sm:$0xff]  }
  0x3f   : > { %3146 = vmatpush2.bf16.msra.mxu1 %v4999_v53  ;;  %3034 = vmatprep.subr.bf16.mxu0 %v5000_v54  ;;  %v5095_v53 = vld [vmem:[%s5809_s17 + $0x268] ss:$76 sps:$4 sm:$0xff]   ;;  %v5096_v54 = vld [vmem:[%s7293_s1 + $0x2f0] ss:$8 sps:$4 sm:$0xff]  }
  0x40   : > { %3147 = vmatprep.subr.bf16.mxu1 %v5002_v55  ;;  %v5099_v55 = vld [vmem:[%s7293_s1 + $0x3f0] ss:$8 sps:$4 sm:$0xff]  }
  0x42   : > { %3035 = vmatpush2.bf16.msra.mxu0 %v5004_v56  ;;  %v5104_v56 = vld [vmem:[%s7293_s1 + $0x2e4] ss:$8 sps:$4 sm:$0xff]  }
  0x43   : > { %3148 = vmatpush2.bf16.msra.mxu1 %v5005_v57  ;;  %3036 = vmatprep.subr.bf16.mxu0 %v5006_v58  ;;  %v5107_v57 = vld [vmem:[%s7293_s1 + $0x3e4] ss:$8 sps:$4 sm:$0xff]   ;;  %v5108_v58 = vld [vmem:[%s5809_s17 + $0x2fc] ss:$76 sps:$4 sm:$0xff]  }
  0x44   : > { %3149 = vmatprep.subr.bf16.mxu1 %v5008_v59  ;;  %v5110_v59 = vld [vmem:[%s5809_s17 + $0x304] ss:$76 sps:$4 sm:$0xff]  }
  0x46   : > { %3037 = vmatpush2.bf16.msra.mxu0 %v5010_v60  ;;  %v5102_v60 = vld [vmem:[%s7293_s1 + $0x2e0] ss:$8 sps:$4 sm:$0xff]  }
  0x47   : > { %3150 = vmatpush2.bf16.msra.mxu1 %v5011_v61  ;;  %3038 = vmatprep.subr.bf16.mxu0 %v5012_v62  ;;  %v5105_v61 = vld [vmem:[%s7293_s1 + $0x3e0] ss:$8 sps:$4 sm:$0xff]   ;;  %v5116_v62 = vld [vmem:[%s7293_s1 + $0x2d4] ss:$8 sps:$4 sm:$0xff]  }
  0x48   : > { %3151 = vmatprep.subr.bf16.mxu1 %v5014_v63  ;;  %v5119_v63 = vld [vmem:[%s7293_s1 + $0x3d4] ss:$8 sps:$4 sm:$0xff]  }
  0x4a   : > { %3039 = vmatpush2.bf16.msra.mxu0 %v5016_v0  ;;  %v5112_v0 = vld [vmem:[%s5809_s17 + $0x2f8] ss:$76 sps:$4 sm:$0xff]  }
  0x4b   : > { %3152 = vmatpush2.bf16.msra.mxu1 %v5017_v1  ;;  %3234 = vmatprep.subr.bf16.mxu0 %v5026_v2  ;;  %v5113_v1 = vld [vmem:[%s5809_s17 + $0x300] ss:$76 sps:$4 sm:$0xff]   ;;  %v5114_v2 = vld [vmem:[%s7293_s1 + $0x2d0] ss:$8 sps:$4 sm:$0xff]  }
  0x4c   : > { %3347 = vmatprep.subr.bf16.mxu1 %v5029_v3  ;;  %v5117_v3 = vld [vmem:[%s7293_s1 + $0x3d0] ss:$8 sps:$4 sm:$0xff]  }
  0x4d   : > { %3041 = vmatmul.mubr.bf16.vlgmr.msra.gmra.mxu0 %v5018_v4  ;;  %v5122_v4 = vld [vmem:[%s7293_s1 + $0x2c4] ss:$8 sps:$4 sm:$0xff]  }
  0x4e   : > { %3154 = vmatmul.mubr.bf16.vlgmr.msra.gmra.mxu1 %v5021_v5  ;;  %3235 = vmatpush1.bf16.msra.mxu0 %v5024_v6  ;;  %v5125_v5 = vld [vmem:[%s7293_s1 + $0x3c4] ss:$8 sps:$4 sm:$0xff]   ;;  %v5126_v6 = vld [vmem:[%s5809_s17 + $0x394] ss:$76 sps:$4 sm:$0xff]  }
  0x4f   : > { %3348 = vmatpush1.bf16.msra.mxu1 %v5027_v7  ;;  %3236 = vmatprep.subr.bf16.mxu0 %v5032_v8  ;;  %v5128_v7 = vld [vmem:[%s5809_s17 + $0x39c] ss:$76 sps:$4 sm:$0xff]  }
  0x50   : > { %3349 = vmatprep.subr.bf16.mxu1 %v5035_v9  ;;  %3050 = vmatprep.mubr.bf16.mxu0 %v5036_v10  ;;  %v5120_v8 = vld [vmem:[%s7293_s1 + $0x2c0] ss:$8 sps:$4 sm:$0xff]   ;;  %v5134_v10 = vld [vmem:[%s7293_s1 + $0x2b4] ss:$8 sps:$4 sm:$0xff]  }
  0x51   : > { %3163 = vmatprep.mubr.bf16.mxu1 %v5038_v11  ;;  %v5123_v9 = vld [vmem:[%s7293_s1 + $0x3c0] ss:$8 sps:$4 sm:$0xff]   ;;  %v5137_v11 = vld [vmem:[%s7293_s1 + $0x3b4] ss:$8 sps:$4 sm:$0xff]  }
  0x52   : > { %3237 = vmatpush1.bf16.msra.mxu0 %v5030_v12  ;;  %v5130_v12 = vld [vmem:[%s5809_s17 + $0x390] ss:$76 sps:$4 sm:$0xff]  }
  0x53   : > { %3350 = vmatpush1.bf16.msra.mxu1 %v5033_v13  ;;  %3238 = vmatprep.subr.bf16.mxu0 %v5044_v14  ;;  %v5131_v13 = vld [vmem:[%s5809_s17 + $0x398] ss:$76 sps:$4 sm:$0xff]  }
  0x54   : > { %3351 = vmatprep.subr.bf16.mxu1 %v5047_v15  ;;  %v5132_v14 = vld [vmem:[%s7293_s1 + $0x2b0] ss:$8 sps:$4 sm:$0xff]  }
  0x55   : > { %3051 = vmatmul.mubr.bf16.gmra.mxu0 %v5040_v16  ;;  %v5135_v15 = vld [vmem:[%s7293_s1 + $0x3b0] ss:$8 sps:$4 sm:$0xff]   ;;  %v5140_v16 = vld [vmem:[%s7293_s1 + $0x2a4] ss:$8 sps:$4 sm:$0xff]  }
  0x56   : > { %3164 = vmatmul.mubr.bf16.gmra.mxu1 %v5041_v17  ;;  %3239 = vmatpush1.bf16.msra.mxu0 %v5042_v18  ;;  %v5143_v17 = vld [vmem:[%s7293_s1 + $0x3a4] ss:$8 sps:$4 sm:$0xff]  }
  0x57   : > { %3352 = vmatpush1.bf16.msra.mxu1 %v5045_v19  ;;  %3240 = vmatprep.subr.bf16.mxu0 %v5050_v20  ;;  %v5144_v18 = vld [vmem:[%s5809_s17 + $0x42c] ss:$76 sps:$4 sm:$0xff]   ;;  %v5146_v19 = vld [vmem:[%s5809_s17 + $0x434] ss:$76 sps:$4 sm:$0xff]  }
  0x58   : > { %3353 = vmatprep.subr.bf16.mxu1 %v5053_v21  ;;  %3060 = vmatprep.mubr.bf16.mxu0 %v5054_v22  ;;  %v5138_v20 = vld [vmem:[%s7293_s1 + $0x2a0] ss:$8 sps:$4 sm:$0xff]   ;;  %v5152_v22 = vld [vmem:[%s7293_s1 + $0x294] ss:$8 sps:$4 sm:$0xff]  }
  0x59   : > { %3173 = vmatprep.mubr.bf16.mxu1 %v5056_v23  ;;  %v5141_v21 = vld [vmem:[%s7293_s1 + $0x3a0] ss:$8 sps:$4 sm:$0xff]   ;;  %v5155_v23 = vld [vmem:[%s7293_s1 + $0x394] ss:$8 sps:$4 sm:$0xff]  }
  0x5a   : > { %3241 = vmatpush1.bf16.msra.mxu0 %v5048_v24  ;;  %v5148_v24 = vld [vmem:[%s5809_s17 + $0x428] ss:$76 sps:$4 sm:$0xff]  }
  0x5b   : > { %3354 = vmatpush1.bf16.msra.mxu1 %v5051_v25  ;;  %3242 = vmatprep.subr.bf16.mxu0 %v5062_v26  ;;  %v5149_v25 = vld [vmem:[%s5809_s17 + $0x430] ss:$76 sps:$4 sm:$0xff]  }
  0x5c   : > { %3355 = vmatprep.subr.bf16.mxu1 %v5065_v27  ;;  %v5150_v26 = vld [vmem:[%s7293_s1 + $0x290] ss:$8 sps:$4 sm:$0xff]  }
  0x5d   : > { %3061 = vmatmul.mubr.bf16.gmra.mxu0 %v5058_v28  ;;  %v5153_v27 = vld [vmem:[%s7293_s1 + $0x390] ss:$8 sps:$4 sm:$0xff]   ;;  %v5158_v28 = vld [vmem:[%s7293_s1 + $0x284] ss:$8 sps:$4 sm:$0xff]  }
  0x5e   : > { %3174 = vmatmul.mubr.bf16.gmra.mxu1 %v5059_v29  ;;  %3243 = vmatpush1.bf16.msra.mxu0 %v5060_v30  ;;  %v5161_v29 = vld [vmem:[%s7293_s1 + $0x384] ss:$8 sps:$4 sm:$0xff]   ;;  %v5164_v30 = vld [vmem:[%s5809_s17 + $0x14] ss:$76 sps:$4 sm:$0xff]  }
  0x5f   : > { %3356 = vmatpush1.bf16.msra.mxu1 %v5063_v31  ;;  %3244 = vmatprep.subr.bf16.mxu0 %v5068_v32  ;;  %v5167_v31 = vld [vmem:[%s5809_s17 + $0x1c] ss:$76 sps:$4 sm:$0xff]  }
  0x60   : > { %3357 = vmatprep.subr.bf16.mxu1 %v5071_v33  ;;  %3070 = vmatprep.mubr.bf16.mxu0 %v5072_v34  ;;  %v5156_v32 = vld [vmem:[%s7293_s1 + $0x280] ss:$8 sps:$4 sm:$0xff]   ;;  %v5170_v34 = vld [vmem:[%s7293_s1 + $0x474] ss:$8 sps:$4 sm:$0xff]  }
  0x61   : > { %3183 = vmatprep.mubr.bf16.mxu1 %v5074_v35  ;;  %v5159_v33 = vld [vmem:[%s7293_s1 + $0x380] ss:$8 sps:$4 sm:$0xff]   ;;  %v5173_v35 = vld [vmem:[%s7293_s1 + $0x574] ss:$8 sps:$4 sm:$0xff]  }
  0x62   : > { %3245 = vmatpush1.bf16.msra.mxu0 %v5066_v36  ;;  %v5162_v36 = vld [vmem:[%s5809_s17 + $0x10] ss:$76 sps:$4 sm:$0xff]  }
  0x63   : > { %3358 = vmatpush1.bf16.msra.mxu1 %v5069_v37  ;;  %3246 = vmatprep.subr.bf16.mxu0 %v5080_v38  ;;  %v5165_v37 = vld [vmem:[%s5809_s17 + $0x18] ss:$76 sps:$4 sm:$0xff]  }
  0x64   : > { %3359 = vmatprep.subr.bf16.mxu1 %v5083_v39  ;;  %v5168_v38 = vld [vmem:[%s7293_s1 + $0x470] ss:$8 sps:$4 sm:$0xff]  }
  0x65   : > { %3071 = vmatmul.mubr.bf16.gmra.mxu0 %v5076_v40  ;;  %v5171_v39 = vld [vmem:[%s7293_s1 + $0x570] ss:$8 sps:$4 sm:$0xff]   ;;  %v5176_v40 = vld [vmem:[%s7293_s1 + $0x464] ss:$8 sps:$4 sm:$0xff]  }
  0x66   : > { %3184 = vmatmul.mubr.bf16.gmra.mxu1 %v5077_v41  ;;  %3247 = vmatpush1.bf16.msra.mxu0 %v5078_v42  ;;  %v5179_v41 = vld [vmem:[%s7293_s1 + $0x564] ss:$8 sps:$4 sm:$0xff]  }
  0x67   : > { %3360 = vmatpush1.bf16.msra.mxu1 %v5081_v43  ;;  %3248 = vmatprep.subr.bf16.mxu0 %v5086_v44  ;;  %v5180_v42 = vld [vmem:[%s5809_s17 + $0xac] ss:$76 sps:$4 sm:$0xff]   ;;  %v5182_v43 = vld [vmem:[%s5809_s17 + $0xb4] ss:$76 sps:$4 sm:$0xff]  }
  0x68   : > { %3361 = vmatprep.subr.bf16.mxu1 %v5089_v45  ;;  %3080 = vmatprep.mubr.bf16.mxu0 %v5090_v46  ;;  %v5174_v44 = vld [vmem:[%s7293_s1 + $0x460] ss:$8 sps:$4 sm:$0xff]   ;;  %v5188_v46 = vld [vmem:[%s7293_s1 + $0x454] ss:$8 sps:$4 sm:$0xff]  }
  0x69   : > { %3193 = vmatprep.mubr.bf16.mxu1 %v5092_v47  ;;  %v5177_v45 = vld [vmem:[%s7293_s1 + $0x560] ss:$8 sps:$4 sm:$0xff]   ;;  %v5191_v47 = vld [vmem:[%s7293_s1 + $0x554] ss:$8 sps:$4 sm:$0xff]  }
  0x6a   : > { %3249 = vmatpush1.bf16.msra.mxu0 %v5084_v48  ;;  %v5184_v48 = vld [vmem:[%s5809_s17 + $0xa8] ss:$76 sps:$4 sm:$0xff]  }
  0x6b   : > { %3362 = vmatpush1.bf16.msra.mxu1 %v5087_v49  ;;  %3250 = vmatprep.subr.bf16.mxu0 %v5098_v50  ;;  %v5185_v49 = vld [vmem:[%s5809_s17 + $0xb0] ss:$76 sps:$4 sm:$0xff]  }
  0x6c   : > { %3363 = vmatprep.subr.bf16.mxu1 %v5101_v51  ;;  %v5186_v50 = vld [vmem:[%s7293_s1 + $0x450] ss:$8 sps:$4 sm:$0xff]  }
  0x6d   : > { %3081 = vmatmul.mubr.bf16.gmra.mxu0 %v5094_v52  ;;  %v5189_v51 = vld [vmem:[%s7293_s1 + $0x550] ss:$8 sps:$4 sm:$0xff]   ;;  %v5194_v52 = vld [vmem:[%s7293_s1 + $0x444] ss:$8 sps:$4 sm:$0xff]  }
  0x6e   : > { %3194 = vmatmul.mubr.bf16.gmra.mxu1 %v5095_v53  ;;  %3251 = vmatpush2.bf16.msra.mxu0 %v5096_v54  ;;  %v5197_v53 = vld [vmem:[%s7293_s1 + $0x544] ss:$8 sps:$4 sm:$0xff]  }
  0x6f   : > { %3364 = vmatpush2.bf16.msra.mxu1 %v5099_v55  ;;  %3252 = vmatprep.subr.bf16.mxu0 %v5104_v56  ;;  %v5198_v54 = vld [vmem:[%s5809_s17 + $0x144] ss:$76 sps:$4 sm:$0xff]   ;;  %v5200_v55 = vld [vmem:[%s5809_s17 + $0x14c] ss:$76 sps:$4 sm:$0xff]   ;;  %v5192_v56 = vld [vmem:[%s7293_s1 + $0x440] ss:$8 sps:$4 sm:$0xff]  }
  0x70   : > { %3365 = vmatprep.subr.bf16.mxu1 %v5107_v57  ;;  %3090 = vmatprep.mubr.bf16.mxu0 %v5108_v58  ;;  %v5195_v57 = vld [vmem:[%s7293_s1 + $0x540] ss:$8 sps:$4 sm:$0xff]   ;;  %v5206_v58 = vld [vmem:[%s7293_s1 + $0x434] ss:$8 sps:$4 sm:$0xff]  }
  0x71   : > { %3203 = vmatprep.mubr.bf16.mxu1 %v5110_v59  ;;  %v5209_v59 = vld [vmem:[%s7293_s1 + $0x534] ss:$8 sps:$4 sm:$0xff]  }
  0x72   : > { %3253 = vmatpush2.bf16.msra.mxu0 %v5102_v60  ;;  %v5202_v60 = vld [vmem:[%s5809_s17 + $0x140] ss:$76 sps:$4 sm:$0xff]  }
  0x73   : > { %3366 = vmatpush2.bf16.msra.mxu1 %v5105_v61  ;;  %3254 = vmatprep.subr.bf16.mxu0 %v5116_v62  ;;  %v5203_v61 = vld [vmem:[%s5809_s17 + $0x148] ss:$76 sps:$4 sm:$0xff]   ;;  %v5204_v62 = vld [vmem:[%s7293_s1 + $0x430] ss:$8 sps:$4 sm:$0xff]  }
  0x74   : > { %3367 = vmatprep.subr.bf16.mxu1 %v5119_v63  ;;  %v5207_v63 = vld [vmem:[%s7293_s1 + $0x530] ss:$8 sps:$4 sm:$0xff]  }
  0x75   : > { %3091 = vmatmul.mubr.bf16.gmra.mxu0 %v5112_v0  ;;  %v5212_v0 = vld [vmem:[%s7293_s1 + $0x424] ss:$8 sps:$4 sm:$0xff]  }
  0x76   : > { %3204 = vmatmul.mubr.bf16.gmra.mxu1 %v5113_v1  ;;  %3255 = vmatpush2.bf16.msra.mxu0 %v5114_v2  ;;  %v5215_v1 = vld [vmem:[%s7293_s1 + $0x524] ss:$8 sps:$4 sm:$0xff]   ;;  %v5216_v2 = vld [vmem:[%s5809_s17 + $0x1dc] ss:$76 sps:$4 sm:$0xff]  }
  0x77   : > { %3368 = vmatpush2.bf16.msra.mxu1 %v5117_v3  ;;  %3256 = vmatprep.subr.bf16.mxu0 %v5122_v4  ;;  %v5218_v3 = vld [vmem:[%s5809_s17 + $0x1e4] ss:$76 sps:$4 sm:$0xff]   ;;  %v5210_v4 = vld [vmem:[%s7293_s1 + $0x420] ss:$8 sps:$4 sm:$0xff]  }
  0x78   : > { %3369 = vmatprep.subr.bf16.mxu1 %v5125_v5  ;;  %3100 = vmatprep.mubr.bf16.mxu0 %v5126_v6  ;;  %v5213_v5 = vld [vmem:[%s7293_s1 + $0x520] ss:$8 sps:$4 sm:$0xff]   ;;  %v5224_v6 = vld [vmem:[%s7293_s1 + $0x414] ss:$8 sps:$4 sm:$0xff]  }
  0x79   : > { %3213 = vmatprep.mubr.bf16.mxu1 %v5128_v7  ;;  %v5227_v7 = vld [vmem:[%s7293_s1 + $0x514] ss:$8 sps:$4 sm:$0xff]  }
  0x7a   : > { %3257 = vmatpush2.bf16.msra.mxu0 %v5120_v8  ;;  %v5220_v8 = vld [vmem:[%s5809_s17 + $0x1d8] ss:$76 sps:$4 sm:$0xff]  }
  0x7b   : > { %3370 = vmatpush2.bf16.msra.mxu1 %v5123_v9  ;;  %3258 = vmatprep.subr.bf16.mxu0 %v5134_v10  ;;  %v5221_v9 = vld [vmem:[%s5809_s17 + $0x1e0] ss:$76 sps:$4 sm:$0xff]   ;;  %v5222_v10 = vld [vmem:[%s7293_s1 + $0x410] ss:$8 sps:$4 sm:$0xff]  }
  0x7c   : > { %3371 = vmatprep.subr.bf16.mxu1 %v5137_v11  ;;  %v5225_v11 = vld [vmem:[%s7293_s1 + $0x510] ss:$8 sps:$4 sm:$0xff]  }
  0x7d   : > { %3101 = vmatmul.mubr.bf16.gmra.mxu0 %v5130_v12  ;;  %v5230_v12 = vld [vmem:[%s7293_s1 + $0x404] ss:$8 sps:$4 sm:$0xff]  }
  0x7e   : > { %3214 = vmatmul.mubr.bf16.gmra.mxu1 %v5131_v13  ;;  %3259 = vmatpush2.bf16.msra.mxu0 %v5132_v14  ;;  %v5233_v13 = vld [vmem:[%s7293_s1 + $0x504] ss:$8 sps:$4 sm:$0xff]   ;;  %v5234_v14 = vld [vmem:[%s5809_s17 + $0x274] ss:$76 sps:$4 sm:$0xff]  }
  0x7f   : > { %3372 = vmatpush2.bf16.msra.mxu1 %v5135_v15  ;;  %3260 = vmatprep.subr.bf16.mxu0 %v5140_v16  ;;  %v5236_v15 = vld [vmem:[%s5809_s17 + $0x27c] ss:$76 sps:$4 sm:$0xff]  }
  0x80   : > { %3373 = vmatprep.subr.bf16.mxu1 %v5143_v17  ;;  %3110 = vmatprep.mubr.bf16.mxu0 %v5144_v18  ;;  %v5228_v16 = vld [vmem:[%s7293_s1 + $0x400] ss:$8 sps:$4 sm:$0xff]   ;;  %v5242_v18 = vld [vmem:[%s7293_s1 + $0x4f4] ss:$8 sps:$4 sm:$0xff]  }
  0x81   : > { %3223 = vmatprep.mubr.bf16.mxu1 %v5146_v19  ;;  %v5231_v17 = vld [vmem:[%s7293_s1 + $0x500] ss:$8 sps:$4 sm:$0xff]   ;;  %v5245_v19 = vld [vmem:[%s7293_s1 + $0x5f4] ss:$8 sps:$4 sm:$0xff]  }
  0x82   : > { %3261 = vmatpush2.bf16.msra.mxu0 %v5138_v20  ;;  %v5238_v20 = vld [vmem:[%s5809_s17 + $0x270] ss:$76 sps:$4 sm:$0xff]  }
  0x83   : > { %3374 = vmatpush2.bf16.msra.mxu1 %v5141_v21  ;;  %3262 = vmatprep.subr.bf16.mxu0 %v5152_v22  ;;  %v5239_v21 = vld [vmem:[%s5809_s17 + $0x278] ss:$76 sps:$4 sm:$0xff]  }
  0x84   : > { %3375 = vmatprep.subr.bf16.mxu1 %v5155_v23  ;;  %v5240_v22 = vld [vmem:[%s7293_s1 + $0x4f0] ss:$8 sps:$4 sm:$0xff]  }
  0x85   : > { %3111 = vmatmul.mubr.bf16.gmra.mxu0 %v5148_v24  ;;  %v5243_v23 = vld [vmem:[%s7293_s1 + $0x5f0] ss:$8 sps:$4 sm:$0xff]   ;;  %v5248_v24 = vld [vmem:[%s7293_s1 + $0x4e4] ss:$8 sps:$4 sm:$0xff]  }
  0x86   : > { %3224 = vmatmul.mubr.bf16.gmra.mxu1 %v5149_v25  ;;  %3263 = vmatpush2.bf16.msra.mxu0 %v5150_v26  ;;  %v5251_v25 = vld [vmem:[%s7293_s1 + $0x5e4] ss:$8 sps:$4 sm:$0xff]  }
  0x87   : > { %3376 = vmatpush2.bf16.msra.mxu1 %v5153_v27  ;;  %3264 = vmatprep.subr.bf16.mxu0 %v5158_v28  ;;  %v5252_v26 = vld [vmem:[%s5809_s17 + $0x30c] ss:$76 sps:$4 sm:$0xff]   ;;  %v5254_v27 = vld [vmem:[%s5809_s17 + $0x314] ss:$76 sps:$4 sm:$0xff]  }
  0x88   : > { %3377 = vmatprep.subr.bf16.mxu1 %v5161_v29  ;;  %3266 = vmatprep.mubr.bf16.mxu0 %v5164_v30  ;;  %v5246_v28 = vld [vmem:[%s7293_s1 + $0x4e0] ss:$8 sps:$4 sm:$0xff]   ;;  %v5260_v30 = vld [vmem:[%s7293_s1 + $0x4d4] ss:$8 sps:$4 sm:$0xff]  }
  0x89   : > { %3379 = vmatprep.mubr.bf16.mxu1 %v5167_v31  ;;  %v5249_v29 = vld [vmem:[%s7293_s1 + $0x5e0] ss:$8 sps:$4 sm:$0xff]   ;;  %v5263_v31 = vld [vmem:[%s7293_s1 + $0x5d4] ss:$8 sps:$4 sm:$0xff]  }
  0x8a   : > { %3265 = vmatpush2.bf16.msra.mxu0 %v5156_v32  ;;  %v5256_v32 = vld [vmem:[%s5809_s17 + $0x308] ss:$76 sps:$4 sm:$0xff]  }
  0x8b   : > { %3378 = vmatpush2.bf16.msra.mxu1 %v5159_v33  ;;  %3460 = vmatprep.subr.bf16.mxu0 %v5170_v34  ;;  %v5257_v33 = vld [vmem:[%s5809_s17 + $0x310] ss:$76 sps:$4 sm:$0xff]  }
  0x8c   : > { %3573 = vmatprep.subr.bf16.mxu1 %v5173_v35  ;;  %v5258_v34 = vld [vmem:[%s7293_s1 + $0x4d0] ss:$8 sps:$4 sm:$0xff]  }
  0x8d   : > { %3267 = vmatmul.mubr.bf16.vlgmr.msra.gmra.mxu0 %v5162_v36  ;;  %v5261_v35 = vld [vmem:[%s7293_s1 + $0x5d0] ss:$8 sps:$4 sm:$0xff]   ;;  %v5266_v36 = vld [vmem:[%s7293_s1 + $0x4c4] ss:$8 sps:$4 sm:$0xff]  }
  0x8e   : > { %3380 = vmatmul.mubr.bf16.vlgmr.msra.gmra.mxu1 %v5165_v37  ;;  %3461 = vmatpush1.bf16.msra.mxu0 %v5168_v38  ;;  %v5269_v37 = vld [vmem:[%s7293_s1 + $0x5c4] ss:$8 sps:$4 sm:$0xff]  }
  0x8f   : > { %3574 = vmatpush1.bf16.msra.mxu1 %v5171_v39  ;;  %3462 = vmatprep.subr.bf16.mxu0 %v5176_v40  ;;  %v5270_v38 = vld [vmem:[%s5809_s17 + $0x3a4] ss:$76 sps:$4 sm:$0xff]   ;;  %v5272_v39 = vld [vmem:[%s5809_s17 + $0x3ac] ss:$76 sps:$4 sm:$0xff]   ;;  %v5264_v40 = vld [vmem:[%s7293_s1 + $0x4c0] ss:$8 sps:$4 sm:$0xff]  }
  0x90   : > { %3575 = vmatprep.subr.bf16.mxu1 %v5179_v41  ;;  %3276 = vmatprep.mubr.bf16.mxu0 %v5180_v42  ;;  %v5267_v41 = vld [vmem:[%s7293_s1 + $0x5c0] ss:$8 sps:$4 sm:$0xff]   ;;  %v5278_v42 = vld [vmem:[%s7293_s1 + $0x4b4] ss:$8 sps:$4 sm:$0xff]  }
  0x91   : > { %3389 = vmatprep.mubr.bf16.mxu1 %v5182_v43  ;;  %v5281_v43 = vld [vmem:[%s7293_s1 + $0x5b4] ss:$8 sps:$4 sm:$0xff]  }
  0x92   : > { %3463 = vmatpush1.bf16.msra.mxu0 %v5174_v44  ;;  %v5274_v44 = vld [vmem:[%s5809_s17 + $0x3a0] ss:$76 sps:$4 sm:$0xff]  }
  0x93   : > { %3576 = vmatpush1.bf16.msra.mxu1 %v5177_v45  ;;  %3464 = vmatprep.subr.bf16.mxu0 %v5188_v46  ;;  %v5275_v45 = vld [vmem:[%s5809_s17 + $0x3a8] ss:$76 sps:$4 sm:$0xff]   ;;  %v5276_v46 = vld [vmem:[%s7293_s1 + $0x4b0] ss:$8 sps:$4 sm:$0xff]  }
  0x94   : > { %3577 = vmatprep.subr.bf16.mxu1 %v5191_v47  ;;  %v5279_v47 = vld [vmem:[%s7293_s1 + $0x5b0] ss:$8 sps:$4 sm:$0xff]  }
  0x95   : > { %3277 = vmatmul.mubr.bf16.gmra.mxu0 %v5184_v48  ;;  %v5284_v48 = vld [vmem:[%s7293_s1 + $0x4a4] ss:$8 sps:$4 sm:$0xff]  }
  0x96   : > { %3390 = vmatmul.mubr.bf16.gmra.mxu1 %v5185_v49  ;;  %3465 = vmatpush1.bf16.msra.mxu0 %v5186_v50  ;;  %v5287_v49 = vld [vmem:[%s7293_s1 + $0x5a4] ss:$8 sps:$4 sm:$0xff]   ;;  %v5288_v50 = vld [vmem:[%s5809_s17 + $0x43c] ss:$76 sps:$4 sm:$0xff]  }
  0x97   : > { %3578 = vmatpush1.bf16.msra.mxu1 %v5189_v51  ;;  %3466 = vmatprep.subr.bf16.mxu0 %v5194_v52  ;;  %v5290_v51 = vld [vmem:[%s5809_s17 + $0x444] ss:$76 sps:$4 sm:$0xff]   ;;  %v5282_v52 = vld [vmem:[%s7293_s1 + $0x4a0] ss:$8 sps:$4 sm:$0xff]  }
  0x98   : > { %3579 = vmatprep.subr.bf16.mxu1 %v5197_v53  ;;  %3286 = vmatprep.mubr.bf16.mxu0 %v5198_v54  ;;  %v5285_v53 = vld [vmem:[%s7293_s1 + $0x5a0] ss:$8 sps:$4 sm:$0xff]   ;;  %v5296_v54 = vld [vmem:[%s7293_s1 + $0x494] ss:$8 sps:$4 sm:$0xff]  }
  0x99   : > { %3399 = vmatprep.mubr.bf16.mxu1 %v5200_v55  ;;  %v5299_v55 = vld [vmem:[%s7293_s1 + $0x594] ss:$8 sps:$4 sm:$0xff]  }
  0x9a   : > { %3467 = vmatpush1.bf16.msra.mxu0 %v5192_v56  ;;  %v5292_v56 = vld [vmem:[%s5809_s17 + $0x438] ss:$76 sps:$4 sm:$0xff]  }
  0x9b   : > { %3580 = vmatpush1.bf16.msra.mxu1 %v5195_v57  ;;  %3468 = vmatprep.subr.bf16.mxu0 %v5206_v58  ;;  %v5293_v57 = vld [vmem:[%s5809_s17 + $0x440] ss:$76 sps:$4 sm:$0xff]   ;;  %v5294_v58 = vld [vmem:[%s7293_s1 + $0x490] ss:$8 sps:$4 sm:$0xff]  }
  0x9c   : > { %3581 = vmatprep.subr.bf16.mxu1 %v5209_v59  ;;  %v5297_v59 = vld [vmem:[%s7293_s1 + $0x590] ss:$8 sps:$4 sm:$0xff]  }
  0x9d   : > { %3287 = vmatmul.mubr.bf16.gmra.mxu0 %v5202_v60  ;;  %v5302_v60 = vld [vmem:[%s7293_s1 + $0x484] ss:$8 sps:$4 sm:$0xff]  }
  0x9e   : > { %3400 = vmatmul.mubr.bf16.gmra.mxu1 %v5203_v61  ;;  %3469 = vmatpush1.bf16.msra.mxu0 %v5204_v62  ;;  %v5305_v61 = vld [vmem:[%s7293_s1 + $0x584] ss:$8 sps:$4 sm:$0xff]  }
  0x9f   : > { %3582 = vmatpush1.bf16.msra.mxu1 %v5207_v63  ;;  %3470 = vmatprep.subr.bf16.mxu0 %v5212_v0  ;;  %v5308_v62 = vld [vmem:[%s5809_s17 + $0x24] ss:$76 sps:$4 sm:$0xff]   ;;  %v5311_v63 = vld [vmem:[%s5809_s17 + $0x2c] ss:$76 sps:$4 sm:$0xff]   ;;  %v5300_v0 = vld [vmem:[%s7293_s1 + $0x480] ss:$8 sps:$4 sm:$0xff]  }
  0xa0   : > { %3583 = vmatprep.subr.bf16.mxu1 %v5215_v1  ;;  %3296 = vmatprep.mubr.bf16.mxu0 %v5216_v2  ;;  %v5303_v1 = vld [vmem:[%s7293_s1 + $0x580] ss:$8 sps:$4 sm:$0xff]   ;;  %v5314_v2 = vld [vmem:[%s7293_s1 + $0x674] ss:$8 sps:$4 sm:$0xff]  }
  0xa1   : > { %3409 = vmatprep.mubr.bf16.mxu1 %v5218_v3  ;;  %v5317_v3 = vld [vmem:[%s7293_s1 + $0x774] ss:$8 sps:$4 sm:$0xff]  }
  0xa2   : > { %3471 = vmatpush1.bf16.msra.mxu0 %v5210_v4  ;;  %v5306_v4 = vld [vmem:[%s5809_s17 + $0x20] ss:$76 sps:$4 sm:$0xff]  }
  0xa3   : > { %3584 = vmatpush1.bf16.msra.mxu1 %v5213_v5  ;;  %3472 = vmatprep.subr.bf16.mxu0 %v5224_v6  ;;  %v5309_v5 = vld [vmem:[%s5809_s17 + $0x28] ss:$76 sps:$4 sm:$0xff]   ;;  %v5312_v6 = vld [vmem:[%s7293_s1 + $0x670] ss:$8 sps:$4 sm:$0xff]  }
  0xa4   : > { %3585 = vmatprep.subr.bf16.mxu1 %v5227_v7  ;;  %v5315_v7 = vld [vmem:[%s7293_s1 + $0x770] ss:$8 sps:$4 sm:$0xff]  }
  0xa5   : > { %3297 = vmatmul.mubr.bf16.gmra.mxu0 %v5220_v8  ;;  %v5320_v8 = vld [vmem:[%s7293_s1 + $0x664] ss:$8 sps:$4 sm:$0xff]  }
  0xa6   : > { %3410 = vmatmul.mubr.bf16.gmra.mxu1 %v5221_v9  ;;  %3473 = vmatpush1.bf16.msra.mxu0 %v5222_v10  ;;  %v5323_v9 = vld [vmem:[%s7293_s1 + $0x764] ss:$8 sps:$4 sm:$0xff]   ;;  %v5324_v10 = vld [vmem:[%s5809_s17 + $0xbc] ss:$76 sps:$4 sm:$0xff]  }
  0xa7   : > { %3586 = vmatpush1.bf16.msra.mxu1 %v5225_v11  ;;  %3474 = vmatprep.subr.bf16.mxu0 %v5230_v12  ;;  %v5326_v11 = vld [vmem:[%s5809_s17 + $0xc4] ss:$76 sps:$4 sm:$0xff]   ;;  %v5318_v12 = vld [vmem:[%s7293_s1 + $0x660] ss:$8 sps:$4 sm:$0xff]  }
  0xa8   : > { %3587 = vmatprep.subr.bf16.mxu1 %v5233_v13  ;;  %3306 = vmatprep.mubr.bf16.mxu0 %v5234_v14  ;;  %v5321_v13 = vld [vmem:[%s7293_s1 + $0x760] ss:$8 sps:$4 sm:$0xff]   ;;  %v5332_v14 = vld [vmem:[%s7293_s1 + $0x654] ss:$8 sps:$4 sm:$0xff]  }
  0xa9   : > { %3419 = vmatprep.mubr.bf16.mxu1 %v5236_v15  ;;  %v5335_v15 = vld [vmem:[%s7293_s1 + $0x754] ss:$8 sps:$4 sm:$0xff]  }
  0xaa   : > { %3475 = vmatpush1.bf16.msra.mxu0 %v5228_v16  ;;  %v5328_v16 = vld [vmem:[%s5809_s17 + $0xb8] ss:$76 sps:$4 sm:$0xff]  }
  0xab   : > { %3588 = vmatpush1.bf16.msra.mxu1 %v5231_v17  ;;  %3476 = vmatprep.subr.bf16.mxu0 %v5242_v18  ;;  %v5329_v17 = vld [vmem:[%s5809_s17 + $0xc0] ss:$76 sps:$4 sm:$0xff]   ;;  %v5330_v18 = vld [vmem:[%s7293_s1 + $0x650] ss:$8 sps:$4 sm:$0xff]  }
  0xac   : > { %3589 = vmatprep.subr.bf16.mxu1 %v5245_v19  ;;  %v5333_v19 = vld [vmem:[%s7293_s1 + $0x750] ss:$8 sps:$4 sm:$0xff]  }
  0xad   : > { %3307 = vmatmul.mubr.bf16.gmra.mxu0 %v5238_v20  ;;  %v5338_v20 = vld [vmem:[%s7293_s1 + $0x644] ss:$8 sps:$4 sm:$0xff]  }
  0xae   : > { %3420 = vmatmul.mubr.bf16.gmra.mxu1 %v5239_v21  ;;  %3477 = vmatpush2.bf16.msra.mxu0 %v5240_v22  ;;  %v5341_v21 = vld [vmem:[%s7293_s1 + $0x744] ss:$8 sps:$4 sm:$0xff]   ;;  %v5342_v22 = vld [vmem:[%s5809_s17 + $0x154] ss:$76 sps:$4 sm:$0xff]  }
  0xaf   : > { %3590 = vmatpush2.bf16.msra.mxu1 %v5243_v23  ;;  %3478 = vmatprep.subr.bf16.mxu0 %v5248_v24  ;;  %v5344_v23 = vld [vmem:[%s5809_s17 + $0x15c] ss:$76 sps:$4 sm:$0xff]  }
  0xb0   : > { %3591 = vmatprep.subr.bf16.mxu1 %v5251_v25  ;;  %3316 = vmatprep.mubr.bf16.mxu0 %v5252_v26  ;;  %v5336_v24 = vld [vmem:[%s7293_s1 + $0x640] ss:$8 sps:$4 sm:$0xff]   ;;  %v5350_v26 = vld [vmem:[%s7293_s1 + $0x634] ss:$8 sps:$4 sm:$0xff]  }
  0xb1   : > { %3429 = vmatprep.mubr.bf16.mxu1 %v5254_v27  ;;  %v5339_v25 = vld [vmem:[%s7293_s1 + $0x740] ss:$8 sps:$4 sm:$0xff]   ;;  %v5353_v27 = vld [vmem:[%s7293_s1 + $0x734] ss:$8 sps:$4 sm:$0xff]  }
  0xb2   : > { %3479 = vmatpush2.bf16.msra.mxu0 %v5246_v28  ;;  %v5346_v28 = vld [vmem:[%s5809_s17 + $0x150] ss:$76 sps:$4 sm:$0xff]  }
  0xb3   : > { %3592 = vmatpush2.bf16.msra.mxu1 %v5249_v29  ;;  %3480 = vmatprep.subr.bf16.mxu0 %v5260_v30  ;;  %v5347_v29 = vld [vmem:[%s5809_s17 + $0x158] ss:$76 sps:$4 sm:$0xff]  }
  0xb4   : > { %3593 = vmatprep.subr.bf16.mxu1 %v5263_v31  ;;  %v5348_v30 = vld [vmem:[%s7293_s1 + $0x630] ss:$8 sps:$4 sm:$0xff]  }
  0xb5   : > { %3317 = vmatmul.mubr.bf16.gmra.mxu0 %v5256_v32  ;;  %v5351_v31 = vld [vmem:[%s7293_s1 + $0x730] ss:$8 sps:$4 sm:$0xff]   ;;  %v5356_v32 = vld [vmem:[%s7293_s1 + $0x624] ss:$8 sps:$4 sm:$0xff]  }
  0xb6   : > { %3430 = vmatmul.mubr.bf16.gmra.mxu1 %v5257_v33  ;;  %3481 = vmatpush2.bf16.msra.mxu0 %v5258_v34  ;;  %v5359_v33 = vld [vmem:[%s7293_s1 + $0x724] ss:$8 sps:$4 sm:$0xff]  }
  0xb7   : > { %3594 = vmatpush2.bf16.msra.mxu1 %v5261_v35  ;;  %3482 = vmatprep.subr.bf16.mxu0 %v5266_v36  ;;  %v5360_v34 = vld [vmem:[%s5809_s17 + $0x1ec] ss:$76 sps:$4 sm:$0xff]   ;;  %v5362_v35 = vld [vmem:[%s5809_s17 + $0x1f4] ss:$76 sps:$4 sm:$0xff]  }
  0xb8   : > { %3595 = vmatprep.subr.bf16.mxu1 %v5269_v37  ;;  %3326 = vmatprep.mubr.bf16.mxu0 %v5270_v38  ;;  %v5354_v36 = vld [vmem:[%s7293_s1 + $0x620] ss:$8 sps:$4 sm:$0xff]   ;;  %v5368_v38 = vld [vmem:[%s7293_s1 + $0x614] ss:$8 sps:$4 sm:$0xff]  }
  0xb9   : > { %3439 = vmatprep.mubr.bf16.mxu1 %v5272_v39  ;;  %v5357_v37 = vld [vmem:[%s7293_s1 + $0x720] ss:$8 sps:$4 sm:$0xff]   ;;  %v5371_v39 = vld [vmem:[%s7293_s1 + $0x714] ss:$8 sps:$4 sm:$0xff]  }
  0xba   : > { %3483 = vmatpush2.bf16.msra.mxu0 %v5264_v40  ;;  %v5364_v40 = vld [vmem:[%s5809_s17 + $0x1e8] ss:$76 sps:$4 sm:$0xff]  }
  0xbb   : > { %3596 = vmatpush2.bf16.msra.mxu1 %v5267_v41  ;;  %3484 = vmatprep.subr.bf16.mxu0 %v5278_v42  ;;  %v5365_v41 = vld [vmem:[%s5809_s17 + $0x1f0] ss:$76 sps:$4 sm:$0xff]  }
  0xbc   : > { %3597 = vmatprep.subr.bf16.mxu1 %v5281_v43  ;;  %v5366_v42 = vld [vmem:[%s7293_s1 + $0x610] ss:$8 sps:$4 sm:$0xff]  }
  0xbd   : > { %3327 = vmatmul.mubr.bf16.gmra.mxu0 %v5274_v44  ;;  %v5369_v43 = vld [vmem:[%s7293_s1 + $0x710] ss:$8 sps:$4 sm:$0xff]   ;;  %v5374_v44 = vld [vmem:[%s7293_s1 + $0x604] ss:$8 sps:$4 sm:$0xff]  }
  0xbe   : > { %3440 = vmatmul.mubr.bf16.gmra.mxu1 %v5275_v45  ;;  %3485 = vmatpush2.bf16.msra.mxu0 %v5276_v46  ;;  %v5377_v45 = vld [vmem:[%s7293_s1 + $0x704] ss:$8 sps:$4 sm:$0xff]  }
  0xbf   : > { %3598 = vmatpush2.bf16.msra.mxu1 %v5279_v47  ;;  %3486 = vmatprep.subr.bf16.mxu0 %v5284_v48  ;;  %v5378_v46 = vld [vmem:[%s5809_s17 + $0x284] ss:$76 sps:$4 sm:$0xff]   ;;  %v5380_v47 = vld [vmem:[%s5809_s17 + $0x28c] ss:$76 sps:$4 sm:$0xff]   ;;  %v5372_v48 = vld [vmem:[%s7293_s1 + $0x600] ss:$8 sps:$4 sm:$0xff]  }
  0xc0   : > { %3599 = vmatprep.subr.bf16.mxu1 %v5287_v49  ;;  %3336 = vmatprep.mubr.bf16.mxu0 %v5288_v50  ;;  %v5375_v49 = vld [vmem:[%s7293_s1 + $0x700] ss:$8 sps:$4 sm:$0xff]   ;;  %v5386_v50 = vld [vmem:[%s7293_s1 + $0x6f4] ss:$8 sps:$4 sm:$0xff]  }
  0xc1   : > { %3449 = vmatprep.mubr.bf16.mxu1 %v5290_v51  ;;  %v5389_v51 = vld [vmem:[%s7293_s1 + $0x7f4] ss:$8 sps:$4 sm:$0xff]  }
  0xc2   : > { %3487 = vmatpush2.bf16.msra.mxu0 %v5282_v52  ;;  %v5382_v52 = vld [vmem:[%s5809_s17 + $0x280] ss:$76 sps:$4 sm:$0xff]  }
  0xc3   : > { %3600 = vmatpush2.bf16.msra.mxu1 %v5285_v53  ;;  %3488 = vmatprep.subr.bf16.mxu0 %v5296_v54  ;;  %v5383_v53 = vld [vmem:[%s5809_s17 + $0x288] ss:$76 sps:$4 sm:$0xff]   ;;  %v5384_v54 = vld [vmem:[%s7293_s1 + $0x6f0] ss:$8 sps:$4 sm:$0xff]  }
  0xc4   : > { %3601 = vmatprep.subr.bf16.mxu1 %v5299_v55  ;;  %v5387_v55 = vld [vmem:[%s7293_s1 + $0x7f0] ss:$8 sps:$4 sm:$0xff]  }
  0xc5   : > { %3337 = vmatmul.mubr.bf16.gmra.mxu0 %v5292_v56  ;;  %v5392_v56 = vld [vmem:[%s7293_s1 + $0x6e4] ss:$8 sps:$4 sm:$0xff]  }
  0xc6   : > { %3450 = vmatmul.mubr.bf16.gmra.mxu1 %v5293_v57  ;;  %3489 = vmatpush2.bf16.msra.mxu0 %v5294_v58  ;;  %v5395_v57 = vld [vmem:[%s7293_s1 + $0x7e4] ss:$8 sps:$4 sm:$0xff]   ;;  %v5396_v58 = vld [vmem:[%s5809_s17 + $0x31c] ss:$76 sps:$4 sm:$0xff]  }
  0xc7   : > { %3602 = vmatpush2.bf16.msra.mxu1 %v5297_v59  ;;  %3490 = vmatprep.subr.bf16.mxu0 %v5302_v60  ;;  %v5398_v59 = vld [vmem:[%s5809_s17 + $0x324] ss:$76 sps:$4 sm:$0xff]   ;;  %v5390_v60 = vld [vmem:[%s7293_s1 + $0x6e0] ss:$8 sps:$4 sm:$0xff]  }
  0xc8   : > { %3603 = vmatprep.subr.bf16.mxu1 %v5305_v61  ;;  %3492 = vmatprep.mubr.bf16.mxu0 %v5308_v62  ;;  %v5393_v61 = vld [vmem:[%s7293_s1 + $0x7e0] ss:$8 sps:$4 sm:$0xff]   ;;  %v5404_v62 = vld [vmem:[%s7293_s1 + $0x6d4] ss:$8 sps:$4 sm:$0xff]  }
  0xc9   : > { %3605 = vmatprep.mubr.bf16.mxu1 %v5311_v63  ;;  %v5407_v63 = vld [vmem:[%s7293_s1 + $0x7d4] ss:$8 sps:$4 sm:$0xff]  }
  0xca   : > { %3491 = vmatpush2.bf16.msra.mxu0 %v5300_v0  ;;  %v5400_v0 = vld [vmem:[%s5809_s17 + $0x318] ss:$76 sps:$4 sm:$0xff]  }
  0xcb   : > { %3604 = vmatpush2.bf16.msra.mxu1 %v5303_v1  ;;  %3686 = vmatprep.subr.bf16.mxu0 %v5314_v2  ;;  %v5401_v1 = vld [vmem:[%s5809_s17 + $0x320] ss:$76 sps:$4 sm:$0xff]   ;;  %v5402_v2 = vld [vmem:[%s7293_s1 + $0x6d0] ss:$8 sps:$4 sm:$0xff]  }
  0xcc   : > { %3799 = vmatprep.subr.bf16.mxu1 %v5317_v3  ;;  %v5405_v3 = vld [vmem:[%s7293_s1 + $0x7d0] ss:$8 sps:$4 sm:$0xff]  }
  0xcd   : > { %3493 = vmatmul.mubr.bf16.vlgmr.msra.gmra.mxu0 %v5306_v4  ;;  %v5410_v4 = vld [vmem:[%s7293_s1 + $0x6c4] ss:$8 sps:$4 sm:$0xff]  }
  0xce   : > { %3606 = vmatmul.mubr.bf16.vlgmr.msra.gmra.mxu1 %v5309_v5  ;;  %3687 = vmatpush1.bf16.msra.mxu0 %v5312_v6  ;;  %v5413_v5 = vld [vmem:[%s7293_s1 + $0x7c4] ss:$8 sps:$4 sm:$0xff]   ;;  %v5414_v6 = vld [vmem:[%s5809_s17 + $0x3b4] ss:$76 sps:$4 sm:$0xff]  }
  0xcf   : > { %3800 = vmatpush1.bf16.msra.mxu1 %v5315_v7  ;;  %3688 = vmatprep.subr.bf16.mxu0 %v5320_v8  ;;  %v5416_v7 = vld [vmem:[%s5809_s17 + $0x3bc] ss:$76 sps:$4 sm:$0xff]  }
  0xd0   : > { %3801 = vmatprep.subr.bf16.mxu1 %v5323_v9  ;;  %3502 = vmatprep.mubr.bf16.mxu0 %v5324_v10  ;;  %v5408_v8 = vld [vmem:[%s7293_s1 + $0x6c0] ss:$8 sps:$4 sm:$0xff]   ;;  %v5418_v10 = vld [vmem:[%s5809_s17 + $0x3b0] ss:$76 sps:$4 sm:$0xff]  }
  0xd1   : > { %3615 = vmatprep.mubr.bf16.mxu1 %v5326_v11  ;;  %v5411_v9 = vld [vmem:[%s7293_s1 + $0x7c0] ss:$8 sps:$4 sm:$0xff]   ;;  %v5422_v11 = vld [vmem:[%s7293_s1 + $0x6b4] ss:$8 sps:$4 sm:$0xff]  }
  0xd2   : > { %3689 = vmatpush1.bf16.msra.mxu0 %v5318_v12  ;;  %v5425_v12 = vld [vmem:[%s7293_s1 + $0x7b4] ss:$8 sps:$4 sm:$0xff]  }
  0xd3   : > { %3802 = vmatpush1.bf16.msra.mxu1 %v5321_v13  ;;  %3690 = vmatprep.subr.bf16.mxu0 %v5332_v14  ;;  %v5419_v13 = vld [vmem:[%s5809_s17 + $0x3b8] ss:$76 sps:$4 sm:$0xff]  }
  0xd4   : > { %3803 = vmatprep.subr.bf16.mxu1 %v5335_v15  ;;  %v5420_v14 = vld [vmem:[%s7293_s1 + $0x6b0] ss:$8 sps:$4 sm:$0xff]  }
  0xd5   : > { %3503 = vmatmul.mubr.bf16.gmra.mxu0 %v5328_v16  ;;  %v5423_v15 = vld [vmem:[%s7293_s1 + $0x7b0] ss:$8 sps:$4 sm:$0xff]   ;;  %v5428_v16 = vld [vmem:[%s7293_s1 + $0x6a4] ss:$8 sps:$4 sm:$0xff]  }
  0xd6   : > { %3616 = vmatmul.mubr.bf16.gmra.mxu1 %v5329_v17  ;;  %3691 = vmatpush1.bf16.msra.mxu0 %v5330_v18  ;;  %v5431_v17 = vld [vmem:[%s7293_s1 + $0x7a4] ss:$8 sps:$4 sm:$0xff]  }
  0xd7   : > { %3804 = vmatpush1.bf16.msra.mxu1 %v5333_v19  ;;  %3692 = vmatprep.subr.bf16.mxu0 %v5338_v20  ;;  %v5432_v18 = vld [vmem:[%s5809_s17 + $0x44c] ss:$76 sps:$4 sm:$0xff]   ;;  %v5434_v19 = vld [vmem:[%s5809_s17 + $0x454] ss:$76 sps:$4 sm:$0xff]  }
  0xd8   : > { %3805 = vmatprep.subr.bf16.mxu1 %v5341_v21  ;;  %3512 = vmatprep.mubr.bf16.mxu0 %v5342_v22  ;;  %v5426_v20 = vld [vmem:[%s7293_s1 + $0x6a0] ss:$8 sps:$4 sm:$0xff]   ;;  %v710_v22 = vlaneseq }
  0xd9   : > { %3625 = vmatprep.mubr.bf16.mxu1 %v5344_v23  ;;  %v5429_v21 = vld [vmem:[%s7293_s1 + $0x7a0] ss:$8 sps:$4 sm:$0xff]  }
  0xda   : > { %3693 = vmatpush1.bf16.msra.mxu0 %v5336_v24  ;;  %v5436_v23 = vld [vmem:[%s5809_s17 + $0x448] ss:$76 sps:$4 sm:$0xff]  }
  0xdb   : > { %3806 = vmatpush1.bf16.msra.mxu1 %v5339_v25  ;;  %3694 = vmatprep.subr.bf16.mxu0 %v5350_v26  ;;  %v5440_v24 = vld [vmem:[%s7293_s1 + $0x694] ss:$8 sps:$4 sm:$0xff]  }
  0xdc   : > { %3807 = vmatprep.subr.bf16.mxu1 %v5353_v27  ;;  %v5443_v25 = vld [vmem:[%s7293_s1 + $0x794] ss:$8 sps:$4 sm:$0xff]   ;;  %v5438_v27 = vld [vmem:[%s7293_s1 + $0x690] ss:$8 sps:$4 sm:$0xff]  }
  0xdd   : > { %3513 = vmatmul.mubr.bf16.gmra.mxu0 %v5346_v28  ;;  %v5437_v26 = vld [vmem:[%s5809_s17 + $0x450] ss:$76 sps:$4 sm:$0xff]  }
  0xde   : > { %3626 = vmatmul.mubr.bf16.gmra.mxu1 %v5347_v29  ;;  %3695 = vmatpush1.bf16.msra.mxu0 %v5348_v30  ;;  %v5441_v28 = vld [vmem:[%s7293_s1 + $0x790] ss:$8 sps:$4 sm:$0xff]   ;;  %v5446_v29 = vld [vmem:[%s7293_s1 + $0x684] ss:$8 sps:$4 sm:$0xff]   ;;  %v711_v30 = vshrl.u32 %v710_v22, 7 }
  0xdf   : > { %3808 = vmatpush1.bf16.msra.mxu1 %v5351_v31  ;;  %3696 = vmatprep.subr.bf16.mxu0 %v5356_v32  ;;  %v5449_v31 = vld [vmem:[%s7293_s1 + $0x784] ss:$8 sps:$4 sm:$0xff]   ;;  %v5444_v32 = vld [vmem:[%s7293_s1 + $0x680] ss:$8 sps:$4 sm:$0xff]   ;;  %v5488_v22 = vld [vmem:[%s7293_s1 + $0x834] ss:$8 sps:$4 sm:$0xff]  }
  0xe0   : > { %3809 = vmatprep.subr.bf16.mxu1 %v5359_v33  ;;  %3522 = vmatprep.mubr.bf16.mxu0 %v5360_v34  ;;  %v5452_v33 = vld [vmem:[%s5809_s17 + $0x34] ss:$76 sps:$4 sm:$0xff]   ;;  %v5455_v34 = vld [vmem:[%s5809_s17 + $0x3c] ss:$76 sps:$4 sm:$0xff]  }
  0xe1   : > { %3635 = vmatprep.mubr.bf16.mxu1 %v5362_v35  ;;  %v5447_v35 = vld [vmem:[%s7293_s1 + $0x780] ss:$8 sps:$4 sm:$0xff]  }
  0xe2   : > { %3697 = vmatpush1.bf16.msra.mxu0 %v5354_v36  ;;  %v708_v36 = vld [vmem:[%s7294_s2] sm:$0x3] }
  0xe3   : > { %3810 = vmatpush1.bf16.msra.mxu1 %v5357_v37  ;;  %3698 = vmatprep.subr.bf16.mxu0 %v5368_v38  ;;  %v712_v37 = vsub.s32 0, %v711_v30  ;;  %v5458_v38 = vld [vmem:[%s7293_s1 + $0x874] ss:$8 sps:$4 sm:$0xff]  }
  0xe4   : > { %3811 = vmatprep.subr.bf16.mxu1 %v5371_v39  ;;  %v5461_v39 = vld [vmem:[%s7293_s1 + $0x974] ss:$8 sps:$4 sm:$0xff]  }
  0xe5   : > { %3523 = vmatmul.mubr.bf16.gmra.mxu0 %v5364_v40  ;;  %v5450_v40 = vld [vmem:[%s5809_s17 + $0x30] ss:$76 sps:$4 sm:$0xff]  }
  0xe6   : > { %3636 = vmatmul.mubr.bf16.gmra.mxu1 %v5365_v41  ;;  %3699 = vmatpush1.bf16.msra.mxu0 %v5366_v42  ;;  %v5453_v41 = vld [vmem:[%s5809_s17 + $0x38] ss:$76 sps:$4 sm:$0xff]   ;;  %v716_v42 = vsub.s32 1, %v711_v30 }
  0xe7   : > { %3812 = vmatpush1.bf16.msra.mxu1 %v5369_v43  ;;  %3700 = vmatprep.subr.bf16.mxu0 %v5374_v44  ;;  %v5456_v43 = vld [vmem:[%s7293_s1 + $0x870] ss:$8 sps:$4 sm:$0xff]   ;;  %v6556_v44 = vrot.slane %v708_v36, %v712_v37 }
  0xe8   : > { %3813 = vmatprep.subr.bf16.mxu1 %v5377_v45  ;;  %3532 = vmatprep.mubr.bf16.mxu0 %v5378_v46  ;;  %v5459_v45 = vld [vmem:[%s7293_s1 + $0x970] ss:$8 sps:$4 sm:$0xff]   ;;  %v5464_v46 = vld [vmem:[%s7293_s1 + $0x864] ss:$8 sps:$4 sm:$0xff]  }
  0xe9   : > { %3645 = vmatprep.mubr.bf16.mxu1 %v5380_v47  ;;  %v5465_v47 = vld [vmem:[%s5809_s17 + $0xcc] ss:$76 sps:$4 sm:$0xff]  }
  0xea   : > { %3701 = vmatpush1.bf16.msra.mxu0 %v5372_v48  ;;  %v6565_v48 = vrot.slane %v708_v36, %v716_v42  ;;  %v5497_v36 = vld [vmem:[%s5809_s17 + $0x204] ss:$76 sps:$4 sm:$0xff]  }
  0xeb   : > { %3814 = vmatpush1.bf16.msra.mxu1 %v5375_v49  ;;  %3702 = vmatprep.subr.bf16.mxu0 %v5386_v50  ;;  %v5467_v49 = vld [vmem:[%s5809_s17 + $0xd4] ss:$76 sps:$4 sm:$0xff]   ;;  %v5476_v50 = vld [vmem:[%s7293_s1 + $0x964] ss:$8 sps:$4 sm:$0xff]  }
  0xec   : > { %3815 = vmatprep.subr.bf16.mxu1 %v5389_v51 }
  0xed   : > { %3533 = vmatmul.mubr.bf16.gmra.mxu0 %v5382_v52 }
  0xee   : > { %3646 = vmatmul.mubr.bf16.gmra.mxu1 %v5383_v53  ;;  %3703 = vmatpush2.bf16.msra.mxu0 %v5384_v54  ;;  %v5462_v53 = vld [vmem:[%s7293_s1 + $0x860] ss:$8 sps:$4 sm:$0xff]  }
  0xef   : > { %3816 = vmatpush2.bf16.msra.mxu1 %v5387_v55  ;;  %3704 = vmatprep.subr.bf16.mxu0 %v5392_v56  ;;  %v5474_v55 = vld [vmem:[%s7293_s1 + $0x960] ss:$8 sps:$4 sm:$0xff]  }
  0xf0   : > { %3817 = vmatprep.subr.bf16.mxu1 %v5395_v57  ;;  %3542 = vmatprep.mubr.bf16.mxu0 %v5396_v58  ;;  %v5473_v58 = vld [vmem:[%s7293_s1 + $0x854] ss:$8 sps:$4 sm:$0xff]  }
  0xf1   : > { %3655 = vmatprep.mubr.bf16.mxu1 %v5398_v59  ;;  %v5491_v59 = vld [vmem:[%s7293_s1 + $0x954] ss:$8 sps:$4 sm:$0xff]  }
  0xf2   : > { %3705 = vmatpush2.bf16.msra.mxu0 %v5390_v60 }
  0xf3   : > { %3818 = vmatpush2.bf16.msra.mxu1 %v5393_v61  ;;  %3706 = vmatprep.subr.bf16.mxu0 %v5404_v62  ;;  %v5469_v62 = vld [vmem:[%s5809_s17 + $0xc8] ss:$76 sps:$4 sm:$0xff]  }
  0xf4   : > { %3819 = vmatprep.subr.bf16.mxu1 %v5407_v63  ;;  %v5470_v63 = vld [vmem:[%s5809_s17 + $0xd0] ss:$76 sps:$4 sm:$0xff]  }
  0xf5   : > { %3543 = vmatmul.mubr.bf16.gmra.mxu0 %v5400_v0 }
  0xf6   : > { %3656 = vmatmul.mubr.bf16.gmra.mxu1 %v5401_v1  ;;  %3707 = vmatpush2.bf16.msra.mxu0 %v5402_v2  ;;  %v5471_v2 = vld [vmem:[%s7293_s1 + $0x850] ss:$8 sps:$4 sm:$0xff]  }
  0xf7   : > { %3820 = vmatpush2.bf16.msra.mxu1 %v5405_v3  ;;  %3708 = vmatprep.subr.bf16.mxu0 %v5410_v4 }
  0xf8   : > { %3821 = vmatprep.subr.bf16.mxu1 %v5413_v5  ;;  %3552 = vmatprep.mubr.bf16.mxu0 %v5414_v6  ;;  %v5480_v5 = vld [vmem:[%s5809_s17 + $0x164] ss:$76 sps:$4 sm:$0xff]  }
  0xf9   : > { %3665 = vmatprep.mubr.bf16.mxu1 %v5416_v7 }
  0xfa   : > { %3709 = vmatpush2.bf16.msra.mxu0 %v5408_v8  ;;  %v5479_v8 = vld [vmem:[%s7293_s1 + $0x844] ss:$8 sps:$4 sm:$0xff]  }
  0xfb   : > { %3822 = vmatpush2.bf16.msra.mxu1 %v5411_v9  ;;  %3710 = vmatprep.subr.bf16.mxu0 %v5422_v11  ;;  %v5482_v9 = vld [vmem:[%s5809_s17 + $0x16c] ss:$76 sps:$4 sm:$0xff]  }
  0xfc   : > { %3823 = vmatprep.subr.bf16.mxu1 %v5425_v12  ;;  %v5489_v12 = vld [vmem:[%s7293_s1 + $0x950] ss:$8 sps:$4 sm:$0xff]  }
  0xfd   : > { %3553 = vmatmul.mubr.bf16.gmra.mxu0 %v5418_v10 }
  0xfe   : > { %3666 = vmatmul.mubr.bf16.gmra.mxu1 %v5419_v13  ;;  %3711 = vmatpush2.bf16.msra.mxu0 %v5420_v14 }
  0xff   : > { %3824 = vmatpush2.bf16.msra.mxu1 %v5423_v15  ;;  %3712 = vmatprep.subr.bf16.mxu0 %v5428_v16  ;;  %v5506_v15 = vld [vmem:[%s7293_s1 + $0x944] ss:$8 sps:$4 sm:$0xff]  }
 0x100   : > { %3825 = vmatprep.subr.bf16.mxu1 %v5431_v17  ;;  %3562 = vmatprep.mubr.bf16.mxu0 %v5432_v18  ;;  %v5477_v18 = vld [vmem:[%s7293_s1 + $0x840] ss:$8 sps:$4 sm:$0xff]  }
 0x101   : > { %3675 = vmatprep.mubr.bf16.mxu1 %v5434_v19 }
 0x102   : > { %3713 = vmatpush2.bf16.msra.mxu0 %v5426_v20 }
 0x103   : > { %3826 = vmatpush2.bf16.msra.mxu1 %v5429_v21  ;;  %3714 = vmatprep.subr.bf16.mxu0 %v5440_v24  ;;  %v5484_v21 = vld [vmem:[%s5809_s17 + $0x160] ss:$76 sps:$4 sm:$0xff]  }
 0x104   : > { %3827 = vmatprep.subr.bf16.mxu1 %v5443_v25  ;;  %v5485_v25 = vld [vmem:[%s5809_s17 + $0x168] ss:$76 sps:$4 sm:$0xff]  }
 0x105   : > { %3563 = vmatmul.mubr.bf16.gmra.mxu0 %v5436_v23 }
 0x106   : > { %3676 = vmatmul.mubr.bf16.gmra.mxu1 %v5437_v26  ;;  %3715 = vmatpush2.bf16.msra.mxu0 %v5438_v27  ;;  %v5504_v26 = vld [vmem:[%s7293_s1 + $0x940] ss:$8 sps:$4 sm:$0xff]  }
 0x107   : > { %3828 = vmatpush2.bf16.msra.mxu1 %v5441_v28  ;;  %3716 = vmatprep.subr.bf16.mxu0 %v5446_v29  ;;  %v5486_v29 = vld [vmem:[%s7293_s1 + $0x830] ss:$8 sps:$4 sm:$0xff]  }
 0x108   : > { %3829 = vmatprep.subr.bf16.mxu1 %v5449_v31  ;;  %3718 = vmatprep.mubr.bf16.mxu0 %v5452_v33 }
 0x109   : > { %3831 = vmatprep.mubr.bf16.mxu1 %v5455_v34 }
 0x10a   : > { %3717 = vmatpush2.bf16.msra.mxu0 %v5444_v32  ;;  %v5495_v32 = vld [vmem:[%s5809_s17 + $0x1fc] ss:$76 sps:$4 sm:$0xff]  }
 0x10b   : > { %3830 = vmatpush2.bf16.msra.mxu1 %v5447_v35  ;;  %3912 = vmatprep.subr.bf16.mxu0 %v5458_v38  ;;  %v5494_v35 = vld [vmem:[%s7293_s1 + $0x824] ss:$8 sps:$4 sm:$0xff]  }
 0x10c   : > { %4025 = vmatprep.subr.bf16.mxu1 %v5461_v39  ;;  %v5492_v39 = vld [vmem:[%s7293_s1 + $0x820] ss:$8 sps:$4 sm:$0xff]  }
 0x10d   : > { %v3042_v51 = vpop.f32.mrf.mxu0  ;;  %3719 = vmatmul.mubr.bf16.vlgmr.msra.gmra.mxu0 %v5450_v40  ;;  %v5521_v40 = vld [vmem:[%s7293_s1 + $0x934] ss:$8 sps:$4 sm:$0xff]  }
 0x10e   : > { %v3155_v52 = vpop.f32.mrf.mxu1  ;;  %3832 = vmatmul.mubr.bf16.vlgmr.msra.gmra.mxu1 %v5453_v41  ;;  %v3043_v54 = vadd.f32 %v3042_v51, %v6556_v44  ;;  %3913 = vmatpush1.bf16.msra.mxu0 %v5456_v43  ;;  %v5519_v43 = vld [vmem:[%s7293_s1 + $0x930] ss:$8 sps:$4 sm:$0xff]   ;;  %v5503_v51 = vld [vmem:[%s7293_s1 + $0x814] ss:$8 sps:$4 sm:$0xff]  }
 0x10f   : > { %4026 = vmatpush1.bf16.msra.mxu1 %v5459_v45  ;;  %v3044_v56 = vpop.f32.mrf.mxu0  ;;  %3914 = vmatprep.subr.bf16.mxu0 %v5464_v46 }
 0x110   : > { %v3157_v57 = vpop.f32.mrf.mxu1  ;;  %3728 = vmatprep.mubr.bf16.mxu0 %v5465_v47  ;;  %v6584_v60 = vadd.f32 %v3155_v52, %v3043_v54  ;;  %v3045_v61 = vadd.f32 %v3044_v56, %v6565_v48  ;;  %3841 = vmatprep.mubr.bf16.mxu1 %v5467_v49  ;;  %v5536_v47 = vld [vmem:[%s7293_s1 + $0x924] ss:$8 sps:$4 sm:$0xff]  }
 0x111   : > { %4027 = vmatprep.subr.bf16.mxu1 %v5476_v50  ;;  %v3046_v0 = vpop.f32.mrf.mxu0  ;;  %v5499_v54 = vld [vmem:[%s5809_s17 + $0x1f8] ss:$76 sps:$4 sm:$0xff]  }
 0x112   : > { %v3159_v1 = vpop.f32.mrf.mxu1  ;;  %v6592_v3 = vadd.f32 %v3157_v57, %v3045_v61  ;;  %v3047_v4 = vadd.f32 %v3046_v0, %v6556_v44  ;;  %3915 = vmatpush1.bf16.msra.mxu0 %v5462_v53 }
 0x113   : > { %4028 = vmatpush1.bf16.msra.mxu1 %v5474_v55  ;;  %v3048_v6 = vpop.f32.mrf.mxu0  ;;  %3916 = vmatprep.subr.bf16.mxu0 %v5473_v58  ;;  %v5500_v55 = vld [vmem:[%s5809_s17 + $0x200] ss:$76 sps:$4 sm:$0xff]   ;;  %v5501_v58 = vld [vmem:[%s7293_s1 + $0x810] ss:$8 sps:$4 sm:$0xff]  }
 0x114   : > { %v3161_v7 = vpop.f32.mrf.mxu1  ;;  %4029 = vmatprep.subr.bf16.mxu1 %v5491_v59  ;;  %v6600_v10 = vadd.f32 %v3159_v1, %v3047_v4  ;;  %v3049_v11 = vadd.f32 %v3048_v6, %v6565_v48  ;;  %v5509_v1 = vld [vmem:[%s7293_s1 + $0x804] ss:$8 sps:$4 sm:$0xff]   ;;  %v5534_v6 = vld [vmem:[%s7293_s1 + $0x920] ss:$8 sps:$4 sm:$0xff]  }
 0x115   : > { %v3052_v13 = vpop.f32.mrf.mxu0  ;;  %3729 = vmatmul.mubr.bf16.gmra.mxu0 %v5469_v62  ;;  %v5512_v62 = vld [vmem:[%s5809_s17 + $0x294] ss:$76 sps:$4 sm:$0xff]  }
 0x116   : > { %v3165_v14 = vpop.f32.mrf.mxu1  ;;  %3842 = vmatmul.mubr.bf16.gmra.mxu1 %v5470_v63  ;;  %v6609_v16 = vadd.f32 %v3161_v7, %v3049_v11  ;;  %v3053_v17 = vadd.f32 %v3052_v13, %v6556_v44  ;;  %3917 = vmatpush1.bf16.msra.mxu0 %v5471_v2  ;;  %v5515_v2 = vld [vmem:[%s5809_s17 + $0x29c] ss:$76 sps:$4 sm:$0xff]  }
 0x117   : > { %3738 = vmatprep.mubr.bf16.mxu0 %v5480_v5  ;;  %v3054_v19 = vpop.f32.mrf.mxu0  ;;  %3918 = vmatprep.subr.bf16.mxu0 %v5479_v8  ;;  %v5507_v13 = vld [vmem:[%s7293_s1 + $0x800] ss:$8 sps:$4 sm:$0xff]  }
 0x118   : > { %v3167_v20 = vpop.f32.mrf.mxu1  ;;  %3851 = vmatprep.mubr.bf16.mxu1 %v5482_v9  ;;  %v6619_v23 = vadd.f32 %v3165_v14, %v3053_v17  ;;  %v3055_v24 = vadd.f32 %v3054_v19, %v6565_v48  ;;  %4030 = vmatpush1.bf16.msra.mxu1 %v5489_v12  ;;  %v5551_v9 = vld [vmem:[%s7293_s1 + $0x914] ss:$8 sps:$4 sm:$0xff]  }
 0x119   : > { %v3056_v27 = vpop.f32.mrf.mxu0  ;;  %4031 = vmatprep.subr.bf16.mxu1 %v5506_v15  ;;  %v5510_v17 = vld [vmem:[%s5809_s17 + $0x290] ss:$76 sps:$4 sm:$0xff]  }
 0x11a   : > { %v3169_v28 = vpop.f32.mrf.mxu1  ;;  %v6629_v30 = vadd.f32 %v3167_v20, %v3055_v24  ;;  %v3057_v31 = vadd.f32 %v3056_v27, %v6556_v44  ;;  %3919 = vmatpush1.bf16.msra.mxu0 %v5477_v18  ;;  %v5518_v18 = vld [vmem:[%s7293_s1 + $0x8f4] ss:$8 sps:$4 sm:$0xff]  }
 0x11b   : > { %v3058_v33 = vpop.f32.mrf.mxu0  ;;  %3920 = vmatprep.subr.bf16.mxu0 %v5488_v22  ;;  %v5549_v22 = vld [vmem:[%s7293_s1 + $0x910] ss:$8 sps:$4 sm:$0xff]  }
 0x11c   : > { %v3171_v34 = vpop.f32.mrf.mxu1  ;;  %v6637_v37 = vadd.f32 %v3169_v28, %v3057_v31  ;;  %v3059_v38 = vadd.f32 %v3058_v33, %v6565_v48  ;;  %4032 = vmatpush1.bf16.msra.mxu1 %v5504_v26  ;;  %v5516_v26 = vld [vmem:[%s7293_s1 + $0x8f0] ss:$8 sps:$4 sm:$0xff]   ;;  %v5524_v33 = vld [vmem:[%s7293_s1 + $0x8e4] ss:$8 sps:$4 sm:$0xff]  }
 0x11d   : > { %v3062_v41 = vpop.f32.mrf.mxu0  ;;  %3739 = vmatmul.mubr.bf16.gmra.mxu0 %v5484_v21  ;;  %4033 = vmatprep.subr.bf16.mxu1 %v5521_v40  ;;  %v5513_v21 = vld [vmem:[%s5809_s17 + $0x298] ss:$76 sps:$4 sm:$0xff]  }
 0x11e   : > { %v3175_v42 = vpop.f32.mrf.mxu1  ;;  %3852 = vmatmul.mubr.bf16.gmra.mxu1 %v5485_v25  ;;  %v6649_v45 = vadd.f32 %v3171_v34, %v3059_v38  ;;  %v3063_v46 = vadd.f32 %v3062_v41, %v6556_v44  ;;  %3921 = vmatpush1.bf16.msra.mxu0 %v5486_v29  ;;  %v5527_v29 = vld [vmem:[%s5809_s17 + $0x32c] ss:$76 sps:$4 sm:$0xff]   ;;  %v5530_v34 = vld [vmem:[%s5809_s17 + $0x334] ss:$76 sps:$4 sm:$0xff]  }
 0x11f   : > { %3748 = vmatprep.mubr.bf16.mxu0 %v5495_v32  ;;  %v3064_v49 = vpop.f32.mrf.mxu0  ;;  %3922 = vmatprep.subr.bf16.mxu0 %v5494_v35  ;;  %v5566_v38 = vld [vmem:[%s7293_s1 + $0x904] ss:$8 sps:$4 sm:$0xff]   ;;  %v5564_v41 = vld [vmem:[%s7293_s1 + $0x900] ss:$8 sps:$4 sm:$0xff]  }
 0x120   : > { %v3177_v50 = vpop.f32.mrf.mxu1  ;;  %3861 = vmatprep.mubr.bf16.mxu1 %v5497_v36  ;;  %v6658_v52 = vadd.f32 %v3175_v42, %v3063_v46  ;;  %v3065_v53 = vadd.f32 %v3064_v49, %v6565_v48  ;;  %4034 = vmatpush1.bf16.msra.mxu1 %v5519_v43  ;;  %v5522_v46 = vld [vmem:[%s7293_s1 + $0x8e0] ss:$8 sps:$4 sm:$0xff]  }
 0x121   : > { %v3066_v56 = vpop.f32.mrf.mxu0  ;;  %4035 = vmatprep.subr.bf16.mxu1 %v5536_v47 }
 0x122   : > { %v3179_v57 = vpop.f32.mrf.mxu1  ;;  %v6666_v59 = vadd.f32 %v3177_v50, %v3065_v53  ;;  %v3067_v61 = vadd.f32 %v3066_v56, %v6556_v44  ;;  %3923 = vmatpush1.bf16.msra.mxu0 %v5492_v39  ;;  %v5525_v50 = vld [vmem:[%s5809_s17 + $0x328] ss:$76 sps:$4 sm:$0xff]  }
 0x123   : > { %v3068_v63 = vpop.f32.mrf.mxu0  ;;  %3924 = vmatprep.subr.bf16.mxu0 %v5503_v51  ;;  %v5533_v51 = vld [vmem:[%s7293_s1 + $0x8d4] ss:$8 sps:$4 sm:$0xff]  }
 0x124   : > { %v3181_v0 = vpop.f32.mrf.mxu1  ;;  %v6674_v4 = vadd.f32 %v3179_v57, %v3067_v61  ;;  %v3069_v5 = vadd.f32 %v3068_v63, %v6565_v48  ;;  %4036 = vmatpush1.bf16.msra.mxu1 %v5534_v6  ;;  %v5539_v63 = vld [vmem:[%s7293_s1 + $0x8c4] ss:$8 sps:$4 sm:$0xff]  }
 0x125   : > { %v3072_v7 = vpop.f32.mrf.mxu0  ;;  %3749 = vmatmul.mubr.bf16.gmra.mxu0 %v5499_v54  ;;  %4037 = vmatprep.subr.bf16.mxu1 %v5551_v9 }
 0x126   : > { %v3185_v8 = vpop.f32.mrf.mxu1  ;;  %3862 = vmatmul.mubr.bf16.gmra.mxu1 %v5500_v55  ;;  %v6683_v11 = vadd.f32 %v3181_v0, %v3069_v5  ;;  %v3073_v12 = vadd.f32 %v3072_v7, %v6556_v44  ;;  %3925 = vmatpush1.bf16.msra.mxu0 %v5501_v58  ;;  %v5528_v55 = vld [vmem:[%s5809_s17 + $0x330] ss:$76 sps:$4 sm:$0xff]   ;;  %v5545_v5 = vld [vmem:[%s5809_s17 + $0x3cc] ss:$76 sps:$4 sm:$0xff]  }
 0x127   : > { %3758 = vmatprep.mubr.bf16.mxu0 %v5512_v62  ;;  %v3074_v14 = vpop.f32.mrf.mxu0  ;;  %3926 = vmatprep.subr.bf16.mxu0 %v5509_v1  ;;  %v5531_v58 = vld [vmem:[%s7293_s1 + $0x8d0] ss:$8 sps:$4 sm:$0xff]  }
 0x128   : > { %v3187_v15 = vpop.f32.mrf.mxu1  ;;  %3871 = vmatprep.mubr.bf16.mxu1 %v5515_v2  ;;  %v6693_v19 = vadd.f32 %v3185_v8, %v3073_v12  ;;  %v3075_v20 = vadd.f32 %v3074_v14, %v6565_v48  ;;  %4038 = vmatpush1.bf16.msra.mxu1 %v5549_v22  ;;  %v5542_v0 = vld [vmem:[%s5809_s17 + $0x3c4] ss:$76 sps:$4 sm:$0xff]   ;;  %v5537_v14 = vld [vmem:[%s7293_s1 + $0x8c0] ss:$8 sps:$4 sm:$0xff]  }
 0x129   : > { %v3076_v24 = vpop.f32.mrf.mxu0  ;;  %4039 = vmatprep.subr.bf16.mxu1 %v5566_v38  ;;  %v5540_v22 = vld [vmem:[%s5809_s17 + $0x3c0] ss:$76 sps:$4 sm:$0xff]   ;;  %v5560_v38 = vld [vmem:[%s5809_s17 + $0x464] ss:$76 sps:$4 sm:$0xff]  }
 0x12a   : > { %v3189_v25 = vpop.f32.mrf.mxu1  ;;  %v6703_v27 = vadd.f32 %v3187_v15, %v3075_v20  ;;  %v3077_v28 = vadd.f32 %v3076_v24, %v6556_v44  ;;  %3927 = vmatpush1.bf16.msra.mxu0 %v5507_v13 }
 0x12b   : > { %v3078_v31 = vpop.f32.mrf.mxu0  ;;  %3928 = vmatprep.subr.bf16.mxu0 %v5518_v18  ;;  %v5548_v18 = vld [vmem:[%s7293_s1 + $0x8b4] ss:$8 sps:$4 sm:$0xff]  }
 0x12c   : > { %v3191_v32 = vpop.f32.mrf.mxu1  ;;  %v6711_v35 = vadd.f32 %v3189_v25, %v3077_v28  ;;  %v3079_v36 = vadd.f32 %v3078_v31, %v6565_v48  ;;  %4040 = vmatpush1.bf16.msra.mxu1 %v5564_v41  ;;  %v5546_v28 = vld [vmem:[%s7293_s1 + $0x8b0] ss:$8 sps:$4 sm:$0xff]  }
 0x12d   : > { %v3082_v39 = vpop.f32.mrf.mxu0  ;;  %3759 = vmatmul.mubr.bf16.gmra.mxu0 %v5510_v17 }
 0x12e   : > { %v3195_v40 = vpop.f32.mrf.mxu1  ;;  %3872 = vmatmul.mubr.bf16.gmra.mxu1 %v5513_v21  ;;  %v6720_v42 = vadd.f32 %v3191_v32, %v3079_v36  ;;  %v3083_v43 = vadd.f32 %v3082_v39, %v6556_v44  ;;  %3929 = vmatpush2.bf16.msra.mxu0 %v5516_v26  ;;  %v5543_v26 = vld [vmem:[%s5809_s17 + $0x3c8] ss:$76 sps:$4 sm:$0xff]   ;;  %v5554_v36 = vld [vmem:[%s7293_s1 + $0x8a4] ss:$8 sps:$4 sm:$0xff]  }
 0x12f   : > { %3768 = vmatprep.mubr.bf16.mxu0 %v5527_v29  ;;  %v3084_v47 = vpop.f32.mrf.mxu0  ;;  %3930 = vmatprep.subr.bf16.mxu0 %v5524_v33  ;;  %v5557_v32 = vld [vmem:[%s5809_s17 + $0x45c] ss:$76 sps:$4 sm:$0xff]  }
 0x130   : > { %v3197_v49 = vpop.f32.mrf.mxu1  ;;  %3881 = vmatprep.mubr.bf16.mxu1 %v5530_v34  ;;  %v6730_v53 = vadd.f32 %v3195_v40, %v3083_v43  ;;  %v3085_v54 = vadd.f32 %v3084_v47, %v6565_v48 }
 0x131   : > { %v3086_v56 = vpop.f32.mrf.mxu0 }
 0x132   : > { %v3199_v57 = vpop.f32.mrf.mxu1  ;;  %v6737_v61 = vadd.f32 %v3197_v49, %v3085_v54  ;;  %v3087_v62 = vadd.f32 %v3086_v56, %v6556_v44  ;;  %3931 = vmatpush2.bf16.msra.mxu0 %v5522_v46  ;;  %v5552_v49 = vld [vmem:[%s7293_s1 + $0x8a0] ss:$8 sps:$4 sm:$0xff]   ;;  %v5563_v54 = vld [vmem:[%s7293_s1 + $0x894] ss:$8 sps:$4 sm:$0xff]  }
 0x133   : > { %v3088_v1 = vpop.f32.mrf.mxu0  ;;  %3932 = vmatprep.subr.bf16.mxu0 %v5533_v51 }
 0x134   : > { %v3201_v2 = vpop.f32.mrf.mxu1  ;;  %v6745_v6 = vadd.f32 %v3199_v57, %v3087_v62  ;;  %v3089_v7 = vadd.f32 %v3088_v1, %v6565_v48  ;;  %v5555_v62 = vld [vmem:[%s5809_s17 + $0x458] ss:$76 sps:$4 sm:$0xff]  }
 0x135   : > { %v3092_v8 = vpop.f32.mrf.mxu0  ;;  %3769 = vmatmul.mubr.bf16.gmra.mxu0 %v5525_v50 }
 0x136   : > { %v3205_v9 = vpop.f32.mrf.mxu1  ;;  %3882 = vmatmul.mubr.bf16.gmra.mxu1 %v5528_v55  ;;  %v6748_v12 = vadd.f32 %v3201_v2, %v3089_v7  ;;  %v3093_v13 = vadd.f32 %v3092_v8, %v6556_v44  ;;  %3933 = vmatpush2.bf16.msra.mxu0 %v5531_v58  ;;  %v5561_v2 = vld [vmem:[%s7293_s1 + $0x890] ss:$8 sps:$4 sm:$0xff]  }
 0x137   : > { %3778 = vmatprep.mubr.bf16.mxu0 %v5542_v0  ;;  %v3094_v15 = vpop.f32.mrf.mxu0  ;;  %3934 = vmatprep.subr.bf16.mxu0 %v5539_v63  ;;  %v5558_v63 = vld [vmem:[%s5809_s17 + $0x460] ss:$76 sps:$4 sm:$0xff]  }
 0x138   : > { %v3207_v17 = vpop.f32.mrf.mxu1  ;;  %3891 = vmatprep.mubr.bf16.mxu1 %v5545_v5  ;;  %v6757_v20 = vadd.f32 %v3205_v9, %v3093_v13  ;;  %v3095_v21 = vadd.f32 %v3094_v15, %v6565_v48  ;;  %v5572_v5 = vld [vmem:[%s5809_s17 + $0x44] ss:$76 sps:$4 sm:$0xff]  }
 0x139   : > { %v3096_v24 = vpop.f32.mrf.mxu0  ;;  %v5569_v9 = vld [vmem:[%s7293_s1 + $0x884] ss:$8 sps:$4 sm:$0xff]  }
 0x13a   : > { %v3209_v25 = vpop.f32.mrf.mxu1  ;;  %v6765_v29 = vadd.f32 %v3207_v17, %v3095_v21  ;;  %v3097_v31 = vadd.f32 %v3096_v24, %v6556_v44  ;;  %3935 = vmatpush2.bf16.msra.mxu0 %v5537_v14 }
 0x13b   : > { %v3098_v33 = vpop.f32.mrf.mxu0  ;;  %3936 = vmatprep.subr.bf16.mxu0 %v5548_v18 }
 0x13c   : > { %v3211_v34 = vpop.f32.mrf.mxu1  ;;  %v6773_v39 = vadd.f32 %v3209_v25, %v3097_v31  ;;  %v3099_v40 = vadd.f32 %v3098_v33, %v6565_v48 }
 0x13d   : > { %v3102_v41 = vpop.f32.mrf.mxu0  ;;  %3779 = vmatmul.mubr.bf16.gmra.mxu0 %v5540_v22  ;;  %v5567_v22 = vld [vmem:[%s7293_s1 + $0x880] ss:$8 sps:$4 sm:$0xff]  }
 0x13e   : > { %v3215_v43 = vpop.f32.mrf.mxu1  ;;  %3892 = vmatmul.mubr.bf16.gmra.mxu1 %v5543_v26  ;;  %v6776_v46 = vadd.f32 %v3211_v34, %v3099_v40  ;;  %v3103_v47 = vadd.f32 %v3102_v41, %v6556_v44  ;;  %3937 = vmatpush2.bf16.msra.mxu0 %v5546_v28  ;;  %v5626_v26 = vmov 0   ;;  %v5570_v34 = vld [vmem:[%s5809_s17 + $0x40] ss:$76 sps:$4 sm:$0xff]   ;;  %v5576_v41 = vld [vmem:[%s5809_s17 + $0xdc] ss:$76 sps:$4 sm:$0xff]  }
 0x13f   : > { %3788 = vmatprep.mubr.bf16.mxu0 %v5557_v32  ;;  %v3104_v50 = vpop.f32.mrf.mxu0  ;;  %3938 = vmatprep.subr.bf16.mxu0 %v5554_v36  ;;  %v5573_v36 = vld [vmem:[%s5809_s17 + $0x48] ss:$76 sps:$4 sm:$0xff]  }
 0x140   : > { %v3217_v51 = vpop.f32.mrf.mxu1  ;;  %3901 = vmatprep.mubr.bf16.mxu1 %v5560_v38  ;;  %v6785_v55 = vadd.f32 %v3215_v43, %v3103_v47  ;;  %v3105_v56 = vadd.f32 %v3104_v50, %v6565_v48 }
 0x141   : > { %v3106_v57 = vpop.f32.mrf.mxu0 }
 0x142   : > { %v3219_v58 = vpop.f32.mrf.mxu1  ;;  %v6790_v0 = vadd.f32 %v3217_v51, %v3105_v56  ;;  %v3107_v1 = vadd.f32 %v3106_v57, %v6556_v44  ;;  %3939 = vmatpush2.bf16.msra.mxu0 %v5552_v49 }
 0x143   : > { %v3108_v7 = vpop.f32.mrf.mxu0  ;;  %3940 = vmatprep.subr.bf16.mxu0 %v5563_v54 }
 0x144   : > { %v3221_v8 = vpop.f32.mrf.mxu1  ;;  %v6800_v13 = vadd.f32 %v3219_v58, %v3107_v1  ;;  %v3109_v14 = vadd.f32 %v3108_v7, %v6565_v48 }
 0x145   : > { %v3112_v15 = vpop.f32.mrf.mxu0  ;;  %3789 = vmatmul.mubr.bf16.gmra.mxu0 %v5555_v62 }
 0x146   : > { %v3225_v17 = vpop.f32.mrf.mxu1  ;;  %3902 = vmatmul.mubr.bf16.gmra.mxu1 %v5558_v63  ;;  %v6803_v18 = vadd.f32 %v3221_v8, %v3109_v14  ;;  %v3113_v21 = vadd.f32 %v3112_v15, %v6556_v44  ;;  %3941 = vmatpush2.bf16.msra.mxu0 %v5561_v2  ;;  %v5574_v2 = vld [vmem:[%s5809_s17 + $0xd8] ss:$76 sps:$4 sm:$0xff]  }
 0x147   : > { %3944 = vmatprep.mubr.bf16.mxu0 %v5572_v5  ;;  %v3114_v24 = vpop.f32.mrf.mxu0  ;;  %3942 = vmatprep.subr.bf16.mxu0 %v5569_v9  ;;  %v5577_v5 = vld [vmem:[%s5809_s17 + $0xe0] ss:$76 sps:$4 sm:$0xff]  }
 0x148   : > { %v3227_v25 = vpop.f32.mrf.mxu1  ;;  %4057 = vmatprep.mubr.bf16.mxu1 %v5626_v26  ;;  %v6810_v28 = vadd.f32 %v3225_v17, %v3113_v21  ;;  %v3115_v31 = vadd.f32 %v3114_v24, %v6565_v48  ;;  %v5580_v9 = vld [vmem:[%s5809_s17 + $0x174] ss:$76 sps:$4 sm:$0xff]  }
 0x149   : > { %v3116_v32 = vpop.f32.mrf.mxu0 }
 0x14a   : > { %v3229_v33 = vpop.f32.mrf.mxu1  ;;  %v6815_v38 = vadd.f32 %v3227_v25, %v3115_v31  ;;  %v3117_v40 = vadd.f32 %v3116_v32, %v6556_v44  ;;  %3943 = vmatpush2.bf16.msra.mxu0 %v5567_v22 }
 0x14b   : > { %v3118_v43 = vpop.f32.mrf.mxu0 }
 0x14c   : > { %v3231_v47 = vpop.f32.mrf.mxu1  ;;  %v6819_v49 = vadd.f32 %v3229_v33, %v3117_v40  ;;  %v3119_v50 = vadd.f32 %v3118_v43, %v6565_v48  ;;  %v5584_v43 = vld [vmem:[%s5809_s17 + $0x20c] ss:$76 sps:$4 sm:$0xff]  }
 0x14d   : > { %v3268_v51 = vpop.f32.mrf.mxu0  ;;  %3945 = vmatmul.mubr.bf16.vlgmr.msra.gmra.mxu0 %v5570_v34  ;;  %v5578_v34 = vld [vmem:[%s5809_s17 + $0x170] ss:$76 sps:$4 sm:$0xff]  }
 0x14e   : > { %v3381_v54 = vpop.f32.mrf.mxu1  ;;  %4058 = vmatmul.mubr.bf16.vlgmr.msra.gmra.mxu1 %v5573_v36  ;;  %v6822_v56 = vadd.f32 %v3231_v47, %v3119_v50  ;;  %v3269_v57 = vadd.f32 %v3268_v51, %v6584_v60  ;;  %3954 = vmatprep.mubr.bf16.mxu0 %v5576_v41  ;;  %v5581_v36 = vld [vmem:[%s5809_s17 + $0x178] ss:$76 sps:$4 sm:$0xff]  }
 0x14f   : > { %4067 = vmatprep.mubr.bf16.mxu1 %v5626_v26  ;;  %v3270_v44 = vpop.f32.mrf.mxu0 }
 0x150   : > { %v3383_v58 = vpop.f32.mrf.mxu1  ;;  %v6826_v62 = vadd.f32 %v3381_v54, %v3269_v57  ;;  %v3271_v63 = vadd.f32 %v3270_v44, %v6592_v3 }
 0x151   : > { %v3272_v48 = vpop.f32.mrf.mxu0 }
 0x152   : > { %v3385_v1 = vpop.f32.mrf.mxu1  ;;  %v6831_v7 = vadd.f32 %v3383_v58, %v3271_v63  ;;  %v3273_v8 = vadd.f32 %v3272_v48, %v6600_v10 }
 0x153   : > { %v3274_v14 = vpop.f32.mrf.mxu0 }
 0x154   : > { %v3387_v60 = vpop.f32.mrf.mxu1  ;;  %v6835_v15 = vadd.f32 %v3385_v1, %v3273_v8  ;;  %v3275_v17 = vadd.f32 %v3274_v14, %v6609_v16  ;;  %v5588_v14 = vld [vmem:[%s5809_s17 + $0x2a4] ss:$76 sps:$4 sm:$0xff]  }
 0x155   : > { %v3278_v21 = vpop.f32.mrf.mxu0  ;;  %3955 = vmatmul.mubr.bf16.gmra.mxu0 %v5574_v2  ;;  %v5582_v2 = vld [vmem:[%s5809_s17 + $0x208] ss:$76 sps:$4 sm:$0xff]  }
 0x156   : > { %v3391_v22 = vpop.f32.mrf.mxu1  ;;  %4068 = vmatmul.mubr.bf16.gmra.mxu1 %v5577_v5  ;;  %v6838_v3 = vadd.f32 %v3387_v60, %v3275_v17  ;;  %v3279_v24 = vadd.f32 %v3278_v21, %v6619_v23  ;;  %3964 = vmatprep.mubr.bf16.mxu0 %v5580_v9  ;;  %v5585_v5 = vld [vmem:[%s5809_s17 + $0x210] ss:$76 sps:$4 sm:$0xff]  }
 0x157   : > { %4077 = vmatprep.mubr.bf16.mxu1 %v5626_v26  ;;  %v3280_v10 = vpop.f32.mrf.mxu0 }
 0x158   : > { %v3393_v25 = vpop.f32.mrf.mxu1  ;;  %v6842_v31 = vadd.f32 %v3391_v22, %v3279_v24  ;;  %v3281_v32 = vadd.f32 %v3280_v10, %v6629_v30 }
 0x159   : > { %v3282_v16 = vpop.f32.mrf.mxu0 }
 0x15a   : > { %v3395_v33 = vpop.f32.mrf.mxu1  ;;  %v6847_v40 = vadd.f32 %v3393_v25, %v3281_v32  ;;  %v3283_v41 = vadd.f32 %v3282_v16, %v6637_v37 }
 0x15b   : > { %v3284_v47 = vpop.f32.mrf.mxu0 }
 0x15c   : > { %v3397_v23 = vpop.f32.mrf.mxu1  ;;  %v6851_v50 = vadd.f32 %v3395_v33, %v3283_v41  ;;  %v3285_v51 = vadd.f32 %v3284_v47, %v6649_v45  ;;  %v5592_v47 = vld [vmem:[%s5809_s17 + $0x33c] ss:$76 sps:$4 sm:$0xff]  }
 0x15d   : > { %v3288_v54 = vpop.f32.mrf.mxu0  ;;  %3965 = vmatmul.mubr.bf16.gmra.mxu0 %v5578_v34  ;;  %v5586_v34 = vld [vmem:[%s5809_s17 + $0x2a0] ss:$76 sps:$4 sm:$0xff]  }
 0x15e   : > { %v3401_v57 = vpop.f32.mrf.mxu1  ;;  %4078 = vmatmul.mubr.bf16.gmra.mxu1 %v5581_v36  ;;  %v6854_v30 = vadd.f32 %v3397_v23, %v3285_v51  ;;  %v3289_v44 = vadd.f32 %v3288_v54, %v6658_v52  ;;  %3974 = vmatprep.mubr.bf16.mxu0 %v5584_v43  ;;  %v5589_v36 = vld [vmem:[%s5809_s17 + $0x2a8] ss:$76 sps:$4 sm:$0xff]  }
 0x15f   : > { %4087 = vmatprep.mubr.bf16.mxu1 %v5626_v26  ;;  %v3290_v37 = vpop.f32.mrf.mxu0 }
 0x160   : > { %v3403_v58 = vpop.f32.mrf.mxu1  ;;  %v6858_v63 = vadd.f32 %v3401_v57, %v3289_v44  ;;  %v3291_v48 = vadd.f32 %v3290_v37, %v6666_v59 }
 0x161   : > { %v3292_v45 = vpop.f32.mrf.mxu0 }
 0x162   : > { %v3405_v1 = vpop.f32.mrf.mxu1  ;;  %v6863_v8 = vadd.f32 %v3403_v58, %v3291_v48  ;;  %v3293_v9 = vadd.f32 %v3292_v45, %v6674_v4 }
 0x163   : > { %v3294_v60 = vpop.f32.mrf.mxu0 }
 0x164   : > { %v3407_v52 = vpop.f32.mrf.mxu1  ;;  %v6867_v17 = vadd.f32 %v3405_v1, %v3293_v9  ;;  %v3295_v21 = vadd.f32 %v3294_v60, %v6683_v11  ;;  %v5596_v60 = vld [vmem:[%s5809_s17 + $0x3d4] ss:$76 sps:$4 sm:$0xff]  }
 0x165   : > { %v3298_v22 = vpop.f32.mrf.mxu0  ;;  %3975 = vmatmul.mubr.bf16.gmra.mxu0 %v5582_v2  ;;  %v5590_v2 = vld [vmem:[%s5809_s17 + $0x338] ss:$76 sps:$4 sm:$0xff]  }
 0x166   : > { %v3411_v24 = vpop.f32.mrf.mxu1  ;;  %4088 = vmatmul.mubr.bf16.gmra.mxu1 %v5585_v5  ;;  %v6870_v59 = vadd.f32 %v3407_v52, %v3295_v21  ;;  %v3299_v10 = vadd.f32 %v3298_v22, %v6693_v19  ;;  %3984 = vmatprep.mubr.bf16.mxu0 %v5588_v14  ;;  %v5593_v5 = vld [vmem:[%s5809_s17 + $0x340] ss:$76 sps:$4 sm:$0xff]  }
 0x167   : > { %4097 = vmatprep.mubr.bf16.mxu1 %v5626_v26  ;;  %v3300_v4 = vpop.f32.mrf.mxu0 }
 0x168   : > { %v3413_v25 = vpop.f32.mrf.mxu1  ;;  %v6874_v32 = vadd.f32 %v3411_v24, %v3299_v10  ;;  %v3301_v16 = vadd.f32 %v3300_v4, %v6703_v27 }
 0x169   : > { %v3302_v11 = vpop.f32.mrf.mxu0 }
 0x16a   : > { %v3415_v33 = vpop.f32.mrf.mxu1  ;;  %v6879_v41 = vadd.f32 %v3413_v25, %v3301_v16  ;;  %v3303_v43 = vadd.f32 %v3302_v11, %v6711_v35 }
 0x16b   : > { %v3304_v23 = vpop.f32.mrf.mxu0 }
 0x16c   : > { %v3417_v19 = vpop.f32.mrf.mxu1  ;;  %v6883_v51 = vadd.f32 %v3415_v33, %v3303_v43  ;;  %v3305_v54 = vadd.f32 %v3304_v23, %v6720_v42  ;;  %v5600_v23 = vld [vmem:[%s5809_s17 + $0x46c] ss:$76 sps:$4 sm:$0xff]  }
 0x16d   : > { %v3308_v57 = vpop.f32.mrf.mxu0  ;;  %3985 = vmatmul.mubr.bf16.gmra.mxu0 %v5586_v34  ;;  %v5594_v34 = vld [vmem:[%s5809_s17 + $0x3d0] ss:$76 sps:$4 sm:$0xff]  }
 0x16e   : > { %v3421_v44 = vpop.f32.mrf.mxu1  ;;  %4098 = vmatmul.mubr.bf16.gmra.mxu1 %v5589_v36  ;;  %v6886_v27 = vadd.f32 %v3417_v19, %v3305_v54  ;;  %v3309_v37 = vadd.f32 %v3308_v57, %v6730_v53  ;;  %3994 = vmatprep.mubr.bf16.mxu0 %v5592_v47  ;;  %v5597_v36 = vld [vmem:[%s5809_s17 + $0x3d8] ss:$76 sps:$4 sm:$0xff]  }
 0x16f   : > { %4107 = vmatprep.mubr.bf16.mxu1 %v5626_v26  ;;  %v3310_v35 = vpop.f32.mrf.mxu0 }
 0x170   : > { %v3423_v58 = vpop.f32.mrf.mxu1  ;;  %v6890_v48 = vadd.f32 %v3421_v44, %v3309_v37  ;;  %v3311_v45 = vadd.f32 %v3310_v35, %v6737_v61 }
 0x171   : > { %v3312_v42 = vpop.f32.mrf.mxu0 }
 0x172   : > { %v3425_v1 = vpop.f32.mrf.mxu1  ;;  %v6895_v9 = vadd.f32 %v3423_v58, %v3311_v45  ;;  %v3313_v14 = vadd.f32 %v3312_v42, %v6745_v6 }
 0x173   : > { %v3314_v52 = vpop.f32.mrf.mxu0 }
 0x174   : > { %v3427_v53 = vpop.f32.mrf.mxu1  ;;  %v6899_v21 = vadd.f32 %v3425_v1, %v3313_v14  ;;  %v3315_v22 = vadd.f32 %v3314_v52, %v6748_v12 }
 0x175   : > { %v3318_v24 = vpop.f32.mrf.mxu0  ;;  %3995 = vmatmul.mubr.bf16.gmra.mxu0 %v5590_v2  ;;  %v5598_v2 = vld [vmem:[%s5809_s17 + $0x468] ss:$76 sps:$4 sm:$0xff]  }
 0x176   : > { %v3431_v10 = vpop.f32.mrf.mxu1  ;;  %4108 = vmatmul.mubr.bf16.gmra.mxu1 %v5593_v5  ;;  %v6902_v61 = vadd.f32 %v3427_v53, %v3315_v22  ;;  %v3319_v4 = vadd.f32 %v3318_v24, %v6757_v20  ;;  %4004 = vmatprep.mubr.bf16.mxu0 %v5596_v60  ;;  %v5601_v5 = vld [vmem:[%s5809_s17 + $0x470] ss:$76 sps:$4 sm:$0xff]   ;;  %s4879_s17 = sshll.u32 %s7385_s30, 3 }
 0x177   : > { %4117 = vmatprep.mubr.bf16.mxu1 %v5626_v26  ;;  %v3320_v6 = vpop.f32.mrf.mxu0  ;;  %s7189_s8 = scalar_lea.vmem %s7295_s3, %s4879_s17 }
 0x178   : > { %v3433_v25 = vpop.f32.mrf.mxu1  ;;  %v6906_v16 = vadd.f32 %v3431_v10, %v3319_v4  ;;  %v3321_v11 = vadd.f32 %v3320_v6, %v6765_v29 }
 0x179   : > { %v3322_v12 = vpop.f32.mrf.mxu0 }
 0x17a   : > { %v3435_v33 = vpop.f32.mrf.mxu1  ;;  %v6911_v43 = vadd.f32 %v3433_v25, %v3321_v11  ;;  %v3323_v47 = vadd.f32 %v3322_v12, %v6773_v39 }
 0x17b   : > { %v3324_v19 = vpop.f32.mrf.mxu0 }
 0x17c   : > { %v3437_v20 = vpop.f32.mrf.mxu1  ;;  %v6915_v54 = vadd.f32 %v3435_v33, %v3323_v47  ;;  %v3325_v57 = vadd.f32 %v3324_v19, %v6776_v46 }
 0x17d   : > { %v3328_v44 = vpop.f32.mrf.mxu0  ;;  %4005 = vmatmul.mubr.bf16.gmra.mxu0 %v5594_v34 }
 0x17e   : > { %v3441_v37 = vpop.f32.mrf.mxu1  ;;  %4118 = vmatmul.mubr.bf16.gmra.mxu1 %v5597_v36  ;;  %v6918_v29 = vadd.f32 %v3437_v20, %v3325_v57  ;;  %v3329_v35 = vadd.f32 %v3328_v44, %v6785_v55  ;;  %4014 = vmatprep.mubr.bf16.mxu0 %v5600_v23 }
 0x17f   : > { %4127 = vmatprep.mubr.bf16.mxu1 %v5626_v26  ;;  %v3330_v39 = vpop.f32.mrf.mxu0 }
 0x180   : > { %v3443_v58 = vpop.f32.mrf.mxu1  ;;  %v6922_v45 = vadd.f32 %v3441_v37, %v3329_v35  ;;  %v3331_v42 = vadd.f32 %v3330_v39, %v6790_v0 }
 0x181   : > { %v3332_v1 = vpop.f32.mrf.mxu0 }
 0x182   : > { %v3445_v46 = vpop.f32.mrf.mxu1  ;;  %v6927_v14 = vadd.f32 %v3443_v58, %v3331_v42  ;;  %v3333_v60 = vadd.f32 %v3332_v1, %v6800_v13 }
 0x183   : > { %v3334_v52 = vpop.f32.mrf.mxu0 }
 0x184   : > { %v3447_v53 = vpop.f32.mrf.mxu1  ;;  %v6930_v55 = vadd.f32 %v3445_v46, %v3333_v60  ;;  %v3335_v26 = vadd.f32 %v3334_v52, %v6803_v18 }
 0x185   : > { %v3338_v22 = vpop.f32.mrf.mxu0  ;;  %4015 = vmatmul.mubr.bf16.gmra.mxu0 %v5598_v2 }
 0x186   : > { %v3451_v24 = vpop.f32.mrf.mxu1  ;;  %4128 = vmatmul.mubr.bf16.gmra.mxu1 %v5601_v5  ;;  %v6933_v10 = vadd.f32 %v3447_v53, %v3335_v26  ;;  %v3339_v0 = vadd.f32 %v3338_v22, %v6810_v28 }
 0x187   : > { %v3340_v4 = vpop.f32.mrf.mxu0 }
 0x188   : > { %v3453_v6 = vpop.f32.mrf.mxu1  ;;  %v6936_v25 = vadd.f32 %v3451_v24, %v3339_v0  ;;  %v3341_v13 = vadd.f32 %v3340_v4, %v6815_v38 }
 0x189   : > { %v3342_v11 = vpop.f32.mrf.mxu0 }
 0x18a   : > { %v3455_v12 = vpop.f32.mrf.mxu1  ;;  %v6939_v33 = vadd.f32 %v3453_v6, %v3341_v13  ;;  %v3343_v18 = vadd.f32 %v3342_v11, %v6819_v49 }
 0x18b   : > { %v3344_v34 = vpop.f32.mrf.mxu0 }
 0x18c   : > { %v3457_v36 = vpop.f32.mrf.mxu1  ;;  %v6942_v47 = vadd.f32 %v3455_v12, %v3343_v18  ;;  %v3345_v23 = vadd.f32 %v3344_v34, %v6822_v56 }
 0x18d   : > { %v3494_v19 = vpop.f32.mrf.mxu0 }
 0x18e   : > { %v3607_v28 = vpop.f32.mrf.mxu1  ;;  %v6945_v20 = vadd.f32 %v3457_v36, %v3345_v23  ;;  %v3495_v57 = vadd.f32 %v3494_v19, %v6826_v62 }
 0x18f   : > { %v3496_v44 = vpop.f32.mrf.mxu0 }
 0x190   : > { %v3609_v38 = vpop.f32.mrf.mxu1  ;;  %v6948_v37 = vadd.f32 %v3607_v28, %v3495_v57  ;;  %v3497_v35 = vadd.f32 %v3496_v44, %v6831_v7 }
 0x191   : > { %v3498_v39 = vpop.f32.mrf.mxu0 }
 0x192   : > { %v3611_v49 = vpop.f32.mrf.mxu1  ;;  %v6951_v58 = vadd.f32 %v3609_v38, %v3497_v35  ;;  %v3499_v42 = vadd.f32 %v3498_v39, %v6835_v15 }
 0x193   : > { %v3500_v1 = vpop.f32.mrf.mxu0 }
 0x194   : > { %v3613_v56 = vpop.f32.mrf.mxu1  ;;  %v6954_v46 = vadd.f32 %v3611_v49, %v3499_v42  ;;  %v3501_v2 = vadd.f32 %v3500_v1, %v6838_v3 }
 0x195   : > { %v3504_v5 = vpop.f32.mrf.mxu0 }
 0x196   : > { %v3617_v62 = vpop.f32.mrf.mxu1  ;;  %v6957_v60 = vadd.f32 %v3613_v56, %v3501_v2  ;;  %v3505_v52 = vadd.f32 %v3504_v5, %v6842_v31 }
 0x197   : > { %v3506_v53 = vpop.f32.mrf.mxu0 }
 0x198   : > { %v3619_v7 = vpop.f32.mrf.mxu1  ;;  %v6960_v26 = vadd.f32 %v3617_v62, %v3505_v52  ;;  %v3507_v22 = vadd.f32 %v3506_v53, %v6847_v40 }
 0x199   : > { %v3508_v24 = vpop.f32.mrf.mxu0 }
 0x19a   : > { %v3621_v15 = vpop.f32.mrf.mxu1  ;;  %v6963_v0 = vadd.f32 %v3619_v7, %v3507_v22  ;;  %v3509_v4 = vadd.f32 %v3508_v24, %v6851_v50 }
 0x19b   : > { %v3510_v6 = vpop.f32.mrf.mxu0 }
 0x19c   : > { %v3623_v3 = vpop.f32.mrf.mxu1  ;;  %v6966_v13 = vadd.f32 %v3621_v15, %v3509_v4  ;;  %v3511_v11 = vadd.f32 %v3510_v6, %v6854_v30 }
 0x19d   : > { %v3514_v12 = vpop.f32.mrf.mxu0 }
 0x19e   : > { %v3627_v31 = vpop.f32.mrf.mxu1  ;;  %v6969_v18 = vadd.f32 %v3623_v3, %v3511_v11  ;;  %v3515_v34 = vadd.f32 %v3514_v12, %v6858_v63 }
 0x19f   : > { %v3516_v36 = vpop.f32.mrf.mxu0 }
 0x1a0   : > { %v3629_v40 = vpop.f32.mrf.mxu1  ;;  %v6972_v23 = vadd.f32 %v3627_v31, %v3515_v34  ;;  %v3517_v19 = vadd.f32 %v3516_v36, %v6863_v8 }
 0x1a1   : > { %v3518_v28 = vpop.f32.mrf.mxu0 }
 0x1a2   : > { %v3631_v50 = vpop.f32.mrf.mxu1  ;;  %v6975_v57 = vadd.f32 %v3629_v40, %v3517_v19  ;;  %v3519_v44 = vadd.f32 %v3518_v28, %v6867_v17 }
 0x1a3   : > { %v3520_v38 = vpop.f32.mrf.mxu0 }
 0x1a4   : > { %v3633_v30 = vpop.f32.mrf.mxu1  ;;  %v6978_v35 = vadd.f32 %v3631_v50, %v3519_v44  ;;  %v3521_v39 = vadd.f32 %v3520_v38, %v6870_v59 }
 0x1a5   : > { %v3524_v49 = vpop.f32.mrf.mxu0 }
 0x1a6   : > { %v3637_v63 = vpop.f32.mrf.mxu1  ;;  %v6981_v42 = vadd.f32 %v3633_v30, %v3521_v39  ;;  %v3525_v1 = vadd.f32 %v3524_v49, %v6874_v32 }
 0x1a7   : > { %v3526_v56 = vpop.f32.mrf.mxu0 }
 0x1a8   : > { %v3639_v8 = vpop.f32.mrf.mxu1  ;;  %v6984_v2 = vadd.f32 %v3637_v63, %v3525_v1  ;;  %v3527_v5 = vadd.f32 %v3526_v56, %v6879_v41 }
 0x1a9   : > { %v3528_v62 = vpop.f32.mrf.mxu0 }
 0x1aa   : > { %v3641_v17 = vpop.f32.mrf.mxu1  ;;  %v6987_v52 = vadd.f32 %v3639_v8, %v3527_v5  ;;  %v3529_v53 = vadd.f32 %v3528_v62, %v6883_v51 }
 0x1ab   : > { %v3530_v7 = vpop.f32.mrf.mxu0 }
 0x1ac   : > { %v3643_v59 = vpop.f32.mrf.mxu1  ;;  %v6990_v22 = vadd.f32 %v3641_v17, %v3529_v53  ;;  %v3531_v24 = vadd.f32 %v3530_v7, %v6886_v27 }
 0x1ad   : > { %v3534_v15 = vpop.f32.mrf.mxu0 }
 0x1ae   : > { %v3647_v32 = vpop.f32.mrf.mxu1  ;;  %v6993_v4 = vadd.f32 %v3643_v59, %v3531_v24  ;;  %v3535_v6 = vadd.f32 %v3534_v15, %v6890_v48 }
 0x1af   : > { %v3536_v3 = vpop.f32.mrf.mxu0 }
 0x1b0   : > { %v3649_v41 = vpop.f32.mrf.mxu1  ;;  %v6996_v11 = vadd.f32 %v3647_v32, %v3535_v6  ;;  %v3537_v12 = vadd.f32 %v3536_v3, %v6895_v9 }
 0x1b1   : > { %v3538_v31 = vpop.f32.mrf.mxu0 }
 0x1b2   : > { %v3651_v51 = vpop.f32.mrf.mxu1  ;;  %v6999_v34 = vadd.f32 %v3649_v41, %v3537_v12  ;;  %v3539_v36 = vadd.f32 %v3538_v31, %v6899_v21 }
 0x1b3   : > { %v3540_v40 = vpop.f32.mrf.mxu0 }
 0x1b4   : > { %v3653_v27 = vpop.f32.mrf.mxu1  ;;  %v7002_v19 = vadd.f32 %v3651_v51, %v3539_v36  ;;  %v3541_v28 = vadd.f32 %v3540_v40, %v6902_v61 }
 0x1b5   : > { %v3544_v50 = vpop.f32.mrf.mxu0 }
 0x1b6   : > { %7296 = vst [vmem:[#allocation2_spill] sm:$0xff] %v7002_v19  ;;  %v3657_v48 = vpop.f32.mrf.mxu1  ;;  %v7005_v44 = vadd.f32 %v3653_v27, %v3541_v28  ;;  %v3545_v38 = vadd.f32 %v3544_v50, %v6906_v16 }
 0x1b7   : > { %v3546_v30 = vpop.f32.mrf.mxu0 }
 0x1b8   : > { %7297 = vst [vmem:[#allocation3_spill] sm:$0xff] %v7005_v44  ;;  %v3659_v9 = vpop.f32.mrf.mxu1  ;;  %v7008_v39 = vadd.f32 %v3657_v48, %v3545_v38  ;;  %v3547_v49 = vadd.f32 %v3546_v30, %v6911_v43 }
 0x1b9   : > { %v3548_v63 = vpop.f32.mrf.mxu0 }
 0x1ba   : > { %7298 = vst [vmem:[#allocation4_spill] sm:$0xff] %v7008_v39  ;;  %v3661_v21 = vpop.f32.mrf.mxu1  ;;  %v7011_v1 = vadd.f32 %v3659_v9, %v3547_v49  ;;  %v3549_v56 = vadd.f32 %v3548_v63, %v6915_v54 }
 0x1bb   : > { %v3550_v8 = vpop.f32.mrf.mxu0 }
 0x1bc   : > { %7299 = vst [vmem:[#allocation5_spill] sm:$0xff] %v7011_v1  ;;  %v3663_v61 = vpop.f32.mrf.mxu1  ;;  %v7014_v5 = vadd.f32 %v3661_v21, %v3549_v56  ;;  %v3551_v62 = vadd.f32 %v3550_v8, %v6918_v29 }
 0x1bd   : > { %v3554_v17 = vpop.f32.mrf.mxu0 }
 0x1be   : > { %7300 = vst [vmem:[#allocation6_spill] sm:$0xff] %v7014_v5  ;;  %v3667_v16 = vpop.f32.mrf.mxu1  ;;  %v7017_v53 = vadd.f32 %v3663_v61, %v3551_v62  ;;  %v3555_v7 = vadd.f32 %v3554_v17, %v6922_v45 }
 0x1bf   : > { %v3556_v59 = vpop.f32.mrf.mxu0 }
 0x1c0   : > { %7301 = vst [vmem:[#allocation7_spill] sm:$0xff] %v7017_v53  ;;  %v3669_v43 = vpop.f32.mrf.mxu1  ;;  %v7020_v24 = vadd.f32 %v3667_v16, %v3555_v7  ;;  %v3557_v15 = vadd.f32 %v3556_v59, %v6927_v14 }
 0x1c1   : > { %v3558_v32 = vpop.f32.mrf.mxu0 }
 0x1c2   : > { %7302 = vst [vmem:[#allocation8_spill] sm:$0xff] %v7020_v24  ;;  %v3671_v54 = vpop.f32.mrf.mxu1  ;;  %v7023_v6 = vadd.f32 %v3669_v43, %v3557_v15  ;;  %v3559_v3 = vadd.f32 %v3558_v32, %v6930_v55 }
 0x1c3   : > { %v3560_v41 = vpop.f32.mrf.mxu0 }
 0x1c4   : > { %7303 = vst [vmem:[#allocation9_spill] sm:$0xff] %v7023_v6  ;;  %v3673_v29 = vpop.f32.mrf.mxu1  ;;  %v7026_v12 = vadd.f32 %v3671_v54, %v3559_v3  ;;  %v3561_v31 = vadd.f32 %v3560_v41, %v6933_v10 }
 0x1c5   : > { %v3564_v51 = vpop.f32.mrf.mxu0 }
 0x1c6   : > { %7304 = vst [vmem:[#allocation10_spill] sm:$0xff] %v7026_v12  ;;  %v3677_v45 = vpop.f32.mrf.mxu1  ;;  %v7029_v36 = vadd.f32 %v3673_v29, %v3561_v31  ;;  %v3565_v40 = vadd.f32 %v3564_v51, %v6936_v25 }
 0x1c7   : > { %v3566_v27 = vpop.f32.mrf.mxu0 }
 0x1c8   : > { %7305 = vst [vmem:[#allocation11_spill] sm:$0xff] %v7029_v36  ;;  %v3679_v14 = vpop.f32.mrf.mxu1  ;;  %v7032_v28 = vadd.f32 %v3677_v45, %v3565_v40  ;;  %v3567_v50 = vadd.f32 %v3566_v27, %v6939_v33 }
 0x1c9   : > { %v3568_v48 = vpop.f32.mrf.mxu0 }
 0x1ca   : > { %7306 = vst [vmem:[#allocation12_spill] sm:$0xff] %v7032_v28  ;;  %v3681_v55 = vpop.f32.mrf.mxu1  ;;  %v7035_v38 = vadd.f32 %v3679_v14, %v3567_v50  ;;  %v3569_v30 = vadd.f32 %v3568_v48, %v6942_v47 }
 0x1cb   : > { %v3570_v9 = vpop.f32.mrf.mxu0 }
 0x1cc   : > { %7307 = vst [vmem:[#allocation13_spill] sm:$0xff] %v7035_v38  ;;  %v3683_v10 = vpop.f32.mrf.mxu1  ;;  %v7038_v49 = vadd.f32 %v3681_v55, %v3569_v30  ;;  %v3571_v63 = vadd.f32 %v3570_v9, %v6945_v20 }
 0x1cd   : > { %v3720_v21 = vpop.f32.mrf.mxu0 }
 0x1ce   : > { %7308 = vst [vmem:[#allocation14_spill] sm:$0xff] %v7038_v49  ;;  %v7041_v25 = vpop.f32.mrf.mxu1  ;;  %v7043_v56 = vadd.f32 %v3683_v10, %v3571_v63 }
 0x1cf   : > { %v3722_v8 = vpop.f32.mrf.mxu0 }
 0x1d0   : > { %7309 = vst [vmem:[#allocation15_spill] sm:$0xff] %v7043_v56  ;;  %v7045_v61 = vpop.f32.mrf.mxu1 }
 0x1d1   : > { %v7047_v33 = vpop.f32.mrf.mxu0 }
 0x1d2   : > { %v7049_v62 = vpop.f32.mrf.mxu1 }
 0x1d3   : > { %v7051_v17 = vpop.f32.mrf.mxu0 }
 0x1d4   : > { %v7053_v47 = vpop.f32.mrf.mxu1 }
 0x1d5   : > { %v7055_v16 = vpop.f32.mrf.mxu0 }
 0x1d6   : > { %v7057_v7 = vpop.f32.mrf.mxu1 }
 0x1d7   : > { %v7059_v20 = vpop.f32.mrf.mxu0 }
 0x1d8   : > { %v7061_v59 = vpop.f32.mrf.mxu1 }
 0x1d9   : > { %v7063_v43 = vpop.f32.mrf.mxu0 }
 0x1da   : > { %v7065_v15 = vpop.f32.mrf.mxu1 }
 0x1db   : > { %v7067_v32 = vpop.f32.mrf.mxu0 }
 0x1dc   : > { %v7069_v54 = vpop.f32.mrf.mxu1 }
 0x1dd   : > { %v7071_v3 = vpop.f32.mrf.mxu0 }
 0x1de   : > { %v7073_v41 = vpop.f32.mrf.mxu1 }
 0x1df   : > { %v7075_v29 = vpop.f32.mrf.mxu0 }
 0x1e0   : > { %v7077_v31 = vpop.f32.mrf.mxu1 }
 0x1e1   : > { %v7079_v51 = vpop.f32.mrf.mxu0 }
 0x1e2   : > { %v7081_v45 = vpop.f32.mrf.mxu1 }
 0x1e3   : > { %v7083_v40 = vpop.f32.mrf.mxu0 }
 0x1e4   : > { %v7085_v27 = vpop.f32.mrf.mxu1 }
 0x1e5   : > { %v7087_v14 = vpop.f32.mrf.mxu0 }
 0x1e6   : > { %v7089_v50 = vpop.f32.mrf.mxu1 }
 0x1e7   : > { %v7091_v48 = vpop.f32.mrf.mxu0 }
 0x1e8   : > { %v7093_v55 = vpop.f32.mrf.mxu1 }
 0x1e9   : > { %v7095_v30 = vpop.f32.mrf.mxu0 }
 0x1ea   : > { %v7097_v9 = vpop.f32.mrf.mxu1 }
 0x1eb   : > { %v7099_v10 = vpop.f32.mrf.mxu0 }
 0x1ec   : > { %v7101_v63 = vpop.f32.mrf.mxu1 }
 0x1ed   : > { %v7103_v56 = vpop.f32.mrf.mxu0 }
 0x1ee   : > { %v7105_v49 = vpop.f32.mrf.mxu1 }
 0x1ef   : > { %v7107_v38 = vpop.f32.mrf.mxu0 }
 0x1f0   : > { %v7109_v28 = vpop.f32.mrf.mxu1 }
 0x1f1   : > { %7310 = vst [vmem:[#allocation16_spill] sm:$0xff] %v7109_v28  ;;  %v7111_v36 = vpop.f32.mrf.mxu0 }
 0x1f2   : > { %7311 = vst [vmem:[#allocation17_spill] sm:$0xff] %v7111_v36  ;;  %v7113_v12 = vpop.f32.mrf.mxu1 }
 0x1f3   : > { %7312 = vst [vmem:[#allocation18_spill] sm:$0xff] %v7113_v12  ;;  %v7115_v6 = vpop.f32.mrf.mxu0 }
 0x1f4   : > { %7313 = vst [vmem:[#allocation19_spill] sm:$0xff] %v7115_v6  ;;  %v7117_v24 = vpop.f32.mrf.mxu1 }
 0x1f5   : > { %7314 = vst [vmem:[#allocation20_spill] sm:$0xff] %v7117_v24  ;;  %v7119_v53 = vpop.f32.mrf.mxu0 }
 0x1f6   : > { %7315 = vst [vmem:[#allocation21_spill] sm:$0xff] %v7119_v53  ;;  %v7121_v5 = vpop.f32.mrf.mxu1 }
 0x1f7   : > { %7316 = vst [vmem:[#allocation22_spill] sm:$0xff] %v7121_v5  ;;  %v7123_v1 = vpop.f32.mrf.mxu0 }
 0x1f8   : > { %7317 = vst [vmem:[#allocation23_spill] sm:$0xff] %v7123_v1  ;;  %v7125_v39 = vpop.f32.mrf.mxu1 }
 0x1f9   : > { %7318 = vst [vmem:[#allocation24_spill] sm:$0xff] %v7125_v39  ;;  %v7127_v44 = vpop.f32.mrf.mxu0 }
 0x1fa   : > { %7319 = vst [vmem:[#allocation25_spill] sm:$0xff] %v7127_v44  ;;  %v7129_v19 = vpop.f32.mrf.mxu1 }
 0x1fb   : > { %7320 = vst [vmem:[#allocation26_spill] sm:$0xff] %v7129_v19  ;;  %v7131_v28 = vpop.f32.mrf.mxu0 }
 0x1fc   : > { %7321 = vst [vmem:[#allocation27_spill] sm:$0xff] %v7131_v28  ;;  %v7133_v36 = vpop.f32.mrf.mxu1 }
 0x1fd   : > { %7322 = vst [vmem:[#allocation28_spill] sm:$0xff] %v7133_v36  ;;  %v7135_v12 = vpop.f32.mrf.mxu0 }
 0x1fe   : > { %7323 = vst [vmem:[#allocation29_spill] sm:$0xff] %v7135_v12  ;;  %v7137_v6 = vpop.f32.mrf.mxu1 }
 0x1ff   : > { %7324 = vst [vmem:[#allocation30_spill] sm:$0xff] %v7137_v6  ;;  %v7139_v24 = vpop.f32.mrf.mxu0  ;;  %v3721_v6 = vadd.f32 %v3720_v21, %v6948_v37  ;;  %v3727_v21 = vadd.f32 %v7051_v17, %v6957_v60 }
 0x200   : > { %7325 = vst [vmem:[#allocation31_spill] sm:$0xff] %v7139_v24  ;;  %v7141_v53 = vpop.f32.mrf.mxu1 }
 0x201   : > { %7326 = vst [vmem:[#allocation32_spill] sm:$0xff] %v7141_v53  ;;  %v7143_v5 = vpop.f32.mrf.mxu0 }
 0x202   : > { %7327 = vst [vmem:[#allocation33_spill] sm:$0xff] %v7143_v5  ;;  %v7145_v1 = vpop.f32.mrf.mxu1 }
 0x203   : > { %7328 = vst [vmem:[#allocation34_spill] sm:$0xff] %v7145_v1  ;;  %v7147_v39 = vpop.f32.mrf.mxu0  ;;  %v3723_v1 = vadd.f32 %v3722_v8, %v6951_v58  ;;  %v3731_v58 = vadd.f32 %v7055_v16, %v6960_v26  ;;  %v3735_v26 = vadd.f32 %v7063_v43, %v6966_v13 }
 0x204   : > { %7329 = vst [vmem:[#allocation35_spill] sm:$0xff] %v7147_v39  ;;  %v7149_v44 = vpop.f32.mrf.mxu1 }
 0x205   : > { %7330 = vst [vmem:[#allocation36_spill] sm:$0xff] %v7149_v44  ;;  %v7151_v19 = vpop.f32.mrf.mxu0  ;;  %v3834_v44 = vadd.f32 %v7041_v25, %v3721_v6  ;;  %v3836_v37 = vadd.f32 %v7045_v61, %v3723_v1  ;;  %v3840_v1 = vadd.f32 %v7053_v47, %v3727_v21  ;;  %v3737_v47 = vadd.f32 %v7067_v32, %v6969_v18 }
 0x206   : > { %v7153_v28 = vpop.f32.mrf.mxu1 }
 0x207   : > { %7331 = vst [vmem:[#allocation37_spill] sm:$0xff] %v7153_v28  ;;  %v7155_v36 = vpop.f32.mrf.mxu0  ;;  %v3725_v28 = vadd.f32 %v7047_v33, %v6954_v46  ;;  %v3733_v46 = vadd.f32 %v7059_v20, %v6963_v0  ;;  %v3848_v20 = vadd.f32 %v7065_v15, %v3735_v26 }
 0x208   : > { %7332 = vst [vmem:[#allocation38_spill] sm:$0xff] %v7155_v36  ;;  %v7157_v12 = vpop.f32.mrf.mxu1 }
 0x209   : > { %7333 = vst [vmem:[#allocation39_spill] sm:$0xff] %v7157_v12  ;;  %v7160_v24 = vpop.f32.mrf.mxu0  ;;  %v3846_v0 = vadd.f32 %v7061_v59, %v3733_v46 }
 0x20a   : > { %7334 = vst [vmem:[#allocation40_spill] sm:$0xff] %v7160_v24  ;;  %v7162_v53 = vpop.f32.mrf.mxu1 }
 0x20b   : > { %7335 = vst [vmem:[#allocation41_spill] sm:$0xff] %v7162_v53  ;;  %v7165_v5 = vpop.f32.mrf.mxu0 }
 0x20c   : > { %7336 = vst [vmem:[#allocation42_spill] sm:$0xff] %v7165_v5  ;;  %v7167_v39 = vpop.f32.mrf.mxu1 }
 0x20d   : > { %7337 = vst [vmem:[#allocation43_spill] sm:$0xff] %v7167_v39  ;;  %v3946_v36 = vpop.f32.mrf.mxu0  ;;  %v3838_v39 = vadd.f32 %v7049_v62, %v3725_v28 }
 0x20e   : > { %v4059_v12 = vpop.f32.mrf.mxu1  ;;  %v3947_v53 = vadd.f32 %v3946_v36, %v3834_v44  ;;  %v3844_v44 = vadd.f32 %v7057_v7, %v3731_v58 }
 0x20f   : > { %v3948_v8 = vpop.f32.mrf.mxu0 }
 0x210   : > { %v4061_v5 = vpop.f32.mrf.mxu1  ;;  %v4060_v6 = vadd.f32 %v4059_v12, %v3947_v53  ;;  %v3949_v25 = vadd.f32 %v3948_v8, %v3836_v37 }
 0x211   : > { %v3950_v33 = vpop.f32.mrf.mxu0 }
 0x212   : > { %v4063_v24 = vpop.f32.mrf.mxu1  ;;  %v4062_v61 = vadd.f32 %v4061_v5, %v3949_v25  ;;  %v3951_v60 = vadd.f32 %v3950_v33, %v3838_v39  ;;  %v4138_v28 = vmax.f32 %v4060_v6, 0.0  ;;  %v3743_v6 = vadd.f32 %v7075_v29, %v6975_v57 }
 0x213   : > { %v3952_v36 = vpop.f32.mrf.mxu0  ;;  %v3850_v25 = vadd.f32 %v7069_v54, %v3737_v47  ;;  %v3753_v47 = vadd.f32 %v7091_v48, %v6987_v52 }
 0x214   : > { %v4065_v17 = vpop.f32.mrf.mxu1  ;;  %v4139_v53 = vmax.f32 %v4062_v61, 0.0  ;;  %v4064_v12 = vadd.f32 %v4063_v24, %v3951_v60  ;;  %v3953_v62 = vadd.f32 %v3952_v36, %v3840_v1  ;;  %v3741_v24 = vadd.f32 %v7071_v3, %v6972_v23 }
 0x215   : > { %v3956_v39 = vpop.f32.mrf.mxu0  ;;  %v3745_v3 = vadd.f32 %v7079_v51, %v6978_v35  ;;  %v3856_v29 = vadd.f32 %v7077_v31, %v3743_v6  ;;  %v3751_v51 = vadd.f32 %v7087_v14, %v6984_v2  ;;  %v3755_v14 = vadd.f32 %v7095_v30, %v6990_v22 }
 0x216   : > { %v4069_v5 = vpop.f32.mrf.mxu1  ;;  %v4880_v13 = vpack.c.bf16 %v4139_v53, %v4138_v28  ;;  %v4066_v16 = vadd.f32 %v4065_v17, %v3953_v62  ;;  %v3957_v7 = vadd.f32 %v3956_v39, %v3844_v44  ;;  %v4140_v37 = vmax.f32 %v4064_v12, 0.0 }
 0x217   : > { %v3958_v59 = vpop.f32.mrf.mxu0  ;;  %v3854_v23 = vadd.f32 %v7073_v41, %v3741_v24  ;;  %v3747_v17 = vadd.f32 %v7083_v40, %v6981_v42  ;;  %v3858_v35 = vadd.f32 %v7081_v45, %v3745_v3  ;;  %v3864_v2 = vadd.f32 %v7089_v50, %v3751_v51 }
 0x218   : > { %v4071_v43 = vpop.f32.mrf.mxu1  ;;  %4266 = vst [vmem:[%s7189_s8] sm:$0xff] %v4880_v13  ;;  %v4141_v21 = vmax.f32 %v4066_v16, 0.0  ;;  %v4070_v58 = vadd.f32 %v4069_v5, %v3957_v7  ;;  %v3959_v8 = vadd.f32 %v3958_v59, %v3846_v0  ;;  %v3866_v48 = vadd.f32 %v7093_v55, %v3753_v47 }
 0x219   : > { %v3960_v18 = vpop.f32.mrf.mxu0  ;;  %v3860_v13 = vadd.f32 %v7085_v27, %v3747_v17  ;;  %v3868_v22 = vadd.f32 %v7097_v9, %v3755_v14  ;;  %v3761_v30 = vadd.f32 %v7103_v56, %v6996_v11  ;;  %v7338_v56 = vld [vmem:[#allocation2_spill] sm:$0xff] }
 0x21a   : > { %v4073_v32 = vpop.f32.mrf.mxu1  ;;  %v4881_v46 = vpack.c.bf16 %v4141_v21, %v4140_v37  ;;  %v4072_v15 = vadd.f32 %v4071_v43, %v3959_v8  ;;  %v3961_v33 = vadd.f32 %v3960_v18, %v3848_v20  ;;  %v4142_v60 = vmax.f32 %v4070_v58, 0.0 }
 0x21b   : > { %v3962_v1 = vpop.f32.mrf.mxu0  ;;  %v3757_v58 = vadd.f32 %v7099_v10, %v6993_v4  ;;  %v3874_v11 = vadd.f32 %v7105_v49, %v3761_v30 }
 0x21c   : > { %v4075_v61 = vpop.f32.mrf.mxu1  ;;  %4267 = vst [vmem:[%s7189_s8 + $0x8] sm:$0xff] %v4881_v46  ;;  %v4143_v44 = vmax.f32 %v4072_v15, 0.0  ;;  %v4074_v26 = vadd.f32 %v4073_v32, %v3961_v33  ;;  %v3963_v57 = vadd.f32 %v3962_v1, %v3850_v25  ;;  %v3763_v33 = vadd.f32 %v7107_v38, %v6999_v34  ;;  %v7340_v38 = vld [vmem:[#allocation16_spill] sm:$0xff] }
 0x21d   : > { %v3966_v36 = vpop.f32.mrf.mxu0 }
 0x21e   : > { %v4079_v54 = vpop.f32.mrf.mxu1  ;;  %v4882_v28 = vpack.c.bf16 %v4143_v44, %v4142_v60  ;;  %v4076_v41 = vadd.f32 %v4075_v61, %v3963_v57  ;;  %v3967_v53 = vadd.f32 %v3966_v36, %v3854_v23  ;;  %v4144_v0 = vmax.f32 %v4074_v26, 0.0  ;;  %v7339_v61 = vld [vmem:[#allocation17_spill] sm:$0xff] }
 0x21f   : > { %v3968_v12 = vpop.f32.mrf.mxu0  ;;  %v3870_v23 = vadd.f32 %v7101_v63, %v3757_v58  ;;  %v3765_v60 = vadd.f32 %v7339_v61, %v7338_v56  ;;  %v7351_v58 = vld [vmem:[#allocation25_spill] sm:$0xff]  ;;  %v7356_v56 = vld [vmem:[#allocation8_spill] sm:$0xff] }
 0x220   : > { %v4081_v62 = vpop.f32.mrf.mxu1  ;;  %4268 = vst [vmem:[%s7189_s8 + $0x10] sm:$0xff] %v4882_v28  ;;  %v4145_v39 = vmax.f32 %v4076_v41, 0.0  ;;  %v4080_v31 = vadd.f32 %v4079_v54, %v3967_v53  ;;  %v3969_v5 = vadd.f32 %v3968_v12, %v3856_v29  ;;  %v3876_v54 = vadd.f32 %v7340_v38, %v3763_v33  ;;  %v7341_v28 = vld [vmem:[#allocation3_spill] sm:$0xff]  ;;  %v7343_v12 = vld [vmem:[#allocation18_spill] sm:$0xff]  ;;  %v7357_v61 = vld [vmem:[#allocation29_spill] sm:$0xff] }
 0x221   : > { %v3970_v42 = vpop.f32.mrf.mxu0  ;;  %v7342_v41 = vld [vmem:[#allocation19_spill] sm:$0xff]  ;;  %v7358_v38 = vld [vmem:[#allocation9_spill] sm:$0xff] }
 0x222   : > { %v4083_v40 = vpop.f32.mrf.mxu1  ;;  %v4883_v16 = vpack.c.bf16 %v4145_v39, %v4144_v0  ;;  %v4082_v45 = vadd.f32 %v4081_v62, %v3969_v5  ;;  %v3971_v7 = vadd.f32 %v3970_v42, %v3858_v35  ;;  %v4146_v59 = vmax.f32 %v4080_v31, 0.0  ;;  %v7344_v0 = vld [vmem:[#allocation4_spill] sm:$0xff]  ;;  %v7345_v39 = vld [vmem:[#allocation21_spill] sm:$0xff]  ;;  %v7353_v33 = vld [vmem:[#allocation7_spill] sm:$0xff] }
 0x223   : > { %v3972_v20 = vpop.f32.mrf.mxu0  ;;  %v3767_v53 = vadd.f32 %v7342_v41, %v7341_v28  ;;  %v3878_v62 = vadd.f32 %v7343_v12, %v3765_v60  ;;  %v3771_v31 = vadd.f32 %v7345_v39, %v7344_v0  ;;  %v3781_v60 = vadd.f32 %v7357_v61, %v7356_v56  ;;  %v7360_v41 = vld [vmem:[#allocation28_spill] sm:$0xff]  ;;  %v7361_v12 = vld [vmem:[#allocation30_spill] sm:$0xff]  ;;  %v7363_v39 = vld [vmem:[#allocation33_spill] sm:$0xff] }
 0x224   : > { %v4085_v24 = vpop.f32.mrf.mxu1  ;;  %4269 = vst [vmem:[%s7189_s8 + $0x18] sm:$0xff] %v4883_v16  ;;  %v4147_v43 = vmax.f32 %v4082_v45, 0.0  ;;  %v4084_v37 = vadd.f32 %v4083_v40, %v3971_v7  ;;  %v3973_v52 = vadd.f32 %v3972_v20, %v3860_v13  ;;  %v7346_v45 = vld [vmem:[#allocation5_spill] sm:$0xff]  ;;  %v7347_v7 = vld [vmem:[#allocation23_spill] sm:$0xff]  ;;  %v7362_v0 = vld [vmem:[#allocation10_spill] sm:$0xff] }
 0x225   : > { %v3976_v21 = vpop.f32.mrf.mxu0 }
 0x226   : > { %v4089_v27 = vpop.f32.mrf.mxu1  ;;  %v4884_v8 = vpack.c.bf16 %v4147_v43, %v4146_v59  ;;  %v4086_v50 = vadd.f32 %v4085_v24, %v3973_v52  ;;  %v3977_v6 = vadd.f32 %v3976_v21, %v3864_v2  ;;  %v4148_v25 = vmax.f32 %v4084_v37, 0.0  ;;  %v7348_v24 = vld [vmem:[#allocation20_spill] sm:$0xff] }
 0x227   : > { %v3978_v18 = vpop.f32.mrf.mxu0  ;;  %v3773_v2 = vadd.f32 %v7347_v7, %v7346_v45  ;;  %v3880_v59 = vadd.f32 %v7348_v24, %v3767_v53  ;;  %v7364_v45 = vld [vmem:[#allocation32_spill] sm:$0xff]  ;;  %v7366_v24 = vld [vmem:[#allocation35_spill] sm:$0xff] }
 0x228   : > { %v4091_v32 = vpop.f32.mrf.mxu1  ;;  %4270 = vst [vmem:[%s7189_s8 + $0x20] sm:$0xff] %v4884_v8  ;;  %v4149_v46 = vmax.f32 %v4086_v50, 0.0  ;;  %v4090_v55 = vadd.f32 %v4089_v27, %v3977_v6  ;;  %v3979_v15 = vadd.f32 %v3978_v18, %v3866_v48  ;;  %v7349_v48 = vld [vmem:[#allocation22_spill] sm:$0xff] }
 0x229   : > { %v3980_v4 = vpop.f32.mrf.mxu0  ;;  %v3884_v21 = vadd.f32 %v7349_v48, %v3771_v31  ;;  %v7350_v27 = vld [vmem:[#allocation6_spill] sm:$0xff]  ;;  %v3785_v31 = vadd.f32 %v7363_v39, %v7362_v0 }
 0x22a   : > { %v4093_v10 = vpop.f32.mrf.mxu1  ;;  %v4885_v3 = vpack.c.bf16 %v4149_v46, %v4148_v25  ;;  %v4092_v9 = vadd.f32 %v4091_v32, %v3979_v15  ;;  %v3981_v1 = vadd.f32 %v3980_v4, %v3868_v22  ;;  %v4150_v57 = vmax.f32 %v4090_v55, 0.0  ;;  %v7352_v25 = vld [vmem:[#allocation24_spill] sm:$0xff]  ;;  %v7354_v4 = vld [vmem:[#allocation27_spill] sm:$0xff]  ;;  %v7367_v48 = vld [vmem:[#allocation34_spill] sm:$0xff] }
 0x22b   : > { %v3982_v44 = vpop.f32.mrf.mxu0  ;;  %v3775_v8 = vadd.f32 %v7351_v58, %v7350_v27  ;;  %v3886_v46 = vadd.f32 %v7352_v25, %v3773_v2  ;;  %v7368_v27 = vld [vmem:[#allocation12_spill] sm:$0xff]  ;;  %v7370_v25 = vld [vmem:[#allocation38_spill] sm:$0xff] }
 0x22c   : > { %v4095_v26 = vpop.f32.mrf.mxu1  ;;  %4271 = vst [vmem:[%s7189_s8 + $0x28] sm:$0xff] %v4885_v3  ;;  %v4151_v29 = vmax.f32 %v4092_v9, 0.0  ;;  %v4094_v36 = vadd.f32 %v4093_v10, %v3981_v1  ;;  %v3983_v34 = vadd.f32 %v3982_v44, %v3870_v23  ;;  %v3777_v10 = vadd.f32 %v7354_v4, %v7353_v33  ;;  %v7355_v1 = vld [vmem:[#allocation26_spill] sm:$0xff]  ;;  %v7371_v33 = vld [vmem:[#allocation36_spill] sm:$0xff] }
 0x22d   : > { %v3986_v17 = vpop.f32.mrf.mxu0  ;;  %v3791_v58 = vadd.f32 %v7151_v19, %v7368_v27 }
 0x22e   : > { %v4099_v63 = vpop.f32.mrf.mxu1  ;;  %v4886_v35 = vpack.c.bf16 %v4151_v29, %v4150_v57  ;;  %v4096_v49 = vadd.f32 %v4095_v26, %v3983_v34  ;;  %v3987_v51 = vadd.f32 %v3986_v17, %v3874_v11  ;;  %v4152_v42 = vmax.f32 %v4094_v36, 0.0 }
 0x22f   : > { %v3988_v5 = vpop.f32.mrf.mxu0  ;;  %v3888_v11 = vadd.f32 %v7355_v1, %v3775_v8  ;;  %v3890_v53 = vadd.f32 %v7360_v41, %v3777_v10  ;;  %v7373_v1 = vld [vmem:[#allocation14_spill] sm:$0xff] }
 0x230   : > { %v4101_v47 = vpop.f32.mrf.mxu1  ;;  %4272 = vst [vmem:[%s7189_s8 + $0x30] sm:$0xff] %v4886_v35  ;;  %v4153_v40 = vmax.f32 %v4096_v49, 0.0  ;;  %v4100_v13 = vadd.f32 %v4099_v63, %v3987_v51  ;;  %v3989_v16 = vadd.f32 %v3988_v5, %v3876_v54  ;;  %v7359_v54 = vld [vmem:[#allocation31_spill] sm:$0xff] }
 0x231   : > { %v3990_v14 = vpop.f32.mrf.mxu0  ;;  %v3783_v17 = vadd.f32 %v7359_v54, %v7358_v38 }
 0x232   : > { %v4103_v20 = vpop.f32.mrf.mxu1  ;;  %v4887_v43 = vpack.c.bf16 %v4153_v40, %v4152_v42  ;;  %v4102_v37 = vadd.f32 %v4101_v47, %v3989_v16  ;;  %v3991_v52 = vadd.f32 %v3990_v14, %v3878_v62  ;;  %v4154_v22 = vmax.f32 %v4100_v13, 0.0 }
 0x233   : > { %v3992_v50 = vpop.f32.mrf.mxu0  ;;  %v3894_v62 = vadd.f32 %v7361_v12, %v3781_v60  ;;  %v3896_v7 = vadd.f32 %v7364_v45, %v3783_v17  ;;  %v7376_v17 = vld [vmem:[#allocation15_spill] sm:$0xff] }
 0x234   : > { %v4105_v6 = vpop.f32.mrf.mxu1  ;;  %4273 = vst [vmem:[%s7189_s8 + $0x38] sm:$0xff] %v4887_v43  ;;  %v4155_v30 = vmax.f32 %v4102_v37, 0.0  ;;  %v4104_v18 = vadd.f32 %v4103_v20, %v3991_v52  ;;  %v3993_v32 = vadd.f32 %v3992_v50, %v3880_v59  ;;  %v7365_v20 = vld [vmem:[#allocation11_spill] sm:$0xff] }
 0x235   : > { %v3996_v55 = vpop.f32.mrf.mxu0  ;;  %v3787_v59 = vadd.f32 %v7366_v24, %v7365_v20 }
 0x236   : > { %v4109_v15 = vpop.f32.mrf.mxu1  ;;  %v4888_v23 = vpack.c.bf16 %v4155_v30, %v4154_v22  ;;  %v4106_v3 = vadd.f32 %v4105_v6, %v3993_v32  ;;  %v3997_v9 = vadd.f32 %v3996_v55, %v3884_v21  ;;  %v4156_v57 = vmax.f32 %v4104_v18, 0.0  ;;  %v7369_v32 = vld [vmem:[#allocation13_spill] sm:$0xff] }
 0x237   : > { %v3998_v44 = vpop.f32.mrf.mxu0  ;;  %v3898_v21 = vadd.f32 %v7367_v48, %v3785_v31  ;;  %v3900_v4 = vadd.f32 %v7371_v33, %v3787_v59 }
 0x238   : > { %v4111_v26 = vpop.f32.mrf.mxu1  ;;  %4274 = vst [vmem:[%s7189_s8 + $0x40] sm:$0xff] %v4888_v23  ;;  %v4157_v29 = vmax.f32 %v4106_v3, 0.0  ;;  %v4110_v36 = vadd.f32 %v4109_v15, %v3997_v9  ;;  %v3999_v34 = vadd.f32 %v3998_v44, %v3886_v46  ;;  %v3793_v46 = vadd.f32 %v7370_v25, %v7369_v32  ;;  %v7372_v9 = vld [vmem:[#allocation37_spill] sm:$0xff] }
 0x239   : > { %v4000_v63 = vpop.f32.mrf.mxu0  ;;  %v3904_v19 = vadd.f32 %v7372_v9, %v3791_v58 }
 0x23a   : > { %v4113_v28 = vpop.f32.mrf.mxu1  ;;  %v4889_v35 = vpack.c.bf16 %v4157_v29, %v4156_v57  ;;  %v4112_v49 = vadd.f32 %v4111_v26, %v3999_v34  ;;  %v4001_v51 = vadd.f32 %v4000_v63, %v3888_v11  ;;  %v4158_v42 = vmax.f32 %v4110_v36, 0.0  ;;  %v7374_v11 = vld [vmem:[#allocation40_spill] sm:$0xff]  ;;  %v7375_v36 = vld [vmem:[#allocation39_spill] sm:$0xff]  ;;  %v7377_v63 = vld [vmem:[#allocation42_spill] sm:$0xff] }
 0x23b   : > { %v4002_v5 = vpop.f32.mrf.mxu0  ;;  %v3795_v56 = vadd.f32 %v7374_v11, %v7373_v1  ;;  %v3906_v34 = vadd.f32 %v7375_v36, %v3793_v46 }
 0x23c   : > { %v4115_v47 = vpop.f32.mrf.mxu1  ;;  %4275 = vst [vmem:[%s7189_s8 + $0x48] sm:$0xff] %v4889_v35  ;;  %v4159_v40 = vmax.f32 %v4112_v49, 0.0  ;;  %v4114_v13 = vadd.f32 %v4113_v28, %v4001_v51  ;;  %v4003_v16 = vadd.f32 %v4002_v5, %v3890_v53  ;;  %v3797_v28 = vadd.f32 %v7377_v63, %v7376_v17  ;;  %v7378_v49 = vld [vmem:[#allocation41_spill] sm:$0xff] }
 0x23d   : > { %v4006_v2 = vpop.f32.mrf.mxu0  ;;  %v3908_v51 = vadd.f32 %v7378_v49, %v3795_v56 }
 0x23e   : > { %v4119_v14 = vpop.f32.mrf.mxu1  ;;  %v4890_v43 = vpack.c.bf16 %v4159_v40, %v4158_v42  ;;  %v4116_v37 = vadd.f32 %v4115_v47, %v4003_v16  ;;  %v4007_v52 = vadd.f32 %v4006_v2, %v3894_v62  ;;  %v4160_v6 = vmax.f32 %v4114_v13, 0.0  ;;  %v7379_v40 = vld [vmem:[#allocation43_spill] sm:$0xff] }
 0x23f   : > { %v4008_v8 = vpop.f32.mrf.mxu0  ;;  %v3910_v13 = vadd.f32 %v7379_v40, %v3797_v28 }
 0x240   : > { %v4121_v50 = vpop.f32.mrf.mxu1  ;;  %4276 = vst [vmem:[%s7189_s8 + $0x50] sm:$0xff] %v4890_v43  ;;  %v4161_v22 = vmax.f32 %v4116_v37, 0.0  ;;  %v4120_v30 = vadd.f32 %v4119_v14, %v4007_v52  ;;  %v4009_v18 = vadd.f32 %v4008_v8, %v3896_v7 }
 0x241   : > { %v4010_v55 = vpop.f32.mrf.mxu0 }
 0x242   : > { %v4123_v15 = vpop.f32.mrf.mxu1  ;;  %v4891_v10 = vpack.c.bf16 %v4161_v22, %v4160_v6  ;;  %v4122_v23 = vadd.f32 %v4121_v50, %v4009_v18  ;;  %v4011_v3 = vadd.f32 %v4010_v55, %v3898_v21  ;;  %v4162_v44 = vmax.f32 %v4120_v30, 0.0 }
 0x243   : > { %v4012_v61 = vpop.f32.mrf.mxu0 }
 0x244   : > { %v4125_v60 = vpop.f32.mrf.mxu1  ;;  %4277 = vst [vmem:[%s7189_s8 + $0x58] sm:$0xff] %v4891_v10  ;;  %v4163_v26 = vmax.f32 %v4122_v23, 0.0  ;;  %v4124_v57 = vadd.f32 %v4123_v15, %v4011_v3  ;;  %v4013_v29 = vadd.f32 %v4012_v61, %v3900_v4 }
 0x245   : > { %v4016_v38 = vpop.f32.mrf.mxu0 }
 0x246   : > { %v4129_v54 = vpop.f32.mrf.mxu1  ;;  %v4892_v41 = vpack.c.bf16 %v4163_v26, %v4162_v44  ;;  %v4126_v53 = vadd.f32 %v4125_v60, %v4013_v29  ;;  %v4017_v35 = vadd.f32 %v4016_v38, %v3904_v19  ;;  %v4164_v0 = vmax.f32 %v4124_v57, 0.0 }
 0x247   : > { %v4018_v12 = vpop.f32.mrf.mxu0 }
 0x248   : > { %v4131_v62 = vpop.f32.mrf.mxu1  ;;  %4278 = vst [vmem:[%s7189_s8 + $0x60] sm:$0xff] %v4892_v41  ;;  %v4165_v39 = vmax.f32 %v4126_v53, 0.0  ;;  %v4130_v31 = vadd.f32 %v4129_v54, %v4017_v35  ;;  %v4019_v5 = vadd.f32 %v4018_v12, %v3906_v34 }
 0x249   : > { %v4020_v47 = vpop.f32.mrf.mxu0 }
 0x24a   : > { %v4133_v42 = vpop.f32.mrf.mxu1  ;;  %v4893_v16 = vpack.c.bf16 %v4165_v39, %v4164_v0  ;;  %v4132_v45 = vadd.f32 %v4131_v62, %v4019_v5  ;;  %v4021_v7 = vadd.f32 %v4020_v47, %v3908_v51  ;;  %v4166_v14 = vmax.f32 %v4130_v31, 0.0 }
 0x24b   : > { %v4022_v2 = vpop.f32.mrf.mxu0 }
 0x24c   : > { %4279 = vst [vmem:[%s7189_s8 + $0x68] sm:$0xff] %v4893_v16  ;;  %v4167_v20 = vmax.f32 %v4132_v45, 0.0  ;;  %v4134_v24 = vadd.f32 %v4133_v42, %v4021_v7  ;;  %v4023_v59 = vadd.f32 %v4022_v2, %v3910_v13  ;;  %v4135_v43 = vpop.f32.mrf.mxu1 }
 0x24e   : > { %v4894_v37 = vpack.c.bf16 %v4167_v20, %v4166_v14  ;;  %v4136_v52 = vadd.f32 %v4135_v43, %v4023_v59  ;;  %v4168_v48 = vmax.f32 %v4134_v24, 0.0 }
 0x250   : > { %4280 = vst [vmem:[%s7189_s8 + $0x70] sm:$0xff] %v4894_v37  ;;  %v4169_v21 = vmax.f32 %v4136_v52, 0.0 }
 0x252   : > { %v4895_v27 = vpack.c.bf16 %v4169_v21, %v4168_v48 }
 0x254   : > { %4281 = vst [vmem:[%s7189_s8 + $0x78] sm:$0xff] %v4895_v27 }
 0x255 PF: > { %s13_s14 = sadd.s32 1, %s5624_s14   ;;  %s7380_s12 = smov %s5620_s13 }
 0x256   : > { %p10_p5 = scmp.ge.s32.totalorder %s13_s14, 4   ;;  %s7381_s13 = smov %s7383_s15 }
 0x258   :  { %12 = sbr.rel (!%p10_p5) target bundleno = 2 (0x2), region = 68 }

// kernel: eye_patch_model_forward.10
= control target key start
LH: loop header
LB: loop body
LE: loop exit
PB: predicated region body
PF: predicated region fallthrough
CT: control target
= control target key end

     0   :  { %vm6268_vm0 = vmmov 0   ;;  %s8248_s1 = inlined_call_operand.vmem [shape: bf16[2304,384], index: 1, kind: input, shape index: {}]   ;;  %s8249_s0 = inlined_call_operand.vmem [shape: bf16[40,2304], index: 0, kind: input, shape index: {}]   ;;  %s8250_s2 = inlined_call_operand.vmem [shape: f32[1,384], index: 2, kind: input, shape index: {}]   ;;  %s8251_s3 = inlined_call_operand.vmem [shape: bf16[384,128], index: 3, kind: input, shape index: {}]   ;;  %s8252_s4 = inlined_call_operand.vmem [shape: f32[1,128], index: 4, kind: input, shape index: {}]   ;;  %s8253_s5 = inlined_call_operand.vmem [shape: bf16[40,128], index: 5, kind: output, shape index: {}]  }
   0x1   :  { %v5558_v0 = vld [vmem:[%s8248_s1 + $0xac] ss:$12 sps:$4 sm:$0xff]   ;;  %v5562_v2 = vld [vmem:[%s8248_s1 + $0xa8] ss:$12 sps:$4 sm:$0xff]   ;;  %v5568_v6 = vld [vmem:[%s8248_s1 + $0x90] ss:$12 sps:$4 sm:$0xff]  }
   0x2   :  { %v5560_v1 = vld [vmem:[%s8248_s1 + $0x22c] ss:$12 sps:$4 sm:$0xff]   ;;  %3206 = vmatprep.subr.bf16.mxu0 %v5558_v0  ;;  %v5563_v3 = vld [vmem:[%s8248_s1 + $0x228] ss:$12 sps:$4 sm:$0xff]   ;;  %v5569_v7 = vld [vmem:[%s8248_s1 + $0x210] ss:$12 sps:$4 sm:$0xff]  }
   0x3   :  { %3267 = vmatprep.subr.bf16.mxu1 %v5560_v1  ;;  %v5564_v4 = vld [vmem:[%s8248_s1 + $0x94] ss:$12 sps:$4 sm:$0xff]   ;;  %3207 = vmatpush1.bf16.msra.mxu0 %v5562_v2  ;;  %v5570_v8 = vld [vmem:[%s8248_s1 + $0x7c] ss:$12 sps:$4 sm:$0xff]   ;;  %v5574_v10 = vld [vmem:[%s8248_s1 + $0x78] ss:$12 sps:$4 sm:$0xff]  }
   0x4   :  { %3268 = vmatpush1.bf16.msra.mxu1 %v5563_v3  ;;  %v5566_v5 = vld [vmem:[%s8248_s1 + $0x214] ss:$12 sps:$4 sm:$0xff]   ;;  %3208 = vmatprep.subr.bf16.mxu0 %v5564_v4  ;;  %v5572_v9 = vld [vmem:[%s8248_s1 + $0x1fc] ss:$12 sps:$4 sm:$0xff]   ;;  %v5575_v11 = vld [vmem:[%s8248_s1 + $0x1f8] ss:$12 sps:$4 sm:$0xff]  }
   0x5   :  { %3269 = vmatprep.subr.bf16.mxu1 %v5566_v5  ;;  %v5576_v12 = vld [vmem:[%s8248_s1 + $0x64] ss:$12 sps:$4 sm:$0xff]   ;;  %v5580_v14 = vld [vmem:[%s8248_s1 + $0x60] ss:$12 sps:$4 sm:$0xff]   ;;  %v5586_v18 = vld [vmem:[%s8248_s1 + $0x48] ss:$12 sps:$4 sm:$0xff]  }
   0x6   :  { %v5578_v13 = vld [vmem:[%s8248_s1 + $0x1e4] ss:$12 sps:$4 sm:$0xff]   ;;  %v5581_v15 = vld [vmem:[%s8248_s1 + $0x1e0] ss:$12 sps:$4 sm:$0xff]   ;;  %v5587_v19 = vld [vmem:[%s8248_s1 + $0x1c8] ss:$12 sps:$4 sm:$0xff]  }
   0x7   :  { %3209 = vmatpush1.bf16.msra.mxu0 %v5568_v6  ;;  %v5582_v16 = vld [vmem:[%s8248_s1 + $0x4c] ss:$12 sps:$4 sm:$0xff]   ;;  %v5588_v20 = vld [vmem:[%s8248_s1 + $0x34] ss:$12 sps:$4 sm:$0xff]   ;;  %v5592_v22 = vld [vmem:[%s8248_s1 + $0x30] ss:$12 sps:$4 sm:$0xff]  }
   0x8   :  { %3270 = vmatpush1.bf16.msra.mxu1 %v5569_v7  ;;  %3210 = vmatprep.subr.bf16.mxu0 %v5570_v8  ;;  %v5584_v17 = vld [vmem:[%s8248_s1 + $0x1cc] ss:$12 sps:$4 sm:$0xff]   ;;  %v5590_v21 = vld [vmem:[%s8248_s1 + $0x1b4] ss:$12 sps:$4 sm:$0xff]   ;;  %v5593_v23 = vld [vmem:[%s8248_s1 + $0x1b0] ss:$12 sps:$4 sm:$0xff]  }
   0x9   :  { %3271 = vmatprep.subr.bf16.mxu1 %v5572_v9  ;;  %v5594_v24 = vld [vmem:[%s8248_s1 + $0x1c] ss:$12 sps:$4 sm:$0xff]   ;;  %v5598_v26 = vld [vmem:[%s8248_s1 + $0x18] ss:$12 sps:$4 sm:$0xff]   ;;  %v5604_v30 = vld [vmem:[%s8248_s1] ss:$12 sps:$4 sm:$0xff]  }
   0xa   :  { %v5596_v25 = vld [vmem:[%s8248_s1 + $0x19c] ss:$12 sps:$4 sm:$0xff]   ;;  %v5599_v27 = vld [vmem:[%s8248_s1 + $0x198] ss:$12 sps:$4 sm:$0xff]   ;;  %v5605_v31 = vld [vmem:[%s8248_s1 + $0x180] ss:$12 sps:$4 sm:$0xff]  }
   0xb   :  { %3211 = vmatpush1.bf16.msra.mxu0 %v5574_v10  ;;  %v5600_v28 = vld [vmem:[%s8248_s1 + $0x4] ss:$12 sps:$4 sm:$0xff]   ;;  %v5606_v32 = vld [vmem:[%s8248_s1 + $0x16c] ss:$12 sps:$4 sm:$0xff]   ;;  %v5610_v34 = vld [vmem:[%s8248_s1 + $0x168] ss:$12 sps:$4 sm:$0xff]  }
   0xc   :  { %3272 = vmatpush1.bf16.msra.mxu1 %v5575_v11  ;;  %3212 = vmatprep.subr.bf16.mxu0 %v5576_v12  ;;  %v5602_v29 = vld [vmem:[%s8248_s1 + $0x184] ss:$12 sps:$4 sm:$0xff]   ;;  %v5608_v33 = vld [vmem:[%s8248_s1 + $0x2ec] ss:$12 sps:$4 sm:$0xff]   ;;  %v5611_v35 = vld [vmem:[%s8248_s1 + $0x2e8] ss:$12 sps:$4 sm:$0xff]  }
   0xd   :  { %3273 = vmatprep.subr.bf16.mxu1 %v5578_v13  ;;  %v5612_v36 = vld [vmem:[%s8248_s1 + $0x154] ss:$12 sps:$4 sm:$0xff]   ;;  %v5616_v38 = vld [vmem:[%s8248_s1 + $0x150] ss:$12 sps:$4 sm:$0xff]   ;;  %v5622_v42 = vld [vmem:[%s8248_s1 + $0x138] ss:$12 sps:$4 sm:$0xff]  }
   0xe   :  { %v5614_v37 = vld [vmem:[%s8248_s1 + $0x2d4] ss:$12 sps:$4 sm:$0xff]   ;;  %v5617_v39 = vld [vmem:[%s8248_s1 + $0x2d0] ss:$12 sps:$4 sm:$0xff]   ;;  %v5623_v43 = vld [vmem:[%s8248_s1 + $0x2b8] ss:$12 sps:$4 sm:$0xff]  }
   0xf   :  { %3213 = vmatpush1.bf16.msra.mxu0 %v5580_v14  ;;  %v5618_v40 = vld [vmem:[%s8248_s1 + $0x13c] ss:$12 sps:$4 sm:$0xff]   ;;  %v5624_v44 = vld [vmem:[%s8248_s1 + $0x124] ss:$12 sps:$4 sm:$0xff]   ;;  %v5628_v46 = vld [vmem:[%s8248_s1 + $0x120] ss:$12 sps:$4 sm:$0xff]  }
  0x10   :  { %3274 = vmatpush1.bf16.msra.mxu1 %v5581_v15  ;;  %3214 = vmatprep.subr.bf16.mxu0 %v5582_v16  ;;  %v5620_v41 = vld [vmem:[%s8248_s1 + $0x2bc] ss:$12 sps:$4 sm:$0xff]   ;;  %v5626_v45 = vld [vmem:[%s8248_s1 + $0x2a4] ss:$12 sps:$4 sm:$0xff]   ;;  %v5629_v47 = vld [vmem:[%s8248_s1 + $0x2a0] ss:$12 sps:$4 sm:$0xff]  }
  0x11   :  { %3275 = vmatprep.subr.bf16.mxu1 %v5584_v17  ;;  %v5630_v48 = vld [vmem:[%s8248_s1 + $0x10c] ss:$12 sps:$4 sm:$0xff]   ;;  %v5634_v52 = vld [vmem:[%s8248_s1 + $0x108] ss:$12 sps:$4 sm:$0xff]   ;;  %v5640_v56 = vld [vmem:[%s8248_s1 + $0xf0] ss:$12 sps:$4 sm:$0xff]  }
  0x12   :  { %v5656_v49 = vld [vmem:[%s8249_s0 + $0x4] ss:$72 sps:$4 sm:$0xff]   ;;  %v5635_v53 = vld [vmem:[%s8248_s1 + $0x288] ss:$12 sps:$4 sm:$0xff]   ;;  %v5641_v57 = vld [vmem:[%s8248_s1 + $0x270] ss:$12 sps:$4 sm:$0xff]  }
  0x13   :  { %3215 = vmatpush1.bf16.msra.mxu0 %v5586_v18  ;;  %v5632_v50 = vld [vmem:[%s8248_s1 + $0x28c] ss:$12 sps:$4 sm:$0xff]   ;;  %3238 = vmatprep.mubr.bf16.mxu0 %v5656_v49  ;;  %v5636_v54 = vld [vmem:[%s8248_s1 + $0xf4] ss:$12 sps:$4 sm:$0xff]   ;;  %v5642_v58 = vld [vmem:[%s8248_s1 + $0xdc] ss:$12 sps:$4 sm:$0xff]  }
  0x14   :  { %3276 = vmatpush1.bf16.msra.mxu1 %v5587_v19  ;;  %3216 = vmatprep.subr.bf16.mxu0 %v5588_v20  ;;  %v5659_v51 = vld [vmem:[%s8249_s0 + $0xc] ss:$72 sps:$4 sm:$0xff]   ;;  %v5644_v59 = vld [vmem:[%s8248_s1 + $0x25c] ss:$12 sps:$4 sm:$0xff]   ;;  %v5646_v60 = vld [vmem:[%s8248_s1 + $0xd8] ss:$12 sps:$4 sm:$0xff]  }
  0x15   :  { %3277 = vmatprep.subr.bf16.mxu1 %v5590_v21  ;;  %3299 = vmatprep.mubr.bf16.mxu1 %v5659_v51  ;;  %v5638_v55 = vld [vmem:[%s8248_s1 + $0x274] ss:$12 sps:$4 sm:$0xff]   ;;  %v5647_v61 = vld [vmem:[%s8248_s1 + $0x258] ss:$12 sps:$4 sm:$0xff]   ;;  %v5657_v5 = vld [vmem:[%s8249_s0 + $0x8] ss:$72 sps:$4 sm:$0xff]  }
  0x16   :  { %v5648_v62 = vld [vmem:[%s8248_s1 + $0xc4] ss:$12 sps:$4 sm:$0xff]   ;;  %v5652_v0 = vld [vmem:[%s8248_s1 + $0xc0] ss:$12 sps:$4 sm:$0xff]   ;;  %v5660_v6 = vld [vmem:[%s8248_s1 + $0x3a8] ss:$12 sps:$4 sm:$0xff]  }
  0x17   :  { %3217 = vmatpush1.bf16.msra.mxu0 %v5592_v22  ;;  %v5650_v63 = vld [vmem:[%s8248_s1 + $0x244] ss:$12 sps:$4 sm:$0xff]   ;;  %v5653_v1 = vld [vmem:[%s8248_s1 + $0x240] ss:$12 sps:$4 sm:$0xff]   ;;  %v5663_v7 = vld [vmem:[%s8248_s1 + $0x528] ss:$12 sps:$4 sm:$0xff]  }
  0x18   :  { %3278 = vmatpush1.bf16.msra.mxu1 %v5593_v23  ;;  %3218 = vmatprep.subr.bf16.mxu0 %v5594_v24  ;;  %v5662_v2 = vld [vmem:[%s8248_s1 + $0x3ac] ss:$12 sps:$4 sm:$0xff]   ;;  %v5654_v4 = vld [vmem:[%s8249_s0] ss:$72 sps:$4 sm:$0xff]   ;;  %v5666_v10 = vld [vmem:[%s8248_s1 + $0x390] ss:$12 sps:$4 sm:$0xff]  }
  0x19   :  { %3279 = vmatprep.subr.bf16.mxu1 %v5596_v25  ;;  %v5665_v3 = vld [vmem:[%s8248_s1 + $0x52c] ss:$12 sps:$4 sm:$0xff]   ;;  %v5668_v8 = vld [vmem:[%s8248_s1 + $0x394] ss:$12 sps:$4 sm:$0xff]   ;;  %v5669_v11 = vld [vmem:[%s8248_s1 + $0x510] ss:$12 sps:$4 sm:$0xff]  }
  0x1a   :  { %v5671_v9 = vld [vmem:[%s8248_s1 + $0x514] ss:$12 sps:$4 sm:$0xff]   ;;  %v5674_v12 = vld [vmem:[%s8248_s1 + $0x37c] ss:$12 sps:$4 sm:$0xff]   ;;  %v5672_v14 = vld [vmem:[%s8248_s1 + $0x378] ss:$12 sps:$4 sm:$0xff]  }
  0x1b   :  { %3219 = vmatpush1.bf16.msra.mxu0 %v5598_v26  ;;  %v5677_v13 = vld [vmem:[%s8248_s1 + $0x4fc] ss:$12 sps:$4 sm:$0xff]   ;;  %v5675_v15 = vld [vmem:[%s8248_s1 + $0x4f8] ss:$12 sps:$4 sm:$0xff]   ;;  %v5678_v18 = vld [vmem:[%s8248_s1 + $0x360] ss:$12 sps:$4 sm:$0xff]  }
  0x1c   :  { %3280 = vmatpush1.bf16.msra.mxu1 %v5599_v27  ;;  %3220 = vmatprep.subr.bf16.mxu0 %v5600_v28  ;;  %v5680_v16 = vld [vmem:[%s8248_s1 + $0x364] ss:$12 sps:$4 sm:$0xff]   ;;  %v5681_v19 = vld [vmem:[%s8248_s1 + $0x4e0] ss:$12 sps:$4 sm:$0xff]   ;;  %v5726_v21 = vld [vmem:[%s8249_s0 + $0x94] ss:$72 sps:$4 sm:$0xff]  }
  0x1d   :  { %3281 = vmatprep.subr.bf16.mxu1 %v5602_v29  ;;  %v5683_v17 = vld [vmem:[%s8248_s1 + $0x4e4] ss:$12 sps:$4 sm:$0xff]   ;;  %v5686_v20 = vld [vmem:[%s8248_s1 + $0x34c] ss:$12 sps:$4 sm:$0xff]   ;;  %v5684_v25 = vld [vmem:[%s8248_s1 + $0x348] ss:$12 sps:$4 sm:$0xff]  }
  0x1e   :  { %v5728_v22 = vld [vmem:[%s8249_s0 + $0x90] ss:$72 sps:$4 sm:$0xff]   ;;  %v5729_v23 = vld [vmem:[%s8249_s0 + $0x9c] ss:$72 sps:$4 sm:$0xff]   ;;  %v5687_v26 = vld [vmem:[%s8248_s1 + $0x4c8] ss:$12 sps:$4 sm:$0xff]  }
  0x1f   :  { %3221 = vmatpush1.bf16.msra.mxu0 %v5604_v30  ;;  %v5689_v24 = vld [vmem:[%s8248_s1 + $0x4cc] ss:$12 sps:$4 sm:$0xff]   ;;  %v5692_v28 = vld [vmem:[%s8248_s1 + $0x334] ss:$12 sps:$4 sm:$0xff]   ;;  %v5771_v49 = vld [vmem:[%s8249_s0 + $0x1c] ss:$72 sps:$4 sm:$0xff]  }
  0x20   :  { %3282 = vmatpush1.bf16.msra.mxu1 %v5605_v31  ;;  %3222 = vmatprep.subr.bf16.mxu0 %v5606_v32  ;;  %v5737_v27 = vld [vmem:[%s8249_s0 + $0x98] ss:$72 sps:$4 sm:$0xff]   ;;  %v5690_v31 = vld [vmem:[%s8248_s1 + $0x330] ss:$12 sps:$4 sm:$0xff]   ;;  %v5711_v51 = vld [vmem:[%s8248_s1 + $0x5e8] ss:$12 sps:$4 sm:$0xff]  }
  0x21   :  { %3283 = vmatprep.subr.bf16.mxu1 %v5608_v33  ;;  %v5695_v29 = vld [vmem:[%s8248_s1 + $0x4b4] ss:$12 sps:$4 sm:$0xff]  }
  0x22   :  { %v57_v30 = vld [vmem:[%s8249_s0 + $0x120] sm:$0xff] }
  0x23   :  { %3223 = vmatpush2.bf16.msra.mxu0 %v5610_v34  ;;  %v6587_v32 = vcombine.high %v57_v30, %v57_v30  ;;  %v6589_v33 = vcombine.low %v57_v30, %v57_v30  ;;  %v5693_v34 = vld [vmem:[%s8248_s1 + $0x4b0] ss:$12 sps:$4 sm:$0xff]  }
  0x24   :  { %3284 = vmatpush2.bf16.msra.mxu1 %v5611_v35  ;;  %3224 = vmatprep.subr.bf16.mxu0 %v5612_v36  ;;  %v5698_v35 = vld [vmem:[%s8248_s1 + $0x31c] ss:$12 sps:$4 sm:$0xff]  }
  0x25   :  { %3285 = vmatprep.subr.bf16.mxu1 %v5614_v37  ;;  %v5701_v36 = vld [vmem:[%s8248_s1 + $0x49c] ss:$12 sps:$4 sm:$0xff]  }
  0x26   :  { %v58_v37 = vld [vmem:[%s8249_s0 + $0x128] sm:$0xff] }
  0x27   :  { %3225 = vmatpush2.bf16.msra.mxu0 %v5616_v38  ;;  %v6604_v38 = vcombine.high %v58_v37, %v58_v37  ;;  %v5792_v30 = vld [vmem:[%s8248_s1 + $0x7fc] ss:$12 sps:$4 sm:$0xff]  }
  0x28   :  { %3286 = vmatpush2.bf16.msra.mxu1 %v5617_v39  ;;  %3226 = vmatprep.subr.bf16.mxu0 %v5618_v40  ;;  %v6607_v39 = vcombine.low %v58_v37, %v58_v37  ;;  %v5696_v40 = vld [vmem:[%s8248_s1 + $0x318] ss:$12 sps:$4 sm:$0xff]  }
  0x29   :  { %3287 = vmatprep.subr.bf16.mxu1 %v5620_v41  ;;  %v5699_v41 = vld [vmem:[%s8248_s1 + $0x498] ss:$12 sps:$4 sm:$0xff]  }
  0x2a   :  { %v60_v37 = vld [vmem:[%s8249_s0 + $0x138] sm:$0xff] }
  0x2b   :  { %3227 = vmatpush2.bf16.msra.mxu0 %v5622_v42  ;;  %v5704_v42 = vld [vmem:[%s8248_s1 + $0x304] ss:$12 sps:$4 sm:$0xff]  }
  0x2c   :  { %3288 = vmatpush2.bf16.msra.mxu1 %v5623_v43  ;;  %3228 = vmatprep.subr.bf16.mxu0 %v5624_v44  ;;  %v5707_v43 = vld [vmem:[%s8248_s1 + $0x484] ss:$12 sps:$4 sm:$0xff]   ;;  %v5702_v44 = vld [vmem:[%s8248_s1 + $0x300] ss:$12 sps:$4 sm:$0xff]  }
  0x2d   :  { %3289 = vmatprep.subr.bf16.mxu1 %v5626_v45  ;;  %v5705_v45 = vld [vmem:[%s8248_s1 + $0x480] ss:$12 sps:$4 sm:$0xff]  }
  0x2f   :  { %3229 = vmatpush2.bf16.msra.mxu0 %v5628_v46  ;;  %v5710_v46 = vld [vmem:[%s8248_s1 + $0x46c] ss:$12 sps:$4 sm:$0xff]  }
  0x30   :  { %3290 = vmatpush2.bf16.msra.mxu1 %v5629_v47  ;;  %3230 = vmatprep.subr.bf16.mxu0 %v5630_v48  ;;  %v5768_v47 = vld [vmem:[%s8249_s0 + $0x14] ss:$72 sps:$4 sm:$0xff]   ;;  %v5713_v48 = vld [vmem:[%s8248_s1 + $0x5ec] ss:$12 sps:$4 sm:$0xff]  }
  0x31   :  { %3291 = vmatprep.subr.bf16.mxu1 %v5632_v50  ;;  %v5708_v50 = vld [vmem:[%s8248_s1 + $0x468] ss:$12 sps:$4 sm:$0xff]  }
  0x33   :  { %3231 = vmatpush2.bf16.msra.mxu0 %v5634_v52  ;;  %v5716_v52 = vld [vmem:[%s8248_s1 + $0x454] ss:$12 sps:$4 sm:$0xff]  }
  0x34   :  { %3292 = vmatpush2.bf16.msra.mxu1 %v5635_v53  ;;  %3232 = vmatprep.subr.bf16.mxu0 %v5636_v54  ;;  %v5719_v53 = vld [vmem:[%s8248_s1 + $0x5d4] ss:$12 sps:$4 sm:$0xff]   ;;  %v5714_v54 = vld [vmem:[%s8248_s1 + $0x450] ss:$12 sps:$4 sm:$0xff]  }
  0x35   :  { %3293 = vmatprep.subr.bf16.mxu1 %v5638_v55  ;;  %v5717_v55 = vld [vmem:[%s8248_s1 + $0x5d0] ss:$12 sps:$4 sm:$0xff]  }
  0x37   :  { %3233 = vmatpush2.bf16.msra.mxu0 %v5640_v56  ;;  %v5722_v56 = vld [vmem:[%s8248_s1 + $0x43c] ss:$12 sps:$4 sm:$0xff]  }
  0x38   :  { %3294 = vmatpush2.bf16.msra.mxu1 %v5641_v57  ;;  %3234 = vmatprep.subr.bf16.mxu0 %v5642_v58  ;;  %v5725_v57 = vld [vmem:[%s8248_s1 + $0x5bc] ss:$12 sps:$4 sm:$0xff]   ;;  %v5720_v58 = vld [vmem:[%s8248_s1 + $0x438] ss:$12 sps:$4 sm:$0xff]  }
  0x39   :  { %3295 = vmatprep.subr.bf16.mxu1 %v5644_v59  ;;  %v5723_v59 = vld [vmem:[%s8248_s1 + $0x5b8] ss:$12 sps:$4 sm:$0xff]  }
  0x3b   :  { %3235 = vmatpush2.bf16.msra.mxu0 %v5646_v60  ;;  %v5733_v60 = vld [vmem:[%s8248_s1 + $0x424] ss:$12 sps:$4 sm:$0xff]  }
  0x3c   :  { %3296 = vmatpush2.bf16.msra.mxu1 %v5647_v61  ;;  %3236 = vmatprep.subr.bf16.mxu0 %v5648_v62  ;;  %v5736_v61 = vld [vmem:[%s8248_s1 + $0x5a4] ss:$12 sps:$4 sm:$0xff]   ;;  %v5731_v62 = vld [vmem:[%s8248_s1 + $0x420] ss:$12 sps:$4 sm:$0xff]  }
  0x3d   :  { %3297 = vmatprep.subr.bf16.mxu1 %v5650_v63  ;;  %v5734_v63 = vld [vmem:[%s8248_s1 + $0x5a0] ss:$12 sps:$4 sm:$0xff]  }
  0x3f   :  { %3237 = vmatpush2.bf16.msra.mxu0 %v5652_v0  ;;  %v5740_v0 = vld [vmem:[%s8248_s1 + $0x40c] ss:$12 sps:$4 sm:$0xff]  }
  0x40   :  { %3298 = vmatpush2.bf16.msra.mxu1 %v5653_v1  ;;  %3328 = vmatprep.subr.bf16.mxu0 %v5662_v2  ;;  %v5743_v1 = vld [vmem:[%s8248_s1 + $0x58c] ss:$12 sps:$4 sm:$0xff]   ;;  %v5738_v2 = vld [vmem:[%s8248_s1 + $0x408] ss:$12 sps:$4 sm:$0xff]  }
  0x41   :  { %3389 = vmatprep.subr.bf16.mxu1 %v5665_v3  ;;  %v5741_v3 = vld [vmem:[%s8248_s1 + $0x588] ss:$12 sps:$4 sm:$0xff]  }
  0x42   :  { %3239 = vmatmul.mubr.bf16.vlgmr.msra.gmra.mxu0 %v5654_v4  ;;  %v5748_v4 = vld [vmem:[%s8248_s1 + $0x3f4] ss:$12 sps:$4 sm:$0xff]  }
  0x43   :  { %3300 = vmatmul.mubr.bf16.vlgmr.msra.gmra.mxu1 %v5657_v5  ;;  %3329 = vmatpush1.bf16.msra.mxu0 %v5660_v6  ;;  %v5751_v5 = vld [vmem:[%s8248_s1 + $0x574] ss:$12 sps:$4 sm:$0xff]   ;;  %v5746_v6 = vld [vmem:[%s8248_s1 + $0x3f0] ss:$12 sps:$4 sm:$0xff]  }
  0x44   :  { %3390 = vmatpush1.bf16.msra.mxu1 %v5663_v7  ;;  %3330 = vmatprep.subr.bf16.mxu0 %v5668_v8  ;;  %v5749_v7 = vld [vmem:[%s8248_s1 + $0x570] ss:$12 sps:$4 sm:$0xff]  }
  0x45   :  { %3391 = vmatprep.subr.bf16.mxu1 %v5671_v9  ;;  %3248 = vmatprep.mubr.bf16.mxu0 %v5726_v21  ;;  %v5755_v8 = vld [vmem:[%s8248_s1 + $0x3dc] ss:$12 sps:$4 sm:$0xff]  }
  0x46   :  { %3309 = vmatprep.mubr.bf16.mxu1 %v5729_v23  ;;  %v5758_v9 = vld [vmem:[%s8248_s1 + $0x55c] ss:$12 sps:$4 sm:$0xff]   ;;  %v5783_v23 = vld [vmem:[%s8248_s1 + $0x814] ss:$12 sps:$4 sm:$0xff]  }
  0x47   :  { %3331 = vmatpush1.bf16.msra.mxu0 %v5666_v10  ;;  %v5753_v10 = vld [vmem:[%s8248_s1 + $0x3d8] ss:$12 sps:$4 sm:$0xff]   ;;  %v5775_v21 = vld [vmem:[%s8248_s1 + $0x828] ss:$12 sps:$4 sm:$0xff]  }
  0x48   :  { %3392 = vmatpush1.bf16.msra.mxu1 %v5669_v11  ;;  %3332 = vmatprep.subr.bf16.mxu0 %v5674_v12  ;;  %v5756_v11 = vld [vmem:[%s8248_s1 + $0x558] ss:$12 sps:$4 sm:$0xff]  }
  0x49   :  { %3393 = vmatprep.subr.bf16.mxu1 %v5677_v13  ;;  %v5762_v12 = vld [vmem:[%s8248_s1 + $0x3c4] ss:$12 sps:$4 sm:$0xff]  }
  0x4a   :  { %3249 = vmatmul.mubr.bf16.gmra.mxu0 %v5728_v22  ;;  %v5765_v13 = vld [vmem:[%s8248_s1 + $0x544] ss:$12 sps:$4 sm:$0xff]   ;;  %v5780_v22 = vld [vmem:[%s8248_s1 + $0x694] ss:$12 sps:$4 sm:$0xff]  }
  0x4b   :  { %3333 = vmatpush1.bf16.msra.mxu0 %v5672_v14  ;;  %3310 = vmatmul.mubr.bf16.gmra.mxu1 %v5737_v27  ;;  %v5760_v14 = vld [vmem:[%s8248_s1 + $0x3c0] ss:$12 sps:$4 sm:$0xff]   ;;  %v5781_v27 = vld [vmem:[%s8248_s1 + $0x810] ss:$12 sps:$4 sm:$0xff]  }
  0x4c   :  { %3394 = vmatpush1.bf16.msra.mxu1 %v5675_v15  ;;  %3334 = vmatprep.subr.bf16.mxu0 %v5680_v16  ;;  %v5763_v15 = vld [vmem:[%s8248_s1 + $0x540] ss:$12 sps:$4 sm:$0xff]  }
  0x4d   :  { %3395 = vmatprep.subr.bf16.mxu1 %v5683_v17  ;;  %3258 = vmatprep.mubr.bf16.mxu0 %v6587_v32  ;;  %v5774_v16 = vld [vmem:[%s8248_s1 + $0x6ac] ss:$12 sps:$4 sm:$0xff]  }
  0x4e   :  { %3319 = vmatprep.mubr.bf16.mxu1 %v6604_v38  ;;  %v5777_v17 = vld [vmem:[%s8248_s1 + $0x82c] ss:$12 sps:$4 sm:$0xff]  }
  0x4f   :  { %3335 = vmatpush1.bf16.msra.mxu0 %v5678_v18  ;;  %v5766_v18 = vld [vmem:[%s8249_s0 + $0x10] ss:$72 sps:$4 sm:$0xff]  }
  0x50   :  { %3396 = vmatpush1.bf16.msra.mxu1 %v5681_v19  ;;  %3336 = vmatprep.subr.bf16.mxu0 %v5686_v20  ;;  %v5769_v19 = vld [vmem:[%s8249_s0 + $0x18] ss:$72 sps:$4 sm:$0xff]   ;;  %v5772_v20 = vld [vmem:[%s8248_s1 + $0x6a8] ss:$12 sps:$4 sm:$0xff]  }
  0x51   :  { %3397 = vmatprep.subr.bf16.mxu1 %v5689_v24  ;;  %v5784_v24 = vld [vmem:[%s8249_s0 + $0xa4] ss:$72 sps:$4 sm:$0xff]  }
  0x52   :  { %3259 = vmatmul.mubr.bf16.gmra.mxu0 %v6589_v33 }
  0x53   :  { %3337 = vmatpush1.bf16.msra.mxu0 %v5684_v25  ;;  %3320 = vmatmul.mubr.bf16.gmra.mxu1 %v6607_v39  ;;  %v5793_v25 = vld [vmem:[%s8249_s0 + $0xac] ss:$72 sps:$4 sm:$0xff]  }
  0x54   :  { %3398 = vmatpush1.bf16.msra.mxu1 %v5687_v26  ;;  %3338 = vmatprep.subr.bf16.mxu0 %v5692_v28  ;;  %v5778_v26 = vld [vmem:[%s8248_s1 + $0x690] ss:$12 sps:$4 sm:$0xff]  }
  0x55   :  { %3399 = vmatprep.subr.bf16.mxu1 %v5695_v29  ;;  %3360 = vmatprep.mubr.bf16.mxu0 %v5768_v47  ;;  %v5789_v28 = vld [vmem:[%s8248_s1 + $0x67c] ss:$12 sps:$4 sm:$0xff]   ;;  %v5809_v47 = vld [vmem:[%s8248_s1 + $0x7cc] ss:$12 sps:$4 sm:$0xff]  }
  0x56   :  { %3421 = vmatprep.mubr.bf16.mxu1 %v5771_v49  ;;  %v5786_v29 = vld [vmem:[%s8249_s0 + $0xa0] ss:$72 sps:$4 sm:$0xff]  }
  0x57   :  { %3339 = vmatpush1.bf16.msra.mxu0 %v5690_v31  ;;  %v5787_v31 = vld [vmem:[%s8248_s1 + $0x678] ss:$12 sps:$4 sm:$0xff]   ;;  %v5804_v49 = vld [vmem:[%s8248_s1 + $0x648] ss:$12 sps:$4 sm:$0xff]  }
  0x58   :  { %3400 = vmatpush1.bf16.msra.mxu1 %v5693_v34  ;;  %3340 = vmatprep.subr.bf16.mxu0 %v5698_v35  ;;  %v5790_v34 = vld [vmem:[%s8248_s1 + $0x7f8] ss:$12 sps:$4 sm:$0xff]   ;;  %v5795_v35 = vld [vmem:[%s8249_s0 + $0xa8] ss:$72 sps:$4 sm:$0xff]  }
  0x59   :  { %3401 = vmatprep.subr.bf16.mxu1 %v5701_v36  ;;  %v59_v36 = vld [vmem:[%s8249_s0 + $0x130] sm:$0xff] }
  0x5b   :  { %3341 = vmatpush1.bf16.msra.mxu0 %v5696_v40  ;;  %v5798_v40 = vld [vmem:[%s8248_s1 + $0x664] ss:$12 sps:$4 sm:$0xff]  }
  0x5c   :  { %3402 = vmatpush1.bf16.msra.mxu1 %v5699_v41  ;;  %3342 = vmatprep.subr.bf16.mxu0 %v5704_v42  ;;  %v5801_v41 = vld [vmem:[%s8248_s1 + $0x7e4] ss:$12 sps:$4 sm:$0xff]   ;;  %v6797_v42 = vcombine.high %v59_v36, %v59_v36 }
  0x5d   :  { %3403 = vmatprep.subr.bf16.mxu1 %v5707_v43  ;;  %v6799_v43 = vcombine.high %v60_v37, %v60_v37 }
  0x5f   :  { %3343 = vmatpush1.bf16.msra.mxu0 %v5702_v44  ;;  %v5796_v44 = vld [vmem:[%s8248_s1 + $0x660] ss:$12 sps:$4 sm:$0xff]  }
  0x60   :  { %3404 = vmatpush1.bf16.msra.mxu1 %v5705_v45  ;;  %3344 = vmatprep.subr.bf16.mxu0 %v5710_v46  ;;  %v5799_v45 = vld [vmem:[%s8248_s1 + $0x7e0] ss:$12 sps:$4 sm:$0xff]  }
  0x61   :  { %3405 = vmatprep.subr.bf16.mxu1 %v5713_v48  ;;  %v5806_v46 = vld [vmem:[%s8248_s1 + $0x64c] ss:$12 sps:$4 sm:$0xff]   ;;  %v6815_v48 = vcombine.low %v59_v36, %v59_v36  ;;  %v5878_v36 = vld [vmem:[%s8249_s0 + $0x20] ss:$72 sps:$4 sm:$0xff]  }
  0x63   :  { %3345 = vmatpush2.bf16.msra.mxu0 %v5708_v50  ;;  %v5807_v50 = vld [vmem:[%s8248_s1 + $0x7c8] ss:$12 sps:$4 sm:$0xff]  }
  0x64   :  { %3406 = vmatpush2.bf16.msra.mxu1 %v5711_v51  ;;  %3346 = vmatprep.subr.bf16.mxu0 %v5716_v52  ;;  %v6823_v51 = vcombine.low %v60_v37, %v60_v37  ;;  %v5814_v52 = vld [vmem:[%s8248_s1 + $0x634] ss:$12 sps:$4 sm:$0xff]   ;;  %v5886_v37 = vld [vmem:[%s8248_s1 + $0x9ac] ss:$12 sps:$4 sm:$0xff]  }
  0x65   :  { %3407 = vmatprep.subr.bf16.mxu1 %v5719_v53  ;;  %v5817_v53 = vld [vmem:[%s8248_s1 + $0x7b4] ss:$12 sps:$4 sm:$0xff]  }
  0x67   :  { %3347 = vmatpush2.bf16.msra.mxu0 %v5714_v54  ;;  %v5880_v54 = vld [vmem:[%s8249_s0 + $0x24] ss:$72 sps:$4 sm:$0xff]  }
  0x68   :  { %3408 = vmatpush2.bf16.msra.mxu1 %v5717_v55  ;;  %3348 = vmatprep.subr.bf16.mxu0 %v5722_v56  ;;  %v5883_v55 = vld [vmem:[%s8249_s0 + $0x2c] ss:$72 sps:$4 sm:$0xff]   ;;  %v5812_v56 = vld [vmem:[%s8248_s1 + $0x630] ss:$12 sps:$4 sm:$0xff]  }
  0x69   :  { %3409 = vmatprep.subr.bf16.mxu1 %v5725_v57  ;;  %v5815_v57 = vld [vmem:[%s8248_s1 + $0x7b0] ss:$12 sps:$4 sm:$0xff]  }
  0x6b   :  { %3349 = vmatpush2.bf16.msra.mxu0 %v5720_v58  ;;  %v5820_v58 = vld [vmem:[%s8248_s1 + $0x61c] ss:$12 sps:$4 sm:$0xff]  }
  0x6c   :  { %3410 = vmatpush2.bf16.msra.mxu1 %v5723_v59  ;;  %3350 = vmatprep.subr.bf16.mxu0 %v5733_v60  ;;  %v5823_v59 = vld [vmem:[%s8248_s1 + $0x79c] ss:$12 sps:$4 sm:$0xff]   ;;  %v5818_v60 = vld [vmem:[%s8248_s1 + $0x618] ss:$12 sps:$4 sm:$0xff]  }
  0x6d   :  { %3411 = vmatprep.subr.bf16.mxu1 %v5736_v61  ;;  %v5821_v61 = vld [vmem:[%s8248_s1 + $0x798] ss:$12 sps:$4 sm:$0xff]  }
  0x6f   :  { %3351 = vmatpush2.bf16.msra.mxu0 %v5731_v62  ;;  %v5826_v62 = vld [vmem:[%s8248_s1 + $0x604] ss:$12 sps:$4 sm:$0xff]  }
  0x70   :  { %3412 = vmatpush2.bf16.msra.mxu1 %v5734_v63  ;;  %3352 = vmatprep.subr.bf16.mxu0 %v5740_v0  ;;  %v5829_v63 = vld [vmem:[%s8248_s1 + $0x784] ss:$12 sps:$4 sm:$0xff]   ;;  %v5824_v0 = vld [vmem:[%s8248_s1 + $0x600] ss:$12 sps:$4 sm:$0xff]  }
  0x71   :  { %3413 = vmatprep.subr.bf16.mxu1 %v5743_v1  ;;  %v5827_v1 = vld [vmem:[%s8248_s1 + $0x780] ss:$12 sps:$4 sm:$0xff]  }
  0x73   :  { %3353 = vmatpush2.bf16.msra.mxu0 %v5738_v2  ;;  %v5832_v2 = vld [vmem:[%s8248_s1 + $0x76c] ss:$12 sps:$4 sm:$0xff]  }
  0x74   :  { %3414 = vmatpush2.bf16.msra.mxu1 %v5741_v3  ;;  %3354 = vmatprep.subr.bf16.mxu0 %v5748_v4  ;;  %v5835_v3 = vld [vmem:[%s8248_s1 + $0x8ec] ss:$12 sps:$4 sm:$0xff]   ;;  %v5830_v4 = vld [vmem:[%s8248_s1 + $0x768] ss:$12 sps:$4 sm:$0xff]  }
  0x75   :  { %3415 = vmatprep.subr.bf16.mxu1 %v5751_v5  ;;  %v5833_v5 = vld [vmem:[%s8248_s1 + $0x8e8] ss:$12 sps:$4 sm:$0xff]  }
  0x77   :  { %3355 = vmatpush2.bf16.msra.mxu0 %v5746_v6  ;;  %v5838_v6 = vld [vmem:[%s8248_s1 + $0x754] ss:$12 sps:$4 sm:$0xff]  }
  0x78   :  { %3416 = vmatpush2.bf16.msra.mxu1 %v5749_v7  ;;  %3356 = vmatprep.subr.bf16.mxu0 %v5755_v8  ;;  %v5841_v7 = vld [vmem:[%s8248_s1 + $0x8d4] ss:$12 sps:$4 sm:$0xff]   ;;  %v5836_v8 = vld [vmem:[%s8248_s1 + $0x750] ss:$12 sps:$4 sm:$0xff]  }
  0x79   :  { %3417 = vmatprep.subr.bf16.mxu1 %v5758_v9  ;;  %v5839_v9 = vld [vmem:[%s8248_s1 + $0x8d0] ss:$12 sps:$4 sm:$0xff]  }
  0x7b   :  { %3357 = vmatpush2.bf16.msra.mxu0 %v5753_v10  ;;  %v5844_v10 = vld [vmem:[%s8248_s1 + $0x73c] ss:$12 sps:$4 sm:$0xff]  }
  0x7c   :  { %3418 = vmatpush2.bf16.msra.mxu1 %v5756_v11  ;;  %3358 = vmatprep.subr.bf16.mxu0 %v5762_v12  ;;  %v5847_v11 = vld [vmem:[%s8248_s1 + $0x8bc] ss:$12 sps:$4 sm:$0xff]   ;;  %v5842_v12 = vld [vmem:[%s8248_s1 + $0x738] ss:$12 sps:$4 sm:$0xff]  }
  0x7d   :  { %3419 = vmatprep.subr.bf16.mxu1 %v5765_v13  ;;  %v5845_v13 = vld [vmem:[%s8248_s1 + $0x8b8] ss:$12 sps:$4 sm:$0xff]  }
  0x7f   :  { %3359 = vmatpush2.bf16.msra.mxu0 %v5760_v14  ;;  %v5850_v14 = vld [vmem:[%s8248_s1 + $0x724] ss:$12 sps:$4 sm:$0xff]  }
  0x80   :  { %3420 = vmatpush2.bf16.msra.mxu1 %v5763_v15  ;;  %3450 = vmatprep.subr.bf16.mxu0 %v5774_v16  ;;  %v5853_v15 = vld [vmem:[%s8248_s1 + $0x8a4] ss:$12 sps:$4 sm:$0xff]   ;;  %v5848_v16 = vld [vmem:[%s8248_s1 + $0x720] ss:$12 sps:$4 sm:$0xff]  }
  0x81   :  { %3511 = vmatprep.subr.bf16.mxu1 %v5777_v17  ;;  %v5851_v17 = vld [vmem:[%s8248_s1 + $0x8a0] ss:$12 sps:$4 sm:$0xff]  }
  0x82   :  { %3361 = vmatmul.mubr.bf16.vlgmr.msra.gmra.mxu0 %v5766_v18  ;;  %v5856_v18 = vld [vmem:[%s8248_s1 + $0x70c] ss:$12 sps:$4 sm:$0xff]  }
  0x83   :  { %3422 = vmatmul.mubr.bf16.vlgmr.msra.gmra.mxu1 %v5769_v19  ;;  %3451 = vmatpush1.bf16.msra.mxu0 %v5772_v20  ;;  %v5859_v19 = vld [vmem:[%s8248_s1 + $0x88c] ss:$12 sps:$4 sm:$0xff]   ;;  %v5854_v20 = vld [vmem:[%s8248_s1 + $0x708] ss:$12 sps:$4 sm:$0xff]  }
  0x84   :  { %3512 = vmatpush1.bf16.msra.mxu1 %v5775_v21  ;;  %3452 = vmatprep.subr.bf16.mxu0 %v5780_v22  ;;  %v5857_v21 = vld [vmem:[%s8248_s1 + $0x888] ss:$12 sps:$4 sm:$0xff]  }
  0x85   :  { %3513 = vmatprep.subr.bf16.mxu1 %v5783_v23  ;;  %3370 = vmatprep.mubr.bf16.mxu0 %v5784_v24  ;;  %v5862_v22 = vld [vmem:[%s8248_s1 + $0x6f4] ss:$12 sps:$4 sm:$0xff]   ;;  %v5860_v24 = vld [vmem:[%s8248_s1 + $0x6f0] ss:$12 sps:$4 sm:$0xff]  }
  0x86   :  { %3431 = vmatprep.mubr.bf16.mxu1 %v5793_v25  ;;  %v5865_v23 = vld [vmem:[%s8248_s1 + $0x874] ss:$12 sps:$4 sm:$0xff]   ;;  %v5863_v25 = vld [vmem:[%s8248_s1 + $0x870] ss:$12 sps:$4 sm:$0xff]  }
  0x87   :  { %3453 = vmatpush1.bf16.msra.mxu0 %v5778_v26  ;;  %v5868_v26 = vld [vmem:[%s8248_s1 + $0x6dc] ss:$12 sps:$4 sm:$0xff]  }
  0x88   :  { %3514 = vmatpush1.bf16.msra.mxu1 %v5781_v27  ;;  %3454 = vmatprep.subr.bf16.mxu0 %v5789_v28  ;;  %v5871_v27 = vld [vmem:[%s8248_s1 + $0x85c] ss:$12 sps:$4 sm:$0xff]   ;;  %v5866_v28 = vld [vmem:[%s8248_s1 + $0x6d8] ss:$12 sps:$4 sm:$0xff]  }
  0x89   :  { %3515 = vmatprep.subr.bf16.mxu1 %v5792_v30  ;;  %v5874_v30 = vld [vmem:[%s8248_s1 + $0x6c4] ss:$12 sps:$4 sm:$0xff]  }
  0x8a   :  { %3371 = vmatmul.mubr.bf16.gmra.mxu0 %v5786_v29  ;;  %v5869_v29 = vld [vmem:[%s8248_s1 + $0x858] ss:$12 sps:$4 sm:$0xff]  }
  0x8b   :  { %3432 = vmatmul.mubr.bf16.gmra.mxu1 %v5795_v35  ;;  %3455 = vmatpush1.bf16.msra.mxu0 %v5787_v31  ;;  %v5877_v31 = vld [vmem:[%s8248_s1 + $0x844] ss:$12 sps:$4 sm:$0xff]   ;;  %v5875_v35 = vld [vmem:[%s8248_s1 + $0x840] ss:$12 sps:$4 sm:$0xff]  }
  0x8c   :  { %3516 = vmatpush1.bf16.msra.mxu1 %v5790_v34  ;;  %3456 = vmatprep.subr.bf16.mxu0 %v5798_v40  ;;  %v5872_v34 = vld [vmem:[%s8248_s1 + $0x6c0] ss:$12 sps:$4 sm:$0xff]  }
  0x8d   :  { %3517 = vmatprep.subr.bf16.mxu1 %v5801_v41  ;;  %3380 = vmatprep.mubr.bf16.mxu0 %v6797_v42  ;;  %v5889_v40 = vld [vmem:[%s8248_s1 + $0xb2c] ss:$12 sps:$4 sm:$0xff]   ;;  %v5881_v41 = vld [vmem:[%s8249_s0 + $0x28] ss:$72 sps:$4 sm:$0xff]  }
  0x8e   :  { %3441 = vmatprep.mubr.bf16.mxu1 %v6799_v43 }
  0x8f   :  { %3457 = vmatpush1.bf16.msra.mxu0 %v5796_v44  ;;  %v5884_v44 = vld [vmem:[%s8248_s1 + $0x9a8] ss:$12 sps:$4 sm:$0xff]  }
  0x90   :  { %3518 = vmatpush1.bf16.msra.mxu1 %v5799_v45  ;;  %3458 = vmatprep.subr.bf16.mxu0 %v5806_v46  ;;  %v5887_v45 = vld [vmem:[%s8248_s1 + $0xb28] ss:$12 sps:$4 sm:$0xff]  }
  0x91   :  { %3519 = vmatprep.subr.bf16.mxu1 %v5809_v47  ;;  %v5892_v46 = vld [vmem:[%s8248_s1 + $0x994] ss:$12 sps:$4 sm:$0xff]  }
  0x92   :  { %3381 = vmatmul.mubr.bf16.gmra.mxu0 %v6815_v48  ;;  %v5895_v47 = vld [vmem:[%s8248_s1 + $0xb14] ss:$12 sps:$4 sm:$0xff]  }
  0x93   :  { %3442 = vmatmul.mubr.bf16.gmra.mxu1 %v6823_v51  ;;  %3459 = vmatpush1.bf16.msra.mxu0 %v5804_v49  ;;  %v5896_v49 = vld [vmem:[%s8249_s0 + $0xb4] ss:$72 sps:$4 sm:$0xff]  }
  0x94   :  { %3520 = vmatpush1.bf16.msra.mxu1 %v5807_v50  ;;  %3460 = vmatprep.subr.bf16.mxu0 %v5814_v52  ;;  %v5890_v50 = vld [vmem:[%s8248_s1 + $0x990] ss:$12 sps:$4 sm:$0xff]  }
  0x95   :  { %3521 = vmatprep.subr.bf16.mxu1 %v5817_v53  ;;  %3482 = vmatprep.mubr.bf16.mxu0 %v5880_v54  ;;  %v5905_v52 = vld [vmem:[%s8249_s0 + $0xbc] ss:$72 sps:$4 sm:$0xff]  }
  0x96   :  { %3543 = vmatprep.mubr.bf16.mxu1 %v5883_v55  ;;  %v5893_v53 = vld [vmem:[%s8248_s1 + $0xb10] ss:$12 sps:$4 sm:$0xff]  }
  0x97   :  { %3461 = vmatpush1.bf16.msra.mxu0 %v5812_v56  ;;  %v5901_v54 = vld [vmem:[%s8248_s1 + $0x97c] ss:$12 sps:$4 sm:$0xff]   ;;  %v5898_v55 = vld [vmem:[%s8249_s0 + $0xb0] ss:$72 sps:$4 sm:$0xff]  }
  0x98   :  { %3522 = vmatpush1.bf16.msra.mxu1 %v5815_v57  ;;  %3462 = vmatprep.subr.bf16.mxu0 %v5820_v58  ;;  %v5904_v56 = vld [vmem:[%s8248_s1 + $0xafc] ss:$12 sps:$4 sm:$0xff]   ;;  %v5899_v57 = vld [vmem:[%s8248_s1 + $0x978] ss:$12 sps:$4 sm:$0xff]  }
  0x99   :  { %3523 = vmatprep.subr.bf16.mxu1 %v5823_v59  ;;  %v5907_v58 = vld [vmem:[%s8249_s0 + $0xb8] ss:$72 sps:$4 sm:$0xff]  }
  0x9a   :  { %v61_v59 = vld [vmem:[%s8249_s0 + $0x140] sm:$0xff] }
  0x9b   :  { %3463 = vmatpush1.bf16.msra.mxu0 %v5818_v60  ;;  %v62_v60 = vld [vmem:[%s8249_s0 + $0x148] sm:$0xff] }
  0x9c   :  { %3524 = vmatpush1.bf16.msra.mxu1 %v5821_v61  ;;  %3464 = vmatprep.subr.bf16.mxu0 %v5826_v62  ;;  %v5902_v61 = vld [vmem:[%s8248_s1 + $0xaf8] ss:$12 sps:$4 sm:$0xff]  }
  0x9d   :  { %3525 = vmatprep.subr.bf16.mxu1 %v5829_v63  ;;  %v5910_v62 = vld [vmem:[%s8248_s1 + $0x964] ss:$12 sps:$4 sm:$0xff]  }
  0x9e   :  { %v5913_v63 = vld [vmem:[%s8248_s1 + $0xae4] ss:$12 sps:$4 sm:$0xff]  }
  0x9f   :  { %3465 = vmatpush1.bf16.msra.mxu0 %v5824_v0  ;;  %v7031_v0 = vcombine.high %v61_v59, %v61_v59 }
  0xa0   :  { %3526 = vmatpush1.bf16.msra.mxu1 %v5827_v1  ;;  %3466 = vmatprep.subr.bf16.mxu0 %v5832_v2  ;;  %v7033_v1 = vcombine.high %v62_v60, %v62_v60  ;;  %v5908_v2 = vld [vmem:[%s8248_s1 + $0x960] ss:$12 sps:$4 sm:$0xff]  }
  0xa1   :  { %3527 = vmatprep.subr.bf16.mxu1 %v5835_v3  ;;  %v5911_v3 = vld [vmem:[%s8248_s1 + $0xae0] ss:$12 sps:$4 sm:$0xff]  }
  0xa3   :  { %3467 = vmatpush2.bf16.msra.mxu0 %v5830_v4  ;;  %v5918_v4 = vld [vmem:[%s8248_s1 + $0x94c] ss:$12 sps:$4 sm:$0xff]  }
  0xa4   :  { %3528 = vmatpush2.bf16.msra.mxu1 %v5833_v5  ;;  %3468 = vmatprep.subr.bf16.mxu0 %v5838_v6  ;;  %v5921_v5 = vld [vmem:[%s8248_s1 + $0xacc] ss:$12 sps:$4 sm:$0xff]   ;;  %v7049_v6 = vcombine.low %v61_v59, %v61_v59  ;;  %v5983_v59 = vld [vmem:[%s8248_s1 + $0xb5c] ss:$12 sps:$4 sm:$0xff]  }
  0xa5   :  { %3529 = vmatprep.subr.bf16.mxu1 %v5841_v7  ;;  %v5916_v7 = vld [vmem:[%s8248_s1 + $0x948] ss:$12 sps:$4 sm:$0xff]  }
  0xa7   :  { %3469 = vmatpush2.bf16.msra.mxu0 %v5836_v8  ;;  %v5919_v8 = vld [vmem:[%s8248_s1 + $0xac8] ss:$12 sps:$4 sm:$0xff]  }
  0xa8   :  { %3530 = vmatpush2.bf16.msra.mxu1 %v5839_v9  ;;  %3470 = vmatprep.subr.bf16.mxu0 %v5844_v10  ;;  %v7057_v9 = vcombine.low %v62_v60, %v62_v60  ;;  %v5926_v10 = vld [vmem:[%s8248_s1 + $0x934] ss:$12 sps:$4 sm:$0xff]   ;;  %v5978_v60 = vld [vmem:[%s8248_s1 + $0x9d8] ss:$12 sps:$4 sm:$0xff]  }
  0xa9   :  { %3531 = vmatprep.subr.bf16.mxu1 %v5847_v11  ;;  %v5929_v11 = vld [vmem:[%s8248_s1 + $0xab4] ss:$12 sps:$4 sm:$0xff]  }
  0xab   :  { %3471 = vmatpush2.bf16.msra.mxu0 %v5842_v12  ;;  %v5992_v12 = vld [vmem:[%s8249_s0 + $0x34] ss:$72 sps:$4 sm:$0xff]  }
  0xac   :  { %3532 = vmatpush2.bf16.msra.mxu1 %v5845_v13  ;;  %3472 = vmatprep.subr.bf16.mxu0 %v5850_v14  ;;  %v5995_v13 = vld [vmem:[%s8249_s0 + $0x3c] ss:$72 sps:$4 sm:$0xff]  }
  0xad   :  { %3533 = vmatprep.subr.bf16.mxu1 %v5853_v15  ;;  %v5924_v14 = vld [vmem:[%s8248_s1 + $0x930] ss:$12 sps:$4 sm:$0xff]  }
  0xae   :  { %v5927_v15 = vld [vmem:[%s8248_s1 + $0xab0] ss:$12 sps:$4 sm:$0xff]  }
  0xaf   :  { %3473 = vmatpush2.bf16.msra.mxu0 %v5848_v16  ;;  %v5932_v16 = vld [vmem:[%s8248_s1 + $0x91c] ss:$12 sps:$4 sm:$0xff]  }
  0xb0   :  { %3534 = vmatpush2.bf16.msra.mxu1 %v5851_v17  ;;  %3474 = vmatprep.subr.bf16.mxu0 %v5856_v18  ;;  %v5935_v17 = vld [vmem:[%s8248_s1 + $0xa9c] ss:$12 sps:$4 sm:$0xff]   ;;  %v5930_v18 = vld [vmem:[%s8248_s1 + $0x918] ss:$12 sps:$4 sm:$0xff]  }
  0xb1   :  { %3535 = vmatprep.subr.bf16.mxu1 %v5859_v19  ;;  %v5933_v19 = vld [vmem:[%s8248_s1 + $0xa98] ss:$12 sps:$4 sm:$0xff]  }
  0xb3   :  { %3475 = vmatpush2.bf16.msra.mxu0 %v5854_v20  ;;  %v5938_v20 = vld [vmem:[%s8248_s1 + $0x904] ss:$12 sps:$4 sm:$0xff]  }
  0xb4   :  { %3536 = vmatpush2.bf16.msra.mxu1 %v5857_v21  ;;  %3476 = vmatprep.subr.bf16.mxu0 %v5862_v22  ;;  %v5941_v21 = vld [vmem:[%s8248_s1 + $0xa84] ss:$12 sps:$4 sm:$0xff]   ;;  %v5936_v22 = vld [vmem:[%s8248_s1 + $0x900] ss:$12 sps:$4 sm:$0xff]  }
  0xb5   :  { %3537 = vmatprep.subr.bf16.mxu1 %v5865_v23  ;;  %v5939_v23 = vld [vmem:[%s8248_s1 + $0xa80] ss:$12 sps:$4 sm:$0xff]  }
  0xb7   :  { %3477 = vmatpush2.bf16.msra.mxu0 %v5860_v24  ;;  %v5944_v24 = vld [vmem:[%s8248_s1 + $0xa6c] ss:$12 sps:$4 sm:$0xff]  }
  0xb8   :  { %3538 = vmatpush2.bf16.msra.mxu1 %v5863_v25  ;;  %3478 = vmatprep.subr.bf16.mxu0 %v5868_v26  ;;  %v5947_v25 = vld [vmem:[%s8248_s1 + $0xbec] ss:$12 sps:$4 sm:$0xff]   ;;  %v5942_v26 = vld [vmem:[%s8248_s1 + $0xa68] ss:$12 sps:$4 sm:$0xff]  }
  0xb9   :  { %3539 = vmatprep.subr.bf16.mxu1 %v5871_v27  ;;  %v5945_v27 = vld [vmem:[%s8248_s1 + $0xbe8] ss:$12 sps:$4 sm:$0xff]  }
  0xbb   :  { %3479 = vmatpush2.bf16.msra.mxu0 %v5866_v28  ;;  %v5950_v28 = vld [vmem:[%s8248_s1 + $0xa54] ss:$12 sps:$4 sm:$0xff]  }
  0xbc   :  { %3540 = vmatpush2.bf16.msra.mxu1 %v5869_v29  ;;  %3480 = vmatprep.subr.bf16.mxu0 %v5874_v30  ;;  %v5953_v29 = vld [vmem:[%s8248_s1 + $0xbd4] ss:$12 sps:$4 sm:$0xff]   ;;  %v5948_v30 = vld [vmem:[%s8248_s1 + $0xa50] ss:$12 sps:$4 sm:$0xff]  }
  0xbd   :  { %3541 = vmatprep.subr.bf16.mxu1 %v5877_v31  ;;  %v5951_v31 = vld [vmem:[%s8248_s1 + $0xbd0] ss:$12 sps:$4 sm:$0xff]  }
  0xbf   :  { %3481 = vmatpush2.bf16.msra.mxu0 %v5872_v34  ;;  %v5956_v34 = vld [vmem:[%s8248_s1 + $0xa3c] ss:$12 sps:$4 sm:$0xff]  }
  0xc0   :  { %3542 = vmatpush2.bf16.msra.mxu1 %v5875_v35  ;;  %3572 = vmatprep.subr.bf16.mxu0 %v5886_v37  ;;  %v5959_v35 = vld [vmem:[%s8248_s1 + $0xbbc] ss:$12 sps:$4 sm:$0xff]   ;;  %v5957_v37 = vld [vmem:[%s8248_s1 + $0xbb8] ss:$12 sps:$4 sm:$0xff]  }
  0xc1   :  { %3633 = vmatprep.subr.bf16.mxu1 %v5889_v40  ;;  %v5962_v40 = vld [vmem:[%s8248_s1 + $0xa24] ss:$12 sps:$4 sm:$0xff]  }
  0xc2   :  { %3483 = vmatmul.mubr.bf16.vlgmr.msra.gmra.mxu0 %v5878_v36  ;;  %v5954_v36 = vld [vmem:[%s8248_s1 + $0xa38] ss:$12 sps:$4 sm:$0xff]  }
  0xc3   :  { %3544 = vmatmul.mubr.bf16.vlgmr.msra.gmra.mxu1 %v5881_v41  ;;  %3573 = vmatpush1.bf16.msra.mxu0 %v5884_v44  ;;  %v5965_v41 = vld [vmem:[%s8248_s1 + $0xba4] ss:$12 sps:$4 sm:$0xff]   ;;  %v5960_v44 = vld [vmem:[%s8248_s1 + $0xa20] ss:$12 sps:$4 sm:$0xff]  }
  0xc4   :  { %3634 = vmatpush1.bf16.msra.mxu1 %v5887_v45  ;;  %3574 = vmatprep.subr.bf16.mxu0 %v5892_v46  ;;  %v5963_v45 = vld [vmem:[%s8248_s1 + $0xba0] ss:$12 sps:$4 sm:$0xff]  }
  0xc5   :  { %3635 = vmatprep.subr.bf16.mxu1 %v5895_v47  ;;  %3492 = vmatprep.mubr.bf16.mxu0 %v5896_v49  ;;  %v5968_v46 = vld [vmem:[%s8248_s1 + $0xa0c] ss:$12 sps:$4 sm:$0xff]   ;;  %v644_v49 = vlaneseq }
  0xc6   :  { %3553 = vmatprep.mubr.bf16.mxu1 %v5905_v52  ;;  %v5971_v47 = vld [vmem:[%s8248_s1 + $0xb8c] ss:$12 sps:$4 sm:$0xff]   ;;  %v5969_v52 = vld [vmem:[%s8248_s1 + $0xb88] ss:$12 sps:$4 sm:$0xff]  }
  0xc7   :  { %3575 = vmatpush1.bf16.msra.mxu0 %v5890_v50  ;;  %v5966_v50 = vld [vmem:[%s8248_s1 + $0xa08] ss:$12 sps:$4 sm:$0xff]  }
  0xc8   :  { %3636 = vmatpush1.bf16.msra.mxu1 %v5893_v53  ;;  %3576 = vmatprep.subr.bf16.mxu0 %v5901_v54  ;;  %v5974_v53 = vld [vmem:[%s8248_s1 + $0x9f4] ss:$12 sps:$4 sm:$0xff]  }
  0xc9   :  { %3637 = vmatprep.subr.bf16.mxu1 %v5904_v56  ;;  %v5977_v54 = vld [vmem:[%s8248_s1 + $0xb74] ss:$12 sps:$4 sm:$0xff]   ;;  %v7172_v56 = vshrl.u32 %v644_v49, 7  ;;  %v6019_v49 = vld [vmem:[%s8248_s1 + $0xc64] ss:$12 sps:$4 sm:$0xff]  }
  0xca   :  { %3493 = vmatmul.mubr.bf16.gmra.mxu0 %v5898_v55  ;;  %v5972_v55 = vld [vmem:[%s8248_s1 + $0x9f0] ss:$12 sps:$4 sm:$0xff]  }
  0xcb   :  { %3554 = vmatmul.mubr.bf16.gmra.mxu1 %v5907_v58  ;;  %3577 = vmatpush1.bf16.msra.mxu0 %v5899_v57  ;;  %v5975_v57 = vld [vmem:[%s8248_s1 + $0xb70] ss:$12 sps:$4 sm:$0xff]  }
  0xcc   :  { %3638 = vmatpush1.bf16.msra.mxu1 %v5902_v61  ;;  %3578 = vmatprep.subr.bf16.mxu0 %v5910_v62  ;;  %v5980_v58 = vld [vmem:[%s8248_s1 + $0x9dc] ss:$12 sps:$4 sm:$0xff]   ;;  %v5981_v61 = vld [vmem:[%s8248_s1 + $0xb58] ss:$12 sps:$4 sm:$0xff]   ;;  %v646_v62 = vsub.s32 0, %v7172_v56 }
  0xcd   :  { %3639 = vmatprep.subr.bf16.mxu1 %v5913_v63  ;;  %3502 = vmatprep.mubr.bf16.mxu0 %v7031_v0  ;;  %v650_v63 = vsub.s32 1, %v7172_v56 }
  0xce   :  { %3563 = vmatprep.mubr.bf16.mxu1 %v7033_v1 }
  0xcf   :  { %3579 = vmatpush1.bf16.msra.mxu0 %v5908_v2  ;;  %v5986_v2 = vld [vmem:[%s8248_s1 + $0x9c4] ss:$12 sps:$4 sm:$0xff]  }
  0xd0   :  { %3640 = vmatpush1.bf16.msra.mxu1 %v5911_v3  ;;  %3580 = vmatprep.subr.bf16.mxu0 %v5918_v4  ;;  %v5989_v3 = vld [vmem:[%s8248_s1 + $0xb44] ss:$12 sps:$4 sm:$0xff]   ;;  %v5984_v4 = vld [vmem:[%s8248_s1 + $0x9c0] ss:$12 sps:$4 sm:$0xff]  }
  0xd1   :  { %3641 = vmatprep.subr.bf16.mxu1 %v5921_v5  ;;  %v5987_v5 = vld [vmem:[%s8248_s1 + $0xb40] ss:$12 sps:$4 sm:$0xff]  }
  0xd2   :  { %3503 = vmatmul.mubr.bf16.gmra.mxu0 %v7049_v6 }
  0xd3   :  { %3564 = vmatmul.mubr.bf16.gmra.mxu1 %v7057_v9  ;;  %3581 = vmatpush1.bf16.msra.mxu0 %v5916_v7  ;;  %v642_v7 = vld [vmem:[%s8250_s2] sm:$0x7] }
  0xd4   :  { %3642 = vmatpush1.bf16.msra.mxu1 %v5919_v8  ;;  %3582 = vmatprep.subr.bf16.mxu0 %v5926_v10  ;;  %v5998_v8 = vld [vmem:[%s8248_s1 + $0xcac] ss:$12 sps:$4 sm:$0xff]  }
  0xd5   :  { %3643 = vmatprep.subr.bf16.mxu1 %v5929_v11  ;;  %3604 = vmatprep.mubr.bf16.mxu0 %v5992_v12  ;;  %v5990_v10 = vld [vmem:[%s8249_s0 + $0x30] ss:$72 sps:$4 sm:$0xff]  }
  0xd6   :  { %3665 = vmatprep.mubr.bf16.mxu1 %v5995_v13  ;;  %v5993_v11 = vld [vmem:[%s8249_s0 + $0x38] ss:$72 sps:$4 sm:$0xff]   ;;  %v5999_v12 = vld [vmem:[%s8248_s1 + $0x170] ss:$12 sps:$4 sm:$0xff]   ;;  %v5996_v13 = vld [vmem:[%s8248_s1 + $0xca8] ss:$12 sps:$4 sm:$0xff]  }
  0xd7   :  { %3583 = vmatpush1.bf16.msra.mxu0 %v5924_v14  ;;  %v6000_v14 = vld [vmem:[%s8248_s1 + $0xb0] ss:$12 sps:$4 sm:$0xff]  }
  0xd8   :  { %3644 = vmatpush1.bf16.msra.mxu1 %v5927_v15  ;;  %3584 = vmatprep.subr.bf16.mxu0 %v5932_v16  ;;  %v7224_v15 = vrot.slane %v642_v7, %v646_v62  ;;  %v6003_v16 = vld [vmem:[%s8248_s1 + $0xc94] ss:$12 sps:$4 sm:$0xff]  }
  0xd9   :  { %3645 = vmatprep.subr.bf16.mxu1 %v5935_v17  ;;  %v6004_v17 = vld [vmem:[%s8248_s1 + $0x158] ss:$12 sps:$4 sm:$0xff]  }
  0xdb   :  { %3585 = vmatpush1.bf16.msra.mxu0 %v5930_v18  ;;  %v7232_v18 = vrot.slane %v642_v7, %v650_v63  ;;  %v6029_v63 = vld [vmem:[%s8248_s1 + $0x50] ss:$12 sps:$4 sm:$0xff]  }
  0xdc   :  { %3646 = vmatpush1.bf16.msra.mxu1 %v5933_v19  ;;  %3586 = vmatprep.subr.bf16.mxu0 %v5938_v20  ;;  %v6001_v19 = vld [vmem:[%s8248_s1 + $0xc90] ss:$12 sps:$4 sm:$0xff]   ;;  %v6005_v20 = vld [vmem:[%s8248_s1 + $0x98] ss:$12 sps:$4 sm:$0xff]  }
  0xdd   :  { %3647 = vmatprep.subr.bf16.mxu1 %v5941_v21  ;;  %v6006_v21 = vld [vmem:[%s8249_s0 + $0xc4] ss:$72 sps:$4 sm:$0xff]  }
  0xdf   :  { %3587 = vmatpush1.bf16.msra.mxu0 %v5936_v22  ;;  %v6013_v22 = vld [vmem:[%s8249_s0 + $0xcc] ss:$72 sps:$4 sm:$0xff]  }
  0xe0   :  { %3648 = vmatpush1.bf16.msra.mxu1 %v5939_v23  ;;  %3588 = vmatprep.subr.bf16.mxu0 %v5944_v24 }
  0xe1   :  { %3649 = vmatprep.subr.bf16.mxu1 %v5947_v25  ;;  %v6011_v25 = vld [vmem:[%s8248_s1 + $0xc7c] ss:$12 sps:$4 sm:$0xff]  }
  0xe3   :  { %3589 = vmatpush2.bf16.msra.mxu0 %v5942_v26 }
  0xe4   :  { %3650 = vmatpush2.bf16.msra.mxu1 %v5945_v27  ;;  %3590 = vmatprep.subr.bf16.mxu0 %v5950_v28  ;;  %v6012_v27 = vld [vmem:[%s8248_s1 + $0x140] ss:$12 sps:$4 sm:$0xff]  }
  0xe5   :  { %3651 = vmatprep.subr.bf16.mxu1 %v5953_v29 }
  0xe7   :  { %3591 = vmatpush2.bf16.msra.mxu0 %v5948_v30  ;;  %v6008_v30 = vld [vmem:[%s8249_s0 + $0xc0] ss:$72 sps:$4 sm:$0xff]  }
  0xe8   :  { %3652 = vmatpush2.bf16.msra.mxu1 %v5951_v31  ;;  %3592 = vmatprep.subr.bf16.mxu0 %v5956_v34  ;;  %v6016_v31 = vld [vmem:[%s8249_s0 + $0xc8] ss:$72 sps:$4 sm:$0xff]  }
  0xe9   :  { %3653 = vmatprep.subr.bf16.mxu1 %v5959_v35 }
  0xeb   :  { %3593 = vmatpush2.bf16.msra.mxu0 %v5954_v36  ;;  %v6009_v36 = vld [vmem:[%s8248_s1 + $0xc78] ss:$12 sps:$4 sm:$0xff]  }
  0xec   :  { %3654 = vmatpush2.bf16.msra.mxu1 %v5957_v37  ;;  %3594 = vmatprep.subr.bf16.mxu0 %v5962_v40  ;;  %v6015_v37 = vld [vmem:[%s8248_s1 + $0x80] ss:$12 sps:$4 sm:$0xff]   ;;  %v63_v40 = vld [vmem:[%s8249_s0 + $0x150] sm:$0xff] }
  0xed   :  { %3655 = vmatprep.subr.bf16.mxu1 %v5965_v41  ;;  %v7308_v62 = vcombine.low %v63_v40, %v63_v40 }
  0xef   :  { %3595 = vmatpush2.bf16.msra.mxu0 %v5960_v44 }
  0xf0   :  { %3656 = vmatpush2.bf16.msra.mxu1 %v5963_v45  ;;  %3596 = vmatprep.subr.bf16.mxu0 %v5968_v46  ;;  %v64_v45 = vld [vmem:[%s8249_s0 + $0x158] sm:$0xff] }
  0xf1   :  { %3657 = vmatprep.subr.bf16.mxu1 %v5971_v47 }
  0xf3   :  { %3597 = vmatpush2.bf16.msra.mxu0 %v5966_v50  ;;  %v6020_v50 = vld [vmem:[%s8248_s1 + $0x128] ss:$12 sps:$4 sm:$0xff]  }
  0xf4   :  { %3658 = vmatpush2.bf16.msra.mxu1 %v5969_v52  ;;  %3598 = vmatprep.subr.bf16.mxu0 %v5974_v53  ;;  %v6017_v53 = vld [vmem:[%s8248_s1 + $0xc60] ss:$12 sps:$4 sm:$0xff]  }
  0xf5   :  { %3659 = vmatprep.subr.bf16.mxu1 %v5977_v54  ;;  %v7288_v54 = vcombine.high %v63_v40, %v63_v40 }
  0xf7   :  { %3599 = vmatpush2.bf16.msra.mxu0 %v5972_v55  ;;  %v7290_v55 = vcombine.high %v64_v45, %v64_v45 }
  0xf8   :  { %3660 = vmatpush2.bf16.msra.mxu1 %v5975_v57  ;;  %3600 = vmatprep.subr.bf16.mxu0 %v5980_v58  ;;  %v6021_v57 = vld [vmem:[%s8248_s1 + $0x68] ss:$12 sps:$4 sm:$0xff]   ;;  %v6026_v58 = vld [vmem:[%s8248_s1 + $0xc4c] ss:$12 sps:$4 sm:$0xff]  }
  0xf9   :  { %3661 = vmatprep.subr.bf16.mxu1 %v5983_v59 }
  0xfb   :  { %3601 = vmatpush2.bf16.msra.mxu0 %v5978_v60  ;;  %v6027_v60 = vld [vmem:[%s8248_s1 + $0x110] ss:$12 sps:$4 sm:$0xff]  }
  0xfc   :  { %3662 = vmatpush2.bf16.msra.mxu1 %v5981_v61  ;;  %3602 = vmatprep.subr.bf16.mxu0 %v5986_v2  ;;  %v6024_v61 = vld [vmem:[%s8248_s1 + $0xc48] ss:$12 sps:$4 sm:$0xff]   ;;  %v7313_v2 = vcombine.low %v64_v45, %v64_v45 }
  0xfd   :  { %3663 = vmatprep.subr.bf16.mxu1 %v5989_v3 }
  0xff   :  { %3603 = vmatpush2.bf16.msra.mxu0 %v5984_v4 }
 0x100   :  { %3664 = vmatpush2.bf16.msra.mxu1 %v5987_v5  ;;  %3694 = vmatprep.subr.bf16.mxu0 %v5998_v8  ;;  %v6033_v5 = vld [vmem:[%s8248_s1 + $0xc34] ss:$12 sps:$4 sm:$0xff]   ;;  %v6034_v8 = vld [vmem:[%s8248_s1 + $0xf8] ss:$12 sps:$4 sm:$0xff]  }
 0x101   :  { %5161 = vmatprep.subr.bf16.mxu1 %v5999_v12 }
 0x102   :  { %v3240_v23 = vpop.f32.mrf.mxu0  ;;  %3605 = vmatmul.mubr.bf16.vlgmr.msra.gmra.mxu0 %v5990_v10 }
 0x103   :  { %3666 = vmatmul.mubr.bf16.vlgmr.msra.gmra.mxu1 %v5993_v11  ;;  %v3301_v24 = vpop.f32.mrf.mxu1  ;;  %v3241_v26 = vadd.f32 %v3240_v23, %v7224_v15  ;;  %3695 = vmatpush1.bf16.msra.mxu0 %v5996_v13  ;;  %v6031_v11 = vld [vmem:[%s8248_s1 + $0xc30] ss:$12 sps:$4 sm:$0xff]   ;;  %v6039_v23 = vld [vmem:[%s8248_s1 + $0xe0] ss:$12 sps:$4 sm:$0xff]  }
 0x104   :  { %5162 = vmatpush3.bf16.msra.mxu1 %v6000_v14  ;;  %v3242_v28 = vpop.f32.mrf.mxu0  ;;  %3696 = vmatprep.subr.bf16.mxu0 %v6003_v16  ;;  %v6088_v14 = vld [vmem:[%s8249_s0 + $0x44] ss:$72 sps:$4 sm:$0xff]  }
 0x105   :  { %v3303_v29 = vpop.f32.mrf.mxu1  ;;  %5163 = vmatprep.subr.bf16.mxu1 %v6004_v17  ;;  %v3243_v34 = vadd.f32 %v3242_v28, %v7232_v18  ;;  %v7260_v35 = vadd.f32 %v3301_v24, %v3241_v26  ;;  %3614 = vmatprep.mubr.bf16.mxu0 %v6006_v21  ;;  %v6035_v16 = vld [vmem:[%s8248_s1 + $0x38] ss:$12 sps:$4 sm:$0xff]  }
 0x106   :  { %3675 = vmatprep.mubr.bf16.mxu1 %v6013_v22  ;;  %v3244_v41 = vpop.f32.mrf.mxu0  ;;  %v6036_v26 = vld [vmem:[%s8248_s1 + $0xc18] ss:$12 sps:$4 sm:$0xff]  }
 0x107   :  { %v3305_v44 = vpop.f32.mrf.mxu1  ;;  %v3245_v46 = vadd.f32 %v3244_v41, %v7224_v15  ;;  %v7275_v47 = vadd.f32 %v3303_v29, %v3243_v34  ;;  %3697 = vmatpush1.bf16.msra.mxu0 %v6001_v19  ;;  %v6040_v29 = vld [vmem:[%s8248_s1 + $0x20] ss:$12 sps:$4 sm:$0xff]   ;;  %v6043_v34 = vld [vmem:[%s8248_s1 + $0xc04] ss:$12 sps:$4 sm:$0xff]  }
 0x108   :  { %5164 = vmatpush3.bf16.msra.mxu1 %v6005_v20  ;;  %3698 = vmatprep.subr.bf16.mxu0 %v6011_v25  ;;  %v7298_v59 = vpop.f32.mrf.mxu0  ;;  %v6038_v20 = vld [vmem:[%s8248_s1 + $0xc1c] ss:$12 sps:$4 sm:$0xff]  }
 0x109   :  { %5165 = vmatprep.subr.bf16.mxu1 %v6012_v27  ;;  %v7283_v52 = vadd.f32 %v3305_v44, %v3245_v46  ;;  %v7315_v4 = vpop.f32.mrf.mxu1  ;;  %v6230_v27 = vld [vmem:[%s8249_s0 + $0x4] ss:$72 sps:$4 sm:$0xff]   ;;  %v6045_v46 = vld [vmem:[%s8248_s1 + $0x8] ss:$12 sps:$4 sm:$0xff]  }
 0x10a   :  { %3615 = vmatmul.mubr.bf16.gmra.mxu0 %v6008_v30  ;;  %v3250_v3 = vpop.f32.mrf.mxu0  ;;  %v6041_v44 = vld [vmem:[%s8248_s1 + $0xc00] ss:$12 sps:$4 sm:$0xff]  }
 0x10b   :  { %3676 = vmatmul.mubr.bf16.gmra.mxu1 %v6016_v31  ;;  %3699 = vmatpush1.bf16.msra.mxu0 %v6009_v36  ;;  %v3251_v7 = vadd.f32 %v3250_v3, %v7224_v15  ;;  %v3311_v13 = vpop.f32.mrf.mxu1  ;;  %v6050_v3 = vld [vmem:[%s8248_s1 + $0x230] ss:$12 sps:$4 sm:$0xff]  }
 0x10c   :  { %5166 = vmatpush3.bf16.msra.mxu1 %v6015_v37  ;;  %3700 = vmatprep.subr.bf16.mxu0 %v6019_v49  ;;  %v3252_v10 = vpop.f32.mrf.mxu0  ;;  %v6044_v37 = vld [vmem:[%s8248_s1 + $0xc8] ss:$12 sps:$4 sm:$0xff]  }
 0x10d   :  { %5167 = vmatprep.subr.bf16.mxu1 %v6020_v50  ;;  %3624 = vmatprep.mubr.bf16.mxu0 %v7288_v54  ;;  %v3253_v12 = vadd.f32 %v3252_v10, %v7232_v18  ;;  %v7336_v17 = vadd.f32 %v3311_v13, %v3251_v7  ;;  %v3313_v22 = vpop.f32.mrf.mxu1  ;;  %v6048_v50 = vld [vmem:[%s8248_s1 + $0xd6c] ss:$12 sps:$4 sm:$0xff]   ;;  %v6053_v7 = vld [vmem:[%s8248_s1 + $0xd54] ss:$12 sps:$4 sm:$0xff]  }
 0x10e   :  { %3685 = vmatprep.mubr.bf16.mxu1 %v7290_v55  ;;  %v3254_v19 = vpop.f32.mrf.mxu0  ;;  %v6055_v13 = vld [vmem:[%s8248_s1 + $0x218] ss:$12 sps:$4 sm:$0xff]  }
 0x10f   :  { %3701 = vmatpush1.bf16.msra.mxu0 %v6017_v53  ;;  %v3255_v21 = vadd.f32 %v3254_v19, %v7224_v15  ;;  %v7345_v24 = vadd.f32 %v3313_v22, %v3253_v12  ;;  %v3315_v28 = vpop.f32.mrf.mxu1  ;;  %v6231_v12 = vld [vmem:[%s8249_s0] ss:$72 sps:$4 sm:$0xff]   ;;  %v6056_v19 = vld [vmem:[%s8248_s1 + $0xd38] ss:$12 sps:$4 sm:$0xff]  }
 0x110   :  { %5168 = vmatpush3.bf16.msra.mxu1 %v6021_v57  ;;  %3702 = vmatprep.subr.bf16.mxu0 %v6026_v58  ;;  %v7347_v25 = vpop.f32.mrf.mxu0  ;;  %v6049_v57 = vld [vmem:[%s8248_s1 + $0x2f0] ss:$12 sps:$4 sm:$0xff]  }
 0x111   :  { %5169 = vmatprep.subr.bf16.mxu1 %v6027_v60  ;;  %v7358_v30 = vadd.f32 %v3315_v28, %v3255_v21  ;;  %v7367_v40 = vpop.f32.mrf.mxu1  ;;  %v6060_v21 = vld [vmem:[%s8248_s1 + $0x200] ss:$12 sps:$4 sm:$0xff]   ;;  %v6063_v22 = vld [vmem:[%s8248_s1 + $0xd24] ss:$12 sps:$4 sm:$0xff]  }
 0x112   :  { %3625 = vmatmul.mubr.bf16.gmra.mxu0 %v7308_v62  ;;  %v3260_v31 = vpop.f32.mrf.mxu0  ;;  %v6233_v28 = vld [vmem:[%s8249_s0 + $0x90] ss:$72 sps:$4 sm:$0xff]  }
 0x113   :  { %3686 = vmatmul.mubr.bf16.gmra.mxu1 %v7313_v2  ;;  %3703 = vmatpush1.bf16.msra.mxu0 %v6024_v61  ;;  %v3261_v36 = vadd.f32 %v3260_v31, %v7224_v15  ;;  %v3321_v49 = vpop.f32.mrf.mxu1  ;;  %v6046_v61 = vld [vmem:[%s8248_s1 + $0xd68] ss:$12 sps:$4 sm:$0xff]   ;;  %v6069_v31 = vld [vmem:[%s8248_s1 + $0x290] ss:$12 sps:$4 sm:$0xff]  }
 0x114   :  { %5170 = vmatpush3.bf16.msra.mxu1 %v6029_v63  ;;  %3704 = vmatprep.subr.bf16.mxu0 %v6033_v5  ;;  %v3262_v41 = vpop.f32.mrf.mxu0 }
 0x115   :  { %5171 = vmatprep.subr.bf16.mxu1 %v6034_v8  ;;  %3787 = vmatprep.mubr.bf16.mxu1 %v6230_v27  ;;  %v3263_v45 = vadd.f32 %v3262_v41, %v7232_v18  ;;  %v7379_v53 = vadd.f32 %v3321_v49, %v3261_v36  ;;  %v3323_v60 = vpop.f32.mrf.mxu1  ;;  %v6054_v8 = vld [vmem:[%s8248_s1 + $0x2d8] ss:$12 sps:$4 sm:$0xff]   ;;  %v6065_v27 = vld [vmem:[%s8248_s1 + $0x1e8] ss:$12 sps:$4 sm:$0xff]   ;;  %v6070_v36 = vld [vmem:[%s8248_s1 + $0x1d0] ss:$12 sps:$4 sm:$0xff]  }
 0x116   :  { %3726 = vmatprep.mubr.bf16.mxu0 %v6088_v14  ;;  %v3264_v15 = vpop.f32.mrf.mxu0  ;;  %v6058_v14 = vld [vmem:[%s8248_s1 + $0xd3c] ss:$12 sps:$4 sm:$0xff]   ;;  %v6074_v41 = vld [vmem:[%s8248_s1 + $0x278] ss:$12 sps:$4 sm:$0xff]   ;;  %v6080_v49 = vld [vmem:[%s8248_s1 + $0x1a0] ss:$12 sps:$4 sm:$0xff]  }
 0x117   :  { %3705 = vmatpush1.bf16.msra.mxu0 %v6031_v11  ;;  %v7387_v63 = vadd.f32 %v3323_v60, %v3263_v45  ;;  %v3325_v5 = vpop.f32.mrf.mxu1  ;;  %v6051_v11 = vld [vmem:[%s8248_s1 + $0xd50] ss:$12 sps:$4 sm:$0xff]   ;;  %v6076_v15 = vld [vmem:[%s8248_s1 + $0xcd8] ss:$12 sps:$4 sm:$0xff]   ;;  %v6085_v60 = vld [vmem:[%s8248_s1 + $0x188] ss:$12 sps:$4 sm:$0xff]  }
 0x118   :  { %5172 = vmatpush3.bf16.msra.mxu1 %v6035_v16  ;;  %3706 = vmatprep.subr.bf16.mxu0 %v6038_v20  ;;  %v3265_v58 = vpop.f32.mrf.mxu0  ;;  %v6059_v16 = vld [vmem:[%s8248_s1 + $0x2c0] ss:$12 sps:$4 sm:$0xff]   ;;  %v6232_v20 = vld [vmem:[%s8249_s0 + $0x94] ss:$72 sps:$4 sm:$0xff]  }
 0x119   :  { %5173 = vmatprep.subr.bf16.mxu1 %v6039_v23  ;;  %v3326_v10 = vpop.f32.mrf.mxu1  ;;  %v6064_v23 = vld [vmem:[%s8248_s1 + $0x2a8] ss:$12 sps:$4 sm:$0xff]   ;;  %v6081_v58 = vld [vmem:[%s8248_s1 + $0xcc0] ss:$12 sps:$4 sm:$0xff]   ;;  %v6091_v5 = vld [vmem:[%s8248_s1 + $0x5f0] ss:$12 sps:$4 sm:$0xff]  }
 0x11a   :  { %v6078_v45 = vld [vmem:[%s8248_s1 + $0xcdc] ss:$12 sps:$4 sm:$0xff]   ;;  %v6093_v10 = vld [vmem:[%s8248_s1 + $0x458] ss:$12 sps:$4 sm:$0xff]  }
 0x11b   :  { %3707 = vmatpush1.bf16.msra.mxu0 %v6036_v26  ;;  %v6061_v26 = vld [vmem:[%s8248_s1 + $0xd20] ss:$12 sps:$4 sm:$0xff]  }
 0x11c   :  { %5174 = vmatpush3.bf16.msra.mxu1 %v6040_v29  ;;  %3708 = vmatprep.subr.bf16.mxu0 %v6043_v34  ;;  %v6068_v29 = vld [vmem:[%s8248_s1 + $0xd0c] ss:$12 sps:$4 sm:$0xff]   ;;  %v6066_v34 = vld [vmem:[%s8248_s1 + $0xd08] ss:$12 sps:$4 sm:$0xff]  }
 0x11d   :  { %5175 = vmatprep.subr.bf16.mxu1 %v6044_v37  ;;  %v6073_v37 = vld [vmem:[%s8248_s1 + $0xcf4] ss:$12 sps:$4 sm:$0xff]  }
 0x11f   :  { %3709 = vmatpush1.bf16.msra.mxu0 %v6041_v44  ;;  %v6075_v44 = vld [vmem:[%s8248_s1 + $0x1b8] ss:$12 sps:$4 sm:$0xff]  }
 0x120   :  { %5176 = vmatpush3.bf16.msra.mxu1 %v6045_v46  ;;  %3710 = vmatprep.subr.bf16.mxu0 %v6048_v50  ;;  %v6079_v46 = vld [vmem:[%s8248_s1 + $0x260] ss:$12 sps:$4 sm:$0xff]   ;;  %v6083_v50 = vld [vmem:[%s8248_s1 + $0xcc4] ss:$12 sps:$4 sm:$0xff]  }
 0x121   :  { %5195 = vmatprep.subr.bf16.mxu1 %v6049_v57  ;;  %v6084_v57 = vld [vmem:[%s8248_s1 + $0x248] ss:$12 sps:$4 sm:$0xff]  }
 0x123   :  { %3788 = vmatmul.mubr.bf16.vlgmr.msra.gmra.mxu1 %v6231_v12  ;;  %3711 = vmatpush2.bf16.msra.mxu0 %v6046_v61  ;;  %v6089_v61 = vld [vmem:[%s8248_s1 + $0x470] ss:$12 sps:$4 sm:$0xff]   ;;  %v6094_v12 = vld [vmem:[%s8248_s1 + $0x398] ss:$12 sps:$4 sm:$0xff]  }
 0x124   :  { %5196 = vmatpush3.bf16.msra.mxu1 %v6050_v3  ;;  %3712 = vmatprep.subr.bf16.mxu0 %v6053_v7  ;;  %v6086_v3 = vld [vmem:[%s8249_s0 + $0x40] ss:$72 sps:$4 sm:$0xff]   ;;  %v6090_v7 = vld [vmem:[%s8248_s1 + $0x3b0] ss:$12 sps:$4 sm:$0xff]  }
 0x125   :  { %5197 = vmatprep.subr.bf16.mxu1 %v6054_v8  ;;  %3795 = vmatprep.mubr.bf16.mxu1 %v6232_v20  ;;  %v6092_v8 = vld [vmem:[%s8248_s1 + $0x530] ss:$12 sps:$4 sm:$0xff]   ;;  %v6098_v20 = vld [vmem:[%s8248_s1 + $0x518] ss:$12 sps:$4 sm:$0xff]  }
 0x127   :  { %3713 = vmatpush2.bf16.msra.mxu0 %v6051_v11  ;;  %v6095_v11 = vld [vmem:[%s8248_s1 + $0x5d8] ss:$12 sps:$4 sm:$0xff]  }
 0x128   :  { %5198 = vmatpush3.bf16.msra.mxu1 %v6055_v13  ;;  %3714 = vmatprep.subr.bf16.mxu0 %v6058_v14  ;;  %v6096_v13 = vld [vmem:[%s8249_s0 + $0xd4] ss:$72 sps:$4 sm:$0xff]  }
 0x129   :  { %5199 = vmatprep.subr.bf16.mxu1 %v6059_v16  ;;  %v6235_v16 = vld [vmem:[%s8249_s0 + $0x8] ss:$72 sps:$4 sm:$0xff]  }
 0x12b   :  { %3796 = vmatmul.mubr.bf16.gmra.mxu1 %v6233_v28  ;;  %3715 = vmatpush2.bf16.msra.mxu0 %v6056_v19  ;;  %v6099_v28 = vld [vmem:[%s8249_s0 + $0xd0] ss:$72 sps:$4 sm:$0xff]  }
 0x12c   :  { %5200 = vmatpush3.bf16.msra.mxu1 %v6060_v21  ;;  %3716 = vmatprep.subr.bf16.mxu0 %v6063_v22  ;;  %v3247_v21 = vadd.f32 %v7298_v59, %v7232_v18  ;;  %v6102_v59 = vld [vmem:[%s8248_s1 + $0x5c0] ss:$12 sps:$4 sm:$0xff]  }
 0x12d   :  { %5201 = vmatprep.subr.bf16.mxu1 %v6064_v23  ;;  %3803 = vmatprep.mubr.bf16.mxu1 %v6587_v32  ;;  %v6071_v32 = vld [vmem:[%s8248_s1 + $0xcf0] ss:$12 sps:$4 sm:$0xff]   ;;  %v6100_v23 = vld [vmem:[%s8248_s1 + $0x440] ss:$12 sps:$4 sm:$0xff]  }
 0x12f   :  { %3717 = vmatpush2.bf16.msra.mxu0 %v6061_v26 }
 0x130   :  { %5202 = vmatpush3.bf16.msra.mxu1 %v6065_v27  ;;  %3718 = vmatprep.subr.bf16.mxu0 %v6068_v29 }
 0x131   :  { %5203 = vmatprep.subr.bf16.mxu1 %v6069_v31  ;;  %v6101_v31 = vld [vmem:[%s8248_s1 + $0x380] ss:$12 sps:$4 sm:$0xff]  }
 0x133   :  { %3804 = vmatmul.mubr.bf16.gmra.mxu1 %v6589_v33  ;;  %3719 = vmatpush2.bf16.msra.mxu0 %v6066_v34  ;;  %v6234_v33 = vld [vmem:[%s8249_s0 + $0xc] ss:$72 sps:$4 sm:$0xff]   ;;  %v6236_v34 = vld [vmem:[%s8249_s0 + $0x9c] ss:$72 sps:$4 sm:$0xff]  }
 0x134   :  { %5204 = vmatpush3.bf16.msra.mxu1 %v6070_v36  ;;  %3720 = vmatprep.subr.bf16.mxu0 %v6073_v37  ;;  %v6103_v36 = vld [vmem:[%s8248_s1 + $0x500] ss:$12 sps:$4 sm:$0xff]  }
 0x135   :  { %5205 = vmatprep.subr.bf16.mxu1 %v6074_v41  ;;  %3843 = vmatprep.mubr.bf16.mxu1 %v6234_v33 }
 0x137   :  { %3721 = vmatpush2.bf16.msra.mxu0 %v6071_v32  ;;  %v3308_v32 = vadd.f32 %v7315_v4, %v3247_v21 }
 0x138   :  { %5206 = vmatpush3.bf16.msra.mxu1 %v6075_v44  ;;  %3722 = vmatprep.subr.bf16.mxu0 %v6078_v45 }
 0x139   :  { %5207 = vmatprep.subr.bf16.mxu1 %v6079_v46  ;;  %v6104_v46 = vld [vmem:[%s8248_s1 + $0x428] ss:$12 sps:$4 sm:$0xff]  }
 0x13b   :  { %3723 = vmatpush2.bf16.msra.mxu0 %v6076_v15 }
 0x13c   :  { %5208 = vmatpush3.bf16.msra.mxu1 %v6080_v49  ;;  %3724 = vmatprep.subr.bf16.mxu0 %v6083_v50  ;;  %v6106_v49 = vld [vmem:[%s8248_s1 + $0x5a8] ss:$12 sps:$4 sm:$0xff]  }
 0x13d   :  { %5209 = vmatprep.subr.bf16.mxu1 %v6084_v57  ;;  %v6105_v50 = vld [vmem:[%s8248_s1 + $0x368] ss:$12 sps:$4 sm:$0xff]  }
 0x13f   :  { %3725 = vmatpush2.bf16.msra.mxu0 %v6081_v58 }
 0x140   :  { %5210 = vmatpush3.bf16.msra.mxu1 %v6085_v60  ;;  %5229 = vmatprep.subr.bf16.mxu0 %v6089_v61  ;;  %v6237_v61 = vld [vmem:[%s8249_s0 + $0x98] ss:$72 sps:$4 sm:$0xff]  }
 0x141   :  { %5263 = vmatprep.subr.bf16.mxu1 %v6091_v5  ;;  %v3257_v5 = vadd.f32 %v7347_v25, %v7232_v18  ;;  %v6111_v18 = vld [vmem:[%s8248_s1 + $0x350] ss:$12 sps:$4 sm:$0xff]  }
 0x142   :  { %v3362_v14 = vpop.f32.mrf.mxu0  ;;  %3727 = vmatmul.mubr.bf16.vlgmr.msra.gmra.mxu0 %v6086_v3  ;;  %v6108_v3 = vld [vmem:[%s8248_s1 + $0x4e8] ss:$12 sps:$4 sm:$0xff]  }
 0x143   :  { %3844 = vmatmul.mubr.bf16.vlgmr.msra.gmra.mxu1 %v6235_v16  ;;  %v3423_v19 = vpop.f32.mrf.mxu1  ;;  %v3363_v22 = vadd.f32 %v3362_v14, %v7260_v35  ;;  %5230 = vmatpush3.bf16.msra.mxu0 %v6090_v7 }
 0x144   :  { %5264 = vmatpush3.bf16.msra.mxu1 %v6092_v8  ;;  %v3364_v26 = vpop.f32.mrf.mxu0  ;;  %5231 = vmatprep.subr.bf16.mxu0 %v6093_v10  ;;  %v6110_v8 = vld [vmem:[%s8248_s1 + $0x410] ss:$12 sps:$4 sm:$0xff]  }
 0x145   :  { %v3425_v27 = vpop.f32.mrf.mxu1  ;;  %5265 = vmatprep.subr.bf16.mxu1 %v6095_v11  ;;  %v3365_v35 = vadd.f32 %v3364_v26, %v7275_v47  ;;  %v7536_v29 = vadd.f32 %v3423_v19, %v3363_v22  ;;  %3736 = vmatprep.mubr.bf16.mxu0 %v6096_v13  ;;  %v65_v47 = vld [vmem:[%s8249_s0 + $0x160] sm:$0xff]  ;;  %v6113_v19 = vld [vmem:[%s8248_s1 + $0x4d0] ss:$12 sps:$4 sm:$0xff]  }
 0x146   :  { %3851 = vmatprep.mubr.bf16.mxu1 %v6236_v34  ;;  %v3366_v37 = vpop.f32.mrf.mxu0  ;;  %v7569_v57 = vcombine.high %v65_v47, %v65_v47  ;;  %v7594_v16 = vcombine.low %v65_v47, %v65_v47  ;;  %v6116_v26 = vld [vmem:[%s8248_s1 + $0x578] ss:$12 sps:$4 sm:$0xff]  }
 0x147   :  { %v3427_v41 = vpop.f32.mrf.mxu1  ;;  %v3367_v44 = vadd.f32 %v3366_v37, %v7283_v52  ;;  %v7552_v45 = vadd.f32 %v3425_v27, %v3365_v35  ;;  %5232 = vmatpush3.bf16.msra.mxu0 %v6094_v12  ;;  %v6112_v12 = vld [vmem:[%s8248_s1 + $0x590] ss:$12 sps:$4 sm:$0xff]   ;;  %v6117_v35 = vld [vmem:[%s8248_s1 + $0x4b8] ss:$12 sps:$4 sm:$0xff]  }
 0x148   :  { %5266 = vmatpush3.bf16.msra.mxu1 %v6098_v20  ;;  %v3368_v15 = vpop.f32.mrf.mxu0  ;;  %5233 = vmatprep.subr.bf16.mxu0 %v6100_v23 }
 0x149   :  { %v7557_v33 = vpop.f32.mrf.mxu1  ;;  %5267 = vmatprep.subr.bf16.mxu1 %v6102_v59  ;;  %v7562_v4 = vadd.f32 %v3368_v15, %v3308_v32  ;;  %v7564_v52 = vadd.f32 %v3427_v41, %v3367_v44  ;;  %v6238_v44 = vld [vmem:[%s8249_s0 + $0x14] ss:$72 sps:$4 sm:$0xff]  }
 0x14a   :  { %v3372_v58 = vpop.f32.mrf.mxu0  ;;  %3737 = vmatmul.mubr.bf16.gmra.mxu0 %v6099_v28 }
 0x14b   :  { %v3433_v60 = vpop.f32.mrf.mxu1  ;;  %3852 = vmatmul.mubr.bf16.gmra.mxu1 %v6237_v61  ;;  %v3373_v7 = vadd.f32 %v3372_v58, %v7336_v17  ;;  %5234 = vmatpush3.bf16.msra.mxu0 %v6101_v31  ;;  %v6122_v58 = vld [vmem:[%s8248_s1 + $0x3c8] ss:$12 sps:$4 sm:$0xff]  }
 0x14c   :  { %5268 = vmatpush3.bf16.msra.mxu1 %v6103_v36  ;;  %v3374_v10 = vpop.f32.mrf.mxu0  ;;  %5235 = vmatprep.subr.bf16.mxu0 %v6104_v46  ;;  %v6118_v36 = vld [vmem:[%s8248_s1 + $0x3e0] ss:$12 sps:$4 sm:$0xff]   ;;  %v6239_v46 = vld [vmem:[%s8249_s0 + $0x1c] ss:$72 sps:$4 sm:$0xff]  }
 0x14d   :  { %v3435_v11 = vpop.f32.mrf.mxu1  ;;  %5269 = vmatprep.subr.bf16.mxu1 %v6106_v49  ;;  %v3375_v13 = vadd.f32 %v3374_v10, %v7345_v24  ;;  %v7587_v14 = vadd.f32 %v3433_v60, %v3373_v7  ;;  %3746 = vmatprep.mubr.bf16.mxu0 %v7569_v57  ;;  %v3318_v24 = vadd.f32 %v7367_v40, %v3257_v5  ;;  %v6124_v60 = vld [vmem:[%s8248_s1 + $0x548] ss:$12 sps:$4 sm:$0xff]   ;;  %v6128_v10 = vld [vmem:[%s8248_s1 + $0x8f0] ss:$12 sps:$4 sm:$0xff]  }
 0x14e   :  { %3859 = vmatprep.mubr.bf16.mxu1 %v6604_v38  ;;  %v3376_v17 = vpop.f32.mrf.mxu0  ;;  %v6114_v38 = vld [vmem:[%s8248_s1 + $0x3f8] ss:$12 sps:$4 sm:$0xff]   ;;  %v6123_v5 = vld [vmem:[%s8248_s1 + $0x308] ss:$12 sps:$4 sm:$0xff]  }
 0x14f   :  { %v3437_v25 = vpop.f32.mrf.mxu1  ;;  %v3377_v20 = vadd.f32 %v3376_v17, %v7358_v30  ;;  %v7601_v21 = vadd.f32 %v3435_v11, %v3375_v13  ;;  %5236 = vmatpush3.bf16.msra.mxu0 %v6105_v50  ;;  %v6115_v30 = vld [vmem:[%s8248_s1 + $0x338] ss:$12 sps:$4 sm:$0xff]   ;;  %v6125_v7 = vld [vmem:[%s8248_s1 + $0x488] ss:$12 sps:$4 sm:$0xff]   ;;  %v6127_v11 = vld [vmem:[%s8248_s1 + $0x6b0] ss:$12 sps:$4 sm:$0xff]  }
 0x150   :  { %5270 = vmatpush3.bf16.msra.mxu1 %v6108_v3  ;;  %v3378_v22 = vpop.f32.mrf.mxu0  ;;  %5237 = vmatprep.subr.bf16.mxu0 %v6110_v8  ;;  %v6126_v8 = vld [vmem:[%s8248_s1 + $0x770] ss:$12 sps:$4 sm:$0xff]   ;;  %v6130_v13 = vld [vmem:[%s8248_s1 + $0x758] ss:$12 sps:$4 sm:$0xff]  }
 0x151   :  { %v3439_v23 = vpop.f32.mrf.mxu1  ;;  %5271 = vmatprep.subr.bf16.mxu1 %v6112_v12  ;;  %v3379_v27 = vadd.f32 %v3378_v22, %v3318_v24  ;;  %v7609_v40 = vadd.f32 %v3437_v25, %v3377_v20  ;;  %v6129_v12 = vld [vmem:[%s8248_s1 + $0x830] ss:$12 sps:$4 sm:$0xff]   ;;  %v6131_v17 = vld [vmem:[%s8248_s1 + $0x698] ss:$12 sps:$4 sm:$0xff]   ;;  %v6134_v20 = vld [vmem:[%s8248_s1 + $0x740] ss:$12 sps:$4 sm:$0xff]  }
 0x152   :  { %v3382_v28 = vpop.f32.mrf.mxu0  ;;  %3747 = vmatmul.mubr.bf16.gmra.mxu0 %v7594_v16  ;;  %v6240_v25 = vld [vmem:[%s8249_s0 + $0x10] ss:$72 sps:$4 sm:$0xff]   ;;  %v6242_v22 = vld [vmem:[%s8249_s0 + $0xa4] ss:$72 sps:$4 sm:$0xff]  }
 0x153   :  { %v3443_v59 = vpop.f32.mrf.mxu1  ;;  %3860 = vmatmul.mubr.bf16.gmra.mxu1 %v6607_v39  ;;  %v3383_v31 = vadd.f32 %v3382_v28, %v7379_v53  ;;  %v7620_v34 = vadd.f32 %v3439_v23, %v3379_v27  ;;  %5238 = vmatpush3.bf16.msra.mxu0 %v6111_v18  ;;  %v6120_v39 = vld [vmem:[%s8248_s1 + $0x560] ss:$12 sps:$4 sm:$0xff]   ;;  %v6132_v18 = vld [vmem:[%s8248_s1 + $0x8d8] ss:$12 sps:$4 sm:$0xff]   ;;  %v6140_v28 = vld [vmem:[%s8248_s1 + $0x8a8] ss:$12 sps:$4 sm:$0xff]  }
 0x154   :  { %5272 = vmatpush3.bf16.msra.mxu1 %v6113_v19  ;;  %v3384_v37 = vpop.f32.mrf.mxu0  ;;  %5239 = vmatprep.subr.bf16.mxu0 %v6114_v38  ;;  %v6119_v53 = vld [vmem:[%s8248_s1 + $0x320] ss:$12 sps:$4 sm:$0xff]   ;;  %v6133_v24 = vld [vmem:[%s8248_s1 + $0x818] ss:$12 sps:$4 sm:$0xff]  }
 0x155   :  { %v3445_v41 = vpop.f32.mrf.mxu1  ;;  %5273 = vmatprep.subr.bf16.mxu1 %v6116_v26  ;;  %v3385_v47 = vadd.f32 %v3384_v37, %v7387_v63  ;;  %v7629_v32 = vadd.f32 %v3443_v59, %v3383_v31  ;;  %3899 = vmatprep.mubr.bf16.mxu0 %v6238_v44  ;;  %v6121_v63 = vld [vmem:[%s8248_s1 + $0x4a0] ss:$12 sps:$4 sm:$0xff]   ;;  %v6139_v31 = vld [vmem:[%s8248_s1 + $0x668] ss:$12 sps:$4 sm:$0xff]   ;;  %v6142_v37 = vld [vmem:[%s8248_s1 + $0x710] ss:$12 sps:$4 sm:$0xff]  }
 0x156   :  { %3955 = vmatprep.mubr.bf16.mxu1 %v6239_v46  ;;  %v3386_v15 = vpop.f32.mrf.mxu0  ;;  %v6241_v19 = vld [vmem:[%s8249_s0 + $0x18] ss:$72 sps:$4 sm:$0xff]   ;;  %v6243_v23 = vld [vmem:[%s8249_s0 + $0xac] ss:$72 sps:$4 sm:$0xff]  }
 0x157   :  { %v3447_v49 = vpop.f32.mrf.mxu1  ;;  %v7643_v50 = vadd.f32 %v3445_v41, %v3385_v47  ;;  %5240 = vmatpush3.bf16.msra.mxu0 %v6115_v30  ;;  %v6136_v38 = vld [vmem:[%s8248_s1 + $0x8c0] ss:$12 sps:$4 sm:$0xff]   ;;  %v6138_v30 = vld [vmem:[%s8248_s1 + $0x728] ss:$12 sps:$4 sm:$0xff]   ;;  %v6144_v41 = vld [vmem:[%s8248_s1 + $0x890] ss:$12 sps:$4 sm:$0xff]  }
 0x158   :  { %5274 = vmatpush3.bf16.msra.mxu1 %v6117_v35  ;;  %5241 = vmatprep.subr.bf16.mxu0 %v6118_v36  ;;  %v3387_v61 = vpop.f32.mrf.mxu0  ;;  %v6135_v26 = vld [vmem:[%s8248_s1 + $0x680] ss:$12 sps:$4 sm:$0xff]   ;;  %v6245_v35 = vld [vmem:[%s8249_s0 + $0xa8] ss:$72 sps:$4 sm:$0xff]   ;;  %v6149_v44 = vld [vmem:[%s8248_s1 + $0x7b8] ss:$12 sps:$4 sm:$0xff]  }
 0x159   :  { %5275 = vmatprep.subr.bf16.mxu1 %v6120_v39  ;;  %v3448_v3 = vpop.f32.mrf.mxu1  ;;  %v6137_v27 = vld [vmem:[%s8248_s1 + $0x800] ss:$12 sps:$4 sm:$0xff]   ;;  %v6141_v36 = vld [vmem:[%s8248_s1 + $0x7e8] ss:$12 sps:$4 sm:$0xff]   ;;  %v6143_v39 = vld [vmem:[%s8248_s1 + $0x650] ss:$12 sps:$4 sm:$0xff]  }
 0x15a   :  { %v6244_v59 = vld [vmem:[%s8249_s0 + $0xa0] ss:$72 sps:$4 sm:$0xff]   ;;  %v6145_v47 = vld [vmem:[%s8248_s1 + $0x7d0] ss:$12 sps:$4 sm:$0xff]   ;;  %v6246_v15 = vld [vmem:[%s8249_s0 + $0x24] ss:$72 sps:$4 sm:$0xff]  }
 0x15b   :  { %5242 = vmatpush3.bf16.msra.mxu0 %v6119_v53  ;;  %v6146_v53 = vld [vmem:[%s8248_s1 + $0x6f8] ss:$12 sps:$4 sm:$0xff]   ;;  %v6150_v46 = vld [vmem:[%s8248_s1 + $0x6e0] ss:$12 sps:$4 sm:$0xff]   ;;  %v6155_v61 = vld [vmem:[%s8248_s1 + $0x608] ss:$12 sps:$4 sm:$0xff]  }
 0x15c   :  { %5276 = vmatpush3.bf16.msra.mxu1 %v6121_v63  ;;  %5243 = vmatprep.subr.bf16.mxu0 %v6122_v58  ;;  %v6152_v63 = vld [vmem:[%s8248_s1 + $0x860] ss:$12 sps:$4 sm:$0xff]   ;;  %v6154_v58 = vld [vmem:[%s8248_s1 + $0x6c8] ss:$12 sps:$4 sm:$0xff]  }
 0x15d   :  { %5277 = vmatprep.subr.bf16.mxu1 %v6124_v60  ;;  %v6153_v49 = vld [vmem:[%s8248_s1 + $0x7a0] ss:$12 sps:$4 sm:$0xff]   ;;  %v6156_v60 = vld [vmem:[%s8248_s1 + $0x848] ss:$12 sps:$4 sm:$0xff]  }
 0x15e   :  { %v6157_v3 = vld [vmem:[%s8248_s1 + $0x788] ss:$12 sps:$4 sm:$0xff]  }
 0x15f   :  { %5244 = vmatpush3.bf16.msra.mxu0 %v6123_v5  ;;  %v6158_v5 = vld [vmem:[%s8248_s1 + $0xa70] ss:$12 sps:$4 sm:$0xff]  }
 0x160   :  { %5278 = vmatpush3.bf16.msra.mxu1 %v6125_v7  ;;  %5297 = vmatprep.subr.bf16.mxu0 %v6126_v8  ;;  %v6160_v7 = vld [vmem:[%s8248_s1 + $0xbf0] ss:$12 sps:$4 sm:$0xff]  }
 0x161   :  { %5331 = vmatprep.subr.bf16.mxu1 %v6128_v10  ;;  %v6159_v8 = vld [vmem:[%s8248_s1 + $0x9b0] ss:$12 sps:$4 sm:$0xff]  }
 0x162   :  { %3900 = vmatmul.mubr.bf16.vlgmr.msra.gmra.mxu0 %v6240_v25  ;;  %v6161_v10 = vld [vmem:[%s8248_s1 + $0xb30] ss:$12 sps:$4 sm:$0xff]  }
 0x163   :  { %3956 = vmatmul.mubr.bf16.vlgmr.msra.gmra.mxu1 %v6241_v19  ;;  %5298 = vmatpush3.bf16.msra.mxu0 %v6127_v11  ;;  %v6162_v11 = vld [vmem:[%s8248_s1 + $0xa58] ss:$12 sps:$4 sm:$0xff]   ;;  %v6249_v25 = vld [vmem:[%s8249_s0 + $0x28] ss:$72 sps:$4 sm:$0xff]  }
 0x164   :  { %5332 = vmatpush3.bf16.msra.mxu1 %v6129_v12  ;;  %5299 = vmatprep.subr.bf16.mxu0 %v6130_v13  ;;  %v6164_v12 = vld [vmem:[%s8248_s1 + $0xbd8] ss:$12 sps:$4 sm:$0xff]  }
 0x165   :  { %5333 = vmatprep.subr.bf16.mxu1 %v6132_v18  ;;  %3907 = vmatprep.mubr.bf16.mxu0 %v6242_v22  ;;  %v6248_v18 = vld [vmem:[%s8249_s0 + $0x20] ss:$72 sps:$4 sm:$0xff]  }
 0x166   :  { %3963 = vmatprep.mubr.bf16.mxu1 %v6243_v23  ;;  %v6166_v23 = vld [vmem:[%s8248_s1 + $0xa40] ss:$12 sps:$4 sm:$0xff]  }
 0x167   :  { %5300 = vmatpush3.bf16.msra.mxu0 %v6131_v17 }
 0x168   :  { %5334 = vmatpush3.bf16.msra.mxu1 %v6133_v24  ;;  %5301 = vmatprep.subr.bf16.mxu0 %v6134_v20  ;;  %v6163_v24 = vld [vmem:[%s8248_s1 + $0x998] ss:$12 sps:$4 sm:$0xff]  }
 0x169   :  { %5335 = vmatprep.subr.bf16.mxu1 %v6136_v38  ;;  %v6165_v20 = vld [vmem:[%s8248_s1 + $0xb18] ss:$12 sps:$4 sm:$0xff]  }
 0x16a   :  { %3908 = vmatmul.mubr.bf16.gmra.mxu0 %v6244_v59 }
 0x16b   :  { %3964 = vmatmul.mubr.bf16.gmra.mxu1 %v6245_v35  ;;  %5302 = vmatpush3.bf16.msra.mxu0 %v6135_v26 }
 0x16c   :  { %5336 = vmatpush3.bf16.msra.mxu1 %v6137_v27  ;;  %5303 = vmatprep.subr.bf16.mxu0 %v6138_v30  ;;  %v6250_v30 = vld [vmem:[%s8249_s0 + $0xb4] ss:$72 sps:$4 sm:$0xff]  }
 0x16d   :  { %5337 = vmatprep.subr.bf16.mxu1 %v6140_v28  ;;  %3915 = vmatprep.mubr.bf16.mxu0 %v6797_v42  ;;  %v6148_v42 = vld [vmem:[%s8248_s1 + $0x878] ss:$12 sps:$4 sm:$0xff]  }
 0x16e   :  { %3971 = vmatprep.mubr.bf16.mxu1 %v6799_v43  ;;  %v6147_v43 = vld [vmem:[%s8248_s1 + $0x638] ss:$12 sps:$4 sm:$0xff]  }
 0x16f   :  { %5304 = vmatpush3.bf16.msra.mxu0 %v6139_v31  ;;  %v6251_v28 = vld [vmem:[%s8249_s0 + $0xbc] ss:$72 sps:$4 sm:$0xff]   ;;  %v3430_v31 = vadd.f32 %v7557_v33, %v7562_v4  ;;  %v6170_v33 = vld [vmem:[%s8248_s1 + $0xa28] ss:$12 sps:$4 sm:$0xff]  }
 0x170   :  { %5338 = vmatpush3.bf16.msra.mxu1 %v6141_v36  ;;  %5305 = vmatprep.subr.bf16.mxu0 %v6142_v37  ;;  %v6167_v37 = vld [vmem:[%s8248_s1 + $0x980] ss:$12 sps:$4 sm:$0xff]   ;;  %v6172_v4 = vld [vmem:[%s8248_s1 + $0xba8] ss:$12 sps:$4 sm:$0xff]  }
 0x171   :  { %5339 = vmatprep.subr.bf16.mxu1 %v6144_v41  ;;  %v6169_v41 = vld [vmem:[%s8248_s1 + $0xb00] ss:$12 sps:$4 sm:$0xff]  }
 0x172   :  { %3916 = vmatmul.mubr.bf16.gmra.mxu0 %v6815_v48  ;;  %v6247_v48 = vld [vmem:[%s8249_s0 + $0x2c] ss:$72 sps:$4 sm:$0xff]  }
 0x173   :  { %3972 = vmatmul.mubr.bf16.gmra.mxu1 %v6823_v51  ;;  %5306 = vmatpush3.bf16.msra.mxu0 %v6143_v39  ;;  %v6151_v51 = vld [vmem:[%s8248_s1 + $0x620] ss:$12 sps:$4 sm:$0xff]  }
 0x174   :  { %5340 = vmatpush3.bf16.msra.mxu1 %v6145_v47  ;;  %5307 = vmatprep.subr.bf16.mxu0 %v6146_v53 }
 0x175   :  { %5341 = vmatprep.subr.bf16.mxu1 %v6148_v42  ;;  %4011 = vmatprep.mubr.bf16.mxu0 %v6246_v15 }
 0x176   :  { %4067 = vmatprep.mubr.bf16.mxu1 %v6247_v48  ;;  %v6171_v48 = vld [vmem:[%s8248_s1 + $0x968] ss:$12 sps:$4 sm:$0xff]  }
 0x177   :  { %5308 = vmatpush3.bf16.msra.mxu0 %v6147_v43  ;;  %v6252_v43 = vld [vmem:[%s8249_s0 + $0xb0] ss:$72 sps:$4 sm:$0xff]  }
 0x178   :  { %5342 = vmatpush3.bf16.msra.mxu1 %v6149_v44  ;;  %5309 = vmatprep.subr.bf16.mxu0 %v6150_v46  ;;  %v6253_v46 = vld [vmem:[%s8249_s0 + $0xb8] ss:$72 sps:$4 sm:$0xff]  }
 0x179   :  { %5343 = vmatprep.subr.bf16.mxu1 %v6152_v63 }
 0x17b   :  { %5310 = vmatpush3.bf16.msra.mxu0 %v6151_v51  ;;  %v6173_v51 = vld [vmem:[%s8248_s1 + $0xae8] ss:$12 sps:$4 sm:$0xff]  }
 0x17c   :  { %5344 = vmatpush3.bf16.msra.mxu1 %v6153_v49  ;;  %5311 = vmatprep.subr.bf16.mxu0 %v6154_v58 }
 0x17d   :  { %5345 = vmatprep.subr.bf16.mxu1 %v6156_v60  ;;  %v6176_v60 = vld [vmem:[%s8248_s1 + $0xb90] ss:$12 sps:$4 sm:$0xff]  }
 0x17f   :  { %5312 = vmatpush3.bf16.msra.mxu0 %v6155_v61 }
 0x180   :  { %5346 = vmatpush3.bf16.msra.mxu1 %v6157_v3  ;;  %5365 = vmatprep.subr.bf16.mxu0 %v6158_v5 }
 0x181   :  { %5399 = vmatprep.subr.bf16.mxu1 %v6160_v7 }
 0x182   :  { %v3484_v13 = vpop.f32.mrf.mxu0  ;;  %4012 = vmatmul.mubr.bf16.vlgmr.msra.gmra.mxu0 %v6248_v18 }
 0x183   :  { %v3545_v17 = vpop.f32.mrf.mxu1  ;;  %4068 = vmatmul.mubr.bf16.vlgmr.msra.gmra.mxu1 %v6249_v25  ;;  %v3485_v19 = vadd.f32 %v3484_v13, %v7536_v29  ;;  %5366 = vmatpush3.bf16.msra.mxu0 %v6159_v8  ;;  %v6168_v29 = vld [vmem:[%s8248_s1 + $0xbc0] ss:$12 sps:$4 sm:$0xff]  }
 0x184   :  { %5400 = vmatpush3.bf16.msra.mxu1 %v6161_v10  ;;  %v3486_v38 = vpop.f32.mrf.mxu0  ;;  %5367 = vmatprep.subr.bf16.mxu0 %v6162_v11  ;;  %v6175_v11 = vld [vmem:[%s8248_s1 + $0x950] ss:$12 sps:$4 sm:$0xff]  }
 0x185   :  { %v3547_v22 = vpop.f32.mrf.mxu1  ;;  %5401 = vmatprep.subr.bf16.mxu1 %v6164_v12  ;;  %v3487_v26 = vadd.f32 %v3486_v38, %v7552_v45  ;;  %v7819_v27 = vadd.f32 %v3545_v17, %v3485_v19  ;;  %4019 = vmatprep.mubr.bf16.mxu0 %v6250_v30 }
 0x186   :  { %4075 = vmatprep.mubr.bf16.mxu1 %v6251_v28  ;;  %v3488_v59 = vpop.f32.mrf.mxu0 }
 0x187   :  { %v3549_v35 = vpop.f32.mrf.mxu1  ;;  %v3489_v36 = vadd.f32 %v3488_v59, %v7564_v52  ;;  %v7830_v45 = vadd.f32 %v3547_v22, %v3487_v26  ;;  %5368 = vmatpush3.bf16.msra.mxu0 %v6163_v24  ;;  %v6255_v26 = vld [vmem:[%s8249_s0 + $0x3c] ss:$72 sps:$4 sm:$0xff]  }
 0x188   :  { %5402 = vmatpush3.bf16.msra.mxu1 %v6165_v20  ;;  %v3490_v39 = vpop.f32.mrf.mxu0  ;;  %5369 = vmatprep.subr.bf16.mxu0 %v6166_v23  ;;  %v6179_v20 = vld [vmem:[%s8248_s1 + $0x938] ss:$12 sps:$4 sm:$0xff]  }
 0x189   :  { %v3551_v47 = vpop.f32.mrf.mxu1  ;;  %5403 = vmatprep.subr.bf16.mxu1 %v6168_v29  ;;  %v3491_v52 = vadd.f32 %v3490_v39, %v3430_v31  ;;  %v7844_v53 = vadd.f32 %v3549_v35, %v3489_v36  ;;  %v6254_v29 = vld [vmem:[%s8249_s0 + $0x34] ss:$72 sps:$4 sm:$0xff]   ;;  %v6185_v35 = vld [vmem:[%s8248_s1 + $0xaa0] ss:$12 sps:$4 sm:$0xff]  }
 0x18a   :  { %v3494_v42 = vpop.f32.mrf.mxu0  ;;  %4020 = vmatmul.mubr.bf16.gmra.mxu0 %v6252_v43  ;;  %v6186_v31 = vld [vmem:[%s8248_s1 + $0x9c8] ss:$12 sps:$4 sm:$0xff]   ;;  %v6207_v43 = vld [vmem:[%s8251_s3 + $0x38] sm:$0xff]  }
 0x18b   :  { %v3555_v44 = vpop.f32.mrf.mxu1  ;;  %4076 = vmatmul.mubr.bf16.gmra.mxu1 %v6253_v46  ;;  %v3495_v63 = vadd.f32 %v3494_v42, %v7587_v14  ;;  %v7853_v15 = vadd.f32 %v3551_v47, %v3491_v52  ;;  %5370 = vmatpush3.bf16.msra.mxu0 %v6167_v37  ;;  %v6174_v14 = vld [vmem:[%s8248_s1 + $0xa10] ss:$12 sps:$4 sm:$0xff]   ;;  %v6188_v36 = vld [vmem:[%s8248_s1 + $0xb48] ss:$12 sps:$4 sm:$0xff]   ;;  %v6192_v42 = vld [vmem:[%s8248_s1 + $0xd58] ss:$12 sps:$4 sm:$0xff]  }
 0x18c   :  { %5404 = vmatpush3.bf16.msra.mxu1 %v6169_v41  ;;  %v3496_v49 = vpop.f32.mrf.mxu0  ;;  %5371 = vmatprep.subr.bf16.mxu0 %v6170_v33  ;;  %v6187_v39 = vld [vmem:[%s8248_s1 + $0x908] ss:$12 sps:$4 sm:$0xff]   ;;  %v6190_v33 = vld [vmem:[%s8248_s1 + $0xd70] ss:$12 sps:$4 sm:$0xff]   ;;  %v6257_v46 = vld [vmem:[%s8249_s0 + $0x38] ss:$72 sps:$4 sm:$0xff]  }
 0x18d   :  { %v3557_v58 = vpop.f32.mrf.mxu1  ;;  %5405 = vmatprep.subr.bf16.mxu1 %v6172_v4  ;;  %v3497_v61 = vadd.f32 %v3496_v49, %v7601_v21  ;;  %v7868_v3 = vadd.f32 %v3555_v44, %v3495_v63  ;;  %4027 = vmatprep.mubr.bf16.mxu0 %v7031_v0  ;;  %v6177_v21 = vld [vmem:[%s8248_s1 + $0xad0] ss:$12 sps:$4 sm:$0xff]   ;;  %v6189_v47 = vld [vmem:[%s8248_s1 + $0xa88] ss:$12 sps:$4 sm:$0xff]   ;;  %v6194_v49 = vld [vmem:[%s8248_s1 + $0xd40] ss:$12 sps:$4 sm:$0xff]  }
 0x18e   :  { %4083 = vmatprep.mubr.bf16.mxu1 %v7033_v1  ;;  %v3498_v5 = vpop.f32.mrf.mxu0  ;;  %v6178_v1 = vld [vmem:[%s8248_s1 + $0x9f8] ss:$12 sps:$4 sm:$0xff]   ;;  %v6191_v52 = vld [vmem:[%s8248_s1 + $0xcb0] ss:$12 sps:$4 sm:$0xff]  }
 0x18f   :  { %v3559_v7 = vpop.f32.mrf.mxu1  ;;  %v3499_v8 = vadd.f32 %v3498_v5, %v7609_v40  ;;  %v7873_v10 = vadd.f32 %v3557_v58, %v3497_v61  ;;  %5372 = vmatpush3.bf16.msra.mxu0 %v6171_v48  ;;  %v6180_v40 = vld [vmem:[%s8248_s1 + $0xb78] ss:$12 sps:$4 sm:$0xff]   ;;  %v6208_v63 = vld [vmem:[%s8251_s3 + $0x70] sm:$0xff]   ;;  %v6210_v5 = vld [vmem:[%s8251_s3 + $0x68] sm:$0xff]  }
 0x190   :  { %5406 = vmatpush3.bf16.msra.mxu1 %v6173_v51  ;;  %v3500_v12 = vpop.f32.mrf.mxu0  ;;  %5373 = vmatprep.subr.bf16.mxu0 %v6174_v14  ;;  %v6206_v4 = vld [vmem:[%s8251_s3 + $0x78] sm:$0xff]   ;;  %v6258_v51 = vld [vmem:[%s8249_s0 + $0xc4] ss:$72 sps:$4 sm:$0xff]   ;;  %v6209_v14 = vld [vmem:[%s8251_s3 + $0x30] sm:$0xff]  }
 0x191   :  { %v3561_v0 = vpop.f32.mrf.mxu1  ;;  %5407 = vmatprep.subr.bf16.mxu1 %v6176_v60  ;;  %v3501_v13 = vadd.f32 %v3500_v12, %v7620_v34  ;;  %v7888_v18 = vadd.f32 %v3559_v7, %v3499_v8  ;;  %v6181_v34 = vld [vmem:[%s8248_s1 + $0xab8] ss:$12 sps:$4 sm:$0xff]   ;;  %v6259_v58 = vld [vmem:[%s8249_s0 + $0xcc] ss:$72 sps:$4 sm:$0xff]   ;;  %v6260_v7 = vld [vmem:[%s8249_s0 + $0xc0] ss:$72 sps:$4 sm:$0xff]  }
 0x192   :  { %v3504_v17 = vpop.f32.mrf.mxu0  ;;  %4028 = vmatmul.mubr.bf16.gmra.mxu0 %v7049_v6  ;;  %v6182_v6 = vld [vmem:[%s8248_s1 + $0x9e0] ss:$12 sps:$4 sm:$0xff]   ;;  %v6256_v44 = vld [vmem:[%s8249_s0 + $0x30] ss:$72 sps:$4 sm:$0xff]   ;;  %v6196_v61 = vld [vmem:[%s8248_s1 + $0xd28] ss:$12 sps:$4 sm:$0xff]  }
 0x193   :  { %v3565_v25 = vpop.f32.mrf.mxu1  ;;  %4084 = vmatmul.mubr.bf16.gmra.mxu1 %v7057_v9  ;;  %v3505_v19 = vadd.f32 %v3504_v17, %v7629_v32  ;;  %v7893_v24 = vadd.f32 %v3561_v0, %v3501_v13  ;;  %5374 = vmatpush3.bf16.msra.mxu0 %v6175_v11  ;;  %v6184_v9 = vld [vmem:[%s8248_s1 + $0xb60] ss:$12 sps:$4 sm:$0xff]   ;;  %v6193_v48 = vld [vmem:[%s8248_s1 + $0xc98] ss:$12 sps:$4 sm:$0xff]   ;;  %v6261_v8 = vld [vmem:[%s8249_s0 + $0xc8] ss:$72 sps:$4 sm:$0xff]  }
 0x194   :  { %5408 = vmatpush3.bf16.msra.mxu1 %v6177_v21  ;;  %v3506_v38 = vpop.f32.mrf.mxu0  ;;  %5375 = vmatprep.subr.bf16.mxu0 %v6178_v1  ;;  %v6195_v60 = vld [vmem:[%s8248_s1 + $0xc80] ss:$12 sps:$4 sm:$0xff]   ;;  %v6197_v21 = vld [vmem:[%s8248_s1 + $0xc68] ss:$12 sps:$4 sm:$0xff]   ;;  %v6198_v0 = vld [vmem:[%s8248_s1 + $0xd10] ss:$12 sps:$4 sm:$0xff]  }
 0x195   :  { %v3567_v22 = vpop.f32.mrf.mxu1  ;;  %5409 = vmatprep.subr.bf16.mxu1 %v6180_v40  ;;  %v3507_v32 = vadd.f32 %v3506_v38, %v7643_v50  ;;  %v7908_v23 = vadd.f32 %v3565_v25, %v3505_v19  ;;  %4123 = vmatprep.mubr.bf16.mxu0 %v6254_v29  ;;  %v6183_v50 = vld [vmem:[%s8248_s1 + $0x920] ss:$12 sps:$4 sm:$0xff]   ;;  %v6199_v1 = vld [vmem:[%s8248_s1 + $0xc50] ss:$12 sps:$4 sm:$0xff]   ;;  %v6201_v13 = vld [vmem:[%s8248_s1 + $0xc38] ss:$12 sps:$4 sm:$0xff]  }
 0x196   :  { %4179 = vmatprep.mubr.bf16.mxu1 %v6255_v26  ;;  %v3508_v30 = vpop.f32.mrf.mxu0  ;;  %v6211_v11 = vld [vmem:[%s8251_s3 + $0x28] sm:$0xff]   ;;  %v6212_v12 = vld [vmem:[%s8251_s3 + $0x60] sm:$0xff]  }
 0x197   :  { %v3569_v28 = vpop.f32.mrf.mxu1  ;;  %v7916_v59 = vadd.f32 %v3567_v22, %v3507_v32  ;;  %5376 = vmatpush3.bf16.msra.mxu0 %v6179_v20  ;;  %v6213_v40 = vld [vmem:[%s8251_s3 + $0x20] sm:$0xff]   ;;  %v6204_v20 = vld [vmem:[%s8248_s1 + $0xcc8] ss:$12 sps:$4 sm:$0xff]  }
 0x198   :  { %5410 = vmatpush3.bf16.msra.mxu1 %v6181_v34  ;;  %5377 = vmatprep.subr.bf16.mxu0 %v6182_v6  ;;  %v3509_v37 = vpop.f32.mrf.mxu0  ;;  %v6262_v17 = vld [vmem:[%s8249_s0 + $0x44] ss:$72 sps:$4 sm:$0xff]   ;;  %v6217_v34 = vld [vmem:[%s8251_s3 + $0x10] sm:$0xff]   ;;  %v6263_v26 = vld [vmem:[%s8249_s0 + $0x40] ss:$72 sps:$4 sm:$0xff]  }
 0x199   :  { %5411 = vmatprep.subr.bf16.mxu1 %v6184_v9  ;;  %v3570_v41 = vpop.f32.mrf.mxu1  ;;  %v6202_v25 = vld [vmem:[%s8248_s1 + $0xce0] ss:$12 sps:$4 sm:$0xff]   ;;  %v6205_v22 = vld [vmem:[%s8248_s1 + $0xc08] ss:$12 sps:$4 sm:$0xff]  }
 0x19a   :  { %v6203_v19 = vld [vmem:[%s8248_s1 + $0xc20] ss:$12 sps:$4 sm:$0xff]  }
 0x19b   :  { %5378 = vmatpush3.bf16.msra.mxu0 %v6183_v50  ;;  %v6218_v38 = vld [vmem:[%s8251_s3 + $0x48] sm:$0xff]   ;;  %v6220_v9 = vld [vmem:[%s8251_s3 + $0x40] sm:$0xff]   ;;  %v6264_v50 = vld [vmem:[%s8249_s0 + $0xd4] ss:$72 sps:$4 sm:$0xff]  }
 0x19c   :  { %5412 = vmatpush3.bf16.msra.mxu1 %v6185_v35  ;;  %5379 = vmatprep.subr.bf16.mxu0 %v6186_v31  ;;  %v6219_v6 = vld [vmem:[%s8251_s3 + $0x8] sm:$0xff]   ;;  %v6221_v32 = vld [vmem:[%s8251_s3] sm:$0xff]  }
 0x19d   :  { %5413 = vmatprep.subr.bf16.mxu1 %v6188_v36 }
 0x19f   :  { %5380 = vmatpush3.bf16.msra.mxu0 %v6187_v39 }
 0x1a0   :  { %5414 = vmatpush3.bf16.msra.mxu1 %v6189_v47  ;;  %5433 = vmatprep.subr.bf16.mxu0 %v6190_v33 }
 0x1a1   :  { %5467 = vmatprep.subr.bf16.mxu1 %v6206_v4 }
 0x1a2   :  { %4124 = vmatmul.mubr.bf16.vlgmr.msra.gmra.mxu0 %v6256_v44 }
 0x1a3   :  { %4180 = vmatmul.mubr.bf16.vlgmr.msra.gmra.mxu1 %v6257_v46  ;;  %5434 = vmatpush3.bf16.msra.mxu0 %v6191_v52 }
 0x1a4   :  { %4131 = vmatprep.mubr.bf16.mxu0 %v6258_v51  ;;  %5435 = vmatprep.subr.bf16.mxu0 %v6192_v42 }
 0x1a5   :  { %4187 = vmatprep.mubr.bf16.mxu1 %v6259_v58  ;;  %5468 = vmatpush3.bf16.msra.mxu1 %v6207_v43  ;;  %v6265_v43 = vld [vmem:[%s8249_s0 + $0xd0] ss:$72 sps:$4 sm:$0xff]  }
 0x1a6   :  { %5469 = vmatprep.subr.bf16.mxu1 %v6208_v63 }
 0x1a7   :  { %5436 = vmatpush3.bf16.msra.mxu0 %v6193_v48 }
 0x1a8   :  { %5437 = vmatprep.subr.bf16.mxu0 %v6194_v49 }
 0x1a9   :  { %5470 = vmatpush3.bf16.msra.mxu1 %v6209_v14 }
 0x1aa   :  { %4132 = vmatmul.mubr.bf16.gmra.mxu0 %v6260_v7  ;;  %5471 = vmatprep.subr.bf16.mxu1 %v6210_v5 }
 0x1ab   :  { %4188 = vmatmul.mubr.bf16.gmra.mxu1 %v6261_v8  ;;  %5438 = vmatpush3.bf16.msra.mxu0 %v6195_v60 }
 0x1ac   :  { %4139 = vmatprep.mubr.bf16.mxu0 %v7288_v54  ;;  %5439 = vmatprep.subr.bf16.mxu0 %v6196_v61  ;;  %v6200_v54 = vld [vmem:[%s8248_s1 + $0xcf8] ss:$12 sps:$4 sm:$0xff]  }
 0x1ad   :  { %4195 = vmatprep.mubr.bf16.mxu1 %v7290_v55  ;;  %5472 = vmatpush3.bf16.msra.mxu1 %v6211_v11  ;;  %v6214_v55 = vld [vmem:[%s8251_s3 + $0x58] sm:$0xff]  }
 0x1ae   :  { %5473 = vmatprep.subr.bf16.mxu1 %v6212_v12 }
 0x1af   :  { %5440 = vmatpush3.bf16.msra.mxu0 %v6197_v21 }
 0x1b0   :  { %5441 = vmatprep.subr.bf16.mxu0 %v6198_v0 }
 0x1b1   :  { %5474 = vmatpush3.bf16.msra.mxu1 %v6213_v40 }
 0x1b2   :  { %4140 = vmatmul.mubr.bf16.gmra.mxu0 %v7308_v62  ;;  %v6215_v62 = vld [vmem:[%s8251_s3 + $0x18] sm:$0xff]   ;;  %5475 = vmatprep.subr.bf16.mxu1 %v6214_v55 }
 0x1b3   :  { %4196 = vmatmul.mubr.bf16.gmra.mxu1 %v7313_v2  ;;  %5442 = vmatpush3.bf16.msra.mxu0 %v6199_v1  ;;  %v6216_v2 = vld [vmem:[%s8251_s3 + $0x50] sm:$0xff]  }
 0x1b4   :  { %4235 = vmatprep.mubr.bf16.mxu0 %v6262_v17  ;;  %5443 = vmatprep.subr.bf16.mxu0 %v6200_v54 }
 0x1b5   :  { %5476 = vmatpush3.bf16.msra.mxu1 %v6215_v62 }
 0x1b6   :  { %5477 = vmatprep.subr.bf16.mxu1 %v6216_v2 }
 0x1b7   :  { %5444 = vmatpush3.bf16.msra.mxu0 %v6201_v13 }
 0x1b8   :  { %5445 = vmatprep.subr.bf16.mxu0 %v6202_v25 }
 0x1b9   :  { %5478 = vmatpush3.bf16.msra.mxu1 %v6217_v34  ;;  %v6267_v34 = vmov 0.0  }
 0x1ba   :  { %5479 = vmatprep.subr.bf16.mxu1 %v6218_v38 }
 0x1bb   :  { %5446 = vmatpush3.bf16.msra.mxu0 %v6203_v19  ;;  %v8104_v19 = vld [vmem:[%s8251_s3 + $0xb8] sm:$0xff]  }
 0x1bc   :  { %5447 = vmatprep.subr.bf16.mxu0 %v6204_v20 }
 0x1bd   :  { %5480 = vmatpush3.bf16.msra.mxu1 %v6219_v6  ;;  %v8115_v6 = vld [vmem:[%s8251_s3 + $0xb0] sm:$0xff]  }
 0x1be   :  { %5481 = vmatprep.subr.bf16.mxu1 %v6220_v9 }
 0x1bf   :  { %5448 = vmatpush3.bf16.msra.mxu0 %v6205_v22 }
 0x1c0   :  { %5512 = vmatprep.subr.bf16.mxu0 %v6267_v34 }
 0x1c1   :  { %5482 = vmatpush3.bf16.msra.mxu1 %v6221_v32 }
 0x1c2   :  { %v3606_v29 = vpop.f32.mrf.mxu0  ;;  %4236 = vmatmul.mubr.bf16.vlgmr.msra.gmra.mxu0 %v6263_v26  ;;  %5540 = vmatprep.subr.bf16.mxu1 %v6267_v34  ;;  %v8124_v26 = vld [vmem:[%s8251_s3 + $0xa8] sm:$0xff]  }
 0x1c3   :  { %v3667_v30 = vpop.f32.mrf.mxu1  ;;  %v3607_v28 = vadd.f32 %v3606_v29, %v7819_v27  ;;  %4243 = vmatprep.mubr.bf16.mxu0 %v6264_v50  ;;  %5513 = vmatpush3.bf16.msra.mxu0 %v8104_v19  ;;  %v6266_v50 = vld [vmem:[%s8250_s2] sm:$0x7] }
 0x1c4   :  { %v3608_v35 = vpop.f32.mrf.mxu0  ;;  %5514 = vmatprep.subr.bf16.mxu0 %v6267_v34 }
 0x1c5   :  { %v3669_v31 = vpop.f32.mrf.mxu1  ;;  %v3609_v36 = vadd.f32 %v3608_v35, %v7830_v45  ;;  %v8065_v37 = vadd.f32 %v3667_v30, %v3607_v28  ;;  %v8130_v30 = vld [vmem:[%s8251_s3 + $0xa0] sm:$0xff]   ;;  %v654_v28 = vsub.s32 2, %v7172_v56 }
 0x1c6   :  { %v3610_v41 = vpop.f32.mrf.mxu0 }
 0x1c7   :  { %v3671_v39 = vpop.f32.mrf.mxu1  ;;  %v3611_v47 = vadd.f32 %v3610_v41, %v7844_v53  ;;  %v8068_v33 = vadd.f32 %v3669_v31, %v3609_v36  ;;  %5515 = vmatpush3.bf16.msra.mxu0 %v8115_v6  ;;  %v8138_v35 = vrot.slane %v6266_v50, %v654_v28  ;;  %v8144_v31 = vld [vmem:[%s8251_s3 + $0x98] sm:$0xff]  }
 0x1c8   :  { %v8070_v4 = vpop.f32.mrf.mxu0  ;;  %5516 = vmatprep.subr.bf16.mxu0 %v6267_v34 }
 0x1c9   :  { %v8072_v27 = vpop.f32.mrf.mxu1  ;;  %v8074_v52 = vadd.f32 %v3671_v39, %v3611_v47  ;;  %v3613_v56 = vadd.f32 %v8070_v4, %v7853_v15 }
 0x1ca   :  { %v3616_v42 = vpop.f32.mrf.mxu0  ;;  %4244 = vmatmul.mubr.bf16.gmra.mxu0 %v6265_v43  ;;  %v8154_v43 = vld [vmem:[%s8251_s3 + $0x90] sm:$0xff]  }
 0x1cb   :  { %v3677_v45 = vpop.f32.mrf.mxu1  ;;  %v3617_v44 = vadd.f32 %v3616_v42, %v7868_v3  ;;  %4251 = vmatprep.mubr.bf16.mxu0 %v7569_v57  ;;  %5517 = vmatpush3.bf16.msra.mxu0 %v8124_v26  ;;  %v3674_v15 = vadd.f32 %v8072_v27, %v3613_v56 }
 0x1cc   :  { %v3618_v53 = vpop.f32.mrf.mxu0  ;;  %5518 = vmatprep.subr.bf16.mxu0 %v6267_v34 }
 0x1cd   :  { %v3679_v46 = vpop.f32.mrf.mxu1  ;;  %v3619_v63 = vadd.f32 %v3618_v53, %v7873_v10  ;;  %v8082_v48 = vadd.f32 %v3677_v45, %v3617_v44 }
 0x1ce   :  { %v3620_v51 = vpop.f32.mrf.mxu0 }
 0x1cf   :  { %v3681_v49 = vpop.f32.mrf.mxu1  ;;  %v3621_v58 = vadd.f32 %v3620_v51, %v7888_v18  ;;  %v8085_v14 = vadd.f32 %v3679_v46, %v3619_v63  ;;  %5519 = vmatpush3.bf16.msra.mxu0 %v8130_v30 }
 0x1d0   :  { %v8087_v60 = vpop.f32.mrf.mxu0  ;;  %5520 = vmatprep.subr.bf16.mxu0 %v6267_v34 }
 0x1d1   :  { %v8089_v61 = vpop.f32.mrf.mxu1  ;;  %v8091_v5 = vadd.f32 %v3681_v49, %v3621_v58 }
 0x1d2   :  { %v3626_v3 = vpop.f32.mrf.mxu0  ;;  %4252 = vmatmul.mubr.bf16.gmra.mxu0 %v7594_v16 }
 0x1d3   :  { %v3687_v57 = vpop.f32.mrf.mxu1  ;;  %v3627_v10 = vadd.f32 %v3626_v3, %v7908_v23  ;;  %5521 = vmatpush3.bf16.msra.mxu0 %v8144_v31  ;;  %5528 = vmatprep.mubr.msk.bf16.mxu0 %vm6268_vm0, %v6267_v34 }
 0x1d4   :  { %v8095_v7 = vpop.f32.mrf.mxu0  ;;  %5522 = vmatprep.subr.bf16.mxu0 %v6267_v34 }
 0x1d5   :  { %v8097_v8 = vpop.f32.mrf.mxu1  ;;  %v8099_v11 = vadd.f32 %v3687_v57, %v3627_v10 }
 0x1d6   :  { %v3630_v21 = vpop.f32.mrf.mxu0 }
 0x1d7   :  { %v3691_v18 = vpop.f32.mrf.mxu1  ;;  %5523 = vmatpush3.bf16.msra.mxu0 %v8154_v43 }
 0x1d8   :  { %v3631_v0 = vpop.f32.mrf.mxu0  ;;  %5524 = vmatprep.subr.bf16.mxu0 %v6267_v34 }
 0x1d9   :  { %v3692_v12 = vpop.f32.mrf.mxu1 }
 0x1e3   :  { %v5177_v1 = vpop.f32.mrf.mxu1 }
 0x1e5   :  { %v5178_v54 = vpop.f32.mrf.mxu1 }
 0x1e6   :  { %v5179_v40 = vadd.f32 %v5178_v54, %v5177_v1 }
 0x1e7   :  { %v5180_v55 = vpop.f32.mrf.mxu1 }
 0x1e8   :  { %v3790_v39 = vadd.f32 %v5179_v40, %v8138_v35 }
 0x1e9   :  { %v5181_v13 = vpop.f32.mrf.mxu1 }
 0x1ea   :  { %v5182_v17 = vadd.f32 %v5181_v13, %v5180_v55 }
 0x1eb   :  { %v5183_v16 = vpop.f32.mrf.mxu1 }
 0x1ec   :  { %v3793_v49 = vadd.f32 %v5182_v17, %v8138_v35  ;;  %v8180_v17 = vld [vmem:[%s8251_s3 + $0x80] sm:$0xff]  }
 0x1ed   :  { %v5184_v25 = vpop.f32.mrf.mxu1 }
 0x1ee   :  { %v5185_v62 = vadd.f32 %v5184_v25, %v5183_v16 }
 0x1ef   :  { %v5186_v23 = vpop.f32.mrf.mxu1 }
 0x1f1   :  { %v5187_v2 = vpop.f32.mrf.mxu1 }
 0x1f2   :  { %v8106_v20 = vadd.f32 %v5187_v2, %v5186_v23 }
 0x1f3   :  { %v5189_v38 = vpop.f32.mrf.mxu1 }
 0x1f4   :  { %v3801_v23 = vadd.f32 %v8106_v20, %v8138_v35 }
 0x1f5   :  { %v5190_v22 = vpop.f32.mrf.mxu1 }
 0x1f6   :  { %v8117_v9 = vadd.f32 %v5190_v22, %v5189_v38 }
 0x1f7   :  { %v5192_v32 = vpop.f32.mrf.mxu1 }
 0x1f9   :  { %v5193_v29 = vpop.f32.mrf.mxu1 }
 0x202   :  { %v3728_v36 = vpop.f32.mrf.mxu0 }
 0x203   :  { %v5211_v41 = vpop.f32.mrf.mxu1  ;;  %v3729_v45 = vadd.f32 %v3728_v36, %v8065_v37  ;;  %v8168_v37 = vld [vmem:[%s8251_s3 + $0x88] sm:$0xff]  }
 0x204   :  { %v3730_v47 = vpop.f32.mrf.mxu0  ;;  %5525 = vmatpush3.bf16.msra.mxu0 %v8168_v37 }
 0x205   :  { %v5212_v42 = vpop.f32.mrf.mxu1  ;;  %v3731_v4 = vadd.f32 %v3730_v47, %v8068_v33  ;;  %v4259_v57 = vmax.f32 %v3729_v45, 0.0  ;;  %v3623_v33 = vadd.f32 %v8087_v60, %v7893_v24  ;;  %5526 = vmatprep.subr.bf16.mxu0 %v6267_v34 }
 0x206   :  { %v5213_v44 = vadd.f32 %v5212_v42, %v5211_v41  ;;  %v3732_v53 = vpop.f32.mrf.mxu0 }
 0x207   :  { %v5214_v46 = vpop.f32.mrf.mxu1  ;;  %v3733_v51 = vadd.f32 %v3732_v53, %v8074_v52  ;;  %v3798_v52 = vadd.f32 %v5185_v62, %v8138_v35  ;;  %v4260_v0 = vmax.f32 %v3731_v4, 0.0  ;;  %v3684_v25 = vadd.f32 %v8089_v61, %v3623_v33 }
 0x208   :  { %v8160_v63 = vadd.f32 %v5213_v44, %v3790_v39  ;;  %v3734_v58 = vpop.f32.mrf.mxu0  ;;  %v3629_v62 = vadd.f32 %v8095_v7, %v7916_v59  ;;  %5527 = vmatpush3.bf16.msra.mxu0 %v8180_v17 }
 0x209   :  { %v5215_v3 = vpop.f32.mrf.mxu1  ;;  %v4262_v10 = vmax.f32 %v3733_v51, 0.0  ;;  %v3735_v27 = vadd.f32 %v3734_v58, %v3674_v15 }
 0x20a   :  { %v5216_v18 = vadd.f32 %v5215_v3, %v5214_v46  ;;  %v3738_v21 = vpop.f32.mrf.mxu0 }
 0x20b   :  { %v5217_v12 = vpop.f32.mrf.mxu1  ;;  %v4274_v1 = vpack.c.bf16 %v4262_v10, %v4259_v57  ;;  %v4263_v54 = vmax.f32 %v3735_v27, 0.0  ;;  %v3739_v60 = vadd.f32 %v3738_v21, %v8082_v48 }
 0x20c   :  { %v8174_v40 = vadd.f32 %v5216_v18, %v3793_v49  ;;  %v3740_v55 = vpop.f32.mrf.mxu0 }
 0x20d   :  { %v5218_v13 = vpop.f32.mrf.mxu1  ;;  %v4275_v24 = vpack.c.bf16 %v4263_v54, %v4260_v0  ;;  %v3741_v22 = vadd.f32 %v3740_v55, %v8085_v14  ;;  %v4265_v59 = vmax.f32 %v3739_v60, 0.0  ;;  %v3690_v14 = vadd.f32 %v8097_v8, %v3629_v62 }
 0x20e   :  { %v5219_v16 = vadd.f32 %v5218_v13, %v5217_v12  ;;  %v3742_v2 = vpop.f32.mrf.mxu0 }
 0x20f   :  { %v5220_v38 = vpop.f32.mrf.mxu1  ;;  %v3743_v32 = vadd.f32 %v3742_v2, %v8091_v5  ;;  %4514 = vmatprep.mubr.bf16.mxu1 %v4275_v24  ;;  %v3806_v5 = vadd.f32 %v8117_v9, %v8138_v35  ;;  %v4266_v41 = vmax.f32 %v3741_v22, 0.0 }
 0x210   :  { %v8191_v29 = vadd.f32 %v5219_v16, %v3798_v52  ;;  %v3744_v48 = vpop.f32.mrf.mxu0  ;;  %4515 = vmatmul.mubr.bf16.vlgmr.msra.gmra.mxu1 %v4274_v1 }
 0x211   :  { %v5221_v61 = vpop.f32.mrf.mxu1  ;;  %v4268_v7 = vmax.f32 %v3743_v32, 0.0  ;;  %v3745_v20 = vadd.f32 %v3744_v48, %v3684_v25  ;;  %5548 = vmatpush3.bf16.msra.mxu1 %v8104_v19 }
 0x212   :  { %v5222_v28 = vadd.f32 %v5221_v61, %v5220_v38  ;;  %v3748_v50 = vpop.f32.mrf.mxu0  ;;  %5541 = vmatprep.subr.bf16.mxu1 %v6267_v34 }
 0x213   :  { %v5223_v36 = vpop.f32.mrf.mxu1  ;;  %v4277_v56 = vpack.c.bf16 %v4268_v7, %v4265_v59  ;;  %v4269_v39 = vmax.f32 %v3745_v20, 0.0  ;;  %v3749_v8 = vadd.f32 %v3748_v50, %v8099_v11 }
 0x214   :  { %v8200_v47 = vadd.f32 %v5222_v28, %v3801_v23  ;;  %v3750_v42 = vpop.f32.mrf.mxu0 }
 0x215   :  { %v5224_v45 = vpop.f32.mrf.mxu1  ;;  %v4278_v44 = vpack.c.bf16 %v4269_v39, %v4266_v41  ;;  %v3751_v53 = vadd.f32 %v3750_v42, %v3690_v14  ;;  %5549 = vmatpush3.bf16.msra.mxu1 %v8115_v6  ;;  %v4271_v58 = vmax.f32 %v3749_v8, 0.0 }
 0x216   :  { %v5225_v46 = vadd.f32 %v5224_v45, %v5223_v36  ;;  %v3752_v19 = vpop.f32.mrf.mxu0  ;;  %5542 = vmatprep.subr.bf16.mxu1 %v6267_v34 }
 0x217   :  { %v5226_v9 = vpop.f32.mrf.mxu1  ;;  %v4272_v35 = vmax.f32 %v3751_v53, 0.0  ;;  %4522 = vmatprep.mubr.bf16.mxu1 %v4278_v44  ;;  %v4280_v11 = vpack.c.bf16 %v4271_v58, %v4271_v58 }
 0x218   :  { %v3862_v15 = vadd.f32 %v5225_v46, %v3806_v5  ;;  %4523 = vmatmul.mubr.bf16.gmra.mxu1 %v4277_v56  ;;  %v3753_v4 = vpop.f32.mrf.mxu0 }
 0x219   :  { %v5227_v51 = vpop.f32.mrf.mxu1  ;;  %v4281_v49 = vpack.c.bf16 %v4272_v35, %v4272_v35  ;;  %5550 = vmatpush3.bf16.msra.mxu1 %v8124_v26 }
 0x21a   :  { %5543 = vmatprep.subr.bf16.mxu1 %v6267_v34 }
 0x21b   :  { %4530 = vmatprep.mubr.bf16.mxu1 %v4281_v49 }
 0x21d   :  { %5551 = vmatpush3.bf16.msra.mxu1 %v8130_v30 }
 0x21e   :  { %5544 = vmatprep.subr.bf16.mxu1 %v6267_v34 }
 0x220   :  { %4531 = vmatmul.mubr.bf16.gmra.mxu1 %v4280_v11 }
 0x221   :  { %5552 = vmatpush3.bf16.msra.mxu1 %v8144_v31  ;;  %5532 = vmatprep.mubr.msk.bf16.mxu1 %vm6268_vm0, %v6267_v34 }
 0x222   :  { %v5245_v6 = vpop.f32.mrf.mxu0  ;;  %5545 = vmatprep.subr.bf16.mxu1 %v6267_v34 }
 0x223   :  { %v5279_v3 = vpop.f32.mrf.mxu1 }
 0x224   :  { %v5246_v26 = vpop.f32.mrf.mxu0 }
 0x225   :  { %v5280_v57 = vpop.f32.mrf.mxu1  ;;  %v5247_v10 = vadd.f32 %v5246_v26, %v5245_v6  ;;  %5553 = vmatpush3.bf16.msra.mxu1 %v8154_v43 }
 0x226   :  { %v5281_v27 = vadd.f32 %v5280_v57, %v5279_v3  ;;  %v5248_v30 = vpop.f32.mrf.mxu0  ;;  %5546 = vmatprep.subr.bf16.mxu1 %v6267_v34 }
 0x227   :  { %v5282_v18 = vpop.f32.mrf.mxu1  ;;  %v3902_v33 = vadd.f32 %v5247_v10, %v8160_v63 }
 0x228   :  { %v5249_v31 = vpop.f32.mrf.mxu0 }
 0x229   :  { %v5283_v52 = vpop.f32.mrf.mxu1  ;;  %v3958_v21 = vadd.f32 %v5281_v27, %v3902_v33  ;;  %v5250_v12 = vadd.f32 %v5249_v31, %v5248_v30  ;;  %5554 = vmatpush3.bf16.msra.mxu1 %v8168_v37 }
 0x22a   :  { %v5284_v0 = vadd.f32 %v5283_v52, %v5282_v18  ;;  %v5251_v1 = vpop.f32.mrf.mxu0  ;;  %5547 = vmatprep.subr.bf16.mxu1 %v6267_v34 }
 0x22b   :  { %v5285_v54 = vpop.f32.mrf.mxu1  ;;  %v3905_v55 = vadd.f32 %v5250_v12, %v8174_v40 }
 0x22c   :  { %v5252_v43 = vpop.f32.mrf.mxu0 }
 0x22d   :  { %v5286_v13 = vpop.f32.mrf.mxu1  ;;  %v8219_v24 = vadd.f32 %v5284_v0, %v3905_v55  ;;  %v5253_v60 = vadd.f32 %v5252_v43, %v5251_v1  ;;  %5555 = vmatpush3.bf16.msra.mxu1 %v8180_v17 }
 0x22e   :  { %v5287_v16 = vadd.f32 %v5286_v13, %v5285_v54  ;;  %v5254_v63 = vpop.f32.mrf.mxu0 }
 0x22f   :  { %v5288_v25 = vpop.f32.mrf.mxu1  ;;  %v3910_v62 = vadd.f32 %v5253_v60, %v8191_v29 }
 0x230   :  { %v5255_v23 = vpop.f32.mrf.mxu0 }
 0x231   :  { %v5289_v37 = vpop.f32.mrf.mxu1  ;;  %v3966_v2 = vadd.f32 %v5287_v16, %v3910_v62  ;;  %v5256_v38 = vadd.f32 %v5255_v23, %v5254_v63 }
 0x232   :  { %v5290_v22 = vadd.f32 %v5289_v37, %v5288_v25  ;;  %v5257_v32 = vpop.f32.mrf.mxu0 }
 0x233   :  { %v5291_v48 = vpop.f32.mrf.mxu1  ;;  %v3913_v40 = vadd.f32 %v5256_v38, %v8200_v47 }
 0x234   :  { %v5258_v61 = vpop.f32.mrf.mxu0 }
 0x235   :  { %v5292_v59 = vpop.f32.mrf.mxu1  ;;  %v8224_v7 = vadd.f32 %v5290_v22, %v3913_v40  ;;  %v5259_v20 = vadd.f32 %v5258_v61, %v5257_v32 }
 0x236   :  { %v5293_v28 = vadd.f32 %v5292_v59, %v5291_v48  ;;  %v5260_v17 = vpop.f32.mrf.mxu0 }
 0x237   :  { %v5294_v14 = vpop.f32.mrf.mxu1  ;;  %v3918_v5 = vadd.f32 %v5259_v20, %v3862_v15 }
 0x238   :  { %v5261_v50 = vpop.f32.mrf.mxu0 }
 0x239   :  { %v5295_v29 = vpop.f32.mrf.mxu1  ;;  %v3974_v36 = vadd.f32 %v5293_v28, %v3918_v5 }
 0x242   :  { %v5313_v41 = vpop.f32.mrf.mxu0 }
 0x243   :  { %v5347_v56 = vpop.f32.mrf.mxu1 }
 0x244   :  { %v5314_v39 = vpop.f32.mrf.mxu0 }
 0x245   :  { %v5348_v42 = vpop.f32.mrf.mxu1  ;;  %v5315_v45 = vadd.f32 %v5314_v39, %v5313_v41 }
 0x246   :  { %v5349_v44 = vadd.f32 %v5348_v42, %v5347_v56  ;;  %v5316_v53 = vpop.f32.mrf.mxu0 }
 0x247   :  { %v5350_v47 = vpop.f32.mrf.mxu1  ;;  %v4014_v46 = vadd.f32 %v5315_v45, %v3958_v21 }
 0x248   :  { %v5317_v8 = vpop.f32.mrf.mxu0 }
 0x249   :  { %v5351_v19 = vpop.f32.mrf.mxu1  ;;  %v4070_v9 = vadd.f32 %v5349_v44, %v4014_v46 }
 0x24a   :  { %v5319_v35 = vpop.f32.mrf.mxu0  ;;  %v5352_v56 = vadd.f32 %v5351_v19, %v5350_v47 }
 0x24b   :  { %v5353_v4 = vpop.f32.mrf.mxu1 }
 0x24c   :  { %v5320_v51 = vpop.f32.mrf.mxu0 }
 0x24d   :  { %v5354_v49 = vpop.f32.mrf.mxu1  ;;  %v5321_v15 = vadd.f32 %v5320_v51, %v5319_v35 }
 0x24e   :  { %v5355_v58 = vadd.f32 %v5354_v49, %v5353_v4  ;;  %v5322_v11 = vpop.f32.mrf.mxu0 }
 0x24f   :  { %v5356_v6 = vpop.f32.mrf.mxu1  ;;  %v4022_v3 = vadd.f32 %v5321_v15, %v3966_v2 }
 0x250   :  { %v5323_v26 = vpop.f32.mrf.mxu0 }
 0x251   :  { %v5357_v57 = vpop.f32.mrf.mxu1  ;;  %v8226_v10 = vadd.f32 %v5355_v58, %v4022_v3  ;;  %v5324_v45 = vadd.f32 %v5323_v26, %v5322_v11 }
 0x252   :  { %v5325_v27 = vpop.f32.mrf.mxu0 }
 0x253   :  { %v5359_v30 = vpop.f32.mrf.mxu1  ;;  %v4025_v3 = vadd.f32 %v5324_v45, %v8224_v7 }
 0x254   :  { %v5326_v18 = vpop.f32.mrf.mxu0 }
 0x255   :  { %v5360_v33 = vpop.f32.mrf.mxu1  ;;  %v5327_v31 = vadd.f32 %v5326_v18, %v5325_v27  ;;  %v5358_v27 = vadd.f32 %v5357_v57, %v5356_v6 }
 0x256   :  { %v5361_v52 = vadd.f32 %v5360_v33, %v5359_v30  ;;  %v5328_v21 = vpop.f32.mrf.mxu0 }
 0x257   :  { %v5362_v12 = vpop.f32.mrf.mxu1  ;;  %v4030_v0 = vadd.f32 %v5327_v31, %v3974_v36  ;;  %v5318_v36 = vadd.f32 %v5317_v8, %v5316_v53  ;;  %v4081_v11 = vadd.f32 %v5358_v27, %v4025_v3 }
 0x258   :  { %v5329_v1 = vpop.f32.mrf.mxu0 }
 0x259   :  { %v5363_v54 = vpop.f32.mrf.mxu1  ;;  %v8228_v55 = vadd.f32 %v5361_v52, %v4030_v0  ;;  %v4017_v41 = vadd.f32 %v5318_v36, %v8219_v24 }
 0x25b   :  { %v4073_v46 = vadd.f32 %v5352_v56, %v4017_v41 }
 0x262   :  { %v5381_v43 = vpop.f32.mrf.mxu0 }
 0x263   :  { %v5415_v13 = vpop.f32.mrf.mxu1 }
 0x264   :  { %v5382_v60 = vpop.f32.mrf.mxu0 }
 0x265   :  { %v5416_v16 = vpop.f32.mrf.mxu1  ;;  %v5383_v39 = vadd.f32 %v5382_v60, %v5381_v43 }
 0x266   :  { %v5384_v63 = vpop.f32.mrf.mxu0  ;;  %v5417_v4 = vadd.f32 %v5416_v16, %v5415_v13 }
 0x267   :  { %v5418_v25 = vpop.f32.mrf.mxu1  ;;  %v4126_v35 = vadd.f32 %v5383_v39, %v4070_v9 }
 0x268   :  { %v5385_v62 = vpop.f32.mrf.mxu0 }
 0x269   :  { %v5419_v23 = vpop.f32.mrf.mxu1  ;;  %v5386_v42 = vadd.f32 %v5385_v62, %v5384_v63  ;;  %v4182_v18 = vadd.f32 %v5417_v4, %v4126_v35 }
 0x26a   :  { %v5387_v37 = vpop.f32.mrf.mxu0  ;;  %v5420_v15 = vadd.f32 %v5419_v23, %v5418_v25 }
 0x26b   :  { %v5421_v2 = vpop.f32.mrf.mxu1  ;;  %v4129_v49 = vadd.f32 %v5386_v42, %v4073_v46 }
 0x26c   :  { %v5388_v38 = vpop.f32.mrf.mxu0 }
 0x26d   :  { %v5422_v22 = vpop.f32.mrf.mxu1  ;;  %v5389_v53 = vadd.f32 %v5388_v38, %v5387_v37  ;;  %v4185_v47 = vadd.f32 %v5420_v15, %v4129_v49  ;;  %v5115_v49 = vld [vmem:[%s8252_s4] ss:$0 sm:$0xff] }
 0x26e   :  { %v5390_v32 = vpop.f32.mrf.mxu0  ;;  %v5423_v31 = vadd.f32 %v5422_v22, %v5421_v2 }
 0x26f   :  { %v5424_v48 = vpop.f32.mrf.mxu1  ;;  %v4134_v9 = vadd.f32 %v5389_v53, %v8226_v10 }
 0x270   :  { %v5391_v40 = vpop.f32.mrf.mxu0 }
 0x271   :  { %v5425_v61 = vpop.f32.mrf.mxu1  ;;  %v5392_v8 = vadd.f32 %v5391_v40, %v5390_v32  ;;  %v4190_v43 = vadd.f32 %v5423_v31, %v4134_v9 }
 0x272   :  { %v5393_v59 = vpop.f32.mrf.mxu0  ;;  %v5426_v12 = vadd.f32 %v5425_v61, %v5424_v48 }
 0x273   :  { %v5427_v20 = vpop.f32.mrf.mxu1  ;;  %v4137_v21 = vadd.f32 %v5392_v8, %v4081_v11 }
 0x274   :  { %v5394_v28 = vpop.f32.mrf.mxu0 }
 0x275   :  { %v5428_v17 = vpop.f32.mrf.mxu1  ;;  %v5395_v1 = vadd.f32 %v5394_v28, %v5393_v59  ;;  %v4193_v60 = vadd.f32 %v5426_v12, %v4137_v21 }
 0x276   :  { %v5396_v14 = vpop.f32.mrf.mxu0  ;;  %v5429_v25 = vadd.f32 %v5428_v17, %v5427_v20 }
 0x277   :  { %v5430_v5 = vpop.f32.mrf.mxu1  ;;  %v4142_v63 = vadd.f32 %v5395_v1, %v8228_v55 }
 0x278   :  { %v5397_v50 = vpop.f32.mrf.mxu0 }
 0x279   :  { %v5431_v29 = vpop.f32.mrf.mxu1  ;;  %v4198_v38 = vadd.f32 %v5429_v25, %v4142_v63 }
 0x282   :  { %v5449_v44 = vpop.f32.mrf.mxu0 }
 0x284   :  { %v5450_v51 = vpop.f32.mrf.mxu0 }
 0x285   :  { %v5451_v58 = vadd.f32 %v5450_v51, %v5449_v44 }
 0x286   :  { %v5452_v30 = vpop.f32.mrf.mxu0 }
 0x287   :  { %v4238_v19 = vadd.f32 %v5451_v58, %v4182_v18 }
 0x288   :  { %v5453_v24 = vpop.f32.mrf.mxu0 }
 0x289   :  { %v5454_v33 = vadd.f32 %v5453_v24, %v5452_v30  ;;  %v4261_v7 = vmax.f32 %v4238_v19, 0.0 }
 0x28a   :  { %v5455_v26 = vpop.f32.mrf.mxu0 }
 0x28b   :  { %v4241_v52 = vadd.f32 %v5454_v33, %v4185_v47 }
 0x28c   :  { %v5456_v0 = vpop.f32.mrf.mxu0 }
 0x28d   :  { %v4264_v6 = vmax.f32 %v4241_v52, 0.0  ;;  %v5457_v57 = vadd.f32 %v5456_v0, %v5455_v26 }
 0x28e   :  { %v5458_v54 = vpop.f32.mrf.mxu0 }
 0x28f   :  { %v4276_v13 = vpack.c.bf16 %v4264_v6, %v4261_v7  ;;  %v4246_v62 = vadd.f32 %v5457_v57, %v4190_v43 }
 0x290   :  { %v5459_v16 = vpop.f32.mrf.mxu0 }
 0x291   :  { %v5460_v23 = vadd.f32 %v5459_v16, %v5458_v54  ;;  %5529 = vmatmul.mubr.bf16.vlgmr.msra.gmra.mxu0 %v4276_v13  ;;  %v4267_v22 = vmax.f32 %v4246_v62, 0.0 }
 0x292   :  { %v5461_v10 = vpop.f32.mrf.mxu0 }
 0x293   :  { %v4249_v37 = vadd.f32 %v5460_v23, %v4193_v60 }
 0x294   :  { %v5462_v2 = vpop.f32.mrf.mxu0 }
 0x295   :  { %v4270_v32 = vmax.f32 %v4249_v37, 0.0  ;;  %v5463_v48 = vadd.f32 %v5462_v2, %v5461_v10 }
 0x296   :  { %v5464_v40 = vpop.f32.mrf.mxu0 }
 0x297   :  { %v4279_v61 = vpack.c.bf16 %v4270_v32, %v4267_v22  ;;  %v4254_v59 = vadd.f32 %v5463_v48, %v4198_v38 }
 0x298   :  { %v5465_v28 = vpop.f32.mrf.mxu0 }
 0x299   :  { %5533 = vmatmul.mubr.bf16.vlgmr.msra.gmra.mxu1 %v4279_v61  ;;  %v4273_v55 = vmax.f32 %v4254_v59, 0.0 }
 0x29a   :  { %5536 = vmatprep.mubr.msk.bf16.mxu1 %vm6268_vm0, %v6267_v34 }
 0x29b   :  { %v4282_v20 = vpack.c.bf16 %v4273_v55, %v4273_v55 }
 0x2a1   :  { %5537 = vmatmul.mubr.bf16.gmra.mxu1 %v4282_v20 }
 0x2d0   :  { %v5483_v17 = vpop.f32.mrf.mxu1 }
 0x2d2   :  { %v5484_v14 = vpop.f32.mrf.mxu1 }
 0x2d3   :  { %v5485_v5 = vadd.f32 %v5484_v14, %v5483_v17 }
 0x2d4   :  { %v5486_v50 = vpop.f32.mrf.mxu1 }
 0x2d5   :  { %v4517_v58 = vadd.f32 %v5485_v5, %v5115_v49 }
 0x2d6   :  { %v5487_v29 = vpop.f32.mrf.mxu1 }
 0x2d7   :  { %v5488_v36 = vadd.f32 %v5487_v29, %v5486_v50 }
 0x2d8   :  { %v5489_v41 = vpop.f32.mrf.mxu1 }
 0x2d9   :  { %v4520_v30 = vadd.f32 %v5488_v36, %v5115_v49 }
 0x2da   :  { %v5490_v56 = vpop.f32.mrf.mxu1 }
 0x2db   :  { %v5491_v39 = vadd.f32 %v5490_v56, %v5489_v41 }
 0x2dc   :  { %v5492_v42 = vpop.f32.mrf.mxu1 }
 0x2dd   :  { %v4525_v11 = vadd.f32 %v5491_v39, %v5115_v49 }
 0x2de   :  { %v5493_v45 = vpop.f32.mrf.mxu1 }
 0x2df   :  { %v5494_v44 = vadd.f32 %v5493_v45, %v5492_v42 }
 0x2e0   :  { %v5495_v46 = vpop.f32.mrf.mxu1 }
 0x2e1   :  { %v4528_v31 = vadd.f32 %v5494_v44, %v5115_v49 }
 0x2e2   :  { %v5496_v35 = vpop.f32.mrf.mxu1 }
 0x2e3   :  { %v5497_v4 = vadd.f32 %v5496_v35, %v5495_v46 }
 0x2e4   :  { %v5498_v51 = vpop.f32.mrf.mxu1 }
 0x2e5   :  { %v4533_v7 = vadd.f32 %v5497_v4, %v5115_v49 }
 0x2e6   :  { %v5499_v34 = vpop.f32.mrf.mxu1 }
 0x351   :  { %v4572_v15 = vpop.f32.mrf.mxu0 }
 0x352   :  { %v4573_v27 = vadd.f32 %v4572_v15, %v4517_v58 }
 0x353   :  { %v5530_v3 = vpop.f32.mrf.mxu0 }
 0x354   :  { %v4594_v24 = vmax.f32 %v4573_v27, 0.0 }
 0x355   :  { %v4575_v18 = vpop.f32.mrf.mxu0 }
 0x356   :  { %v4576_v53 = vadd.f32 %v4575_v18, %v4520_v30 }
 0x357   :  { %v5531_v8 = vpop.f32.mrf.mxu0 }
 0x358   :  { %v4595_v47 = vmax.f32 %v4576_v53, 0.0 }
 0x359   :  { %v4580_v19 = vpop.f32.mrf.mxu1 }
 0x35a   :  { %v5153_v33 = vpack.c.bf16 %v4595_v47, %v4594_v24  ;;  %v4581_v9 = vadd.f32 %v4580_v19, %v4525_v11 }
 0x35b   :  { %v5534_v26 = vpop.f32.mrf.mxu1 }
 0x35c   :  { %5154 = vst [vmem:[%s8253_s5] sm:$0xff] %v5153_v33   ;;  %v4596_v0 = vmax.f32 %v4581_v9, 0.0 }
 0x35d   :  { %v4583_v52 = vpop.f32.mrf.mxu1 }
 0x35e   :  { %v4584_v21 = vadd.f32 %v4583_v52, %v4528_v31 }
 0x35f   :  { %v5535_v12 = vpop.f32.mrf.mxu1 }
 0x360   :  { %v4597_v1 = vmax.f32 %v4584_v21, 0.0 }
 0x361   :  { %v4588_v6 = vpop.f32.mrf.mxu1 }
 0x362   :  { %v5158_v57 = vpack.c.bf16 %v4597_v1, %v4596_v0  ;;  %v4589_v54 = vadd.f32 %v4588_v6, %v4533_v7 }
 0x363   :  { %v5538_v43 = vpop.f32.mrf.mxu1 }
 0x364   :  { %5160 = vst [vmem:[%s8253_s5 + $0x8] sm:$0xff] %v5158_v57   ;;  %v4598_v13 = vmax.f32 %v4589_v54, 0.0 }
 0x365   :  { %v4591_v60 = vpop.f32.mrf.mxu1 }
 0x366   :  { %v5149_v16 = vpack.c.bf16 %v4598_v13, %v4598_v13 }
 0x367   :  { %v5539_v63 = vpop.f32.mrf.mxu1 }
 0x368   :  { %4624 = vst [vmem:[%s8253_s5 + $0x10] sm:$0xf] %v5149_v16 }

// kernel: eye_patch_model_forward.11
= control target key start
LH: loop header
LB: loop body
LE: loop exit
PB: predicated region body
PF: predicated region fallthrough
CT: control target
= control target key end

     0   :  { %vm2701_vm0 = vmmov 0   ;;  %s3330_s1 = inlined_call_operand.vmem [shape: bf16[2560,128], index: 1, kind: input, shape index: {}]   ;;  %s3331_s0 = inlined_call_operand.vmem [shape: bf16[8,2560], index: 0, kind: input, shape index: {}]   ;;  %s3332_s3 = inlined_call_operand.vmem [shape: bf16[128,128], index: 3, kind: input, shape index: {}]   ;;  %s3333_s2 = inlined_call_operand.vmem [shape: f32[1,128], index: 2, kind: input, shape index: {}]   ;;  %s3334_s5 = inlined_call_operand.vmem [shape: bf16[128,128], index: 5, kind: input, shape index: {}]   ;;  %s3335_s4 = inlined_call_operand.vmem [shape: f32[1,128], index: 4, kind: input, shape index: {}]   ;;  %s3336_s6 = inlined_call_operand.vmem [shape: f32[1,128], index: 6, kind: input, shape index: {}]   ;;  %s3337_s7 = inlined_call_operand.vmem [shape: f32[8,128], index: 7, kind: output, shape index: {}]  }
   0x1   :  { %v2504_v0 = vld [vmem:[%s3330_s1 + $0x78] sm:$0xff]   ;;  %v2508_v4 = vld [vmem:[%s3330_s1 + $0x70] sm:$0xff]   ;;  %v2512_v8 = vld [vmem:[%s3330_s1 + $0x68] sm:$0xff]  }
   0x2   :  { %v2505_v1 = vld [vmem:[%s3330_s1 + $0xf8] sm:$0xff]   ;;  %2224 = vmatprep.subr.bf16.mxu0 %v2504_v0  ;;  %v2509_v5 = vld [vmem:[%s3330_s1 + $0xf0] sm:$0xff]   ;;  %v2513_v9 = vld [vmem:[%s3330_s1 + $0xe8] sm:$0xff]  }
   0x3   :  { %v2506_v2 = vld [vmem:[%s3330_s1 + $0x38] sm:$0xff]   ;;  %2246 = vmatprep.subr.bf16.mxu1 %v2505_v1  ;;  %v2510_v6 = vld [vmem:[%s3330_s1 + $0x30] sm:$0xff]   ;;  %v2514_v10 = vld [vmem:[%s3330_s1 + $0x28] sm:$0xff]  }
   0x4   :  { %v2507_v3 = vld [vmem:[%s3330_s1 + $0xb8] sm:$0xff]   ;;  %2225 = vmatpush3.bf16.msra.mxu0 %v2506_v2  ;;  %v2511_v7 = vld [vmem:[%s3330_s1 + $0xb0] sm:$0xff]   ;;  %v2515_v11 = vld [vmem:[%s3330_s1 + $0xa8] sm:$0xff]  }
   0x5   :  { %2247 = vmatpush3.bf16.msra.mxu1 %v2507_v3  ;;  %2226 = vmatprep.subr.bf16.mxu0 %v2508_v4  ;;  %v2516_v12 = vld [vmem:[%s3330_s1 + $0x60] sm:$0xff]   ;;  %v2520_v16 = vld [vmem:[%s3330_s1 + $0x58] sm:$0xff]   ;;  %v2524_v20 = vld [vmem:[%s3330_s1 + $0x50] sm:$0xff]  }
   0x6   :  { %2248 = vmatprep.subr.bf16.mxu1 %v2509_v5  ;;  %v2517_v13 = vld [vmem:[%s3330_s1 + $0xe0] sm:$0xff]   ;;  %v2521_v17 = vld [vmem:[%s3330_s1 + $0xd8] sm:$0xff]   ;;  %v2525_v21 = vld [vmem:[%s3330_s1 + $0xd0] sm:$0xff]  }
   0x7   :  { %v2518_v14 = vld [vmem:[%s3330_s1 + $0x20] sm:$0xff]   ;;  %v2522_v18 = vld [vmem:[%s3330_s1 + $0x18] sm:$0xff]   ;;  %v2526_v22 = vld [vmem:[%s3330_s1 + $0x10] sm:$0xff]  }
   0x8   :  { %2227 = vmatpush3.bf16.msra.mxu0 %v2510_v6  ;;  %v2519_v15 = vld [vmem:[%s3330_s1 + $0xa0] sm:$0xff]   ;;  %v2523_v19 = vld [vmem:[%s3330_s1 + $0x98] sm:$0xff]   ;;  %v2527_v23 = vld [vmem:[%s3330_s1 + $0x90] sm:$0xff]  }
   0x9   :  { %2249 = vmatpush3.bf16.msra.mxu1 %v2511_v7  ;;  %2228 = vmatprep.subr.bf16.mxu0 %v2512_v8  ;;  %v2528_v24 = vld [vmem:[%s3330_s1 + $0x48] sm:$0xff]   ;;  %v2532_v28 = vld [vmem:[%s3330_s1 + $0x40] sm:$0xff]   ;;  %v2540_v38 = vld [vmem:[%s3330_s1 + $0x178] sm:$0xff]  }
   0xa   :  { %2250 = vmatprep.subr.bf16.mxu1 %v2513_v9  ;;  %v2529_v25 = vld [vmem:[%s3330_s1 + $0xc8] sm:$0xff]   ;;  %v2533_v29 = vld [vmem:[%s3330_s1 + $0xc0] sm:$0xff]   ;;  %v2541_v39 = vld [vmem:[%s3330_s1 + $0x1f8] sm:$0xff]  }
   0xb   :  { %v2530_v26 = vld [vmem:[%s3330_s1 + $0x8] sm:$0xff]   ;;  %v2534_v30 = vld [vmem:[%s3330_s1] sm:$0xff]   ;;  %v2542_v40 = vld [vmem:[%s3330_s1 + $0x138] sm:$0xff]  }
   0xc   :  { %2229 = vmatpush3.bf16.msra.mxu0 %v2514_v10  ;;  %v2531_v27 = vld [vmem:[%s3330_s1 + $0x88] sm:$0xff]   ;;  %v2535_v31 = vld [vmem:[%s3330_s1 + $0x80] sm:$0xff]   ;;  %v2543_v41 = vld [vmem:[%s3330_s1 + $0x1b8] sm:$0xff]  }
   0xd   :  { %2251 = vmatpush3.bf16.msra.mxu1 %v2515_v11  ;;  %2230 = vmatprep.subr.bf16.mxu0 %v2516_v12  ;;  %v27_v32 = vld [vmem:[%s3331_s0] sm:$0xff]  ;;  %v28_v33 = vld [vmem:[%s3331_s0 + $0x8] sm:$0xff]  ;;  %v2544_v42 = vld [vmem:[%s3330_s1 + $0x170] sm:$0xff]  }
   0xe   :  { %2252 = vmatprep.subr.bf16.mxu1 %v2517_v13  ;;  %v2026_v34 = vcombine.low %v27_v32, %v27_v32  ;;  %v2027_v35 = vcombine.high %v27_v32, %v27_v32  ;;  %v2028_v36 = vcombine.low %v28_v33, %v28_v33  ;;  %v2029_v37 = vcombine.high %v28_v33, %v28_v33  ;;  %v2545_v43 = vld [vmem:[%s3330_s1 + $0x1f0] sm:$0xff]   ;;  %v2548_v46 = vld [vmem:[%s3330_s1 + $0x168] sm:$0xff]   ;;  %v2552_v50 = vld [vmem:[%s3330_s1 + $0x160] sm:$0xff]  }
   0xf   :  { %v2546_v44 = vld [vmem:[%s3330_s1 + $0x130] sm:$0xff]   ;;  %v2549_v47 = vld [vmem:[%s3330_s1 + $0x1e8] sm:$0xff]   ;;  %v2553_v51 = vld [vmem:[%s3330_s1 + $0x1e0] sm:$0xff]  }
  0x10   :  { %2231 = vmatpush3.bf16.msra.mxu0 %v2518_v14  ;;  %1426 = vmatprep.mubr.bf16.mxu0 %v2027_v35  ;;  %v2547_v45 = vld [vmem:[%s3330_s1 + $0x1b0] sm:$0xff]   ;;  %v2550_v48 = vld [vmem:[%s3330_s1 + $0x128] sm:$0xff]   ;;  %v2554_v52 = vld [vmem:[%s3330_s1 + $0x120] sm:$0xff]  }
  0x11   :  { %2253 = vmatpush3.bf16.msra.mxu1 %v2519_v15  ;;  %2232 = vmatprep.subr.bf16.mxu0 %v2520_v16  ;;  %v2551_v49 = vld [vmem:[%s3330_s1 + $0x1a8] sm:$0xff]   ;;  %v2555_v53 = vld [vmem:[%s3330_s1 + $0x1a0] sm:$0xff]   ;;  %v2556_v54 = vld [vmem:[%s3330_s1 + $0x158] sm:$0xff]  }
  0x12   :  { %2254 = vmatprep.subr.bf16.mxu1 %v2521_v17  ;;  %1466 = vmatprep.mubr.bf16.mxu1 %v2029_v37  ;;  %v2557_v55 = vld [vmem:[%s3330_s1 + $0x1d8] sm:$0xff]   ;;  %v2560_v58 = vld [vmem:[%s3330_s1 + $0x150] sm:$0xff]   ;;  %v2564_v62 = vld [vmem:[%s3330_s1 + $0x148] sm:$0xff]  }
  0x13   :  { %v2558_v56 = vld [vmem:[%s3330_s1 + $0x118] sm:$0xff]   ;;  %v2561_v59 = vld [vmem:[%s3330_s1 + $0x1d0] sm:$0xff]   ;;  %v2565_v63 = vld [vmem:[%s3330_s1 + $0x1c8] sm:$0xff]  }
  0x14   :  { %2233 = vmatpush3.bf16.msra.mxu0 %v2522_v18  ;;  %v2559_v57 = vld [vmem:[%s3330_s1 + $0x198] sm:$0xff]   ;;  %v2562_v60 = vld [vmem:[%s3330_s1 + $0x110] sm:$0xff]   ;;  %v2566_v0 = vld [vmem:[%s3330_s1 + $0x108] sm:$0xff]  }
  0x15   :  { %2255 = vmatpush3.bf16.msra.mxu1 %v2523_v19  ;;  %2234 = vmatprep.subr.bf16.mxu0 %v2524_v20  ;;  %v2563_v61 = vld [vmem:[%s3330_s1 + $0x190] sm:$0xff]   ;;  %v2567_v1 = vld [vmem:[%s3330_s1 + $0x188] sm:$0xff]   ;;  %v2568_v2 = vld [vmem:[%s3330_s1 + $0x140] sm:$0xff]  }
  0x16   :  { %2256 = vmatprep.subr.bf16.mxu1 %v2525_v21  ;;  %v2569_v3 = vld [vmem:[%s3330_s1 + $0x1c0] sm:$0xff]   ;;  %v29_v6 = vld [vmem:[%s3331_s0 + $0x10] sm:$0xff]  ;;  %v30_v9 = vld [vmem:[%s3331_s0 + $0x18] sm:$0xff] }
  0x17   :  { %v2570_v4 = vld [vmem:[%s3330_s1 + $0x100] sm:$0xff]   ;;  %v2030_v7 = vcombine.low %v29_v6, %v29_v6  ;;  %v2031_v8 = vcombine.high %v29_v6, %v29_v6  ;;  %v2032_v10 = vcombine.low %v30_v9, %v30_v9  ;;  %v2033_v11 = vcombine.high %v30_v9, %v30_v9  ;;  %v2576_v12 = vld [vmem:[%s3330_s1 + $0x278] sm:$0xff]   ;;  %v2580_v16 = vld [vmem:[%s3330_s1 + $0x270] sm:$0xff]  }
  0x18   :  { %2235 = vmatpush3.bf16.msra.mxu0 %v2526_v22  ;;  %v2571_v5 = vld [vmem:[%s3330_s1 + $0x180] sm:$0xff]   ;;  %v2577_v13 = vld [vmem:[%s3330_s1 + $0x2f8] sm:$0xff]   ;;  %v2581_v17 = vld [vmem:[%s3330_s1 + $0x2f0] sm:$0xff]  }
  0x19   :  { %2257 = vmatpush3.bf16.msra.mxu1 %v2527_v23  ;;  %2236 = vmatprep.subr.bf16.mxu0 %v2528_v24  ;;  %v2578_v14 = vld [vmem:[%s3330_s1 + $0x238] sm:$0xff]   ;;  %v2582_v18 = vld [vmem:[%s3330_s1 + $0x230] sm:$0xff]   ;;  %v2584_v20 = vld [vmem:[%s3330_s1 + $0x268] sm:$0xff]  }
  0x1a   :  { %2258 = vmatprep.subr.bf16.mxu1 %v2529_v25  ;;  %v2579_v15 = vld [vmem:[%s3330_s1 + $0x2b8] sm:$0xff]   ;;  %v2583_v19 = vld [vmem:[%s3330_s1 + $0x2b0] sm:$0xff]   ;;  %v2585_v21 = vld [vmem:[%s3330_s1 + $0x2e8] sm:$0xff]  }
  0x1b   :  { %v2586_v22 = vld [vmem:[%s3330_s1 + $0x228] sm:$0xff]   ;;  %v2588_v24 = vld [vmem:[%s3330_s1 + $0x260] sm:$0xff]   ;;  %v2596_v32 = vld [vmem:[%s3330_s1 + $0x250] sm:$0xff]  }
  0x1c   :  { %2237 = vmatpush3.bf16.msra.mxu0 %v2530_v26  ;;  %v2587_v23 = vld [vmem:[%s3330_s1 + $0x2a8] sm:$0xff]   ;;  %v2589_v25 = vld [vmem:[%s3330_s1 + $0x2e0] sm:$0xff]   ;;  %v2597_v33 = vld [vmem:[%s3330_s1 + $0x2d0] sm:$0xff]  }
  0x1d   :  { %2259 = vmatpush3.bf16.msra.mxu1 %v2531_v27  ;;  %2238 = vmatprep.subr.bf16.mxu0 %v2532_v28  ;;  %v2590_v26 = vld [vmem:[%s3330_s1 + $0x220] sm:$0xff]   ;;  %v2592_v28 = vld [vmem:[%s3330_s1 + $0x258] sm:$0xff]   ;;  %v2599_v35 = vld [vmem:[%s3330_s1 + $0x290] sm:$0xff]  }
  0x1e   :  { %2260 = vmatprep.subr.bf16.mxu1 %v2533_v29  ;;  %v2591_v27 = vld [vmem:[%s3330_s1 + $0x2a0] sm:$0xff]   ;;  %v2593_v29 = vld [vmem:[%s3330_s1 + $0x2d8] sm:$0xff]   ;;  %v2601_v37 = vld [vmem:[%s3330_s1 + $0x2c8] sm:$0xff]  }
  0x1f   :  { %v2632_v6 = vld [vmem:[%s3330_s1 + $0x350] sm:$0xff]  }
  0x20   :  { %2239 = vmatpush3.bf16.msra.mxu0 %v2534_v30  ;;  %v2594_v30 = vld [vmem:[%s3330_s1 + $0x218] sm:$0xff]   ;;  %v2635_v9 = vld [vmem:[%s3330_s1 + $0x390] sm:$0xff]  }
  0x21   :  { %2261 = vmatpush3.bf16.msra.mxu1 %v2535_v31  ;;  %2268 = vmatprep.subr.bf16.mxu0 %v2540_v38  ;;  %v2595_v31 = vld [vmem:[%s3330_s1 + $0x298] sm:$0xff]   ;;  %v2602_v38 = vld [vmem:[%s3330_s1 + $0x208] sm:$0xff]  }
  0x22   :  { %2290 = vmatprep.subr.bf16.mxu1 %v2541_v39  ;;  %v2603_v39 = vld [vmem:[%s3330_s1 + $0x288] sm:$0xff]  }
  0x23   :  { %1427 = vmatmul.mubr.bf16.vlgmr.msra.gmra.mxu0 %v2026_v34  ;;  %v2598_v34 = vld [vmem:[%s3330_s1 + $0x210] sm:$0xff]  }
  0x24   :  { %1467 = vmatmul.mubr.bf16.vlgmr.msra.gmra.mxu1 %v2028_v36  ;;  %2269 = vmatpush3.bf16.msra.mxu0 %v2542_v40  ;;  %v2600_v36 = vld [vmem:[%s3330_s1 + $0x248] sm:$0xff]   ;;  %v2604_v40 = vld [vmem:[%s3330_s1 + $0x240] sm:$0xff]  }
  0x25   :  { %2291 = vmatpush3.bf16.msra.mxu1 %v2543_v41  ;;  %2270 = vmatprep.subr.bf16.mxu0 %v2544_v42  ;;  %v2605_v41 = vld [vmem:[%s3330_s1 + $0x2c0] sm:$0xff]  }
  0x26   :  { %2292 = vmatprep.subr.bf16.mxu1 %v2545_v43  ;;  %1506 = vmatprep.mubr.bf16.mxu0 %v2031_v8  ;;  %v2606_v42 = vld [vmem:[%s3330_s1 + $0x200] sm:$0xff]   ;;  %v2634_v8 = vld [vmem:[%s3330_s1 + $0x310] sm:$0xff]  }
  0x27   :  { %1546 = vmatprep.mubr.bf16.mxu1 %v2033_v11  ;;  %v2607_v43 = vld [vmem:[%s3330_s1 + $0x280] sm:$0xff]   ;;  %v2637_v11 = vld [vmem:[%s3330_s1 + $0x3c8] sm:$0xff]  }
  0x28   :  { %2271 = vmatpush3.bf16.msra.mxu0 %v2546_v44  ;;  %v31_v44 = vld [vmem:[%s3331_s0 + $0x20] sm:$0xff] }
  0x29   :  { %2293 = vmatpush3.bf16.msra.mxu1 %v2547_v45  ;;  %2272 = vmatprep.subr.bf16.mxu0 %v2548_v46  ;;  %v32_v45 = vld [vmem:[%s3331_s0 + $0x28] sm:$0xff]  ;;  %v2034_v46 = vcombine.low %v31_v44, %v31_v44 }
  0x2a   :  { %2294 = vmatprep.subr.bf16.mxu1 %v2549_v47  ;;  %v2035_v47 = vcombine.high %v31_v44, %v31_v44  ;;  %v2668_v44 = vld [vmem:[%s3330_s1 + $0x450] sm:$0xff]  }
  0x2c   :  { %2273 = vmatpush3.bf16.msra.mxu0 %v2550_v48  ;;  %v2036_v48 = vcombine.low %v32_v45, %v32_v45 }
  0x2d   :  { %2295 = vmatpush3.bf16.msra.mxu1 %v2551_v49  ;;  %2274 = vmatprep.subr.bf16.mxu0 %v2552_v50  ;;  %v2037_v49 = vcombine.high %v32_v45, %v32_v45  ;;  %v2612_v50 = vld [vmem:[%s3330_s1 + $0x378] sm:$0xff]   ;;  %v2669_v45 = vld [vmem:[%s3330_s1 + $0x4d0] sm:$0xff]  }
  0x2e   :  { %2296 = vmatprep.subr.bf16.mxu1 %v2553_v51  ;;  %v2613_v51 = vld [vmem:[%s3330_s1 + $0x3f8] sm:$0xff]  }
  0x30   :  { %2275 = vmatpush3.bf16.msra.mxu0 %v2554_v52  ;;  %v2614_v52 = vld [vmem:[%s3330_s1 + $0x338] sm:$0xff]  }
  0x31   :  { %2297 = vmatpush3.bf16.msra.mxu1 %v2555_v53  ;;  %2276 = vmatprep.subr.bf16.mxu0 %v2556_v54  ;;  %v2615_v53 = vld [vmem:[%s3330_s1 + $0x3b8] sm:$0xff]   ;;  %v2616_v54 = vld [vmem:[%s3330_s1 + $0x370] sm:$0xff]  }
  0x32   :  { %2298 = vmatprep.subr.bf16.mxu1 %v2557_v55  ;;  %v2617_v55 = vld [vmem:[%s3330_s1 + $0x3f0] sm:$0xff]  }
  0x34   :  { %2277 = vmatpush3.bf16.msra.mxu0 %v2558_v56  ;;  %v2618_v56 = vld [vmem:[%s3330_s1 + $0x330] sm:$0xff]  }
  0x35   :  { %2299 = vmatpush3.bf16.msra.mxu1 %v2559_v57  ;;  %2278 = vmatprep.subr.bf16.mxu0 %v2560_v58  ;;  %v2619_v57 = vld [vmem:[%s3330_s1 + $0x3b0] sm:$0xff]   ;;  %v2620_v58 = vld [vmem:[%s3330_s1 + $0x368] sm:$0xff]  }
  0x36   :  { %2300 = vmatprep.subr.bf16.mxu1 %v2561_v59  ;;  %v2621_v59 = vld [vmem:[%s3330_s1 + $0x3e8] sm:$0xff]  }
  0x38   :  { %2279 = vmatpush3.bf16.msra.mxu0 %v2562_v60  ;;  %v2622_v60 = vld [vmem:[%s3330_s1 + $0x328] sm:$0xff]  }
  0x39   :  { %2301 = vmatpush3.bf16.msra.mxu1 %v2563_v61  ;;  %2280 = vmatprep.subr.bf16.mxu0 %v2564_v62  ;;  %v2623_v61 = vld [vmem:[%s3330_s1 + $0x3a8] sm:$0xff]   ;;  %v2624_v62 = vld [vmem:[%s3330_s1 + $0x360] sm:$0xff]  }
  0x3a   :  { %2302 = vmatprep.subr.bf16.mxu1 %v2565_v63  ;;  %v2625_v63 = vld [vmem:[%s3330_s1 + $0x3e0] sm:$0xff]  }
  0x3c   :  { %2281 = vmatpush3.bf16.msra.mxu0 %v2566_v0  ;;  %v2626_v0 = vld [vmem:[%s3330_s1 + $0x320] sm:$0xff]  }
  0x3d   :  { %2303 = vmatpush3.bf16.msra.mxu1 %v2567_v1  ;;  %2282 = vmatprep.subr.bf16.mxu0 %v2568_v2  ;;  %v2627_v1 = vld [vmem:[%s3330_s1 + $0x3a0] sm:$0xff]   ;;  %v2628_v2 = vld [vmem:[%s3330_s1 + $0x358] sm:$0xff]  }
  0x3e   :  { %2304 = vmatprep.subr.bf16.mxu1 %v2569_v3  ;;  %v2629_v3 = vld [vmem:[%s3330_s1 + $0x3d8] sm:$0xff]  }
  0x40   :  { %2283 = vmatpush3.bf16.msra.mxu0 %v2570_v4  ;;  %v2630_v4 = vld [vmem:[%s3330_s1 + $0x318] sm:$0xff]  }
  0x41   :  { %2305 = vmatpush3.bf16.msra.mxu1 %v2571_v5  ;;  %2312 = vmatprep.subr.bf16.mxu0 %v2576_v12  ;;  %v2631_v5 = vld [vmem:[%s3330_s1 + $0x398] sm:$0xff]   ;;  %v2638_v12 = vld [vmem:[%s3330_s1 + $0x308] sm:$0xff]  }
  0x42   :  { %2334 = vmatprep.subr.bf16.mxu1 %v2577_v13  ;;  %v2639_v13 = vld [vmem:[%s3330_s1 + $0x388] sm:$0xff]  }
  0x43   :  { %1507 = vmatmul.mubr.bf16.vlgmr.msra.gmra.mxu0 %v2030_v7  ;;  %v2633_v7 = vld [vmem:[%s3330_s1 + $0x3d0] sm:$0xff]  }
  0x44   :  { %1547 = vmatmul.mubr.bf16.vlgmr.msra.gmra.mxu1 %v2032_v10  ;;  %2313 = vmatpush3.bf16.msra.mxu0 %v2578_v14  ;;  %v2636_v10 = vld [vmem:[%s3330_s1 + $0x348] sm:$0xff]   ;;  %v2640_v14 = vld [vmem:[%s3330_s1 + $0x340] sm:$0xff]  }
  0x45   :  { %2335 = vmatpush3.bf16.msra.mxu1 %v2579_v15  ;;  %2314 = vmatprep.subr.bf16.mxu0 %v2580_v16  ;;  %v2641_v15 = vld [vmem:[%s3330_s1 + $0x3c0] sm:$0xff]  }
  0x46   :  { %2336 = vmatprep.subr.bf16.mxu1 %v2581_v17  ;;  %1586 = vmatprep.mubr.bf16.mxu0 %v2035_v47  ;;  %v2642_v16 = vld [vmem:[%s3330_s1 + $0x300] sm:$0xff]   ;;  %v2671_v47 = vld [vmem:[%s3330_s1 + $0x490] sm:$0xff]  }
  0x47   :  { %1626 = vmatprep.mubr.bf16.mxu1 %v2037_v49  ;;  %v2643_v17 = vld [vmem:[%s3330_s1 + $0x380] sm:$0xff]   ;;  %v2673_v49 = vld [vmem:[%s3330_s1 + $0x4c8] sm:$0xff]  }
  0x48   :  { %2315 = vmatpush3.bf16.msra.mxu0 %v2582_v18  ;;  %v33_v18 = vld [vmem:[%s3331_s0 + $0x30] sm:$0xff] }
  0x49   :  { %2337 = vmatpush3.bf16.msra.mxu1 %v2583_v19  ;;  %2316 = vmatprep.subr.bf16.mxu0 %v2584_v20  ;;  %v34_v19 = vld [vmem:[%s3331_s0 + $0x38] sm:$0xff]  ;;  %v2038_v20 = vcombine.low %v33_v18, %v33_v18 }
  0x4a   :  { %2338 = vmatprep.subr.bf16.mxu1 %v2585_v21  ;;  %v2039_v21 = vcombine.high %v33_v18, %v33_v18  ;;  %v2690_v18 = vld [vmem:[%s3332_s3 + $0x8] sm:$0xff]  }
  0x4c   :  { %2317 = vmatpush3.bf16.msra.mxu0 %v2586_v22  ;;  %v2040_v22 = vcombine.low %v34_v19, %v34_v19 }
  0x4d   :  { %2339 = vmatpush3.bf16.msra.mxu1 %v2587_v23  ;;  %2318 = vmatprep.subr.bf16.mxu0 %v2588_v24  ;;  %v2648_v23 = vld [vmem:[%s3330_s1 + $0x478] sm:$0xff]   ;;  %v2041_v24 = vcombine.high %v34_v19, %v34_v19  ;;  %v2691_v19 = vld [vmem:[%s3332_s3] sm:$0xff]  }
  0x4e   :  { %2340 = vmatprep.subr.bf16.mxu1 %v2589_v25  ;;  %v2649_v25 = vld [vmem:[%s3330_s1 + $0x4f8] sm:$0xff]  }
  0x50   :  { %2319 = vmatpush3.bf16.msra.mxu0 %v2590_v26  ;;  %v2650_v26 = vld [vmem:[%s3330_s1 + $0x438] sm:$0xff]  }
  0x51   :  { %2341 = vmatpush3.bf16.msra.mxu1 %v2591_v27  ;;  %2320 = vmatprep.subr.bf16.mxu0 %v2592_v28  ;;  %v2651_v27 = vld [vmem:[%s3330_s1 + $0x4b8] sm:$0xff]   ;;  %v2652_v28 = vld [vmem:[%s3330_s1 + $0x470] sm:$0xff]  }
  0x52   :  { %2342 = vmatprep.subr.bf16.mxu1 %v2593_v29  ;;  %v2653_v29 = vld [vmem:[%s3330_s1 + $0x4f0] sm:$0xff]  }
  0x54   :  { %2321 = vmatpush3.bf16.msra.mxu0 %v2594_v30  ;;  %v2654_v30 = vld [vmem:[%s3330_s1 + $0x430] sm:$0xff]  }
  0x55   :  { %2343 = vmatpush3.bf16.msra.mxu1 %v2595_v31  ;;  %2322 = vmatprep.subr.bf16.mxu0 %v2596_v32  ;;  %v2655_v31 = vld [vmem:[%s3330_s1 + $0x4b0] sm:$0xff]   ;;  %v2656_v32 = vld [vmem:[%s3330_s1 + $0x468] sm:$0xff]  }
  0x56   :  { %2344 = vmatprep.subr.bf16.mxu1 %v2597_v33  ;;  %v2657_v33 = vld [vmem:[%s3330_s1 + $0x4e8] sm:$0xff]  }
  0x58   :  { %2323 = vmatpush3.bf16.msra.mxu0 %v2598_v34  ;;  %v2658_v34 = vld [vmem:[%s3330_s1 + $0x428] sm:$0xff]  }
  0x59   :  { %2345 = vmatpush3.bf16.msra.mxu1 %v2599_v35  ;;  %2324 = vmatprep.subr.bf16.mxu0 %v2600_v36  ;;  %v2659_v35 = vld [vmem:[%s3330_s1 + $0x4a8] sm:$0xff]   ;;  %v2660_v36 = vld [vmem:[%s3330_s1 + $0x460] sm:$0xff]  }
  0x5a   :  { %2346 = vmatprep.subr.bf16.mxu1 %v2601_v37  ;;  %v2661_v37 = vld [vmem:[%s3330_s1 + $0x4e0] sm:$0xff]  }
  0x5c   :  { %2325 = vmatpush3.bf16.msra.mxu0 %v2602_v38  ;;  %v2662_v38 = vld [vmem:[%s3330_s1 + $0x420] sm:$0xff]  }
  0x5d   :  { %2347 = vmatpush3.bf16.msra.mxu1 %v2603_v39  ;;  %2326 = vmatprep.subr.bf16.mxu0 %v2604_v40  ;;  %v2663_v39 = vld [vmem:[%s3330_s1 + $0x4a0] sm:$0xff]   ;;  %v2664_v40 = vld [vmem:[%s3330_s1 + $0x458] sm:$0xff]  }
  0x5e   :  { %2348 = vmatprep.subr.bf16.mxu1 %v2605_v41  ;;  %v2665_v41 = vld [vmem:[%s3330_s1 + $0x4d8] sm:$0xff]  }
  0x60   :  { %2327 = vmatpush3.bf16.msra.mxu0 %v2606_v42  ;;  %v2666_v42 = vld [vmem:[%s3330_s1 + $0x418] sm:$0xff]  }
  0x61   :  { %2349 = vmatpush3.bf16.msra.mxu1 %v2607_v43  ;;  %2356 = vmatprep.subr.bf16.mxu0 %v2612_v50  ;;  %v2667_v43 = vld [vmem:[%s3330_s1 + $0x498] sm:$0xff]   ;;  %v2674_v50 = vld [vmem:[%s3330_s1 + $0x408] sm:$0xff]  }
  0x62   :  { %2378 = vmatprep.subr.bf16.mxu1 %v2613_v51  ;;  %v2675_v51 = vld [vmem:[%s3330_s1 + $0x488] sm:$0xff]  }
  0x63   :  { %1587 = vmatmul.mubr.bf16.vlgmr.msra.gmra.mxu0 %v2034_v46  ;;  %v2670_v46 = vld [vmem:[%s3330_s1 + $0x410] sm:$0xff]  }
  0x64   :  { %1627 = vmatmul.mubr.bf16.vlgmr.msra.gmra.mxu1 %v2036_v48  ;;  %2357 = vmatpush3.bf16.msra.mxu0 %v2614_v52  ;;  %v2672_v48 = vld [vmem:[%s3330_s1 + $0x448] sm:$0xff]   ;;  %v2676_v52 = vld [vmem:[%s3330_s1 + $0x440] sm:$0xff]  }
  0x65   :  { %2379 = vmatpush3.bf16.msra.mxu1 %v2615_v53  ;;  %2358 = vmatprep.subr.bf16.mxu0 %v2616_v54  ;;  %v2677_v53 = vld [vmem:[%s3330_s1 + $0x4c0] sm:$0xff]  }
  0x66   :  { %2380 = vmatprep.subr.bf16.mxu1 %v2617_v55  ;;  %1666 = vmatprep.mubr.bf16.mxu0 %v2039_v21  ;;  %v2678_v54 = vld [vmem:[%s3330_s1 + $0x400] sm:$0xff]   ;;  %v2693_v21 = vld [vmem:[%s3334_s5 + $0x30] sm:$0xff]  }
  0x67   :  { %1706 = vmatprep.mubr.bf16.mxu1 %v2041_v24  ;;  %v2679_v55 = vld [vmem:[%s3330_s1 + $0x480] sm:$0xff]   ;;  %v2696_v24 = vld [vmem:[%s3334_s5 + $0x18] sm:$0xff]  }
  0x68   :  { %2359 = vmatpush3.bf16.msra.mxu0 %v2618_v56  ;;  %v35_v56 = vld [vmem:[%s3331_s0 + $0x40] sm:$0xff] }
  0x69   :  { %2381 = vmatpush3.bf16.msra.mxu1 %v2619_v57  ;;  %2360 = vmatprep.subr.bf16.mxu0 %v2620_v58  ;;  %v2042_v57 = vcombine.low %v35_v56, %v35_v56  ;;  %v2043_v58 = vcombine.high %v35_v56, %v35_v56 }
  0x6a   :  { %2382 = vmatprep.subr.bf16.mxu1 %v2621_v59  ;;  %v36_v59 = vld [vmem:[%s3331_s0 + $0x48] sm:$0xff] }
  0x6c   :  { %2361 = vmatpush3.bf16.msra.mxu0 %v2622_v60  ;;  %v2044_v60 = vcombine.low %v36_v59, %v36_v59 }
  0x6d   :  { %2383 = vmatpush3.bf16.msra.mxu1 %v2623_v61  ;;  %2362 = vmatprep.subr.bf16.mxu0 %v2624_v62  ;;  %v2045_v61 = vcombine.high %v36_v59, %v36_v59  ;;  %v2700_v62 = vmov 0.0  }
  0x6e   :  { %2384 = vmatprep.subr.bf16.mxu1 %v2625_v63  ;;  %v2684_v63 = vld [vmem:[%s3332_s3 + $0x38] sm:$0xff]  }
  0x70   :  { %2363 = vmatpush3.bf16.msra.mxu0 %v2626_v0  ;;  %v2685_v0 = vld [vmem:[%s3332_s3 + $0x30] sm:$0xff]  }
  0x71   :  { %2385 = vmatpush3.bf16.msra.mxu1 %v2627_v1  ;;  %2364 = vmatprep.subr.bf16.mxu0 %v2628_v2  ;;  %v2686_v1 = vld [vmem:[%s3332_s3 + $0x28] sm:$0xff]   ;;  %v2687_v2 = vld [vmem:[%s3332_s3 + $0x20] sm:$0xff]  }
  0x72   :  { %2386 = vmatprep.subr.bf16.mxu1 %v2629_v3  ;;  %v2688_v3 = vld [vmem:[%s3332_s3 + $0x18] sm:$0xff]  }
  0x74   :  { %2365 = vmatpush3.bf16.msra.mxu0 %v2630_v4 }
  0x75   :  { %2387 = vmatpush3.bf16.msra.mxu1 %v2631_v5  ;;  %2366 = vmatprep.subr.bf16.mxu0 %v2632_v6  ;;  %v2025_v6 = vld [vmem:[%s3333_s2] ss:$0 sm:$0xff] }
  0x76   :  { %2388 = vmatprep.subr.bf16.mxu1 %v2633_v7 }
  0x78   :  { %2367 = vmatpush3.bf16.msra.mxu0 %v2634_v8 }
  0x79   :  { %2389 = vmatpush3.bf16.msra.mxu1 %v2635_v9  ;;  %2368 = vmatprep.subr.bf16.mxu0 %v2636_v10 }
  0x7a   :  { %2390 = vmatprep.subr.bf16.mxu1 %v2637_v11  ;;  %v2689_v11 = vld [vmem:[%s3332_s3 + $0x10] sm:$0xff]  }
  0x7c   :  { %2369 = vmatpush3.bf16.msra.mxu0 %v2638_v12 }
  0x7d   :  { %2391 = vmatpush3.bf16.msra.mxu1 %v2639_v13  ;;  %2370 = vmatprep.subr.bf16.mxu0 %v2640_v14 }
  0x7e   :  { %2392 = vmatprep.subr.bf16.mxu1 %v2641_v15 }
  0x80   :  { %2371 = vmatpush3.bf16.msra.mxu0 %v2642_v16 }
  0x81   :  { %2393 = vmatpush3.bf16.msra.mxu1 %v2643_v17  ;;  %2400 = vmatprep.subr.bf16.mxu0 %v2648_v23  ;;  %v2695_v23 = vld [vmem:[%s3334_s5 + $0x20] sm:$0xff]  }
  0x82   :  { %2422 = vmatprep.subr.bf16.mxu1 %v2649_v25 }
  0x83   :  { %1667 = vmatmul.mubr.bf16.vlgmr.msra.gmra.mxu0 %v2038_v20  ;;  %v2692_v20 = vld [vmem:[%s3334_s5 + $0x38] sm:$0xff]  }
  0x84   :  { %1707 = vmatmul.mubr.bf16.vlgmr.msra.gmra.mxu1 %v2040_v22  ;;  %2401 = vmatpush3.bf16.msra.mxu0 %v2650_v26  ;;  %v2694_v22 = vld [vmem:[%s3334_s5 + $0x28] sm:$0xff]  }
  0x85   :  { %2423 = vmatpush3.bf16.msra.mxu1 %v2651_v27  ;;  %2402 = vmatprep.subr.bf16.mxu0 %v2652_v28 }
  0x86   :  { %2424 = vmatprep.subr.bf16.mxu1 %v2653_v29  ;;  %1746 = vmatprep.mubr.bf16.mxu0 %v2043_v58  ;;  %v2697_v29 = vld [vmem:[%s3334_s5 + $0x10] sm:$0xff]  }
  0x87   :  { %1786 = vmatprep.mubr.bf16.mxu1 %v2045_v61 }
  0x88   :  { %2403 = vmatpush3.bf16.msra.mxu0 %v2654_v30 }
  0x89   :  { %2425 = vmatpush3.bf16.msra.mxu1 %v2655_v31  ;;  %2404 = vmatprep.subr.bf16.mxu0 %v2656_v32 }
  0x8a   :  { %2426 = vmatprep.subr.bf16.mxu1 %v2657_v33 }
  0x8c   :  { %2405 = vmatpush3.bf16.msra.mxu0 %v2658_v34 }
  0x8d   :  { %2427 = vmatpush3.bf16.msra.mxu1 %v2659_v35  ;;  %2406 = vmatprep.subr.bf16.mxu0 %v2660_v36 }
  0x8e   :  { %2428 = vmatprep.subr.bf16.mxu1 %v2661_v37 }
  0x90   :  { %2407 = vmatpush3.bf16.msra.mxu0 %v2662_v38 }
  0x91   :  { %2429 = vmatpush3.bf16.msra.mxu1 %v2663_v39  ;;  %2408 = vmatprep.subr.bf16.mxu0 %v2664_v40 }
  0x92   :  { %2430 = vmatprep.subr.bf16.mxu1 %v2665_v41 }
  0x94   :  { %2409 = vmatpush3.bf16.msra.mxu0 %v2666_v42 }
  0x95   :  { %2431 = vmatpush3.bf16.msra.mxu1 %v2667_v43  ;;  %2410 = vmatprep.subr.bf16.mxu0 %v2668_v44 }
  0x96   :  { %2432 = vmatprep.subr.bf16.mxu1 %v2669_v45 }
  0x98   :  { %2411 = vmatpush3.bf16.msra.mxu0 %v2670_v46 }
  0x99   :  { %2433 = vmatpush3.bf16.msra.mxu1 %v2671_v47  ;;  %2412 = vmatprep.subr.bf16.mxu0 %v2672_v48 }
  0x9a   :  { %2434 = vmatprep.subr.bf16.mxu1 %v2673_v49 }
  0x9c   :  { %2413 = vmatpush3.bf16.msra.mxu0 %v2674_v50 }
  0x9d   :  { %2435 = vmatpush3.bf16.msra.mxu1 %v2675_v51  ;;  %2414 = vmatprep.subr.bf16.mxu0 %v2676_v52 }
  0x9e   :  { %2436 = vmatprep.subr.bf16.mxu1 %v2677_v53 }
  0xa0   :  { %2415 = vmatpush3.bf16.msra.mxu0 %v2678_v54 }
  0xa1   :  { %2437 = vmatpush3.bf16.msra.mxu1 %v2679_v55  ;;  %2462 = vmatprep.subr.bf16.mxu0 %v2700_v62 }
  0xa2   :  { %2482 = vmatprep.subr.bf16.mxu1 %v2700_v62 }
  0xa3   :  { %1747 = vmatmul.mubr.bf16.vlgmr.msra.gmra.mxu0 %v2042_v57 }
  0xa4   :  { %1787 = vmatmul.mubr.bf16.vlgmr.msra.gmra.mxu1 %v2044_v60  ;;  %2463 = vmatpush3.bf16.msra.mxu0 %v2684_v63 }
  0xa5   :  { %2464 = vmatprep.subr.bf16.mxu0 %v2700_v62  ;;  %2478 = vmatprep.mubr.msk.bf16.mxu0 %vm2701_vm0, %v2700_v62 }
  0xa6   :  { %2498 = vmatprep.mubr.msk.bf16.mxu1 %vm2701_vm0, %v2700_v62  ;;  %2483 = vmatpush3.bf16.msra.mxu1 %v2692_v20 }
  0xa7   :  { %2484 = vmatprep.subr.bf16.mxu1 %v2700_v62 }
  0xa8   :  { %2465 = vmatpush3.bf16.msra.mxu0 %v2685_v0 }
  0xa9   :  { %2466 = vmatprep.subr.bf16.mxu0 %v2700_v62 }
  0xaa   :  { %2485 = vmatpush3.bf16.msra.mxu1 %v2693_v21 }
  0xab   :  { %2486 = vmatprep.subr.bf16.mxu1 %v2700_v62 }
  0xac   :  { %2467 = vmatpush3.bf16.msra.mxu0 %v2686_v1 }
  0xad   :  { %2468 = vmatprep.subr.bf16.mxu0 %v2700_v62 }
  0xae   :  { %2487 = vmatpush3.bf16.msra.mxu1 %v2694_v22 }
  0xaf   :  { %2488 = vmatprep.subr.bf16.mxu1 %v2700_v62 }
  0xb0   :  { %2469 = vmatpush3.bf16.msra.mxu0 %v2687_v2 }
  0xb1   :  { %2470 = vmatprep.subr.bf16.mxu0 %v2700_v62 }
  0xb2   :  { %2489 = vmatpush3.bf16.msra.mxu1 %v2695_v23 }
  0xb3   :  { %2490 = vmatprep.subr.bf16.mxu1 %v2700_v62 }
  0xb4   :  { %2471 = vmatpush3.bf16.msra.mxu0 %v2688_v3 }
  0xb5   :  { %2472 = vmatprep.subr.bf16.mxu0 %v2700_v62 }
  0xb6   :  { %2491 = vmatpush3.bf16.msra.mxu1 %v2696_v24 }
  0xb7   :  { %2492 = vmatprep.subr.bf16.mxu1 %v2700_v62 }
  0xb8   :  { %2473 = vmatpush3.bf16.msra.mxu0 %v2689_v11 }
  0xb9   :  { %2474 = vmatprep.subr.bf16.mxu0 %v2700_v62 }
  0xba   :  { %2493 = vmatpush3.bf16.msra.mxu1 %v2697_v29 }
  0xbb   :  { %2494 = vmatprep.subr.bf16.mxu1 %v2700_v62 }
  0xbc   :  { %2475 = vmatpush3.bf16.msra.mxu0 %v2690_v18 }
  0xbd   :  { %2476 = vmatprep.subr.bf16.mxu0 %v2700_v62 }
  0xc0   :  { %2477 = vmatpush3.bf16.msra.mxu0 %v2691_v19 }
  0xe3   :  { %v2240_v4 = vpop.f32.mrf.mxu0 }
  0xe4   :  { %v2262_v5 = vpop.f32.mrf.mxu1 }
  0xe5   :  { %v2241_v7 = vpop.f32.mrf.mxu0 }
  0xe6   :  { %v2263_v8 = vpop.f32.mrf.mxu1  ;;  %v2242_v9 = vadd.f32 %v2241_v7, %v2240_v4 }
  0xe7   :  { %v2264_v10 = vadd.f32 %v2263_v8, %v2262_v5  ;;  %v2243_v12 = vpop.f32.mrf.mxu0 }
  0xe8   :  { %v2265_v13 = vpop.f32.mrf.mxu1  ;;  %v1429_v14 = vadd.f32 %v2242_v9, %v2025_v6 }
  0xe9   :  { %v2244_v15 = vpop.f32.mrf.mxu0  ;;  %v2698_v13 = vld [vmem:[%s3334_s5 + $0x8] sm:$0xff]  }
  0xea   :  { %v2266_v16 = vpop.f32.mrf.mxu1  ;;  %v1469_v17 = vadd.f32 %v2264_v10, %v1429_v14  ;;  %2495 = vmatpush3.bf16.msra.mxu1 %v2698_v13  ;;  %v2699_v14 = vld [vmem:[%s3334_s5] sm:$0xff]  }
  0xeb   :  { %2496 = vmatprep.subr.bf16.mxu1 %v2700_v62  ;;  %v2206_v15 = vld [vmem:[%s3335_s4] ss:$0 sm:$0xff] }
  0xec   :  { %v2215_v62 = vld [vmem:[%s3336_s6] ss:$0 sm:$0xff] }
  0xee   :  { %2497 = vmatpush3.bf16.msra.mxu1 %v2699_v14 }
 0x103   :  { %v2284_v25 = vpop.f32.mrf.mxu0 }
 0x104   :  { %v2306_v26 = vpop.f32.mrf.mxu1 }
 0x105   :  { %v2285_v27 = vpop.f32.mrf.mxu0 }
 0x106   :  { %v2307_v28 = vpop.f32.mrf.mxu1  ;;  %v2286_v30 = vadd.f32 %v2285_v27, %v2284_v25 }
 0x107   :  { %v2308_v31 = vadd.f32 %v2307_v28, %v2306_v26  ;;  %v2287_v32 = vpop.f32.mrf.mxu0 }
 0x108   :  { %v2309_v33 = vpop.f32.mrf.mxu1  ;;  %v1509_v34 = vadd.f32 %v2286_v30, %v1469_v17 }
 0x109   :  { %v2288_v35 = vpop.f32.mrf.mxu0 }
 0x10a   :  { %v2310_v36 = vpop.f32.mrf.mxu1  ;;  %v1549_v37 = vadd.f32 %v2308_v31, %v1509_v34 }
 0x123   :  { %v2328_v38 = vpop.f32.mrf.mxu0 }
 0x124   :  { %v2350_v39 = vpop.f32.mrf.mxu1 }
 0x125   :  { %v2329_v40 = vpop.f32.mrf.mxu0 }
 0x126   :  { %v2351_v41 = vpop.f32.mrf.mxu1  ;;  %v2330_v54 = vadd.f32 %v2329_v40, %v2328_v38 }
 0x127   :  { %v2331_v42 = vpop.f32.mrf.mxu0  ;;  %v2352_v56 = vadd.f32 %v2351_v41, %v2350_v39 }
 0x128   :  { %v2353_v43 = vpop.f32.mrf.mxu1  ;;  %v1589_v55 = vadd.f32 %v2330_v54, %v1549_v37 }
 0x129   :  { %v2332_v44 = vpop.f32.mrf.mxu0 }
 0x12a   :  { %v2354_v45 = vpop.f32.mrf.mxu1  ;;  %v1629_v58 = vadd.f32 %v2352_v56, %v1589_v55 }
 0x143   :  { %v2372_v46 = vpop.f32.mrf.mxu0 }
 0x144   :  { %v2394_v47 = vpop.f32.mrf.mxu1 }
 0x145   :  { %v2373_v48 = vpop.f32.mrf.mxu0 }
 0x146   :  { %v2395_v49 = vpop.f32.mrf.mxu1  ;;  %v2374_v57 = vadd.f32 %v2373_v48, %v2372_v46 }
 0x147   :  { %v2375_v50 = vpop.f32.mrf.mxu0  ;;  %v2396_v60 = vadd.f32 %v2395_v49, %v2394_v47 }
 0x148   :  { %v2397_v51 = vpop.f32.mrf.mxu1  ;;  %v1669_v59 = vadd.f32 %v2374_v57, %v1629_v58 }
 0x149   :  { %v2376_v52 = vpop.f32.mrf.mxu0 }
 0x14a   :  { %v2398_v53 = vpop.f32.mrf.mxu1  ;;  %v1709_v2 = vadd.f32 %v2396_v60, %v1669_v59 }
 0x163   :  { %v2416_v61 = vpop.f32.mrf.mxu0 }
 0x164   :  { %v2438_v63 = vpop.f32.mrf.mxu1 }
 0x165   :  { %v2417_v0 = vpop.f32.mrf.mxu0 }
 0x166   :  { %v2439_v1 = vpop.f32.mrf.mxu1  ;;  %v2418_v3 = vadd.f32 %v2417_v0, %v2416_v61 }
 0x167   :  { %v2419_v4 = vpop.f32.mrf.mxu0  ;;  %v2440_v7 = vadd.f32 %v2439_v1, %v2438_v63 }
 0x168   :  { %v2441_v5 = vpop.f32.mrf.mxu1  ;;  %v1749_v6 = vadd.f32 %v2418_v3, %v1709_v2 }
 0x169   :  { %v2420_v8 = vpop.f32.mrf.mxu0 }
 0x16a   :  { %v2442_v9 = vpop.f32.mrf.mxu1  ;;  %v1789_v10 = vadd.f32 %v2440_v7, %v1749_v6 }
 0x16c   :  { %v1794_v11 = vmax.f32 %v1789_v10, 0.0 }
 0x16e   :  { %v1795_v12 = vpack.c.bf16 %v1794_v11, %v1794_v11 }
 0x170   :  { %2479 = vmatmul.mubr.bf16.vlgmr.msra.gmra.mxu0 %v1795_v12 }
 0x230   :  { %v1901_v16 = vpop.f32.mrf.mxu0 }
 0x231   :  { %v1902_v17 = vadd.f32 %v2206_v15, %v1901_v16 }
 0x232   :  { %v2480_v18 = vpop.f32.mrf.mxu0 }
 0x233   :  { %v1907_v19 = vmax.f32 %v1902_v17, 0.0 }
 0x234   :  { %v1904_v20 = vpop.f32.mrf.mxu0 }
 0x235   :  { %v1908_v21 = vpack.c.bf16 %v1907_v19, %v1907_v19 }
 0x236   :  { %v2481_v22 = vpop.f32.mrf.mxu0 }
 0x237   :  { %2499 = vmatmul.mubr.bf16.vlgmr.msra.gmra.mxu1 %v1908_v21 }
 0x2f7   :  { %v2014_v23 = vpop.f32.mrf.mxu1 }
 0x2f8   :  { %v2015_v24 = vadd.f32 %v2215_v62, %v2014_v23 }
 0x2f9   :  { %v2500_v25 = vpop.f32.mrf.mxu1 }
 0x2fa   :  { %2020 = vst [vmem:[%s3337_s7] sm:$0xff] %v2015_v24 }
 0x2fb   :  { %v2017_v26 = vpop.f32.mrf.mxu1 }
 0x2fd   :  { %v2501_v27 = vpop.f32.mrf.mxu1 }

</bundles_post_ra>
